<compile_context>
chip_gen: v6e
topology: v6e:2x2x1
jax: 0.10.0
libtpu: 0.0.40
codegen_flags: <defaults>
</compile_context>

<pallas_src>
import jax
import jax.numpy as jnp
from jax.experimental import pallas as pl
from jax.experimental.pallas import tpu as pltpu


# ----------------------------------------------------------------------------
# Pallas kernel: Y = relu(X @ W + b).  X, W bf16; accumulate + epilogue in f32;
# store bf16 for the next layer.  Used for the three conv layers (im2col GEMM).
# ----------------------------------------------------------------------------
def _gemm_bias_relu_kernel(x_ref, w_ref, b_ref, o_ref):
    y = jnp.dot(x_ref[...], w_ref[...], preferred_element_type=jnp.float32)
    y = jnp.maximum(y + b_ref[...], 0.0)          # f32 epilogue (v5e-safe)
    o_ref[...] = y.astype(o_ref.dtype)


def _row_tiling(M, steps=2):
    """Row tile (multiple of 8) and padded M giving exactly `steps` grid steps.

    Two steps keep both v7x TensorCores busy while keeping grid overhead at
    ~0.7 us per conv; v5e/v6e (1 TC) are unaffected.
    """
    tm = ((M + steps - 1) // steps + 7) // 8 * 8
    return tm, tm * steps


def pallas_conv_gemm(patches, w_mat, b, *, steps=2):
    """patches: (M, K) bf16, w_mat: (K, N) bf16, b: (N,) f32 -> (M, N) bf16."""
    M, K = patches.shape
    Kw, N = w_mat.shape
    assert K == Kw, (K, Kw)

    TM, Mp = _row_tiling(M, steps)
    if Mp != M:
        patches = jnp.pad(patches, ((0, Mp - M), (0, 0)))

    out = pl.pallas_call(
        _gemm_bias_relu_kernel,
        out_shape=jax.ShapeDtypeStruct((Mp, N), jnp.bfloat16),
        grid_spec=pltpu.PrefetchScalarGridSpec(
            num_scalar_prefetch=0,
            grid=(Mp // TM,),
            in_specs=[
                pl.BlockSpec((TM, K), lambda i: (i, 0)),   # row tile of patches
                pl.BlockSpec((K, N), lambda i: (0, 0)),    # full weight, resident
                pl.BlockSpec((1, N), lambda i: (0, 0)),    # bias row (f32)
            ],
            out_specs=pl.BlockSpec((TM, N), lambda i: (i, 0)),
        ),
        compiler_params=pltpu.CompilerParams(
            dimension_semantics=("parallel",)),
    )(patches, w_mat, b.reshape(1, N))
    return out[:M] if Mp != M else out


# ----------------------------------------------------------------------------
# Fused FC head: out = relu(X @ W1 + b1) @ W2 + b2 in ONE grid step.
# W1 (bf16, 2.2 MB) is fully VMEM-resident; X is a single full block (no
# K-slicing); fc2 runs in the same kernel epilogue.
# ----------------------------------------------------------------------------
def _fc_head_kernel(x_ref, w1_ref, b1_ref, w2_ref, b2_ref, o_ref):
    h = jnp.dot(x_ref[...], w1_ref[...], preferred_element_type=jnp.float32)
    h = jnp.maximum(h + b1_ref[...], 0.0)                       # (Bp, 100) f32
    o_ref[...] = (jnp.dot(h, w2_ref[...],
                          preferred_element_type=jnp.float32)
                  + b2_ref[...])                                # (Bp, 1) f32


def pallas_fc_head(x, w1, b1, w2, b2):
    """x: (B, K) bf16, w1: (K, H) bf16, b1: (H,) f32, w2: (H, N) f32,
    b2: (N,) f32 -> (B, N) f32."""
    B, K = x.shape
    Kw, H = w1.shape
    N = w2.shape[1]
    assert K == Kw, (K, Kw)

    Bp = max((B + 7) // 8 * 8, 8)              # pad batch to a multiple of 8
    if Bp != B:
        x = jnp.pad(x, ((0, Bp - B), (0, 0)))

    out = pl.pallas_call(
        _fc_head_kernel,
        out_shape=jax.ShapeDtypeStruct((Bp, N), jnp.float32),
        grid_spec=pltpu.PrefetchScalarGridSpec(
            num_scalar_prefetch=0,
            grid=(1,),
            in_specs=[
                pl.BlockSpec((Bp, K), lambda i: (0, 0)),   # full X block
                pl.BlockSpec((K, H), lambda i: (0, 0)),    # resident W1 (bf16)
                pl.BlockSpec((1, H), lambda i: (0, 0)),    # b1
                pl.BlockSpec((H, N), lambda i: (0, 0)),    # W2 (tiny, f32)
                pl.BlockSpec((1, N), lambda i: (0, 0)),    # b2
            ],
            out_specs=pl.BlockSpec((Bp, N), lambda i: (0, 0)),
        ),
        compiler_params=pltpu.CompilerParams(
            dimension_semantics=("arbitrary",)),
    )(x, w1, b1.reshape(1, H), w2, b2.reshape(1, N))
    return out[:B]


# ----------------------------------------------------------------------------
# Conv2d(k=5, stride=2, pad=2) + ReLU  ==  im2col (glue) + Pallas GEMM kernel.
# ----------------------------------------------------------------------------
def _im2col(x_nhwc, k, stride, pad):
    B, H, W, C = x_nhwc.shape
    xp = jnp.pad(x_nhwc, ((0, 0), (pad, pad), (pad, pad), (0, 0)))
    Ho = (H + 2 * pad - k) // stride + 1
    Wo = (W + 2 * pad - k) // stride + 1
    cols = []
    for i in range(k):
        for j in range(k):
            cols.append(
                xp[:,
                   i:i + (Ho - 1) * stride + 1:stride,
                   j:j + (Wo - 1) * stride + 1:stride, :])
    patches = jnp.stack(cols, axis=3)                 # (B, Ho, Wo, k*k, C)
    return patches.reshape(B * Ho * Wo, k * k * C), (B, Ho, Wo)


def conv2d_relu(x_nhwc, w_mat, b, *, k=5, stride=2, pad=2, steps=2):
    cout = w_mat.shape[1]
    patches, (B, Ho, Wo) = _im2col(x_nhwc, k, stride, pad)
    y = pallas_conv_gemm(patches, w_mat, b, steps=steps)
    return y.reshape(B, Ho, Wo, cout)


# ----------------------------------------------------------------------------
# Parameter init (deterministic, synthetic stand-in for layer_init/orthogonal).
# ----------------------------------------------------------------------------
def init_params(key):
    ks = jax.random.split(key, 5)

    def w_init(k, shape, std):
        fan_in = 1
        for d in shape[:-1]:
            fan_in *= d
        return (jax.random.normal(k, shape, jnp.float32)
                * (std / jnp.sqrt(jnp.float32(fan_in))))

    # Conv weights generated HWIO, reshaped once to (k*k*cin, cout) GEMM
    # matrices matching the im2col tap/channel order, and cast to bf16.
    def conv_w(k, cin, cout):
        w = w_init(k, (5, 5, cin, cout), jnp.sqrt(2.0))
        return w.reshape(5 * 5 * cin, cout).astype(jnp.bfloat16)

    # fc1: generated in PyTorch NCHW-flatten row order (c*169 + h*13 + w), then
    # rows permuted ONCE so the kernel consumes the NHWC flatten the conv stack
    # produces (eliminates the per-forward transpose); cast to bf16.
    wfc1_pt = w_init(ks[3], (64 * 13 * 13, 100), jnp.sqrt(2.0))
    i = jnp.arange(64 * 13 * 13)
    c, hw = i % 64, i // 64
    h, w = hw // 13, hw % 13
    perm = c * (13 * 13) + h * 13 + w                 # NHWC index -> NCHW index
    wfc1 = wfc1_pt[perm].astype(jnp.bfloat16)

    params = {
        "w1": conv_w(ks[0], 4, 16),
        "b1": jnp.zeros((16,), jnp.float32),
        "w2": conv_w(ks[1], 16, 32),
        "b2": jnp.zeros((32,), jnp.float32),
        "w3": conv_w(ks[2], 32, 64),
        "b3": jnp.zeros((64,), jnp.float32),
        "wfc1": wfc1,                                  # (10816, 100) bf16, NHWC order
        "bfc1": jnp.zeros((100,), jnp.float32),
        "wfc2": w_init(ks[4], (100, 1), 1.0),          # f32 (tiny, final layer)
        "bfc2": jnp.zeros((1,), jnp.float32),
    }
    return params


# ----------------------------------------------------------------------------
# Full forward pass (matches CNNCritic.forward semantics).
# ----------------------------------------------------------------------------
@jax.jit
def cnn_critic_forward(params, x_nchw):
    # NCHW -> NHWC once; bf16 for the streamed conv path.
    x = jnp.transpose(x_nchw, (0, 2, 3, 1)).astype(jnp.bfloat16)
    x = conv2d_relu(x, params["w1"], params["b1"])    # (B, 52, 52, 16)
    x = conv2d_relu(x, params["w2"], params["b2"])    # (B, 26, 26, 32)
    x = conv2d_relu(x, params["w3"], params["b3"])    # (B, 13, 13, 64)
    # Flatten directly in NHWC order; wfc1 rows were permuted at init so this
    # is equivalent to PyTorch's Flatten on the NCHW (B, 64, 13, 13) tensor.
    B = x.shape[0]
    x = x.reshape(B, 13 * 13 * 64)                    # (B, 10816) bf16
    # fc1 (+ReLU) and fc2 fused into a single-step Pallas kernel.
    return pallas_fc_head(x, params["wfc1"], params["bfc1"],
                          params["wfc2"], params["bfc2"])   # (B, 1) f32


if __name__ == "__main__":
    key = jax.random.PRNGKey(0)
    pkey, xkey = jax.random.split(key)
    params = init_params(pkey)

    # Input spatial size is fixed by fc1 (10816 = 64*13*13 -> 104x104 input).
    x = jax.random.normal(xkey, (2, 4, 104, 104), jnp.float32)

    out = cnn_critic_forward(params, x)
    out = jax.block_until_ready(out)
    assert out.shape == (2, 1), out.shape
    assert out.dtype == jnp.float32
    print("KERNEL_OK")
</pallas_src>

<mosaic_0001>
module attributes {stable_mosaic.version = 11 : i64} {
  func.func @_gemm_bias_relu_kernel(%arg0: i32, %arg1: memref<2704x100xbf16, #tpu.memory_space<vmem>>, %arg2: memref<100x16xbf16, #tpu.memory_space<vmem>>, %arg3: memref<1x16xf32, #tpu.memory_space<vmem>>, %arg4: memref<2704x16xbf16, #tpu.memory_space<vmem>>) attributes {dimension_semantics = [#tpu.dimension_semantics<parallel>], iteration_bounds = array<i64: 2>, scalar_prefetch = 0 : i64, scratch_operands = 0 : i64, tpu.core_type = #tpu.core_type<tc>, window_params = [{transform_indices = @transform_0, window_bounds = array<i64: 2704, 100>}, {pipeline_mode = #tpu.pipeline_mode<synchronous>, transform_indices = @transform_1, window_bounds = array<i64: 100, 16>}, {pipeline_mode = #tpu.pipeline_mode<synchronous>, transform_indices = @transform_2, window_bounds = array<i64: 1, 16>}, {transform_indices = @transform_3, window_bounds = array<i64: 2704, 16>}]} {
    %c0 = arith.constant 0 : index
    %c0_0 = arith.constant 0 : index
    %0 = vector.load %arg1[%c0, %c0_0] : memref<2704x100xbf16, #tpu.memory_space<vmem>>, vector<2704x100xbf16>
    %c0_1 = arith.constant 0 : index
    %c0_2 = arith.constant 0 : index
    %1 = vector.load %arg2[%c0_1, %c0_2] : memref<100x16xbf16, #tpu.memory_space<vmem>>, vector<100x16xbf16>
    %cst = arith.constant dense<0.000000e+00> : vector<2704x16xf32>
    %2 = tpu.matmul %0, %1, %cst {dimension_numbers = #tpu.dot_dimension_numbers<[1], [0], [0], [1], [0, 0, 1, 1], [], []>} : vector<2704x100xbf16>, vector<100x16xbf16>, vector<2704x16xf32> -> vector<2704x16xf32>
    %c0_3 = arith.constant 0 : index
    %c0_4 = arith.constant 0 : index
    %3 = vector.load %arg3[%c0_3, %c0_4] : memref<1x16xf32, #tpu.memory_space<vmem>>, vector<1x16xf32>
    %4 = vector.broadcast %3 : vector<1x16xf32> to vector<2704x16xf32>
    %5 = arith.addf %2, %4 : vector<2704x16xf32>
    %cst_5 = arith.constant 0.000000e+00 : f32
    %6 = vector.broadcast %cst_5 : f32 to vector<2704x16xf32>
    %7 = arith.maximumf %5, %6 : vector<2704x16xf32>
    %8 = arith.truncf %7 : vector<2704x16xf32> to vector<2704x16xbf16>
    %c0_6 = arith.constant 0 : index
    %c0_7 = arith.constant 0 : index
    %9 = vector.load %arg4[%c0_6, %c0_7] : memref<2704x16xbf16, #tpu.memory_space<vmem>>, vector<2704x16xbf16>
    tpu.vector_store %arg4[%c0_6, %c0_7], %8 {strides = array<i32>} : memref<2704x16xbf16, #tpu.memory_space<vmem>>, vector<2704x16xbf16>,
    return
  }
  func.func @transform_0(%arg0: i32) -> (i32, i32) {
    %c0_i32 = arith.constant 0 : i32
    %c0_i32_0 = arith.constant 0 : i32
    return %arg0, %c0_i32 : i32, i32
  }
  func.func @transform_1(%arg0: i32) -> (i32, i32) {
    %c0_i32 = arith.constant 0 : i32
    %c0_i32_0 = arith.constant 0 : i32
    %c0_i32_1 = arith.constant 0 : i32
    return %c0_i32, %c0_i32_0 : i32, i32
  }
  func.func @transform_2(%arg0: i32) -> (i32, i32) {
    %c0_i32 = arith.constant 0 : i32
    %c0_i32_0 = arith.constant 0 : i32
    %c0_i32_1 = arith.constant 0 : i32
    return %c0_i32, %c0_i32_0 : i32, i32
  }
  func.func @transform_3(%arg0: i32) -> (i32, i32) {
    %c0_i32 = arith.constant 0 : i32
    %c0_i32_0 = arith.constant 0 : i32
    return %arg0, %c0_i32 : i32, i32
  }
}

module attributes {stable_mosaic.version = 11 : i64} {
  func.func @_gemm_bias_relu_kernel(%arg0: i32, %arg1: memref<680x400xbf16, #tpu.memory_space<vmem>>, %arg2: memref<400x32xbf16, #tpu.memory_space<vmem>>, %arg3: memref<1x32xf32, #tpu.memory_space<vmem>>, %arg4: memref<680x32xbf16, #tpu.memory_space<vmem>>) attributes {dimension_semantics = [#tpu.dimension_semantics<parallel>], iteration_bounds = array<i64: 2>, scalar_prefetch = 0 : i64, scratch_operands = 0 : i64, tpu.core_type = #tpu.core_type<tc>, window_params = [{transform_indices = @transform_0, window_bounds = array<i64: 680, 400>}, {pipeline_mode = #tpu.pipeline_mode<synchronous>, transform_indices = @transform_1, window_bounds = array<i64: 400, 32>}, {pipeline_mode = #tpu.pipeline_mode<synchronous>, transform_indices = @transform_2, window_bounds = array<i64: 1, 32>}, {transform_indices = @transform_3, window_bounds = array<i64: 680, 32>}]} {
    %c0 = arith.constant 0 : index
    %c0_0 = arith.constant 0 : index
    %0 = vector.load %arg1[%c0, %c0_0] : memref<680x400xbf16, #tpu.memory_space<vmem>>, vector<680x400xbf16>
    %c0_1 = arith.constant 0 : index
    %c0_2 = arith.constant 0 : index
    %1 = vector.load %arg2[%c0_1, %c0_2] : memref<400x32xbf16, #tpu.memory_space<vmem>>, vector<400x32xbf16>
    %cst = arith.constant dense<0.000000e+00> : vector<680x32xf32>
    %2 = tpu.matmul %0, %1, %cst {dimension_numbers = #tpu.dot_dimension_numbers<[1], [0], [0], [1], [0, 0, 1, 1], [], []>} : vector<680x400xbf16>, vector<400x32xbf16>, vector<680x32xf32> -> vector<680x32xf32>
    %c0_3 = arith.constant 0 : index
    %c0_4 = arith.constant 0 : index
    %3 = vector.load %arg3[%c0_3, %c0_4] : memref<1x32xf32, #tpu.memory_space<vmem>>, vector<1x32xf32>
    %4 = vector.broadcast %3 : vector<1x32xf32> to vector<680x32xf32>
    %5 = arith.addf %2, %4 : vector<680x32xf32>
    %cst_5 = arith.constant 0.000000e+00 : f32
    %6 = vector.broadcast %cst_5 : f32 to vector<680x32xf32>
    %7 = arith.maximumf %5, %6 : vector<680x32xf32>
    %8 = arith.truncf %7 : vector<680x32xf32> to vector<680x32xbf16>
    %c0_6 = arith.constant 0 : index
    %c0_7 = arith.constant 0 : index
    %9 = vector.load %arg4[%c0_6, %c0_7] : memref<680x32xbf16, #tpu.memory_space<vmem>>, vector<680x32xbf16>
    tpu.vector_store %arg4[%c0_6, %c0_7], %8 {strides = array<i32>} : memref<680x32xbf16, #tpu.memory_space<vmem>>, vector<680x32xbf16>,
    return
  }
  func.func @transform_0(%arg0: i32) -> (i32, i32) {
    %c0_i32 = arith.constant 0 : i32
    %c0_i32_0 = arith.constant 0 : i32
    return %arg0, %c0_i32 : i32, i32
  }
  func.func @transform_1(%arg0: i32) -> (i32, i32) {
    %c0_i32 = arith.constant 0 : i32
    %c0_i32_0 = arith.constant 0 : i32
    %c0_i32_1 = arith.constant 0 : i32
    return %c0_i32, %c0_i32_0 : i32, i32
  }
  func.func @transform_2(%arg0: i32) -> (i32, i32) {
    %c0_i32 = arith.constant 0 : i32
    %c0_i32_0 = arith.constant 0 : i32
    %c0_i32_1 = arith.constant 0 : i32
    return %c0_i32, %c0_i32_0 : i32, i32
  }
  func.func @transform_3(%arg0: i32) -> (i32, i32) {
    %c0_i32 = arith.constant 0 : i32
    %c0_i32_0 = arith.constant 0 : i32
    return %arg0, %c0_i32 : i32, i32
  }
}

module attributes {stable_mosaic.version = 11 : i64} {
  func.func @_gemm_bias_relu_kernel(%arg0: i32, %arg1: memref<176x800xbf16, #tpu.memory_space<vmem>>, %arg2: memref<800x64xbf16, #tpu.memory_space<vmem>>, %arg3: memref<1x64xf32, #tpu.memory_space<vmem>>, %arg4: memref<176x64xbf16, #tpu.memory_space<vmem>>) attributes {dimension_semantics = [#tpu.dimension_semantics<parallel>], iteration_bounds = array<i64: 2>, scalar_prefetch = 0 : i64, scratch_operands = 0 : i64, tpu.core_type = #tpu.core_type<tc>, window_params = [{transform_indices = @transform_0, window_bounds = array<i64: 176, 800>}, {pipeline_mode = #tpu.pipeline_mode<synchronous>, transform_indices = @transform_1, window_bounds = array<i64: 800, 64>}, {pipeline_mode = #tpu.pipeline_mode<synchronous>, transform_indices = @transform_2, window_bounds = array<i64: 1, 64>}, {transform_indices = @transform_3, window_bounds = array<i64: 176, 64>}]} {
    %c0 = arith.constant 0 : index
    %c0_0 = arith.constant 0 : index
    %0 = vector.load %arg1[%c0, %c0_0] : memref<176x800xbf16, #tpu.memory_space<vmem>>, vector<176x800xbf16>
    %c0_1 = arith.constant 0 : index
    %c0_2 = arith.constant 0 : index
    %1 = vector.load %arg2[%c0_1, %c0_2] : memref<800x64xbf16, #tpu.memory_space<vmem>>, vector<800x64xbf16>
    %cst = arith.constant dense<0.000000e+00> : vector<176x64xf32>
    %2 = tpu.matmul %0, %1, %cst {dimension_numbers = #tpu.dot_dimension_numbers<[1], [0], [0], [1], [0, 0, 1, 1], [], []>} : vector<176x800xbf16>, vector<800x64xbf16>, vector<176x64xf32> -> vector<176x64xf32>
    %c0_3 = arith.constant 0 : index
    %c0_4 = arith.constant 0 : index
    %3 = vector.load %arg3[%c0_3, %c0_4] : memref<1x64xf32, #tpu.memory_space<vmem>>, vector<1x64xf32>
    %4 = vector.broadcast %3 : vector<1x64xf32> to vector<176x64xf32>
    %5 = arith.addf %2, %4 : vector<176x64xf32>
    %cst_5 = arith.constant 0.000000e+00 : f32
    %6 = vector.broadcast %cst_5 : f32 to vector<176x64xf32>
    %7 = arith.maximumf %5, %6 : vector<176x64xf32>
    %8 = arith.truncf %7 : vector<176x64xf32> to vector<176x64xbf16>
    %c0_6 = arith.constant 0 : index
    %c0_7 = arith.constant 0 : index
    %9 = vector.load %arg4[%c0_6, %c0_7] : memref<176x64xbf16, #tpu.memory_space<vmem>>, vector<176x64xbf16>
    tpu.vector_store %arg4[%c0_6, %c0_7], %8 {strides = array<i32>} : memref<176x64xbf16, #tpu.memory_space<vmem>>, vector<176x64xbf16>,
    return
  }
  func.func @transform_0(%arg0: i32) -> (i32, i32) {
    %c0_i32 = arith.constant 0 : i32
    %c0_i32_0 = arith.constant 0 : i32
    return %arg0, %c0_i32 : i32, i32
  }
  func.func @transform_1(%arg0: i32) -> (i32, i32) {
    %c0_i32 = arith.constant 0 : i32
    %c0_i32_0 = arith.constant 0 : i32
    %c0_i32_1 = arith.constant 0 : i32
    return %c0_i32, %c0_i32_0 : i32, i32
  }
  func.func @transform_2(%arg0: i32) -> (i32, i32) {
    %c0_i32 = arith.constant 0 : i32
    %c0_i32_0 = arith.constant 0 : i32
    %c0_i32_1 = arith.constant 0 : i32
    return %c0_i32, %c0_i32_0 : i32, i32
  }
  func.func @transform_3(%arg0: i32) -> (i32, i32) {
    %c0_i32 = arith.constant 0 : i32
    %c0_i32_0 = arith.constant 0 : i32
    return %arg0, %c0_i32 : i32, i32
  }
}

module attributes {stable_mosaic.version = 11 : i64} {
  func.func @_fc_head_kernel(%arg0: i32, %arg1: memref<8x10816xbf16, #tpu.memory_space<vmem>>, %arg2: memref<10816x100xbf16, #tpu.memory_space<vmem>>, %arg3: memref<1x100xf32, #tpu.memory_space<vmem>>, %arg4: memref<100x1xf32, #tpu.memory_space<vmem>>, %arg5: memref<1x1xf32, #tpu.memory_space<vmem>>, %arg6: memref<8x1xf32, #tpu.memory_space<vmem>>) attributes {dimension_semantics = [#tpu.dimension_semantics<arbitrary>], iteration_bounds = array<i64: 1>, scalar_prefetch = 0 : i64, scratch_operands = 0 : i64, tpu.core_type = #tpu.core_type<tc>, window_params = [{pipeline_mode = #tpu.pipeline_mode<synchronous>, transform_indices = @transform_0, window_bounds = array<i64: 8, 10816>}, {pipeline_mode = #tpu.pipeline_mode<synchronous>, transform_indices = @transform_1, window_bounds = array<i64: 10816, 100>}, {pipeline_mode = #tpu.pipeline_mode<synchronous>, transform_indices = @transform_2, window_bounds = array<i64: 1, 100>}, {pipeline_mode = #tpu.pipeline_mode<synchronous>, transform_indices = @transform_3, window_bounds = array<i64: 100, 1>}, {pipeline_mode = #tpu.pipeline_mode<synchronous>, transform_indices = @transform_4, window_bounds = array<i64: 1, 1>}, {pipeline_mode = #tpu.pipeline_mode<synchronous>, transform_indices = @transform_5, window_bounds = array<i64: 8, 1>}]} {
    %c0 = arith.constant 0 : index
    %c0_0 = arith.constant 0 : index
    %0 = vector.load %arg1[%c0, %c0_0] : memref<8x10816xbf16, #tpu.memory_space<vmem>>, vector<8x10816xbf16>
    %c0_1 = arith.constant 0 : index
    %c0_2 = arith.constant 0 : index
    %1 = vector.load %arg2[%c0_1, %c0_2] : memref<10816x100xbf16, #tpu.memory_space<vmem>>, vector<10816x100xbf16>
    %cst = arith.constant dense<0.000000e+00> : vector<8x100xf32>
    %2 = tpu.matmul %0, %1, %cst {dimension_numbers = #tpu.dot_dimension_numbers<[1], [0], [0], [1], [0, 0, 1, 1], [], []>} : vector<8x10816xbf16>, vector<10816x100xbf16>, vector<8x100xf32> -> vector<8x100xf32>
    %c0_3 = arith.constant 0 : index
    %c0_4 = arith.constant 0 : index
    %3 = vector.load %arg3[%c0_3, %c0_4] : memref<1x100xf32, #tpu.memory_space<vmem>>, vector<1x100xf32>
    %4 = vector.broadcast %3 : vector<1x100xf32> to vector<8x100xf32>
    %5 = arith.addf %2, %4 : vector<8x100xf32>
    %cst_5 = arith.constant 0.000000e+00 : f32
    %6 = vector.broadcast %cst_5 : f32 to vector<8x100xf32>
    %7 = arith.maximumf %5, %6 : vector<8x100xf32>
    %c0_6 = arith.constant 0 : index
    %c0_7 = arith.constant 0 : index
    %8 = vector.load %arg4[%c0_6, %c0_7] : memref<100x1xf32, #tpu.memory_space<vmem>>, vector<100x1xf32>
    %cst_8 = arith.constant dense<0.000000e+00> : vector<8x1xf32>
    %9 = tpu.matmul %7, %8, %cst_8 {dimension_numbers = #tpu.dot_dimension_numbers<[1], [0], [0], [1], [0, 0, 1, 1], [], []>} : vector<8x100xf32>, vector<100x1xf32>, vector<8x1xf32> -> vector<8x1xf32>
    %c0_9 = arith.constant 0 : index
    %c0_10 = arith.constant 0 : index
    %10 = vector.load %arg5[%c0_9, %c0_10] : memref<1x1xf32, #tpu.memory_space<vmem>>, vector<1x1xf32>
    %11 = vector.broadcast %10 : vector<1x1xf32> to vector<8x1xf32>
    %12 = arith.addf %9, %11 : vector<8x1xf32>
    %c0_11 = arith.constant 0 : index
    %c0_12 = arith.constant 0 : index
    %13 = vector.load %arg6[%c0_11, %c0_12] : memref<8x1xf32, #tpu.memory_space<vmem>>, vector<8x1xf32>
    tpu.vector_store %arg6[%c0_11, %c0_12], %12 {strides = array<i32>} : memref<8x1xf32, #tpu.memory_space<vmem>>, vector<8x1xf32>,
    return
  }
  func.func @transform_0(%arg0: i32) -> (i32, i32) {
    %c0_i32 = arith.constant 0 : i32
    %c0_i32_0 = arith.constant 0 : i32
    %c0_i32_1 = arith.constant 0 : i32
    return %c0_i32, %c0_i32_0 : i32, i32
  }
  func.func @transform_1(%arg0: i32) -> (i32, i32) {
    %c0_i32 = arith.constant 0 : i32
    %c0_i32_0 = arith.constant 0 : i32
    %c0_i32_1 = arith.constant 0 : i32
    return %c0_i32, %c0_i32_0 : i32, i32
  }
  func.func @transform_2(%arg0: i32) -> (i32, i32) {
    %c0_i32 = arith.constant 0 : i32
    %c0_i32_0 = arith.constant 0 : i32
    %c0_i32_1 = arith.constant 0 : i32
    return %c0_i32, %c0_i32_0 : i32, i32
  }
  func.func @transform_3(%arg0: i32) -> (i32, i32) {
    %c0_i32 = arith.constant 0 : i32
    %c0_i32_0 = arith.constant 0 : i32
    %c0_i32_1 = arith.constant 0 : i32
    return %c0_i32, %c0_i32_0 : i32, i32
  }
  func.func @transform_4(%arg0: i32) -> (i32, i32) {
    %c0_i32 = arith.constant 0 : i32
    %c0_i32_0 = arith.constant 0 : i32
    %c0_i32_1 = arith.constant 0 : i32
    return %c0_i32, %c0_i32_0 : i32, i32
  }
  func.func @transform_5(%arg0: i32) -> (i32, i32) {
    %c0_i32 = arith.constant 0 : i32
    %c0_i32_0 = arith.constant 0 : i32
    %c0_i32_1 = arith.constant 0 : i32
    return %c0_i32, %c0_i32_0 : i32, i32
  }
}

</mosaic_0001>

<bundles_post_ra>
// kernel: cnn_critic_forward.4
= control target key start
LH: loop header
LB: loop body
LE: loop exit
PB: predicated region body
PF: predicated region fallthrough
CT: control target
= control target key end

     0   :  { %s7530_s12 = smov 0   ;;  %s9308_s0 = inlined_call_operand.vmem [shape: bf16[5408,100], index: 0, kind: input, shape index: {}]   ;;  %s9309_s1 = inlined_call_operand.vmem [shape: bf16[100,16], index: 1, kind: input, shape index: {}]   ;;  %s9310_s2 = inlined_call_operand.vmem [shape: f32[1,16], index: 2, kind: input, shape index: {}]   ;;  %s9311_s3 = inlined_call_operand.vmem [shape: bf16[5408,16], index: 3, kind: output, shape index: {}]  }
   0x1 LB: > { %s5399_s13 = sadd.s32 4294967295, %s7506_s12   ;;  %p5403_p0 = scmp.ge.s32.totalorder %s7506_s12, 1  ;;  %s7506_s12 = sphi %s7530_s12, %s13_s12  }
   0x2   : > { %p138_p1 = scmp.lt.s32.totalorder %s7506_s12, 3 }
   0x4   : > { %p139_p2 = pnand %p5403_p0, %p138_p1 }
   0x5   : > { %s162_s18 = smul.u32 (!%p139_p2), 338, %s5399_s13 }
   0x6   : > { %142 = sbr.rel (%p139_p2) target bundleno = 916 (0x394), region = 32 }
   0x7   : > { %p163_p3 = scmp.lt.s32.totalorder (!%p139_p2), %s162_s18, 675 }
   0xb   : > { %v7320_v0 = vld [vmem:[%s9309_s1 + $0x30] ss:$0 sps:$4 sm:$0x33]   ;;  %v7508_v1 = vmov 0.0   ;;  %vm1925_vm0 = vcmask 1041408   ;;  %v7321_v3 = vld [vmem:[%s9309_s1 + $0x28] sm:$0xff]  }
   0xc   : > { %6606 = vmatprep.subr.bf16.mxu0 %v7508_v1  ;;  %7296 = vmatprep.subr.bf16.mxu1 %v7508_v1  ;;  %v1927_v2 = vsel %vm1925_vm0, %v7320_v0, 0  ;;  %vm7509_vm1 = vmmov 0   ;;  %v7322_v4 = vld [vmem:[%s9309_s1 + $0x20] sm:$0xff]   ;;  %s9313_s18 = smov (!%p163_p3, %s162_s18), 675  ;;  %v7323_v5 = vld [vmem:[%s9309_s1 + $0x18] sm:$0xff]   ;;  %v7324_v6 = vld [vmem:[%s9309_s1 + $0x10] sm:$0xff]  }
   0xd   : > { %6607 = vmatpush3.bf16.msra.mxu0 %v1927_v2  ;;  %7303 = vmatpush3.bf16.msra.mxu1 %v1927_v2  ;;  %s5404_s21 = sshll.u32 %s9313_s18, 2  ;;  %v7325_v7 = vld [vmem:[%s9309_s1 + $0x8] sm:$0xff]   ;;  %v7326_v8 = vld [vmem:[%s9309_s1] sm:$0xff]   ;;  %vm1417_vm2 = vcmask 818176   ;;  %vm5004_vm3 = vcmask 125952  }
   0xe   : > { %6608 = vmatprep.subr.bf16.mxu0 %v7508_v1  ;;  %7297 = vmatprep.subr.bf16.mxu1 %v7508_v1  ;;  %s7568_s26 = scalar_lea.vmem %s9308_s0, %s5404_s21  ;;  %v7784_v59 = vld [vmem:[%s9310_s2] ss:$0 sm:$0xff]  ;;  %s7799_s10 = scalar_lea.vmem %s9311_s3, %s5404_s21 }
   0xf   : > { %6620 = vmatprep.mubr.msk.bf16.mxu0 %vm7509_vm1, %v7508_v1  ;;  %6960 = vmatprep.mubr.msk.bf16.mxu1 %vm7509_vm1, %v7508_v1  ;;  %v7327_v9 = vld [vmem:[%s7568_s26] sm:$0xff]   ;;  %v7328_v10 = vld [vmem:[%s7568_s26 + $0x2a8] sm:$0xff]   ;;  %v7330_v12 = vld [vmem:[%s7568_s26 + $0x2b0] sm:$0xff]  }
  0x10   : > { %v7329_v11 = vld [vmem:[%s7568_s26 + $0x8] sm:$0xff]   ;;  %v7331_v13 = vld [vmem:[%s7568_s26 + $0x10] sm:$0xff]   ;;  %v7332_v14 = vld [vmem:[%s7568_s26 + $0x2b8] sm:$0xff]  }
  0x11   : > { %6609 = vmatpush3.bf16.msra.mxu0 %v7321_v3  ;;  %7304 = vmatpush3.bf16.msra.mxu1 %v7321_v3  ;;  %v7333_v15 = vld [vmem:[%s7568_s26 + $0x18] sm:$0xff]   ;;  %v7334_v16 = vld [vmem:[%s7568_s26 + $0x2c0] sm:$0xff]   ;;  %v7336_v18 = vld [vmem:[%s7568_s26 + $0x2c8] sm:$0xff]  }
  0x12   : > { %6610 = vmatprep.subr.bf16.mxu0 %v7508_v1  ;;  %7298 = vmatprep.subr.bf16.mxu1 %v7508_v1  ;;  %v7335_v17 = vld [vmem:[%s7568_s26 + $0x20] sm:$0xff]   ;;  %v7337_v19 = vld [vmem:[%s7568_s26 + $0x28] sm:$0xff]   ;;  %v7338_v20 = vld [vmem:[%s7568_s26 + $0x2d0] sm:$0xff]  }
  0x13   : > { %v7339_v21 = vld [vmem:[%s7568_s26 + $0x30] sm:$0xff]   ;;  %v7340_v22 = vld [vmem:[%s7568_s26 + $0x2d8] sm:$0xff]   ;;  %v7342_v24 = vld [vmem:[%s7568_s26 + $0x2e0] sm:$0xff]  }
  0x14   : > { %v7341_v23 = vld [vmem:[%s7568_s26 + $0x38] sm:$0xff]   ;;  %v7343_v25 = vld [vmem:[%s7568_s26 + $0x40] sm:$0xff]   ;;  %v7344_v26 = vld [vmem:[%s7568_s26 + $0x2e8] sm:$0xff]  }
  0x15   : > { %6611 = vmatpush3.bf16.msra.mxu0 %v7322_v4  ;;  %7305 = vmatpush3.bf16.msra.mxu1 %v7322_v4  ;;  %v7345_v27 = vld [vmem:[%s7568_s26 + $0x48] sm:$0xff]   ;;  %v7346_v28 = vld [vmem:[%s7568_s26 + $0x2f0] sm:$0xff]   ;;  %v7348_v30 = vld [vmem:[%s7568_s26 + $0x2f8] sm:$0xff]  }
  0x16   : > { %6612 = vmatprep.subr.bf16.mxu0 %v7508_v1  ;;  %7299 = vmatprep.subr.bf16.mxu1 %v7508_v1  ;;  %v7347_v29 = vld [vmem:[%s7568_s26 + $0x50] sm:$0xff]   ;;  %v7349_v31 = vld [vmem:[%s7568_s26 + $0x58] sm:$0xff]   ;;  %v7350_v32 = vld [vmem:[%s7568_s26 + $0x300] sm:$0xff]  }
  0x17   : > { %v7351_v33 = vld [vmem:[%s7568_s26 + $0x60] sm:$0xff]   ;;  %v7352_v34 = vld [vmem:[%s7568_s26 + $0x308] sm:$0xff]   ;;  %v7354_v36 = vld [vmem:[%s7568_s26 + $0x310] sm:$0xff]  }
  0x18   : > { %v7353_v35 = vld [vmem:[%s7568_s26 + $0x68] sm:$0xff]   ;;  %v7355_v37 = vld [vmem:[%s7568_s26 + $0x70] sm:$0xff]   ;;  %v7356_v38 = vld [vmem:[%s7568_s26 + $0x318] sm:$0xff]  }
  0x19   : > { %6613 = vmatpush3.bf16.msra.mxu0 %v7323_v5  ;;  %7306 = vmatpush3.bf16.msra.mxu1 %v7323_v5  ;;  %v7357_v39 = vld [vmem:[%s7568_s26 + $0x78] sm:$0xff]   ;;  %v7358_v40 = vld [vmem:[%s7568_s26 + $0x320] sm:$0xff]   ;;  %v7360_v42 = vld [vmem:[%s7568_s26 + $0x328] sm:$0xff]  }
  0x1a   : > { %6614 = vmatprep.subr.bf16.mxu0 %v7508_v1  ;;  %7300 = vmatprep.subr.bf16.mxu1 %v7508_v1  ;;  %v7359_v41 = vld [vmem:[%s7568_s26 + $0x80] sm:$0xff]   ;;  %v7361_v43 = vld [vmem:[%s7568_s26 + $0x88] sm:$0xff]   ;;  %v7362_v44 = vld [vmem:[%s7568_s26 + $0x330] sm:$0xff]  }
  0x1b   : > { %v7363_v45 = vld [vmem:[%s7568_s26 + $0x90] sm:$0xff]   ;;  %v7364_v46 = vld [vmem:[%s7568_s26 + $0x338] sm:$0xff]   ;;  %v7366_v48 = vld [vmem:[%s7568_s26 + $0x340] sm:$0xff]  }
  0x1c   : > { %v7365_v47 = vld [vmem:[%s7568_s26 + $0x98] sm:$0xff]   ;;  %v7367_v49 = vld [vmem:[%s7568_s26 + $0xa0] sm:$0xff]   ;;  %v7368_v50 = vld [vmem:[%s7568_s26 + $0x348] sm:$0xff]  }
  0x1d   : > { %6615 = vmatpush3.bf16.msra.mxu0 %v7324_v6  ;;  %7307 = vmatpush3.bf16.msra.mxu1 %v7324_v6  ;;  %v7369_v51 = vld [vmem:[%s7568_s26 + $0xa8] sm:$0xff]   ;;  %v7370_v52 = vld [vmem:[%s7568_s26 + $0x350] sm:$0xff]   ;;  %v7372_v54 = vld [vmem:[%s7568_s26 + $0x358] sm:$0xff]  }
  0x1e   : > { %6616 = vmatprep.subr.bf16.mxu0 %v7508_v1  ;;  %7301 = vmatprep.subr.bf16.mxu1 %v7508_v1  ;;  %v7371_v53 = vld [vmem:[%s7568_s26 + $0xb0] sm:$0xff]   ;;  %v7373_v55 = vld [vmem:[%s7568_s26 + $0xb8] sm:$0xff]   ;;  %v7374_v56 = vld [vmem:[%s7568_s26 + $0x360] sm:$0xff]  }
  0x1f   : > { %v7375_v57 = vld [vmem:[%s7568_s26 + $0xc0] sm:$0xff]   ;;  %v7376_v58 = vld [vmem:[%s7568_s26 + $0x368] sm:$0xff]  }
  0x21   : > { %6617 = vmatpush3.bf16.msra.mxu0 %v7325_v7  ;;  %7308 = vmatpush3.bf16.msra.mxu1 %v7325_v7  ;;  %v7377_v7 = vld [vmem:[%s7568_s26 + $0xc8] sm:$0xff]  }
  0x22   : > { %6618 = vmatprep.subr.bf16.mxu0 %v7508_v1  ;;  %7302 = vmatprep.subr.bf16.mxu1 %v7508_v1 }
  0x25   : > { %6619 = vmatpush3.bf16.msra.mxu0 %v7326_v8  ;;  %7309 = vmatpush3.bf16.msra.mxu1 %v7326_v8  ;;  %v7378_v8 = vld [vmem:[%s7568_s26 + $0x370] sm:$0xff]  }
  0x28   : > { %6621 = vmatmul.mubr.msk.bf16.vlgmr.msra.gmra.mxu0 %vm1417_vm2, %v7327_v9  ;;  %6961 = vmatmul.mubr.msk.bf16.vlgmr.msra.gmra.mxu1 %vm1417_vm2, %v7328_v10 }
  0x29   : > { %6624 = vmatprep.mubr.msk.bf16.mxu0 %vm7509_vm1, %v7508_v1  ;;  %6964 = vmatprep.mubr.msk.bf16.mxu1 %vm7509_vm1, %v7508_v1 }
  0x30   : > { %6625 = vmatmul.mubr.msk.bf16.gmra.mxu0 %vm1417_vm2, %v7329_v11  ;;  %6965 = vmatmul.mubr.msk.bf16.gmra.mxu1 %vm1417_vm2, %v7330_v12 }
  0x31   : > { %6628 = vmatprep.mubr.msk.bf16.mxu0 %vm7509_vm1, %v7508_v1  ;;  %6968 = vmatprep.mubr.msk.bf16.mxu1 %vm7509_vm1, %v7508_v1 }
  0x38   : > { %6629 = vmatmul.mubr.msk.bf16.gmra.mxu0 %vm1417_vm2, %v7331_v13  ;;  %6969 = vmatmul.mubr.msk.bf16.gmra.mxu1 %vm1417_vm2, %v7332_v14 }
  0x39   : > { %6632 = vmatprep.mubr.msk.bf16.mxu0 %vm7509_vm1, %v7508_v1  ;;  %6972 = vmatprep.mubr.msk.bf16.mxu1 %vm7509_vm1, %v7508_v1 }
  0x40   : > { %6633 = vmatmul.mubr.msk.bf16.gmra.mxu0 %vm1417_vm2, %v7333_v15  ;;  %6973 = vmatmul.mubr.msk.bf16.gmra.mxu1 %vm1417_vm2, %v7334_v16 }
  0x41   : > { %6636 = vmatprep.mubr.msk.bf16.mxu0 %vm7509_vm1, %v7508_v1  ;;  %6976 = vmatprep.mubr.msk.bf16.mxu1 %vm7509_vm1, %v7508_v1 }
  0x48   : > { %6637 = vmatmul.mubr.msk.bf16.gmra.mxu0 %vm1417_vm2, %v7335_v17  ;;  %6977 = vmatmul.mubr.msk.bf16.gmra.mxu1 %vm1417_vm2, %v7336_v18 }
  0x49   : > { %6640 = vmatprep.mubr.msk.bf16.mxu0 %vm7509_vm1, %v7508_v1  ;;  %6980 = vmatprep.mubr.msk.bf16.mxu1 %vm7509_vm1, %v7508_v1 }
  0x50   : > { %6641 = vmatmul.mubr.msk.bf16.gmra.mxu0 %vm1417_vm2, %v7337_v19  ;;  %6981 = vmatmul.mubr.msk.bf16.gmra.mxu1 %vm1417_vm2, %v7338_v20 }
  0x51   : > { %6644 = vmatprep.mubr.msk.bf16.mxu0 %vm7509_vm1, %v7508_v1  ;;  %6984 = vmatprep.mubr.msk.bf16.mxu1 %vm7509_vm1, %v7508_v1 }
  0x58   : > { %6645 = vmatmul.mubr.msk.bf16.gmra.mxu0 %vm1417_vm2, %v7339_v21  ;;  %6985 = vmatmul.mubr.msk.bf16.gmra.mxu1 %vm1417_vm2, %v7340_v22 }
  0x59   : > { %6648 = vmatprep.mubr.msk.bf16.mxu0 %vm7509_vm1, %v7508_v1  ;;  %6988 = vmatprep.mubr.msk.bf16.mxu1 %vm7509_vm1, %v7508_v1 }
  0x60   : > { %6649 = vmatmul.mubr.msk.bf16.gmra.mxu0 %vm1417_vm2, %v7341_v23  ;;  %6989 = vmatmul.mubr.msk.bf16.gmra.mxu1 %vm1417_vm2, %v7342_v24 }
  0x61   : > { %6652 = vmatprep.mubr.msk.bf16.mxu0 %vm7509_vm1, %v7508_v1  ;;  %6992 = vmatprep.mubr.msk.bf16.mxu1 %vm7509_vm1, %v7508_v1 }
  0x68   : > { %6653 = vmatmul.mubr.msk.bf16.gmra.mxu0 %vm1417_vm2, %v7343_v25  ;;  %6993 = vmatmul.mubr.msk.bf16.gmra.mxu1 %vm1417_vm2, %v7344_v26 }
  0x69   : > { %6656 = vmatprep.mubr.msk.bf16.mxu0 %vm7509_vm1, %v7508_v1  ;;  %6996 = vmatprep.mubr.msk.bf16.mxu1 %vm7509_vm1, %v7508_v1 }
  0x70   : > { %6657 = vmatmul.mubr.msk.bf16.gmra.mxu0 %vm1417_vm2, %v7345_v27  ;;  %6997 = vmatmul.mubr.msk.bf16.gmra.mxu1 %vm1417_vm2, %v7346_v28 }
  0x71   : > { %6660 = vmatprep.mubr.msk.bf16.mxu0 %vm7509_vm1, %v7508_v1  ;;  %7000 = vmatprep.mubr.msk.bf16.mxu1 %vm7509_vm1, %v7508_v1 }
  0x78   : > { %6661 = vmatmul.mubr.msk.bf16.gmra.mxu0 %vm1417_vm2, %v7347_v29  ;;  %7001 = vmatmul.mubr.msk.bf16.gmra.mxu1 %vm1417_vm2, %v7348_v30  ;;  %v7379_v29 = vld [vmem:[%s7568_s26 + $0xd0] sm:$0xff]   ;;  %v7380_v30 = vld [vmem:[%s7568_s26 + $0x378] sm:$0xff]  }
  0x79   : > { %6664 = vmatprep.mubr.msk.bf16.mxu0 %vm7509_vm1, %v7508_v1  ;;  %7004 = vmatprep.mubr.msk.bf16.mxu1 %vm7509_vm1, %v7508_v1 }
  0x80   : > { %6665 = vmatmul.mubr.msk.bf16.gmra.mxu0 %vm1417_vm2, %v7349_v31  ;;  %7005 = vmatmul.mubr.msk.bf16.gmra.mxu1 %vm1417_vm2, %v7350_v32 }
  0x81   : > { %6668 = vmatprep.mubr.msk.bf16.mxu0 %vm7509_vm1, %v7508_v1  ;;  %7008 = vmatprep.mubr.msk.bf16.mxu1 %vm7509_vm1, %v7508_v1 }
  0x88   : > { %6669 = vmatmul.mubr.msk.bf16.gmra.mxu0 %vm1417_vm2, %v7351_v33  ;;  %7009 = vmatmul.mubr.msk.bf16.gmra.mxu1 %vm1417_vm2, %v7352_v34 }
  0x89   : > { %6672 = vmatprep.mubr.msk.bf16.mxu0 %vm7509_vm1, %v7508_v1  ;;  %7012 = vmatprep.mubr.msk.bf16.mxu1 %vm7509_vm1, %v7508_v1 }
  0x90   : > { %6673 = vmatmul.mubr.msk.bf16.gmra.mxu0 %vm1417_vm2, %v7353_v35  ;;  %7013 = vmatmul.mubr.msk.bf16.gmra.mxu1 %vm1417_vm2, %v7354_v36 }
  0x91   : > { %6676 = vmatprep.mubr.msk.bf16.mxu0 %vm7509_vm1, %v7508_v1  ;;  %7016 = vmatprep.mubr.msk.bf16.mxu1 %vm7509_vm1, %v7508_v1 }
  0x98   : > { %6677 = vmatmul.mubr.msk.bf16.gmra.mxu0 %vm1417_vm2, %v7355_v37  ;;  %7017 = vmatmul.mubr.msk.bf16.gmra.mxu1 %vm1417_vm2, %v7356_v38 }
  0x99   : > { %6680 = vmatprep.mubr.msk.bf16.mxu0 %vm7509_vm1, %v7508_v1  ;;  %7020 = vmatprep.mubr.msk.bf16.mxu1 %vm7509_vm1, %v7508_v1 }
  0xa0   : > { %6681 = vmatmul.mubr.msk.bf16.gmra.mxu0 %vm1417_vm2, %v7357_v39  ;;  %7021 = vmatmul.mubr.msk.bf16.gmra.mxu1 %vm1417_vm2, %v7358_v40 }
  0xa1   : > { %6684 = vmatprep.mubr.msk.bf16.mxu0 %vm7509_vm1, %v7508_v1  ;;  %7024 = vmatprep.mubr.msk.bf16.mxu1 %vm7509_vm1, %v7508_v1 }
  0xa8   : > { %6685 = vmatmul.mubr.msk.bf16.gmra.mxu0 %vm1417_vm2, %v7359_v41  ;;  %7025 = vmatmul.mubr.msk.bf16.gmra.mxu1 %vm1417_vm2, %v7360_v42 }
  0xa9   : > { %6688 = vmatprep.mubr.msk.bf16.mxu0 %vm7509_vm1, %v7508_v1  ;;  %7028 = vmatprep.mubr.msk.bf16.mxu1 %vm7509_vm1, %v7508_v1 }
  0xb0   : > { %6689 = vmatmul.mubr.msk.bf16.gmra.mxu0 %vm1417_vm2, %v7361_v43  ;;  %7029 = vmatmul.mubr.msk.bf16.gmra.mxu1 %vm1417_vm2, %v7362_v44 }
  0xb1   : > { %6692 = vmatprep.mubr.msk.bf16.mxu0 %vm7509_vm1, %v7508_v1  ;;  %7032 = vmatprep.mubr.msk.bf16.mxu1 %vm7509_vm1, %v7508_v1 }
  0xb8   : > { %6693 = vmatmul.mubr.msk.bf16.gmra.mxu0 %vm1417_vm2, %v7363_v45  ;;  %7033 = vmatmul.mubr.msk.bf16.gmra.mxu1 %vm1417_vm2, %v7364_v46 }
  0xb9   : > { %6696 = vmatprep.mubr.msk.bf16.mxu0 %vm7509_vm1, %v7508_v1  ;;  %7036 = vmatprep.mubr.msk.bf16.mxu1 %vm7509_vm1, %v7508_v1 }
  0xc0   : > { %6697 = vmatmul.mubr.msk.bf16.gmra.mxu0 %vm1417_vm2, %v7365_v47  ;;  %7037 = vmatmul.mubr.msk.bf16.gmra.mxu1 %vm1417_vm2, %v7366_v48 }
  0xc1   : > { %6700 = vmatprep.mubr.msk.bf16.mxu0 %vm7509_vm1, %v7508_v1  ;;  %7040 = vmatprep.mubr.msk.bf16.mxu1 %vm7509_vm1, %v7508_v1 }
  0xc8   : > { %6701 = vmatmul.mubr.msk.bf16.gmra.mxu0 %vm1417_vm2, %v7367_v49  ;;  %7041 = vmatmul.mubr.msk.bf16.gmra.mxu1 %vm1417_vm2, %v7368_v50 }
  0xc9   : > { %6704 = vmatprep.mubr.msk.bf16.mxu0 %vm7509_vm1, %v7508_v1  ;;  %7044 = vmatprep.mubr.msk.bf16.mxu1 %vm7509_vm1, %v7508_v1 }
  0xd0   : > { %6705 = vmatmul.mubr.msk.bf16.gmra.mxu0 %vm1417_vm2, %v7369_v51  ;;  %7045 = vmatmul.mubr.msk.bf16.gmra.mxu1 %vm1417_vm2, %v7370_v52  ;;  %v7381_v51 = vld [vmem:[%s7568_s26 + $0xd8] sm:$0xff]   ;;  %v7382_v52 = vld [vmem:[%s7568_s26 + $0x380] sm:$0xff]  }
  0xd1   : > { %6708 = vmatprep.mubr.msk.bf16.mxu0 %vm7509_vm1, %v7508_v1  ;;  %7048 = vmatprep.mubr.msk.bf16.mxu1 %vm7509_vm1, %v7508_v1 }
  0xd8   : > { %6709 = vmatmul.mubr.msk.bf16.gmra.mxu0 %vm1417_vm2, %v7371_v53  ;;  %7049 = vmatmul.mubr.msk.bf16.gmra.mxu1 %vm1417_vm2, %v7372_v54 }
  0xd9   : > { %6712 = vmatprep.mubr.msk.bf16.mxu0 %vm7509_vm1, %v7508_v1  ;;  %7052 = vmatprep.mubr.msk.bf16.mxu1 %vm7509_vm1, %v7508_v1 }
  0xe0   : > { %6713 = vmatmul.mubr.msk.bf16.gmra.mxu0 %vm1417_vm2, %v7373_v55  ;;  %7053 = vmatmul.mubr.msk.bf16.gmra.mxu1 %vm1417_vm2, %v7374_v56 }
  0xe1   : > { %6716 = vmatprep.mubr.msk.bf16.mxu0 %vm7509_vm1, %v7508_v1  ;;  %7056 = vmatprep.mubr.msk.bf16.mxu1 %vm7509_vm1, %v7508_v1 }
  0xe8   : > { %v1963_v60 = vpop.f32.mrf.mxu0  ;;  %6717 = vmatmul.mubr.msk.bf16.gmra.mxu0 %vm1417_vm2, %v7375_v57  ;;  %v2643_v61 = vpop.f32.mrf.mxu1  ;;  %7057 = vmatmul.mubr.msk.bf16.gmra.mxu1 %vm1417_vm2, %v7376_v58 }
  0xe9   : > { %v1964_v62 = vadd.f32 %v7784_v59, %v1963_v60  ;;  %v2644_v63 = vadd.f32 %v7784_v59, %v2643_v61  ;;  %6720 = vmatprep.mubr.msk.bf16.mxu0 %vm7509_vm1, %v7508_v1  ;;  %7060 = vmatprep.mubr.msk.bf16.mxu1 %vm7509_vm1, %v7508_v1 }
  0xea   : > { %v6622_v0 = vpop.f32.mrf.mxu0  ;;  %v6962_v2 = vpop.f32.mrf.mxu1 }
  0xeb   : > { %v3314_v3 = vmax.f32 %v1964_v62, 0.0  ;;  %v3484_v4 = vmax.f32 %v2644_v63, 0.0 }
  0xec   : > { %v1966_v5 = vpop.f32.mrf.mxu0  ;;  %v2646_v6 = vpop.f32.mrf.mxu1 }
  0xed   : > { %v6092_v9 = vpack.c.bf16 %v3314_v3, %v3314_v3  ;;  %v6262_v10 = vpack.c.bf16 %v3484_v4, %v3484_v4  ;;  %v1967_v11 = vadd.f32 %v7784_v59, %v1966_v5  ;;  %v2647_v12 = vadd.f32 %v7784_v59, %v2646_v6 }
  0xee   : > { %v6623_v13 = vpop.f32.mrf.mxu0  ;;  %v6963_v14 = vpop.f32.mrf.mxu1 }
  0xef   : > { %5005 = vst.msk [vmem:[%s7799_s10] sm:$0xf] %vm5004_vm3, %v6092_v9  ;;  %5175 = vst.msk [vmem:[%s7799_s10 + $0x2a8] sm:$0xf] %vm5004_vm3, %v6262_v10  ;;  %v3315_v15 = vmax.f32 %v1967_v11, 0.0  ;;  %v3485_v16 = vmax.f32 %v2647_v12, 0.0 }
  0xf0   : > { %v1971_v17 = vpop.f32.mrf.mxu0  ;;  %6721 = vmatmul.mubr.msk.bf16.gmra.mxu0 %vm1417_vm2, %v7377_v7  ;;  %v2651_v18 = vpop.f32.mrf.mxu1  ;;  %7061 = vmatmul.mubr.msk.bf16.gmra.mxu1 %vm1417_vm2, %v7378_v8  ;;  %v7383_v11 = vld [vmem:[%s7568_s26 + $0xe0] sm:$0xff]   ;;  %v7384_v12 = vld [vmem:[%s7568_s26 + $0x388] sm:$0xff]  }
  0xf1   : > { %v6093_v19 = vpack.c.bf16 %v3315_v15, %v3315_v15  ;;  %v6263_v20 = vpack.c.bf16 %v3485_v16, %v3485_v16  ;;  %v1972_v21 = vadd.f32 %v7784_v59, %v1971_v17  ;;  %v2652_v22 = vadd.f32 %v7784_v59, %v2651_v18  ;;  %6724 = vmatprep.mubr.msk.bf16.mxu0 %vm7509_vm1, %v7508_v1 }
  0xf2   : > { %v6626_v23 = vpop.f32.mrf.mxu0  ;;  %v6966_v24 = vpop.f32.mrf.mxu1  ;;  %7064 = vmatprep.mubr.msk.bf16.mxu1 %vm7509_vm1, %v7508_v1 }
  0xf3   : > { %5006 = vst.msk [vmem:[%s7799_s10 + $0x4] sm:$0xf] %vm5004_vm3, %v6093_v19  ;;  %5176 = vst.msk [vmem:[%s7799_s10 + $0x2ac] sm:$0xf] %vm5004_vm3, %v6263_v20  ;;  %v3316_v25 = vmax.f32 %v1972_v21, 0.0  ;;  %v3486_v26 = vmax.f32 %v2652_v22, 0.0 }
  0xf4   : > { %v1974_v27 = vpop.f32.mrf.mxu0  ;;  %v2654_v28 = vpop.f32.mrf.mxu1 }
  0xf5   : > { %v6094_v31 = vpack.c.bf16 %v3316_v25, %v3316_v25  ;;  %v6264_v32 = vpack.c.bf16 %v3486_v26, %v3486_v26  ;;  %v1975_v33 = vadd.f32 %v7784_v59, %v1974_v27  ;;  %v2655_v34 = vadd.f32 %v7784_v59, %v2654_v28 }
  0xf6   : > { %v6627_v35 = vpop.f32.mrf.mxu0  ;;  %v6967_v36 = vpop.f32.mrf.mxu1 }
  0xf7   : > { %5007 = vst.msk [vmem:[%s7799_s10 + $0x8] sm:$0xf] %vm5004_vm3, %v6094_v31  ;;  %5177 = vst.msk [vmem:[%s7799_s10 + $0x2b0] sm:$0xf] %vm5004_vm3, %v6264_v32  ;;  %v3317_v37 = vmax.f32 %v1975_v33, 0.0  ;;  %v3487_v38 = vmax.f32 %v2655_v34, 0.0 }
  0xf8   : > { %v1979_v39 = vpop.f32.mrf.mxu0  ;;  %6725 = vmatmul.mubr.msk.bf16.gmra.mxu0 %vm1417_vm2, %v7379_v29  ;;  %v2659_v40 = vpop.f32.mrf.mxu1  ;;  %7065 = vmatmul.mubr.msk.bf16.gmra.mxu1 %vm1417_vm2, %v7380_v30  ;;  %v7385_v33 = vld [vmem:[%s7568_s26 + $0xe8] sm:$0xff]   ;;  %v7386_v34 = vld [vmem:[%s7568_s26 + $0x390] sm:$0xff]  }
  0xf9   : > { %v6095_v41 = vpack.c.bf16 %v3317_v37, %v3317_v37  ;;  %v6265_v42 = vpack.c.bf16 %v3487_v38, %v3487_v38  ;;  %v1980_v43 = vadd.f32 %v7784_v59, %v1979_v39  ;;  %v2660_v44 = vadd.f32 %v7784_v59, %v2659_v40  ;;  %6728 = vmatprep.mubr.msk.bf16.mxu0 %vm7509_vm1, %v7508_v1 }
  0xfa   : > { %v6630_v45 = vpop.f32.mrf.mxu0  ;;  %v6970_v46 = vpop.f32.mrf.mxu1  ;;  %7068 = vmatprep.mubr.msk.bf16.mxu1 %vm7509_vm1, %v7508_v1 }
  0xfb   : > { %5008 = vst.msk [vmem:[%s7799_s10 + $0xc] sm:$0xf] %vm5004_vm3, %v6095_v41  ;;  %5178 = vst.msk [vmem:[%s7799_s10 + $0x2b4] sm:$0xf] %vm5004_vm3, %v6265_v42  ;;  %v3318_v47 = vmax.f32 %v1980_v43, 0.0  ;;  %v3488_v48 = vmax.f32 %v2660_v44, 0.0 }
  0xfc   : > { %v1982_v49 = vpop.f32.mrf.mxu0  ;;  %v2662_v50 = vpop.f32.mrf.mxu1 }
  0xfd   : > { %v6096_v53 = vpack.c.bf16 %v3318_v47, %v3318_v47  ;;  %v6266_v54 = vpack.c.bf16 %v3488_v48, %v3488_v48  ;;  %v1983_v55 = vadd.f32 %v7784_v59, %v1982_v49  ;;  %v2663_v56 = vadd.f32 %v7784_v59, %v2662_v50 }
  0xfe   : > { %v6631_v57 = vpop.f32.mrf.mxu0  ;;  %v6971_v58 = vpop.f32.mrf.mxu1 }
  0xff   : > { %5009 = vst.msk [vmem:[%s7799_s10 + $0x10] sm:$0xf] %vm5004_vm3, %v6096_v53  ;;  %5179 = vst.msk [vmem:[%s7799_s10 + $0x2b8] sm:$0xf] %vm5004_vm3, %v6266_v54  ;;  %v3319_v60 = vmax.f32 %v1983_v55, 0.0  ;;  %v3489_v61 = vmax.f32 %v2663_v56, 0.0 }
 0x100   : > { %v1987_v62 = vpop.f32.mrf.mxu0  ;;  %6729 = vmatmul.mubr.msk.bf16.gmra.mxu0 %vm1417_vm2, %v7381_v51  ;;  %v2667_v63 = vpop.f32.mrf.mxu1  ;;  %7069 = vmatmul.mubr.msk.bf16.gmra.mxu1 %vm1417_vm2, %v7382_v52  ;;  %v7387_v55 = vld [vmem:[%s7568_s26 + $0xf0] sm:$0xff]   ;;  %v7388_v56 = vld [vmem:[%s7568_s26 + $0x398] sm:$0xff]  }
 0x101   : > { %v6097_v0 = vpack.c.bf16 %v3319_v60, %v3319_v60  ;;  %v6267_v2 = vpack.c.bf16 %v3489_v61, %v3489_v61  ;;  %v1988_v3 = vadd.f32 %v7784_v59, %v1987_v62  ;;  %v2668_v4 = vadd.f32 %v7784_v59, %v2667_v63  ;;  %6732 = vmatprep.mubr.msk.bf16.mxu0 %vm7509_vm1, %v7508_v1 }
 0x102   : > { %v6634_v5 = vpop.f32.mrf.mxu0  ;;  %v6974_v6 = vpop.f32.mrf.mxu1  ;;  %7072 = vmatprep.mubr.msk.bf16.mxu1 %vm7509_vm1, %v7508_v1 }
 0x103   : > { %5010 = vst.msk [vmem:[%s7799_s10 + $0x14] sm:$0xf] %vm5004_vm3, %v6097_v0  ;;  %5180 = vst.msk [vmem:[%s7799_s10 + $0x2bc] sm:$0xf] %vm5004_vm3, %v6267_v2  ;;  %v3320_v7 = vmax.f32 %v1988_v3, 0.0  ;;  %v3490_v8 = vmax.f32 %v2668_v4, 0.0 }
 0x104   : > { %v1990_v9 = vpop.f32.mrf.mxu0  ;;  %v2670_v10 = vpop.f32.mrf.mxu1 }
 0x105   : > { %v6098_v13 = vpack.c.bf16 %v3320_v7, %v3320_v7  ;;  %v6268_v14 = vpack.c.bf16 %v3490_v8, %v3490_v8  ;;  %v1991_v15 = vadd.f32 %v7784_v59, %v1990_v9  ;;  %v2671_v16 = vadd.f32 %v7784_v59, %v2670_v10 }
 0x106   : > { %v6635_v17 = vpop.f32.mrf.mxu0  ;;  %v6975_v18 = vpop.f32.mrf.mxu1 }
 0x107   : > { %5011 = vst.msk [vmem:[%s7799_s10 + $0x18] sm:$0xf] %vm5004_vm3, %v6098_v13  ;;  %5181 = vst.msk [vmem:[%s7799_s10 + $0x2c0] sm:$0xf] %vm5004_vm3, %v6268_v14  ;;  %v3321_v19 = vmax.f32 %v1991_v15, 0.0  ;;  %v3491_v20 = vmax.f32 %v2671_v16, 0.0 }
 0x108   : > { %v1995_v21 = vpop.f32.mrf.mxu0  ;;  %6733 = vmatmul.mubr.msk.bf16.gmra.mxu0 %vm1417_vm2, %v7383_v11  ;;  %v2675_v22 = vpop.f32.mrf.mxu1  ;;  %7073 = vmatmul.mubr.msk.bf16.gmra.mxu1 %vm1417_vm2, %v7384_v12  ;;  %v7389_v15 = vld [vmem:[%s7568_s26 + $0xf8] sm:$0xff]   ;;  %v7390_v16 = vld [vmem:[%s7568_s26 + $0x3a0] sm:$0xff]  }
 0x109   : > { %v6099_v23 = vpack.c.bf16 %v3321_v19, %v3321_v19  ;;  %v6269_v24 = vpack.c.bf16 %v3491_v20, %v3491_v20  ;;  %v1996_v25 = vadd.f32 %v7784_v59, %v1995_v21  ;;  %v2676_v26 = vadd.f32 %v7784_v59, %v2675_v22  ;;  %6736 = vmatprep.mubr.msk.bf16.mxu0 %vm7509_vm1, %v7508_v1 }
 0x10a   : > { %v6638_v27 = vpop.f32.mrf.mxu0  ;;  %v6978_v28 = vpop.f32.mrf.mxu1  ;;  %7076 = vmatprep.mubr.msk.bf16.mxu1 %vm7509_vm1, %v7508_v1 }
 0x10b   : > { %5012 = vst.msk [vmem:[%s7799_s10 + $0x1c] sm:$0xf] %vm5004_vm3, %v6099_v23  ;;  %5182 = vst.msk [vmem:[%s7799_s10 + $0x2c4] sm:$0xf] %vm5004_vm3, %v6269_v24  ;;  %v3322_v29 = vmax.f32 %v1996_v25, 0.0  ;;  %v3492_v30 = vmax.f32 %v2676_v26, 0.0 }
 0x10c   : > { %v1998_v31 = vpop.f32.mrf.mxu0  ;;  %v2678_v32 = vpop.f32.mrf.mxu1 }
 0x10d   : > { %v6100_v35 = vpack.c.bf16 %v3322_v29, %v3322_v29  ;;  %v6270_v36 = vpack.c.bf16 %v3492_v30, %v3492_v30  ;;  %v1999_v37 = vadd.f32 %v7784_v59, %v1998_v31  ;;  %v2679_v38 = vadd.f32 %v7784_v59, %v2678_v32 }
 0x10e   : > { %v6639_v39 = vpop.f32.mrf.mxu0  ;;  %v6979_v40 = vpop.f32.mrf.mxu1 }
 0x10f   : > { %5013 = vst.msk [vmem:[%s7799_s10 + $0x20] sm:$0xf] %vm5004_vm3, %v6100_v35  ;;  %5183 = vst.msk [vmem:[%s7799_s10 + $0x2c8] sm:$0xf] %vm5004_vm3, %v6270_v36  ;;  %v3323_v41 = vmax.f32 %v1999_v37, 0.0  ;;  %v3493_v42 = vmax.f32 %v2679_v38, 0.0 }
 0x110   : > { %v2003_v43 = vpop.f32.mrf.mxu0  ;;  %6737 = vmatmul.mubr.msk.bf16.gmra.mxu0 %vm1417_vm2, %v7385_v33  ;;  %v2683_v44 = vpop.f32.mrf.mxu1  ;;  %7077 = vmatmul.mubr.msk.bf16.gmra.mxu1 %vm1417_vm2, %v7386_v34  ;;  %v7391_v37 = vld [vmem:[%s7568_s26 + $0x100] sm:$0xff]   ;;  %v7392_v38 = vld [vmem:[%s7568_s26 + $0x3a8] sm:$0xff]  }
 0x111   : > { %v6101_v45 = vpack.c.bf16 %v3323_v41, %v3323_v41  ;;  %v6271_v46 = vpack.c.bf16 %v3493_v42, %v3493_v42  ;;  %v2004_v47 = vadd.f32 %v7784_v59, %v2003_v43  ;;  %v2684_v48 = vadd.f32 %v7784_v59, %v2683_v44  ;;  %6740 = vmatprep.mubr.msk.bf16.mxu0 %vm7509_vm1, %v7508_v1 }
 0x112   : > { %v6642_v49 = vpop.f32.mrf.mxu0  ;;  %v6982_v50 = vpop.f32.mrf.mxu1  ;;  %7080 = vmatprep.mubr.msk.bf16.mxu1 %vm7509_vm1, %v7508_v1 }
 0x113   : > { %5014 = vst.msk [vmem:[%s7799_s10 + $0x24] sm:$0xf] %vm5004_vm3, %v6101_v45  ;;  %5184 = vst.msk [vmem:[%s7799_s10 + $0x2cc] sm:$0xf] %vm5004_vm3, %v6271_v46  ;;  %v3324_v51 = vmax.f32 %v2004_v47, 0.0  ;;  %v3494_v52 = vmax.f32 %v2684_v48, 0.0 }
 0x114   : > { %v2006_v53 = vpop.f32.mrf.mxu0  ;;  %v2686_v54 = vpop.f32.mrf.mxu1 }
 0x115   : > { %v6102_v57 = vpack.c.bf16 %v3324_v51, %v3324_v51  ;;  %v6272_v58 = vpack.c.bf16 %v3494_v52, %v3494_v52  ;;  %v2007_v60 = vadd.f32 %v7784_v59, %v2006_v53  ;;  %v2687_v61 = vadd.f32 %v7784_v59, %v2686_v54 }
 0x116   : > { %v6643_v62 = vpop.f32.mrf.mxu0  ;;  %v6983_v63 = vpop.f32.mrf.mxu1 }
 0x117   : > { %5015 = vst.msk [vmem:[%s7799_s10 + $0x28] sm:$0xf] %vm5004_vm3, %v6102_v57  ;;  %5185 = vst.msk [vmem:[%s7799_s10 + $0x2d0] sm:$0xf] %vm5004_vm3, %v6272_v58  ;;  %v3325_v0 = vmax.f32 %v2007_v60, 0.0  ;;  %v3495_v2 = vmax.f32 %v2687_v61, 0.0 }
 0x118   : > { %v2011_v3 = vpop.f32.mrf.mxu0  ;;  %6741 = vmatmul.mubr.msk.bf16.gmra.mxu0 %vm1417_vm2, %v7387_v55  ;;  %v2691_v4 = vpop.f32.mrf.mxu1  ;;  %7081 = vmatmul.mubr.msk.bf16.gmra.mxu1 %vm1417_vm2, %v7388_v56  ;;  %v7393_v60 = vld [vmem:[%s7568_s26 + $0x108] sm:$0xff]   ;;  %v7394_v61 = vld [vmem:[%s7568_s26 + $0x3b0] sm:$0xff]  }
 0x119   : > { %v6103_v5 = vpack.c.bf16 %v3325_v0, %v3325_v0  ;;  %v6273_v6 = vpack.c.bf16 %v3495_v2, %v3495_v2  ;;  %v2012_v7 = vadd.f32 %v7784_v59, %v2011_v3  ;;  %v2692_v8 = vadd.f32 %v7784_v59, %v2691_v4  ;;  %6744 = vmatprep.mubr.msk.bf16.mxu0 %vm7509_vm1, %v7508_v1 }
 0x11a   : > { %v6646_v9 = vpop.f32.mrf.mxu0  ;;  %v6986_v10 = vpop.f32.mrf.mxu1  ;;  %7084 = vmatprep.mubr.msk.bf16.mxu1 %vm7509_vm1, %v7508_v1 }
 0x11b   : > { %5016 = vst.msk [vmem:[%s7799_s10 + $0x2c] sm:$0xf] %vm5004_vm3, %v6103_v5  ;;  %5186 = vst.msk [vmem:[%s7799_s10 + $0x2d4] sm:$0xf] %vm5004_vm3, %v6273_v6  ;;  %v3326_v11 = vmax.f32 %v2012_v7, 0.0  ;;  %v3496_v12 = vmax.f32 %v2692_v8, 0.0 }
 0x11c   : > { %v2014_v13 = vpop.f32.mrf.mxu0  ;;  %v2694_v14 = vpop.f32.mrf.mxu1 }
 0x11d   : > { %v6104_v17 = vpack.c.bf16 %v3326_v11, %v3326_v11  ;;  %v6274_v18 = vpack.c.bf16 %v3496_v12, %v3496_v12  ;;  %v2015_v19 = vadd.f32 %v7784_v59, %v2014_v13  ;;  %v2695_v20 = vadd.f32 %v7784_v59, %v2694_v14 }
 0x11e   : > { %v6647_v21 = vpop.f32.mrf.mxu0  ;;  %v6987_v22 = vpop.f32.mrf.mxu1 }
 0x11f   : > { %5017 = vst.msk [vmem:[%s7799_s10 + $0x30] sm:$0xf] %vm5004_vm3, %v6104_v17  ;;  %5187 = vst.msk [vmem:[%s7799_s10 + $0x2d8] sm:$0xf] %vm5004_vm3, %v6274_v18  ;;  %v3327_v23 = vmax.f32 %v2015_v19, 0.0  ;;  %v3497_v24 = vmax.f32 %v2695_v20, 0.0 }
 0x120   : > { %v2019_v25 = vpop.f32.mrf.mxu0  ;;  %6745 = vmatmul.mubr.msk.bf16.gmra.mxu0 %vm1417_vm2, %v7389_v15  ;;  %v2699_v26 = vpop.f32.mrf.mxu1  ;;  %7085 = vmatmul.mubr.msk.bf16.gmra.mxu1 %vm1417_vm2, %v7390_v16  ;;  %v7395_v19 = vld [vmem:[%s7568_s26 + $0x110] sm:$0xff]   ;;  %v7396_v20 = vld [vmem:[%s7568_s26 + $0x3b8] sm:$0xff]  }
 0x121   : > { %v6105_v27 = vpack.c.bf16 %v3327_v23, %v3327_v23  ;;  %v6275_v28 = vpack.c.bf16 %v3497_v24, %v3497_v24  ;;  %v2020_v29 = vadd.f32 %v7784_v59, %v2019_v25  ;;  %v2700_v30 = vadd.f32 %v7784_v59, %v2699_v26  ;;  %6748 = vmatprep.mubr.msk.bf16.mxu0 %vm7509_vm1, %v7508_v1 }
 0x122   : > { %v6650_v31 = vpop.f32.mrf.mxu0  ;;  %v6990_v32 = vpop.f32.mrf.mxu1  ;;  %7088 = vmatprep.mubr.msk.bf16.mxu1 %vm7509_vm1, %v7508_v1 }
 0x123   : > { %5018 = vst.msk [vmem:[%s7799_s10 + $0x34] sm:$0xf] %vm5004_vm3, %v6105_v27  ;;  %5188 = vst.msk [vmem:[%s7799_s10 + $0x2dc] sm:$0xf] %vm5004_vm3, %v6275_v28  ;;  %v3328_v33 = vmax.f32 %v2020_v29, 0.0  ;;  %v3498_v34 = vmax.f32 %v2700_v30, 0.0 }
 0x124   : > { %v2022_v35 = vpop.f32.mrf.mxu0  ;;  %v2702_v36 = vpop.f32.mrf.mxu1 }
 0x125   : > { %v6106_v39 = vpack.c.bf16 %v3328_v33, %v3328_v33  ;;  %v6276_v40 = vpack.c.bf16 %v3498_v34, %v3498_v34  ;;  %v2023_v41 = vadd.f32 %v7784_v59, %v2022_v35  ;;  %v2703_v42 = vadd.f32 %v7784_v59, %v2702_v36 }
 0x126   : > { %v6651_v43 = vpop.f32.mrf.mxu0  ;;  %v6991_v44 = vpop.f32.mrf.mxu1 }
 0x127   : > { %5019 = vst.msk [vmem:[%s7799_s10 + $0x38] sm:$0xf] %vm5004_vm3, %v6106_v39  ;;  %5189 = vst.msk [vmem:[%s7799_s10 + $0x2e0] sm:$0xf] %vm5004_vm3, %v6276_v40  ;;  %v3329_v45 = vmax.f32 %v2023_v41, 0.0  ;;  %v3499_v46 = vmax.f32 %v2703_v42, 0.0 }
 0x128   : > { %v2027_v47 = vpop.f32.mrf.mxu0  ;;  %6749 = vmatmul.mubr.msk.bf16.gmra.mxu0 %vm1417_vm2, %v7391_v37  ;;  %v2707_v48 = vpop.f32.mrf.mxu1  ;;  %7089 = vmatmul.mubr.msk.bf16.gmra.mxu1 %vm1417_vm2, %v7392_v38  ;;  %v7397_v41 = vld [vmem:[%s7568_s26 + $0x118] sm:$0xff]   ;;  %v7398_v42 = vld [vmem:[%s7568_s26 + $0x3c0] sm:$0xff]  }
 0x129   : > { %v6107_v49 = vpack.c.bf16 %v3329_v45, %v3329_v45  ;;  %v6277_v50 = vpack.c.bf16 %v3499_v46, %v3499_v46  ;;  %v2028_v51 = vadd.f32 %v7784_v59, %v2027_v47  ;;  %v2708_v52 = vadd.f32 %v7784_v59, %v2707_v48  ;;  %6752 = vmatprep.mubr.msk.bf16.mxu0 %vm7509_vm1, %v7508_v1 }
 0x12a   : > { %v6654_v53 = vpop.f32.mrf.mxu0  ;;  %v6994_v54 = vpop.f32.mrf.mxu1  ;;  %7092 = vmatprep.mubr.msk.bf16.mxu1 %vm7509_vm1, %v7508_v1 }
 0x12b   : > { %5020 = vst.msk [vmem:[%s7799_s10 + $0x3c] sm:$0xf] %vm5004_vm3, %v6107_v49  ;;  %5190 = vst.msk [vmem:[%s7799_s10 + $0x2e4] sm:$0xf] %vm5004_vm3, %v6277_v50  ;;  %v3330_v55 = vmax.f32 %v2028_v51, 0.0  ;;  %v3500_v56 = vmax.f32 %v2708_v52, 0.0 }
 0x12c   : > { %v2030_v57 = vpop.f32.mrf.mxu0  ;;  %v2710_v58 = vpop.f32.mrf.mxu1 }
 0x12d   : > { %v6108_v62 = vpack.c.bf16 %v3330_v55, %v3330_v55  ;;  %v6278_v63 = vpack.c.bf16 %v3500_v56, %v3500_v56  ;;  %v2031_v0 = vadd.f32 %v7784_v59, %v2030_v57  ;;  %v2711_v2 = vadd.f32 %v7784_v59, %v2710_v58 }
 0x12e   : > { %v6655_v3 = vpop.f32.mrf.mxu0  ;;  %v6995_v4 = vpop.f32.mrf.mxu1 }
 0x12f   : > { %5021 = vst.msk [vmem:[%s7799_s10 + $0x40] sm:$0xf] %vm5004_vm3, %v6108_v62  ;;  %5191 = vst.msk [vmem:[%s7799_s10 + $0x2e8] sm:$0xf] %vm5004_vm3, %v6278_v63  ;;  %v3331_v5 = vmax.f32 %v2031_v0, 0.0  ;;  %v3501_v6 = vmax.f32 %v2711_v2, 0.0 }
 0x130   : > { %v2035_v7 = vpop.f32.mrf.mxu0  ;;  %6753 = vmatmul.mubr.msk.bf16.gmra.mxu0 %vm1417_vm2, %v7393_v60  ;;  %v2715_v8 = vpop.f32.mrf.mxu1  ;;  %7093 = vmatmul.mubr.msk.bf16.gmra.mxu1 %vm1417_vm2, %v7394_v61  ;;  %v7399_v0 = vld [vmem:[%s7568_s26 + $0x120] sm:$0xff]   ;;  %v7400_v2 = vld [vmem:[%s7568_s26 + $0x3c8] sm:$0xff]  }
 0x131   : > { %v6109_v9 = vpack.c.bf16 %v3331_v5, %v3331_v5  ;;  %v6279_v10 = vpack.c.bf16 %v3501_v6, %v3501_v6  ;;  %v2036_v11 = vadd.f32 %v7784_v59, %v2035_v7  ;;  %v2716_v12 = vadd.f32 %v7784_v59, %v2715_v8  ;;  %6756 = vmatprep.mubr.msk.bf16.mxu0 %vm7509_vm1, %v7508_v1 }
 0x132   : > { %v6658_v13 = vpop.f32.mrf.mxu0  ;;  %v6998_v14 = vpop.f32.mrf.mxu1  ;;  %7096 = vmatprep.mubr.msk.bf16.mxu1 %vm7509_vm1, %v7508_v1 }
 0x133   : > { %5022 = vst.msk [vmem:[%s7799_s10 + $0x44] sm:$0xf] %vm5004_vm3, %v6109_v9  ;;  %5192 = vst.msk [vmem:[%s7799_s10 + $0x2ec] sm:$0xf] %vm5004_vm3, %v6279_v10  ;;  %v3332_v15 = vmax.f32 %v2036_v11, 0.0  ;;  %v3502_v16 = vmax.f32 %v2716_v12, 0.0 }
 0x134   : > { %v2038_v17 = vpop.f32.mrf.mxu0  ;;  %v2718_v18 = vpop.f32.mrf.mxu1 }
 0x135   : > { %v6110_v21 = vpack.c.bf16 %v3332_v15, %v3332_v15  ;;  %v6280_v22 = vpack.c.bf16 %v3502_v16, %v3502_v16  ;;  %v2039_v23 = vadd.f32 %v7784_v59, %v2038_v17  ;;  %v2719_v24 = vadd.f32 %v7784_v59, %v2718_v18 }
 0x136   : > { %v6659_v25 = vpop.f32.mrf.mxu0  ;;  %v6999_v26 = vpop.f32.mrf.mxu1 }
 0x137   : > { %5023 = vst.msk [vmem:[%s7799_s10 + $0x48] sm:$0xf] %vm5004_vm3, %v6110_v21  ;;  %5193 = vst.msk [vmem:[%s7799_s10 + $0x2f0] sm:$0xf] %vm5004_vm3, %v6280_v22  ;;  %v3333_v27 = vmax.f32 %v2039_v23, 0.0  ;;  %v3503_v28 = vmax.f32 %v2719_v24, 0.0 }
 0x138   : > { %v2043_v29 = vpop.f32.mrf.mxu0  ;;  %6757 = vmatmul.mubr.msk.bf16.gmra.mxu0 %vm1417_vm2, %v7395_v19  ;;  %v2723_v30 = vpop.f32.mrf.mxu1  ;;  %7097 = vmatmul.mubr.msk.bf16.gmra.mxu1 %vm1417_vm2, %v7396_v20  ;;  %v7401_v23 = vld [vmem:[%s7568_s26 + $0x128] sm:$0xff]   ;;  %v7402_v24 = vld [vmem:[%s7568_s26 + $0x3d0] sm:$0xff]  }
 0x139   : > { %v6111_v31 = vpack.c.bf16 %v3333_v27, %v3333_v27  ;;  %v6281_v32 = vpack.c.bf16 %v3503_v28, %v3503_v28  ;;  %v2044_v33 = vadd.f32 %v7784_v59, %v2043_v29  ;;  %v2724_v34 = vadd.f32 %v7784_v59, %v2723_v30  ;;  %6760 = vmatprep.mubr.msk.bf16.mxu0 %vm7509_vm1, %v7508_v1 }
 0x13a   : > { %v6662_v35 = vpop.f32.mrf.mxu0  ;;  %v7002_v36 = vpop.f32.mrf.mxu1  ;;  %7100 = vmatprep.mubr.msk.bf16.mxu1 %vm7509_vm1, %v7508_v1 }
 0x13b   : > { %5024 = vst.msk [vmem:[%s7799_s10 + $0x4c] sm:$0xf] %vm5004_vm3, %v6111_v31  ;;  %5194 = vst.msk [vmem:[%s7799_s10 + $0x2f4] sm:$0xf] %vm5004_vm3, %v6281_v32  ;;  %v3334_v37 = vmax.f32 %v2044_v33, 0.0  ;;  %v3504_v38 = vmax.f32 %v2724_v34, 0.0 }
 0x13c   : > { %v2046_v39 = vpop.f32.mrf.mxu0  ;;  %v2726_v40 = vpop.f32.mrf.mxu1 }
 0x13d   : > { %v6112_v43 = vpack.c.bf16 %v3334_v37, %v3334_v37  ;;  %v6282_v44 = vpack.c.bf16 %v3504_v38, %v3504_v38  ;;  %v2047_v45 = vadd.f32 %v7784_v59, %v2046_v39  ;;  %v2727_v46 = vadd.f32 %v7784_v59, %v2726_v40 }
 0x13e   : > { %v6663_v47 = vpop.f32.mrf.mxu0  ;;  %v7003_v48 = vpop.f32.mrf.mxu1 }
 0x13f   : > { %5025 = vst.msk [vmem:[%s7799_s10 + $0x50] sm:$0xf] %vm5004_vm3, %v6112_v43  ;;  %5195 = vst.msk [vmem:[%s7799_s10 + $0x2f8] sm:$0xf] %vm5004_vm3, %v6282_v44  ;;  %v3335_v49 = vmax.f32 %v2047_v45, 0.0  ;;  %v3505_v50 = vmax.f32 %v2727_v46, 0.0 }
 0x140   : > { %v2051_v51 = vpop.f32.mrf.mxu0  ;;  %6761 = vmatmul.mubr.msk.bf16.gmra.mxu0 %vm1417_vm2, %v7397_v41  ;;  %v2731_v52 = vpop.f32.mrf.mxu1  ;;  %7101 = vmatmul.mubr.msk.bf16.gmra.mxu1 %vm1417_vm2, %v7398_v42  ;;  %v7403_v45 = vld [vmem:[%s7568_s26 + $0x130] sm:$0xff]   ;;  %v7404_v46 = vld [vmem:[%s7568_s26 + $0x3d8] sm:$0xff]  }
 0x141   : > { %v6113_v53 = vpack.c.bf16 %v3335_v49, %v3335_v49  ;;  %v6283_v54 = vpack.c.bf16 %v3505_v50, %v3505_v50  ;;  %v2052_v55 = vadd.f32 %v7784_v59, %v2051_v51  ;;  %v2732_v56 = vadd.f32 %v7784_v59, %v2731_v52  ;;  %6764 = vmatprep.mubr.msk.bf16.mxu0 %vm7509_vm1, %v7508_v1 }
 0x142   : > { %v6666_v57 = vpop.f32.mrf.mxu0  ;;  %v7006_v58 = vpop.f32.mrf.mxu1  ;;  %7104 = vmatprep.mubr.msk.bf16.mxu1 %vm7509_vm1, %v7508_v1 }
 0x143   : > { %5026 = vst.msk [vmem:[%s7799_s10 + $0x54] sm:$0xf] %vm5004_vm3, %v6113_v53  ;;  %5196 = vst.msk [vmem:[%s7799_s10 + $0x2fc] sm:$0xf] %vm5004_vm3, %v6283_v54  ;;  %v3336_v60 = vmax.f32 %v2052_v55, 0.0  ;;  %v3506_v61 = vmax.f32 %v2732_v56, 0.0 }
 0x144   : > { %v2054_v62 = vpop.f32.mrf.mxu0  ;;  %v2734_v63 = vpop.f32.mrf.mxu1 }
 0x145   : > { %v6114_v3 = vpack.c.bf16 %v3336_v60, %v3336_v60  ;;  %v6284_v4 = vpack.c.bf16 %v3506_v61, %v3506_v61  ;;  %v2055_v5 = vadd.f32 %v7784_v59, %v2054_v62  ;;  %v2735_v6 = vadd.f32 %v7784_v59, %v2734_v63 }
 0x146   : > { %v6667_v7 = vpop.f32.mrf.mxu0  ;;  %v7007_v8 = vpop.f32.mrf.mxu1 }
 0x147   : > { %5027 = vst.msk [vmem:[%s7799_s10 + $0x58] sm:$0xf] %vm5004_vm3, %v6114_v3  ;;  %5197 = vst.msk [vmem:[%s7799_s10 + $0x300] sm:$0xf] %vm5004_vm3, %v6284_v4  ;;  %v3337_v9 = vmax.f32 %v2055_v5, 0.0  ;;  %v3507_v10 = vmax.f32 %v2735_v6, 0.0 }
 0x148   : > { %v2059_v11 = vpop.f32.mrf.mxu0  ;;  %6765 = vmatmul.mubr.msk.bf16.gmra.mxu0 %vm1417_vm2, %v7399_v0  ;;  %v2739_v12 = vpop.f32.mrf.mxu1  ;;  %7105 = vmatmul.mubr.msk.bf16.gmra.mxu1 %vm1417_vm2, %v7400_v2  ;;  %v7405_v5 = vld [vmem:[%s7568_s26 + $0x138] sm:$0xff]   ;;  %v7406_v6 = vld [vmem:[%s7568_s26 + $0x3e0] sm:$0xff]  }
 0x149   : > { %v6115_v13 = vpack.c.bf16 %v3337_v9, %v3337_v9  ;;  %v6285_v14 = vpack.c.bf16 %v3507_v10, %v3507_v10  ;;  %v2060_v15 = vadd.f32 %v7784_v59, %v2059_v11  ;;  %v2740_v16 = vadd.f32 %v7784_v59, %v2739_v12  ;;  %6768 = vmatprep.mubr.msk.bf16.mxu0 %vm7509_vm1, %v7508_v1 }
 0x14a   : > { %v6670_v17 = vpop.f32.mrf.mxu0  ;;  %v7010_v18 = vpop.f32.mrf.mxu1  ;;  %7108 = vmatprep.mubr.msk.bf16.mxu1 %vm7509_vm1, %v7508_v1 }
 0x14b   : > { %5028 = vst.msk [vmem:[%s7799_s10 + $0x5c] sm:$0xf] %vm5004_vm3, %v6115_v13  ;;  %5198 = vst.msk [vmem:[%s7799_s10 + $0x304] sm:$0xf] %vm5004_vm3, %v6285_v14  ;;  %v3338_v19 = vmax.f32 %v2060_v15, 0.0  ;;  %v3508_v20 = vmax.f32 %v2740_v16, 0.0 }
 0x14c   : > { %v2062_v21 = vpop.f32.mrf.mxu0  ;;  %v2742_v22 = vpop.f32.mrf.mxu1 }
 0x14d   : > { %v6116_v25 = vpack.c.bf16 %v3338_v19, %v3338_v19  ;;  %v6286_v26 = vpack.c.bf16 %v3508_v20, %v3508_v20  ;;  %v2063_v27 = vadd.f32 %v7784_v59, %v2062_v21  ;;  %v2743_v28 = vadd.f32 %v7784_v59, %v2742_v22 }
 0x14e   : > { %v6671_v29 = vpop.f32.mrf.mxu0  ;;  %v7011_v30 = vpop.f32.mrf.mxu1 }
 0x14f   : > { %5029 = vst.msk [vmem:[%s7799_s10 + $0x60] sm:$0xf] %vm5004_vm3, %v6116_v25  ;;  %5199 = vst.msk [vmem:[%s7799_s10 + $0x308] sm:$0xf] %vm5004_vm3, %v6286_v26  ;;  %v3339_v31 = vmax.f32 %v2063_v27, 0.0  ;;  %v3509_v32 = vmax.f32 %v2743_v28, 0.0 }
 0x150   : > { %v2067_v33 = vpop.f32.mrf.mxu0  ;;  %6769 = vmatmul.mubr.msk.bf16.gmra.mxu0 %vm1417_vm2, %v7401_v23  ;;  %v2747_v34 = vpop.f32.mrf.mxu1  ;;  %7109 = vmatmul.mubr.msk.bf16.gmra.mxu1 %vm1417_vm2, %v7402_v24  ;;  %v7407_v27 = vld [vmem:[%s7568_s26 + $0x140] sm:$0xff]   ;;  %v7408_v28 = vld [vmem:[%s7568_s26 + $0x3e8] sm:$0xff]  }
 0x151   : > { %v6117_v35 = vpack.c.bf16 %v3339_v31, %v3339_v31  ;;  %v6287_v36 = vpack.c.bf16 %v3509_v32, %v3509_v32  ;;  %v2068_v37 = vadd.f32 %v7784_v59, %v2067_v33  ;;  %v2748_v38 = vadd.f32 %v7784_v59, %v2747_v34  ;;  %6772 = vmatprep.mubr.msk.bf16.mxu0 %vm7509_vm1, %v7508_v1 }
 0x152   : > { %v6674_v39 = vpop.f32.mrf.mxu0  ;;  %v7014_v40 = vpop.f32.mrf.mxu1  ;;  %7112 = vmatprep.mubr.msk.bf16.mxu1 %vm7509_vm1, %v7508_v1 }
 0x153   : > { %5030 = vst.msk [vmem:[%s7799_s10 + $0x64] sm:$0xf] %vm5004_vm3, %v6117_v35  ;;  %5200 = vst.msk [vmem:[%s7799_s10 + $0x30c] sm:$0xf] %vm5004_vm3, %v6287_v36  ;;  %v3340_v41 = vmax.f32 %v2068_v37, 0.0  ;;  %v3510_v42 = vmax.f32 %v2748_v38, 0.0 }
 0x154   : > { %v2070_v43 = vpop.f32.mrf.mxu0  ;;  %v2750_v44 = vpop.f32.mrf.mxu1 }
 0x155   : > { %v6118_v47 = vpack.c.bf16 %v3340_v41, %v3340_v41  ;;  %v6288_v48 = vpack.c.bf16 %v3510_v42, %v3510_v42  ;;  %v2071_v49 = vadd.f32 %v7784_v59, %v2070_v43  ;;  %v2751_v50 = vadd.f32 %v7784_v59, %v2750_v44 }
 0x156   : > { %v6675_v51 = vpop.f32.mrf.mxu0  ;;  %v7015_v52 = vpop.f32.mrf.mxu1 }
 0x157   : > { %5031 = vst.msk [vmem:[%s7799_s10 + $0x68] sm:$0xf] %vm5004_vm3, %v6118_v47  ;;  %5201 = vst.msk [vmem:[%s7799_s10 + $0x310] sm:$0xf] %vm5004_vm3, %v6288_v48  ;;  %v3341_v53 = vmax.f32 %v2071_v49, 0.0  ;;  %v3511_v54 = vmax.f32 %v2751_v50, 0.0 }
 0x158   : > { %v2075_v55 = vpop.f32.mrf.mxu0  ;;  %6773 = vmatmul.mubr.msk.bf16.gmra.mxu0 %vm1417_vm2, %v7403_v45  ;;  %v2755_v56 = vpop.f32.mrf.mxu1  ;;  %7113 = vmatmul.mubr.msk.bf16.gmra.mxu1 %vm1417_vm2, %v7404_v46  ;;  %v7409_v49 = vld [vmem:[%s7568_s26 + $0x148] sm:$0xff]   ;;  %v7410_v50 = vld [vmem:[%s7568_s26 + $0x3f0] sm:$0xff]  }
 0x159   : > { %v6119_v57 = vpack.c.bf16 %v3341_v53, %v3341_v53  ;;  %v6289_v58 = vpack.c.bf16 %v3511_v54, %v3511_v54  ;;  %v2076_v60 = vadd.f32 %v7784_v59, %v2075_v55  ;;  %v2756_v61 = vadd.f32 %v7784_v59, %v2755_v56  ;;  %6776 = vmatprep.mubr.msk.bf16.mxu0 %vm7509_vm1, %v7508_v1 }
 0x15a   : > { %v6678_v62 = vpop.f32.mrf.mxu0  ;;  %v7018_v63 = vpop.f32.mrf.mxu1  ;;  %7116 = vmatprep.mubr.msk.bf16.mxu1 %vm7509_vm1, %v7508_v1 }
 0x15b   : > { %5032 = vst.msk [vmem:[%s7799_s10 + $0x6c] sm:$0xf] %vm5004_vm3, %v6119_v57  ;;  %5202 = vst.msk [vmem:[%s7799_s10 + $0x314] sm:$0xf] %vm5004_vm3, %v6289_v58  ;;  %v3342_v0 = vmax.f32 %v2076_v60, 0.0  ;;  %v3512_v2 = vmax.f32 %v2756_v61, 0.0 }
 0x15c   : > { %v2078_v3 = vpop.f32.mrf.mxu0  ;;  %v2758_v4 = vpop.f32.mrf.mxu1  ;;  %v8134_v63 = vld [vmem:[%s9310_s2] ss:$0 sm:$0xff] }
 0x15d   : > { %v6120_v7 = vpack.c.bf16 %v3342_v0, %v3342_v0  ;;  %v6290_v8 = vpack.c.bf16 %v3512_v2, %v3512_v2  ;;  %v2079_v9 = vadd.f32 %v7784_v59, %v2078_v3  ;;  %v2759_v10 = vadd.f32 %v7784_v59, %v2758_v4 }
 0x15e   : > { %v6679_v11 = vpop.f32.mrf.mxu0  ;;  %v7019_v12 = vpop.f32.mrf.mxu1 }
 0x15f   : > { %5033 = vst.msk [vmem:[%s7799_s10 + $0x70] sm:$0xf] %vm5004_vm3, %v6120_v7  ;;  %5203 = vst.msk [vmem:[%s7799_s10 + $0x318] sm:$0xf] %vm5004_vm3, %v6290_v8  ;;  %v3343_v13 = vmax.f32 %v2079_v9, 0.0  ;;  %v3513_v14 = vmax.f32 %v2759_v10, 0.0 }
 0x160   : > { %v2083_v15 = vpop.f32.mrf.mxu0  ;;  %6777 = vmatmul.mubr.msk.bf16.gmra.mxu0 %vm1417_vm2, %v7405_v5  ;;  %v2763_v16 = vpop.f32.mrf.mxu1  ;;  %7117 = vmatmul.mubr.msk.bf16.gmra.mxu1 %vm1417_vm2, %v7406_v6  ;;  %v7411_v9 = vld [vmem:[%s7568_s26 + $0x150] sm:$0xff]   ;;  %v7412_v10 = vld [vmem:[%s7568_s26 + $0x3f8] sm:$0xff]  }
 0x161   : > { %v6121_v17 = vpack.c.bf16 %v3343_v13, %v3343_v13  ;;  %v6291_v18 = vpack.c.bf16 %v3513_v14, %v3513_v14  ;;  %v2084_v19 = vadd.f32 %v7784_v59, %v2083_v15  ;;  %v2764_v20 = vadd.f32 %v7784_v59, %v2763_v16  ;;  %6780 = vmatprep.mubr.msk.bf16.mxu0 %vm7509_vm1, %v7508_v1 }
 0x162   : > { %v6682_v21 = vpop.f32.mrf.mxu0  ;;  %v7022_v22 = vpop.f32.mrf.mxu1  ;;  %7120 = vmatprep.mubr.msk.bf16.mxu1 %vm7509_vm1, %v7508_v1 }
 0x163   : > { %5034 = vst.msk [vmem:[%s7799_s10 + $0x74] sm:$0xf] %vm5004_vm3, %v6121_v17  ;;  %5204 = vst.msk [vmem:[%s7799_s10 + $0x31c] sm:$0xf] %vm5004_vm3, %v6291_v18  ;;  %v3344_v23 = vmax.f32 %v2084_v19, 0.0  ;;  %v3514_v24 = vmax.f32 %v2764_v20, 0.0 }
 0x164   : > { %v2086_v25 = vpop.f32.mrf.mxu0  ;;  %v2766_v26 = vpop.f32.mrf.mxu1 }
 0x165   : > { %v6122_v29 = vpack.c.bf16 %v3344_v23, %v3344_v23  ;;  %v6292_v30 = vpack.c.bf16 %v3514_v24, %v3514_v24  ;;  %v2087_v31 = vadd.f32 %v7784_v59, %v2086_v25  ;;  %v2767_v32 = vadd.f32 %v7784_v59, %v2766_v26 }
 0x166   : > { %v6683_v33 = vpop.f32.mrf.mxu0  ;;  %v7023_v34 = vpop.f32.mrf.mxu1 }
 0x167   : > { %5035 = vst.msk [vmem:[%s7799_s10 + $0x78] sm:$0xf] %vm5004_vm3, %v6122_v29  ;;  %5205 = vst.msk [vmem:[%s7799_s10 + $0x320] sm:$0xf] %vm5004_vm3, %v6292_v30  ;;  %v3345_v35 = vmax.f32 %v2087_v31, 0.0  ;;  %v3515_v36 = vmax.f32 %v2767_v32, 0.0 }
 0x168   : > { %v2091_v37 = vpop.f32.mrf.mxu0  ;;  %6781 = vmatmul.mubr.msk.bf16.gmra.mxu0 %vm1417_vm2, %v7407_v27  ;;  %v2771_v38 = vpop.f32.mrf.mxu1  ;;  %7121 = vmatmul.mubr.msk.bf16.gmra.mxu1 %vm1417_vm2, %v7408_v28  ;;  %v7413_v31 = vld [vmem:[%s7568_s26 + $0x158] sm:$0xff]   ;;  %v7414_v32 = vld [vmem:[%s7568_s26 + $0x400] sm:$0xff]  }
 0x169   : > { %v6123_v39 = vpack.c.bf16 %v3345_v35, %v3345_v35  ;;  %v6293_v40 = vpack.c.bf16 %v3515_v36, %v3515_v36  ;;  %v2092_v41 = vadd.f32 %v7784_v59, %v2091_v37  ;;  %v2772_v42 = vadd.f32 %v7784_v59, %v2771_v38  ;;  %6784 = vmatprep.mubr.msk.bf16.mxu0 %vm7509_vm1, %v7508_v1 }
 0x16a   : > { %v6686_v43 = vpop.f32.mrf.mxu0  ;;  %v7026_v44 = vpop.f32.mrf.mxu1  ;;  %7124 = vmatprep.mubr.msk.bf16.mxu1 %vm7509_vm1, %v7508_v1 }
 0x16b   : > { %5036 = vst.msk [vmem:[%s7799_s10 + $0x7c] sm:$0xf] %vm5004_vm3, %v6123_v39  ;;  %5206 = vst.msk [vmem:[%s7799_s10 + $0x324] sm:$0xf] %vm5004_vm3, %v6293_v40  ;;  %v3346_v45 = vmax.f32 %v2092_v41, 0.0  ;;  %v3516_v46 = vmax.f32 %v2772_v42, 0.0 }
 0x16c   : > { %v2094_v47 = vpop.f32.mrf.mxu0  ;;  %v2774_v48 = vpop.f32.mrf.mxu1 }
 0x16d   : > { %v6124_v51 = vpack.c.bf16 %v3346_v45, %v3346_v45  ;;  %v6294_v52 = vpack.c.bf16 %v3516_v46, %v3516_v46  ;;  %v2095_v53 = vadd.f32 %v7784_v59, %v2094_v47  ;;  %v2775_v54 = vadd.f32 %v7784_v59, %v2774_v48 }
 0x16e   : > { %v6687_v55 = vpop.f32.mrf.mxu0  ;;  %v7027_v56 = vpop.f32.mrf.mxu1 }
 0x16f   : > { %5037 = vst.msk [vmem:[%s7799_s10 + $0x80] sm:$0xf] %vm5004_vm3, %v6124_v51  ;;  %5207 = vst.msk [vmem:[%s7799_s10 + $0x328] sm:$0xf] %vm5004_vm3, %v6294_v52  ;;  %v3347_v57 = vmax.f32 %v2095_v53, 0.0  ;;  %v3517_v58 = vmax.f32 %v2775_v54, 0.0 }
 0x170   : > { %v2099_v60 = vpop.f32.mrf.mxu0  ;;  %6785 = vmatmul.mubr.msk.bf16.gmra.mxu0 %vm1417_vm2, %v7409_v49  ;;  %v2779_v61 = vpop.f32.mrf.mxu1  ;;  %7125 = vmatmul.mubr.msk.bf16.gmra.mxu1 %vm1417_vm2, %v7410_v50  ;;  %v7415_v53 = vld [vmem:[%s7568_s26 + $0x160] sm:$0xff]   ;;  %v7416_v54 = vld [vmem:[%s7568_s26 + $0x408] sm:$0xff]  }
 0x171   : > { %v6125_v62 = vpack.c.bf16 %v3347_v57, %v3347_v57  ;;  %v6295_v59 = vpack.c.bf16 %v3517_v58, %v3517_v58  ;;  %v2100_v0 = vadd.f32 %v8134_v63, %v2099_v60  ;;  %v2780_v2 = vadd.f32 %v8134_v63, %v2779_v61  ;;  %6788 = vmatprep.mubr.msk.bf16.mxu0 %vm7509_vm1, %v7508_v1 }
 0x172   : > { %v6690_v3 = vpop.f32.mrf.mxu0  ;;  %v7030_v4 = vpop.f32.mrf.mxu1  ;;  %7128 = vmatprep.mubr.msk.bf16.mxu1 %vm7509_vm1, %v7508_v1 }
 0x173   : > { %5038 = vst.msk [vmem:[%s7799_s10 + $0x84] sm:$0xf] %vm5004_vm3, %v6125_v62  ;;  %5208 = vst.msk [vmem:[%s7799_s10 + $0x32c] sm:$0xf] %vm5004_vm3, %v6295_v59  ;;  %v3348_v5 = vmax.f32 %v2100_v0, 0.0  ;;  %v3518_v6 = vmax.f32 %v2780_v2, 0.0 }
 0x174   : > { %v2102_v7 = vpop.f32.mrf.mxu0  ;;  %v2782_v8 = vpop.f32.mrf.mxu1 }
 0x175   : > { %v6126_v11 = vpack.c.bf16 %v3348_v5, %v3348_v5  ;;  %v6296_v12 = vpack.c.bf16 %v3518_v6, %v3518_v6  ;;  %v2103_v13 = vadd.f32 %v8134_v63, %v2102_v7  ;;  %v2783_v14 = vadd.f32 %v8134_v63, %v2782_v8 }
 0x176   : > { %v6691_v15 = vpop.f32.mrf.mxu0  ;;  %v7031_v16 = vpop.f32.mrf.mxu1 }
 0x177   : > { %5039 = vst.msk [vmem:[%s7799_s10 + $0x88] sm:$0xf] %vm5004_vm3, %v6126_v11  ;;  %5209 = vst.msk [vmem:[%s7799_s10 + $0x330] sm:$0xf] %vm5004_vm3, %v6296_v12  ;;  %v3349_v17 = vmax.f32 %v2103_v13, 0.0  ;;  %v3519_v18 = vmax.f32 %v2783_v14, 0.0 }
 0x178   : > { %v2107_v19 = vpop.f32.mrf.mxu0  ;;  %6789 = vmatmul.mubr.msk.bf16.gmra.mxu0 %vm1417_vm2, %v7411_v9  ;;  %v2787_v20 = vpop.f32.mrf.mxu1  ;;  %7129 = vmatmul.mubr.msk.bf16.gmra.mxu1 %vm1417_vm2, %v7412_v10  ;;  %v7417_v13 = vld [vmem:[%s7568_s26 + $0x168] sm:$0xff]   ;;  %v7418_v14 = vld [vmem:[%s7568_s26 + $0x410] sm:$0xff]  }
 0x179   : > { %v6127_v21 = vpack.c.bf16 %v3349_v17, %v3349_v17  ;;  %v6297_v22 = vpack.c.bf16 %v3519_v18, %v3519_v18  ;;  %v2108_v23 = vadd.f32 %v8134_v63, %v2107_v19  ;;  %v2788_v24 = vadd.f32 %v8134_v63, %v2787_v20  ;;  %6792 = vmatprep.mubr.msk.bf16.mxu0 %vm7509_vm1, %v7508_v1 }
 0x17a   : > { %v6694_v25 = vpop.f32.mrf.mxu0  ;;  %v7034_v26 = vpop.f32.mrf.mxu1  ;;  %7132 = vmatprep.mubr.msk.bf16.mxu1 %vm7509_vm1, %v7508_v1 }
 0x17b   : > { %5040 = vst.msk [vmem:[%s7799_s10 + $0x8c] sm:$0xf] %vm5004_vm3, %v6127_v21  ;;  %5210 = vst.msk [vmem:[%s7799_s10 + $0x334] sm:$0xf] %vm5004_vm3, %v6297_v22  ;;  %v3350_v27 = vmax.f32 %v2108_v23, 0.0  ;;  %v3520_v28 = vmax.f32 %v2788_v24, 0.0 }
 0x17c   : > { %v2110_v29 = vpop.f32.mrf.mxu0  ;;  %v2790_v30 = vpop.f32.mrf.mxu1 }
 0x17d   : > { %v6128_v33 = vpack.c.bf16 %v3350_v27, %v3350_v27  ;;  %v6298_v34 = vpack.c.bf16 %v3520_v28, %v3520_v28  ;;  %v2111_v35 = vadd.f32 %v8134_v63, %v2110_v29  ;;  %v2791_v36 = vadd.f32 %v8134_v63, %v2790_v30 }
 0x17e   : > { %v6695_v37 = vpop.f32.mrf.mxu0  ;;  %v7035_v38 = vpop.f32.mrf.mxu1 }
 0x17f   : > { %5041 = vst.msk [vmem:[%s7799_s10 + $0x90] sm:$0xf] %vm5004_vm3, %v6128_v33  ;;  %5211 = vst.msk [vmem:[%s7799_s10 + $0x338] sm:$0xf] %vm5004_vm3, %v6298_v34  ;;  %v3351_v39 = vmax.f32 %v2111_v35, 0.0  ;;  %v3521_v40 = vmax.f32 %v2791_v36, 0.0 }
 0x180   : > { %v2115_v41 = vpop.f32.mrf.mxu0  ;;  %6793 = vmatmul.mubr.msk.bf16.gmra.mxu0 %vm1417_vm2, %v7413_v31  ;;  %v2795_v42 = vpop.f32.mrf.mxu1  ;;  %7133 = vmatmul.mubr.msk.bf16.gmra.mxu1 %vm1417_vm2, %v7414_v32  ;;  %v7419_v35 = vld [vmem:[%s7568_s26 + $0x170] sm:$0xff]   ;;  %v7420_v36 = vld [vmem:[%s7568_s26 + $0x418] sm:$0xff]  }
 0x181   : > { %v6129_v43 = vpack.c.bf16 %v3351_v39, %v3351_v39  ;;  %v6299_v44 = vpack.c.bf16 %v3521_v40, %v3521_v40  ;;  %v2116_v45 = vadd.f32 %v8134_v63, %v2115_v41  ;;  %v2796_v46 = vadd.f32 %v8134_v63, %v2795_v42  ;;  %6796 = vmatprep.mubr.msk.bf16.mxu0 %vm7509_vm1, %v7508_v1 }
 0x182   : > { %v6698_v47 = vpop.f32.mrf.mxu0  ;;  %v7038_v48 = vpop.f32.mrf.mxu1  ;;  %7136 = vmatprep.mubr.msk.bf16.mxu1 %vm7509_vm1, %v7508_v1 }
 0x183   : > { %5042 = vst.msk [vmem:[%s7799_s10 + $0x94] sm:$0xf] %vm5004_vm3, %v6129_v43  ;;  %5212 = vst.msk [vmem:[%s7799_s10 + $0x33c] sm:$0xf] %vm5004_vm3, %v6299_v44  ;;  %v3352_v49 = vmax.f32 %v2116_v45, 0.0  ;;  %v3522_v50 = vmax.f32 %v2796_v46, 0.0 }
 0x184   : > { %v2118_v51 = vpop.f32.mrf.mxu0  ;;  %v2798_v52 = vpop.f32.mrf.mxu1 }
 0x185   : > { %v6130_v55 = vpack.c.bf16 %v3352_v49, %v3352_v49  ;;  %v6300_v56 = vpack.c.bf16 %v3522_v50, %v3522_v50  ;;  %v2119_v57 = vadd.f32 %v8134_v63, %v2118_v51  ;;  %v2799_v58 = vadd.f32 %v8134_v63, %v2798_v52 }
 0x186   : > { %v6699_v60 = vpop.f32.mrf.mxu0  ;;  %v7039_v61 = vpop.f32.mrf.mxu1 }
 0x187   : > { %5043 = vst.msk [vmem:[%s7799_s10 + $0x98] sm:$0xf] %vm5004_vm3, %v6130_v55  ;;  %5213 = vst.msk [vmem:[%s7799_s10 + $0x340] sm:$0xf] %vm5004_vm3, %v6300_v56  ;;  %v3353_v62 = vmax.f32 %v2119_v57, 0.0  ;;  %v3523_v59 = vmax.f32 %v2799_v58, 0.0 }
 0x188   : > { %v2123_v0 = vpop.f32.mrf.mxu0  ;;  %6797 = vmatmul.mubr.msk.bf16.gmra.mxu0 %vm1417_vm2, %v7415_v53  ;;  %v2803_v2 = vpop.f32.mrf.mxu1  ;;  %7137 = vmatmul.mubr.msk.bf16.gmra.mxu1 %vm1417_vm2, %v7416_v54  ;;  %v7421_v57 = vld [vmem:[%s7568_s26 + $0x178] sm:$0xff]   ;;  %v7422_v58 = vld [vmem:[%s7568_s26 + $0x420] sm:$0xff]  }
 0x189   : > { %v6131_v3 = vpack.c.bf16 %v3353_v62, %v3353_v62  ;;  %v6301_v4 = vpack.c.bf16 %v3523_v59, %v3523_v59  ;;  %v2124_v5 = vadd.f32 %v8134_v63, %v2123_v0  ;;  %v2804_v6 = vadd.f32 %v8134_v63, %v2803_v2  ;;  %6800 = vmatprep.mubr.msk.bf16.mxu0 %vm7509_vm1, %v7508_v1 }
 0x18a   : > { %v6702_v7 = vpop.f32.mrf.mxu0  ;;  %v7042_v8 = vpop.f32.mrf.mxu1  ;;  %7140 = vmatprep.mubr.msk.bf16.mxu1 %vm7509_vm1, %v7508_v1 }
 0x18b   : > { %5044 = vst.msk [vmem:[%s7799_s10 + $0x9c] sm:$0xf] %vm5004_vm3, %v6131_v3  ;;  %5214 = vst.msk [vmem:[%s7799_s10 + $0x344] sm:$0xf] %vm5004_vm3, %v6301_v4  ;;  %v3354_v9 = vmax.f32 %v2124_v5, 0.0  ;;  %v3524_v10 = vmax.f32 %v2804_v6, 0.0 }
 0x18c   : > { %v2126_v11 = vpop.f32.mrf.mxu0  ;;  %v2806_v12 = vpop.f32.mrf.mxu1 }
 0x18d   : > { %v6132_v15 = vpack.c.bf16 %v3354_v9, %v3354_v9  ;;  %v6302_v16 = vpack.c.bf16 %v3524_v10, %v3524_v10  ;;  %v2127_v17 = vadd.f32 %v8134_v63, %v2126_v11  ;;  %v2807_v18 = vadd.f32 %v8134_v63, %v2806_v12 }
 0x18e   : > { %v6703_v19 = vpop.f32.mrf.mxu0  ;;  %v7043_v20 = vpop.f32.mrf.mxu1 }
 0x18f   : > { %5045 = vst.msk [vmem:[%s7799_s10 + $0xa0] sm:$0xf] %vm5004_vm3, %v6132_v15  ;;  %5215 = vst.msk [vmem:[%s7799_s10 + $0x348] sm:$0xf] %vm5004_vm3, %v6302_v16  ;;  %v3355_v21 = vmax.f32 %v2127_v17, 0.0  ;;  %v3525_v22 = vmax.f32 %v2807_v18, 0.0 }
 0x190   : > { %v2131_v23 = vpop.f32.mrf.mxu0  ;;  %6801 = vmatmul.mubr.msk.bf16.gmra.mxu0 %vm1417_vm2, %v7417_v13  ;;  %v2811_v24 = vpop.f32.mrf.mxu1  ;;  %7141 = vmatmul.mubr.msk.bf16.gmra.mxu1 %vm1417_vm2, %v7418_v14  ;;  %v7423_v17 = vld [vmem:[%s7568_s26 + $0x180] sm:$0xff]   ;;  %v7424_v18 = vld [vmem:[%s7568_s26 + $0x428] sm:$0xff]  }
 0x191   : > { %v6133_v25 = vpack.c.bf16 %v3355_v21, %v3355_v21  ;;  %v6303_v26 = vpack.c.bf16 %v3525_v22, %v3525_v22  ;;  %v2132_v27 = vadd.f32 %v8134_v63, %v2131_v23  ;;  %v2812_v28 = vadd.f32 %v8134_v63, %v2811_v24  ;;  %6804 = vmatprep.mubr.msk.bf16.mxu0 %vm7509_vm1, %v7508_v1 }
 0x192   : > { %v6706_v29 = vpop.f32.mrf.mxu0  ;;  %v7046_v30 = vpop.f32.mrf.mxu1  ;;  %7144 = vmatprep.mubr.msk.bf16.mxu1 %vm7509_vm1, %v7508_v1 }
 0x193   : > { %5046 = vst.msk [vmem:[%s7799_s10 + $0xa4] sm:$0xf] %vm5004_vm3, %v6133_v25  ;;  %5216 = vst.msk [vmem:[%s7799_s10 + $0x34c] sm:$0xf] %vm5004_vm3, %v6303_v26  ;;  %v3356_v31 = vmax.f32 %v2132_v27, 0.0  ;;  %v3526_v32 = vmax.f32 %v2812_v28, 0.0 }
 0x194   : > { %v2134_v33 = vpop.f32.mrf.mxu0  ;;  %v2814_v34 = vpop.f32.mrf.mxu1 }
 0x195   : > { %v6134_v37 = vpack.c.bf16 %v3356_v31, %v3356_v31  ;;  %v6304_v38 = vpack.c.bf16 %v3526_v32, %v3526_v32  ;;  %v2135_v39 = vadd.f32 %v8134_v63, %v2134_v33  ;;  %v2815_v40 = vadd.f32 %v8134_v63, %v2814_v34 }
 0x196   : > { %v6707_v41 = vpop.f32.mrf.mxu0  ;;  %v7047_v42 = vpop.f32.mrf.mxu1 }
 0x197   : > { %5047 = vst.msk [vmem:[%s7799_s10 + $0xa8] sm:$0xf] %vm5004_vm3, %v6134_v37  ;;  %5217 = vst.msk [vmem:[%s7799_s10 + $0x350] sm:$0xf] %vm5004_vm3, %v6304_v38  ;;  %v3357_v43 = vmax.f32 %v2135_v39, 0.0  ;;  %v3527_v44 = vmax.f32 %v2815_v40, 0.0 }
 0x198   : > { %v2139_v45 = vpop.f32.mrf.mxu0  ;;  %6805 = vmatmul.mubr.msk.bf16.gmra.mxu0 %vm1417_vm2, %v7419_v35  ;;  %v2819_v46 = vpop.f32.mrf.mxu1  ;;  %7145 = vmatmul.mubr.msk.bf16.gmra.mxu1 %vm1417_vm2, %v7420_v36  ;;  %v7425_v39 = vld [vmem:[%s7568_s26 + $0x188] sm:$0xff]   ;;  %v7426_v40 = vld [vmem:[%s7568_s26 + $0x430] sm:$0xff]  }
 0x199   : > { %v6135_v47 = vpack.c.bf16 %v3357_v43, %v3357_v43  ;;  %v6305_v48 = vpack.c.bf16 %v3527_v44, %v3527_v44  ;;  %v2140_v49 = vadd.f32 %v8134_v63, %v2139_v45  ;;  %v2820_v50 = vadd.f32 %v8134_v63, %v2819_v46  ;;  %6808 = vmatprep.mubr.msk.bf16.mxu0 %vm7509_vm1, %v7508_v1 }
 0x19a   : > { %v6710_v51 = vpop.f32.mrf.mxu0  ;;  %v7050_v52 = vpop.f32.mrf.mxu1  ;;  %7148 = vmatprep.mubr.msk.bf16.mxu1 %vm7509_vm1, %v7508_v1 }
 0x19b   : > { %5048 = vst.msk [vmem:[%s7799_s10 + $0xac] sm:$0xf] %vm5004_vm3, %v6135_v47  ;;  %5218 = vst.msk [vmem:[%s7799_s10 + $0x354] sm:$0xf] %vm5004_vm3, %v6305_v48  ;;  %v3358_v53 = vmax.f32 %v2140_v49, 0.0  ;;  %v3528_v54 = vmax.f32 %v2820_v50, 0.0 }
 0x19c   : > { %v2142_v55 = vpop.f32.mrf.mxu0  ;;  %v2822_v56 = vpop.f32.mrf.mxu1 }
 0x19d   : > { %v6136_v60 = vpack.c.bf16 %v3358_v53, %v3358_v53  ;;  %v6306_v61 = vpack.c.bf16 %v3528_v54, %v3528_v54  ;;  %v2143_v62 = vadd.f32 %v8134_v63, %v2142_v55  ;;  %v2823_v59 = vadd.f32 %v8134_v63, %v2822_v56 }
 0x19e   : > { %v6711_v0 = vpop.f32.mrf.mxu0  ;;  %v7051_v2 = vpop.f32.mrf.mxu1 }
 0x19f   : > { %5049 = vst.msk [vmem:[%s7799_s10 + $0xb0] sm:$0xf] %vm5004_vm3, %v6136_v60  ;;  %5219 = vst.msk [vmem:[%s7799_s10 + $0x358] sm:$0xf] %vm5004_vm3, %v6306_v61  ;;  %v3359_v3 = vmax.f32 %v2143_v62, 0.0  ;;  %v3529_v4 = vmax.f32 %v2823_v59, 0.0 }
 0x1a0   : > { %v2147_v5 = vpop.f32.mrf.mxu0  ;;  %6809 = vmatmul.mubr.msk.bf16.gmra.mxu0 %vm1417_vm2, %v7421_v57  ;;  %v2827_v6 = vpop.f32.mrf.mxu1  ;;  %7149 = vmatmul.mubr.msk.bf16.gmra.mxu1 %vm1417_vm2, %v7422_v58  ;;  %v7427_v62 = vld [vmem:[%s7568_s26 + $0x190] sm:$0xff]   ;;  %v7428_v59 = vld [vmem:[%s7568_s26 + $0x438] sm:$0xff]  }
 0x1a1   : > { %v6137_v7 = vpack.c.bf16 %v3359_v3, %v3359_v3  ;;  %v6307_v8 = vpack.c.bf16 %v3529_v4, %v3529_v4  ;;  %v2148_v9 = vadd.f32 %v8134_v63, %v2147_v5  ;;  %v2828_v10 = vadd.f32 %v8134_v63, %v2827_v6  ;;  %6812 = vmatprep.mubr.msk.bf16.mxu0 %vm7509_vm1, %v7508_v1 }
 0x1a2   : > { %v6714_v11 = vpop.f32.mrf.mxu0  ;;  %v7054_v12 = vpop.f32.mrf.mxu1  ;;  %7152 = vmatprep.mubr.msk.bf16.mxu1 %vm7509_vm1, %v7508_v1 }
 0x1a3   : > { %5050 = vst.msk [vmem:[%s7799_s10 + $0xb4] sm:$0xf] %vm5004_vm3, %v6137_v7  ;;  %5220 = vst.msk [vmem:[%s7799_s10 + $0x35c] sm:$0xf] %vm5004_vm3, %v6307_v8  ;;  %v3360_v13 = vmax.f32 %v2148_v9, 0.0  ;;  %v3530_v14 = vmax.f32 %v2828_v10, 0.0 }
 0x1a4   : > { %v2150_v15 = vpop.f32.mrf.mxu0  ;;  %v2830_v16 = vpop.f32.mrf.mxu1 }
 0x1a5   : > { %v6138_v19 = vpack.c.bf16 %v3360_v13, %v3360_v13  ;;  %v6308_v20 = vpack.c.bf16 %v3530_v14, %v3530_v14  ;;  %v2151_v21 = vadd.f32 %v8134_v63, %v2150_v15  ;;  %v2831_v22 = vadd.f32 %v8134_v63, %v2830_v16 }
 0x1a6   : > { %v6715_v23 = vpop.f32.mrf.mxu0  ;;  %v7055_v24 = vpop.f32.mrf.mxu1 }
 0x1a7   : > { %5051 = vst.msk [vmem:[%s7799_s10 + $0xb8] sm:$0xf] %vm5004_vm3, %v6138_v19  ;;  %5221 = vst.msk [vmem:[%s7799_s10 + $0x360] sm:$0xf] %vm5004_vm3, %v6308_v20  ;;  %v3361_v25 = vmax.f32 %v2151_v21, 0.0  ;;  %v3531_v26 = vmax.f32 %v2831_v22, 0.0 }
 0x1a8   : > { %v2155_v27 = vpop.f32.mrf.mxu0  ;;  %6813 = vmatmul.mubr.msk.bf16.gmra.mxu0 %vm1417_vm2, %v7423_v17  ;;  %v2835_v28 = vpop.f32.mrf.mxu1  ;;  %7153 = vmatmul.mubr.msk.bf16.gmra.mxu1 %vm1417_vm2, %v7424_v18  ;;  %v7429_v21 = vld [vmem:[%s7568_s26 + $0x198] sm:$0xff]   ;;  %v7430_v22 = vld [vmem:[%s7568_s26 + $0x440] sm:$0xff]  }
 0x1a9   : > { %v6139_v29 = vpack.c.bf16 %v3361_v25, %v3361_v25  ;;  %v6309_v30 = vpack.c.bf16 %v3531_v26, %v3531_v26  ;;  %v2156_v31 = vadd.f32 %v8134_v63, %v2155_v27  ;;  %v2836_v32 = vadd.f32 %v8134_v63, %v2835_v28  ;;  %6816 = vmatprep.mubr.msk.bf16.mxu0 %vm7509_vm1, %v7508_v1 }
 0x1aa   : > { %v6718_v33 = vpop.f32.mrf.mxu0  ;;  %v7058_v34 = vpop.f32.mrf.mxu1  ;;  %7156 = vmatprep.mubr.msk.bf16.mxu1 %vm7509_vm1, %v7508_v1 }
 0x1ab   : > { %5052 = vst.msk [vmem:[%s7799_s10 + $0xbc] sm:$0xf] %vm5004_vm3, %v6139_v29  ;;  %5222 = vst.msk [vmem:[%s7799_s10 + $0x364] sm:$0xf] %vm5004_vm3, %v6309_v30  ;;  %v3362_v35 = vmax.f32 %v2156_v31, 0.0  ;;  %v3532_v36 = vmax.f32 %v2836_v32, 0.0 }
 0x1ac   : > { %v2158_v37 = vpop.f32.mrf.mxu0  ;;  %v2838_v38 = vpop.f32.mrf.mxu1 }
 0x1ad   : > { %v6140_v41 = vpack.c.bf16 %v3362_v35, %v3362_v35  ;;  %v6310_v42 = vpack.c.bf16 %v3532_v36, %v3532_v36  ;;  %v2159_v43 = vadd.f32 %v8134_v63, %v2158_v37  ;;  %v2839_v44 = vadd.f32 %v8134_v63, %v2838_v38 }
 0x1ae   : > { %v6719_v45 = vpop.f32.mrf.mxu0  ;;  %v7059_v46 = vpop.f32.mrf.mxu1 }
 0x1af   : > { %5053 = vst.msk [vmem:[%s7799_s10 + $0xc0] sm:$0xf] %vm5004_vm3, %v6140_v41  ;;  %5223 = vst.msk [vmem:[%s7799_s10 + $0x368] sm:$0xf] %vm5004_vm3, %v6310_v42  ;;  %v3363_v47 = vmax.f32 %v2159_v43, 0.0  ;;  %v3533_v48 = vmax.f32 %v2839_v44, 0.0 }
 0x1b0   : > { %v2163_v49 = vpop.f32.mrf.mxu0  ;;  %6817 = vmatmul.mubr.msk.bf16.gmra.mxu0 %vm1417_vm2, %v7425_v39  ;;  %v2843_v50 = vpop.f32.mrf.mxu1  ;;  %7157 = vmatmul.mubr.msk.bf16.gmra.mxu1 %vm1417_vm2, %v7426_v40  ;;  %v7431_v43 = vld [vmem:[%s7568_s26 + $0x1a0] sm:$0xff]   ;;  %v7432_v44 = vld [vmem:[%s7568_s26 + $0x448] sm:$0xff]  }
 0x1b1   : > { %v6141_v51 = vpack.c.bf16 %v3363_v47, %v3363_v47  ;;  %v6311_v52 = vpack.c.bf16 %v3533_v48, %v3533_v48  ;;  %v2164_v53 = vadd.f32 %v8134_v63, %v2163_v49  ;;  %v2844_v54 = vadd.f32 %v8134_v63, %v2843_v50  ;;  %6820 = vmatprep.mubr.msk.bf16.mxu0 %vm7509_vm1, %v7508_v1 }
 0x1b2   : > { %v6722_v55 = vpop.f32.mrf.mxu0  ;;  %v7062_v56 = vpop.f32.mrf.mxu1  ;;  %7160 = vmatprep.mubr.msk.bf16.mxu1 %vm7509_vm1, %v7508_v1 }
 0x1b3   : > { %5054 = vst.msk [vmem:[%s7799_s10 + $0xc4] sm:$0xf] %vm5004_vm3, %v6141_v51  ;;  %5224 = vst.msk [vmem:[%s7799_s10 + $0x36c] sm:$0xf] %vm5004_vm3, %v6311_v52  ;;  %v3364_v57 = vmax.f32 %v2164_v53, 0.0  ;;  %v3534_v58 = vmax.f32 %v2844_v54, 0.0 }
 0x1b4   : > { %v2166_v60 = vpop.f32.mrf.mxu0  ;;  %v2846_v61 = vpop.f32.mrf.mxu1 }
 0x1b5   : > { %v6142_v0 = vpack.c.bf16 %v3364_v57, %v3364_v57  ;;  %v6312_v2 = vpack.c.bf16 %v3534_v58, %v3534_v58  ;;  %v2167_v3 = vadd.f32 %v8134_v63, %v2166_v60  ;;  %v2847_v4 = vadd.f32 %v8134_v63, %v2846_v61 }
 0x1b6   : > { %v6723_v5 = vpop.f32.mrf.mxu0  ;;  %v7063_v6 = vpop.f32.mrf.mxu1 }
 0x1b7   : > { %5055 = vst.msk [vmem:[%s7799_s10 + $0xc8] sm:$0xf] %vm5004_vm3, %v6142_v0  ;;  %5225 = vst.msk [vmem:[%s7799_s10 + $0x370] sm:$0xf] %vm5004_vm3, %v6312_v2  ;;  %v3365_v7 = vmax.f32 %v2167_v3, 0.0  ;;  %v3535_v8 = vmax.f32 %v2847_v4, 0.0 }
 0x1b8   : > { %v2171_v9 = vpop.f32.mrf.mxu0  ;;  %6821 = vmatmul.mubr.msk.bf16.gmra.mxu0 %vm1417_vm2, %v7427_v62  ;;  %v2851_v10 = vpop.f32.mrf.mxu1  ;;  %7161 = vmatmul.mubr.msk.bf16.gmra.mxu1 %vm1417_vm2, %v7428_v59  ;;  %v7433_v3 = vld [vmem:[%s7568_s26 + $0x1a8] sm:$0xff]   ;;  %v7434_v4 = vld [vmem:[%s7568_s26 + $0x450] sm:$0xff]  }
 0x1b9   : > { %v6143_v11 = vpack.c.bf16 %v3365_v7, %v3365_v7  ;;  %v6313_v12 = vpack.c.bf16 %v3535_v8, %v3535_v8  ;;  %v2172_v13 = vadd.f32 %v8134_v63, %v2171_v9  ;;  %v2852_v14 = vadd.f32 %v8134_v63, %v2851_v10  ;;  %6824 = vmatprep.mubr.msk.bf16.mxu0 %vm7509_vm1, %v7508_v1 }
 0x1ba   : > { %v6726_v15 = vpop.f32.mrf.mxu0  ;;  %v7066_v16 = vpop.f32.mrf.mxu1  ;;  %7164 = vmatprep.mubr.msk.bf16.mxu1 %vm7509_vm1, %v7508_v1 }
 0x1bb   : > { %5056 = vst.msk [vmem:[%s7799_s10 + $0xcc] sm:$0xf] %vm5004_vm3, %v6143_v11  ;;  %5226 = vst.msk [vmem:[%s7799_s10 + $0x374] sm:$0xf] %vm5004_vm3, %v6313_v12  ;;  %v3366_v17 = vmax.f32 %v2172_v13, 0.0  ;;  %v3536_v18 = vmax.f32 %v2852_v14, 0.0 }
 0x1bc   : > { %v2174_v19 = vpop.f32.mrf.mxu0  ;;  %v2854_v20 = vpop.f32.mrf.mxu1 }
 0x1bd   : > { %v6144_v23 = vpack.c.bf16 %v3366_v17, %v3366_v17  ;;  %v6314_v24 = vpack.c.bf16 %v3536_v18, %v3536_v18  ;;  %v2175_v25 = vadd.f32 %v8134_v63, %v2174_v19  ;;  %v2855_v26 = vadd.f32 %v8134_v63, %v2854_v20 }
 0x1be   : > { %v6727_v27 = vpop.f32.mrf.mxu0  ;;  %v7067_v28 = vpop.f32.mrf.mxu1 }
 0x1bf   : > { %5057 = vst.msk [vmem:[%s7799_s10 + $0xd0] sm:$0xf] %vm5004_vm3, %v6144_v23  ;;  %5227 = vst.msk [vmem:[%s7799_s10 + $0x378] sm:$0xf] %vm5004_vm3, %v6314_v24  ;;  %v3367_v29 = vmax.f32 %v2175_v25, 0.0  ;;  %v3537_v30 = vmax.f32 %v2855_v26, 0.0 }
 0x1c0   : > { %v2179_v31 = vpop.f32.mrf.mxu0  ;;  %6825 = vmatmul.mubr.msk.bf16.gmra.mxu0 %vm1417_vm2, %v7429_v21  ;;  %v2859_v32 = vpop.f32.mrf.mxu1  ;;  %7165 = vmatmul.mubr.msk.bf16.gmra.mxu1 %vm1417_vm2, %v7430_v22  ;;  %v7435_v25 = vld [vmem:[%s7568_s26 + $0x1b0] sm:$0xff]   ;;  %v7436_v26 = vld [vmem:[%s7568_s26 + $0x458] sm:$0xff]  }
 0x1c1   : > { %v6145_v33 = vpack.c.bf16 %v3367_v29, %v3367_v29  ;;  %v6315_v34 = vpack.c.bf16 %v3537_v30, %v3537_v30  ;;  %v2180_v35 = vadd.f32 %v8134_v63, %v2179_v31  ;;  %v2860_v36 = vadd.f32 %v8134_v63, %v2859_v32  ;;  %6828 = vmatprep.mubr.msk.bf16.mxu0 %vm7509_vm1, %v7508_v1 }
 0x1c2   : > { %v6730_v37 = vpop.f32.mrf.mxu0  ;;  %v7070_v38 = vpop.f32.mrf.mxu1  ;;  %7168 = vmatprep.mubr.msk.bf16.mxu1 %vm7509_vm1, %v7508_v1 }
 0x1c3   : > { %5058 = vst.msk [vmem:[%s7799_s10 + $0xd4] sm:$0xf] %vm5004_vm3, %v6145_v33  ;;  %5228 = vst.msk [vmem:[%s7799_s10 + $0x37c] sm:$0xf] %vm5004_vm3, %v6315_v34  ;;  %v3368_v39 = vmax.f32 %v2180_v35, 0.0  ;;  %v3538_v40 = vmax.f32 %v2860_v36, 0.0 }
 0x1c4   : > { %v2182_v41 = vpop.f32.mrf.mxu0  ;;  %v2862_v42 = vpop.f32.mrf.mxu1 }
 0x1c5   : > { %v6146_v45 = vpack.c.bf16 %v3368_v39, %v3368_v39  ;;  %v6316_v46 = vpack.c.bf16 %v3538_v40, %v3538_v40  ;;  %v2183_v47 = vadd.f32 %v8134_v63, %v2182_v41  ;;  %v2863_v48 = vadd.f32 %v8134_v63, %v2862_v42 }
 0x1c6   : > { %v6731_v49 = vpop.f32.mrf.mxu0  ;;  %v7071_v50 = vpop.f32.mrf.mxu1 }
 0x1c7   : > { %5059 = vst.msk [vmem:[%s7799_s10 + $0xd8] sm:$0xf] %vm5004_vm3, %v6146_v45  ;;  %5229 = vst.msk [vmem:[%s7799_s10 + $0x380] sm:$0xf] %vm5004_vm3, %v6316_v46  ;;  %v3369_v51 = vmax.f32 %v2183_v47, 0.0  ;;  %v3539_v52 = vmax.f32 %v2863_v48, 0.0 }
 0x1c8   : > { %v2187_v53 = vpop.f32.mrf.mxu0  ;;  %6829 = vmatmul.mubr.msk.bf16.gmra.mxu0 %vm1417_vm2, %v7431_v43  ;;  %v2867_v54 = vpop.f32.mrf.mxu1  ;;  %7169 = vmatmul.mubr.msk.bf16.gmra.mxu1 %vm1417_vm2, %v7432_v44  ;;  %v7437_v47 = vld [vmem:[%s7568_s26 + $0x1b8] sm:$0xff]   ;;  %v7438_v48 = vld [vmem:[%s7568_s26 + $0x460] sm:$0xff]  }
 0x1c9   : > { %v6147_v55 = vpack.c.bf16 %v3369_v51, %v3369_v51  ;;  %v6317_v56 = vpack.c.bf16 %v3539_v52, %v3539_v52  ;;  %v2188_v57 = vadd.f32 %v8134_v63, %v2187_v53  ;;  %v2868_v58 = vadd.f32 %v8134_v63, %v2867_v54  ;;  %6832 = vmatprep.mubr.msk.bf16.mxu0 %vm7509_vm1, %v7508_v1 }
 0x1ca   : > { %v6734_v60 = vpop.f32.mrf.mxu0  ;;  %v7074_v61 = vpop.f32.mrf.mxu1  ;;  %7172 = vmatprep.mubr.msk.bf16.mxu1 %vm7509_vm1, %v7508_v1 }
 0x1cb   : > { %5060 = vst.msk [vmem:[%s7799_s10 + $0xdc] sm:$0xf] %vm5004_vm3, %v6147_v55  ;;  %5230 = vst.msk [vmem:[%s7799_s10 + $0x384] sm:$0xf] %vm5004_vm3, %v6317_v56  ;;  %v3370_v62 = vmax.f32 %v2188_v57, 0.0  ;;  %v3540_v59 = vmax.f32 %v2868_v58, 0.0 }
 0x1cc   : > { %v2190_v0 = vpop.f32.mrf.mxu0  ;;  %v2870_v2 = vpop.f32.mrf.mxu1 }
 0x1cd   : > { %v6148_v5 = vpack.c.bf16 %v3370_v62, %v3370_v62  ;;  %v6318_v6 = vpack.c.bf16 %v3540_v59, %v3540_v59  ;;  %v2191_v7 = vadd.f32 %v8134_v63, %v2190_v0  ;;  %v2871_v8 = vadd.f32 %v8134_v63, %v2870_v2 }
 0x1ce   : > { %v6735_v9 = vpop.f32.mrf.mxu0  ;;  %v7075_v10 = vpop.f32.mrf.mxu1 }
 0x1cf   : > { %5061 = vst.msk [vmem:[%s7799_s10 + $0xe0] sm:$0xf] %vm5004_vm3, %v6148_v5  ;;  %5231 = vst.msk [vmem:[%s7799_s10 + $0x388] sm:$0xf] %vm5004_vm3, %v6318_v6  ;;  %v3371_v11 = vmax.f32 %v2191_v7, 0.0  ;;  %v3541_v12 = vmax.f32 %v2871_v8, 0.0 }
 0x1d0   : > { %v2195_v13 = vpop.f32.mrf.mxu0  ;;  %6833 = vmatmul.mubr.msk.bf16.gmra.mxu0 %vm1417_vm2, %v7433_v3  ;;  %v2875_v14 = vpop.f32.mrf.mxu1  ;;  %7173 = vmatmul.mubr.msk.bf16.gmra.mxu1 %vm1417_vm2, %v7434_v4  ;;  %v7439_v7 = vld [vmem:[%s7568_s26 + $0x1c0] sm:$0xff]   ;;  %v7440_v8 = vld [vmem:[%s7568_s26 + $0x468] sm:$0xff]  }
 0x1d1   : > { %v6149_v15 = vpack.c.bf16 %v3371_v11, %v3371_v11  ;;  %v6319_v16 = vpack.c.bf16 %v3541_v12, %v3541_v12  ;;  %v2196_v17 = vadd.f32 %v8134_v63, %v2195_v13  ;;  %v2876_v18 = vadd.f32 %v8134_v63, %v2875_v14  ;;  %6836 = vmatprep.mubr.msk.bf16.mxu0 %vm7509_vm1, %v7508_v1 }
 0x1d2   : > { %v6738_v19 = vpop.f32.mrf.mxu0  ;;  %v7078_v20 = vpop.f32.mrf.mxu1  ;;  %7176 = vmatprep.mubr.msk.bf16.mxu1 %vm7509_vm1, %v7508_v1 }
 0x1d3   : > { %5062 = vst.msk [vmem:[%s7799_s10 + $0xe4] sm:$0xf] %vm5004_vm3, %v6149_v15  ;;  %5232 = vst.msk [vmem:[%s7799_s10 + $0x38c] sm:$0xf] %vm5004_vm3, %v6319_v16  ;;  %v3372_v21 = vmax.f32 %v2196_v17, 0.0  ;;  %v3542_v22 = vmax.f32 %v2876_v18, 0.0 }
 0x1d4   : > { %v2198_v23 = vpop.f32.mrf.mxu0  ;;  %v2878_v24 = vpop.f32.mrf.mxu1 }
 0x1d5   : > { %v6150_v27 = vpack.c.bf16 %v3372_v21, %v3372_v21  ;;  %v6320_v28 = vpack.c.bf16 %v3542_v22, %v3542_v22  ;;  %v2199_v29 = vadd.f32 %v8134_v63, %v2198_v23  ;;  %v2879_v30 = vadd.f32 %v8134_v63, %v2878_v24 }
 0x1d6   : > { %v6739_v31 = vpop.f32.mrf.mxu0  ;;  %v7079_v32 = vpop.f32.mrf.mxu1 }
 0x1d7   : > { %5063 = vst.msk [vmem:[%s7799_s10 + $0xe8] sm:$0xf] %vm5004_vm3, %v6150_v27  ;;  %5233 = vst.msk [vmem:[%s7799_s10 + $0x390] sm:$0xf] %vm5004_vm3, %v6320_v28  ;;  %v3373_v33 = vmax.f32 %v2199_v29, 0.0  ;;  %v3543_v34 = vmax.f32 %v2879_v30, 0.0 }
 0x1d8   : > { %v2203_v35 = vpop.f32.mrf.mxu0  ;;  %6837 = vmatmul.mubr.msk.bf16.gmra.mxu0 %vm1417_vm2, %v7435_v25  ;;  %v2883_v36 = vpop.f32.mrf.mxu1  ;;  %7177 = vmatmul.mubr.msk.bf16.gmra.mxu1 %vm1417_vm2, %v7436_v26  ;;  %v7441_v29 = vld [vmem:[%s7568_s26 + $0x1c8] sm:$0xff]   ;;  %v7442_v30 = vld [vmem:[%s7568_s26 + $0x470] sm:$0xff]  }
 0x1d9   : > { %v6151_v37 = vpack.c.bf16 %v3373_v33, %v3373_v33  ;;  %v6321_v38 = vpack.c.bf16 %v3543_v34, %v3543_v34  ;;  %v2204_v39 = vadd.f32 %v8134_v63, %v2203_v35  ;;  %v2884_v40 = vadd.f32 %v8134_v63, %v2883_v36  ;;  %6840 = vmatprep.mubr.msk.bf16.mxu0 %vm7509_vm1, %v7508_v1 }
 0x1da   : > { %v6742_v41 = vpop.f32.mrf.mxu0  ;;  %v7082_v42 = vpop.f32.mrf.mxu1  ;;  %7180 = vmatprep.mubr.msk.bf16.mxu1 %vm7509_vm1, %v7508_v1 }
 0x1db   : > { %5064 = vst.msk [vmem:[%s7799_s10 + $0xec] sm:$0xf] %vm5004_vm3, %v6151_v37  ;;  %5234 = vst.msk [vmem:[%s7799_s10 + $0x394] sm:$0xf] %vm5004_vm3, %v6321_v38  ;;  %v3374_v43 = vmax.f32 %v2204_v39, 0.0  ;;  %v3544_v44 = vmax.f32 %v2884_v40, 0.0 }
 0x1dc   : > { %v2206_v45 = vpop.f32.mrf.mxu0  ;;  %v2886_v46 = vpop.f32.mrf.mxu1 }
 0x1dd   : > { %v6152_v49 = vpack.c.bf16 %v3374_v43, %v3374_v43  ;;  %v6322_v50 = vpack.c.bf16 %v3544_v44, %v3544_v44  ;;  %v2207_v51 = vadd.f32 %v8134_v63, %v2206_v45  ;;  %v2887_v52 = vadd.f32 %v8134_v63, %v2886_v46 }
 0x1de   : > { %v6743_v53 = vpop.f32.mrf.mxu0  ;;  %v7083_v54 = vpop.f32.mrf.mxu1 }
 0x1df   : > { %5065 = vst.msk [vmem:[%s7799_s10 + $0xf0] sm:$0xf] %vm5004_vm3, %v6152_v49  ;;  %5235 = vst.msk [vmem:[%s7799_s10 + $0x398] sm:$0xf] %vm5004_vm3, %v6322_v50  ;;  %v3375_v55 = vmax.f32 %v2207_v51, 0.0  ;;  %v3545_v56 = vmax.f32 %v2887_v52, 0.0 }
 0x1e0   : > { %v2211_v57 = vpop.f32.mrf.mxu0  ;;  %6841 = vmatmul.mubr.msk.bf16.gmra.mxu0 %vm1417_vm2, %v7437_v47  ;;  %v2891_v58 = vpop.f32.mrf.mxu1  ;;  %7181 = vmatmul.mubr.msk.bf16.gmra.mxu1 %vm1417_vm2, %v7438_v48  ;;  %v7443_v51 = vld [vmem:[%s7568_s26 + $0x1d0] sm:$0xff]   ;;  %v7444_v52 = vld [vmem:[%s7568_s26 + $0x478] sm:$0xff]  }
 0x1e1   : > { %v6153_v60 = vpack.c.bf16 %v3375_v55, %v3375_v55  ;;  %v6323_v61 = vpack.c.bf16 %v3545_v56, %v3545_v56  ;;  %v2212_v62 = vadd.f32 %v8134_v63, %v2211_v57  ;;  %v2892_v59 = vadd.f32 %v8134_v63, %v2891_v58  ;;  %6844 = vmatprep.mubr.msk.bf16.mxu0 %vm7509_vm1, %v7508_v1 }
 0x1e2   : > { %v6746_v0 = vpop.f32.mrf.mxu0  ;;  %v7086_v2 = vpop.f32.mrf.mxu1  ;;  %7184 = vmatprep.mubr.msk.bf16.mxu1 %vm7509_vm1, %v7508_v1 }
 0x1e3   : > { %5066 = vst.msk [vmem:[%s7799_s10 + $0xf4] sm:$0xf] %vm5004_vm3, %v6153_v60  ;;  %5236 = vst.msk [vmem:[%s7799_s10 + $0x39c] sm:$0xf] %vm5004_vm3, %v6323_v61  ;;  %v3376_v3 = vmax.f32 %v2212_v62, 0.0  ;;  %v3546_v4 = vmax.f32 %v2892_v59, 0.0 }
 0x1e4   : > { %v2214_v5 = vpop.f32.mrf.mxu0  ;;  %v2894_v6 = vpop.f32.mrf.mxu1 }
 0x1e5   : > { %v6154_v9 = vpack.c.bf16 %v3376_v3, %v3376_v3  ;;  %v6324_v10 = vpack.c.bf16 %v3546_v4, %v3546_v4  ;;  %v2215_v11 = vadd.f32 %v8134_v63, %v2214_v5  ;;  %v2895_v12 = vadd.f32 %v8134_v63, %v2894_v6 }
 0x1e6   : > { %v6747_v13 = vpop.f32.mrf.mxu0  ;;  %v7087_v14 = vpop.f32.mrf.mxu1 }
 0x1e7   : > { %5067 = vst.msk [vmem:[%s7799_s10 + $0xf8] sm:$0xf] %vm5004_vm3, %v6154_v9  ;;  %5237 = vst.msk [vmem:[%s7799_s10 + $0x3a0] sm:$0xf] %vm5004_vm3, %v6324_v10  ;;  %v3377_v15 = vmax.f32 %v2215_v11, 0.0  ;;  %v3547_v16 = vmax.f32 %v2895_v12, 0.0 }
 0x1e8   : > { %v2219_v17 = vpop.f32.mrf.mxu0  ;;  %6845 = vmatmul.mubr.msk.bf16.gmra.mxu0 %vm1417_vm2, %v7439_v7  ;;  %v2899_v18 = vpop.f32.mrf.mxu1  ;;  %7185 = vmatmul.mubr.msk.bf16.gmra.mxu1 %vm1417_vm2, %v7440_v8  ;;  %v7445_v11 = vld [vmem:[%s7568_s26 + $0x1d8] sm:$0xff]   ;;  %v8491_v14 = vld [vmem:[%s9310_s2] ss:$0 sm:$0xff] }
 0x1e9   : > { %v6155_v19 = vpack.c.bf16 %v3377_v15, %v3377_v15  ;;  %v6325_v20 = vpack.c.bf16 %v3547_v16, %v3547_v16  ;;  %v2220_v21 = vadd.f32 %v8134_v63, %v2219_v17  ;;  %v2900_v22 = vadd.f32 %v8134_v63, %v2899_v18  ;;  %6848 = vmatprep.mubr.msk.bf16.mxu0 %vm7509_vm1, %v7508_v1 }
 0x1ea   : > { %v6750_v23 = vpop.f32.mrf.mxu0  ;;  %v7090_v24 = vpop.f32.mrf.mxu1  ;;  %7188 = vmatprep.mubr.msk.bf16.mxu1 %vm7509_vm1, %v7508_v1 }
 0x1eb   : > { %5068 = vst.msk [vmem:[%s7799_s10 + $0xfc] sm:$0xf] %vm5004_vm3, %v6155_v19  ;;  %5238 = vst.msk [vmem:[%s7799_s10 + $0x3a4] sm:$0xf] %vm5004_vm3, %v6325_v20  ;;  %v3378_v25 = vmax.f32 %v2220_v21, 0.0  ;;  %v3548_v26 = vmax.f32 %v2900_v22, 0.0 }
 0x1ec   : > { %v2222_v27 = vpop.f32.mrf.mxu0  ;;  %v2902_v28 = vpop.f32.mrf.mxu1 }
 0x1ed   : > { %v6156_v31 = vpack.c.bf16 %v3378_v25, %v3378_v25  ;;  %v6326_v32 = vpack.c.bf16 %v3548_v26, %v3548_v26  ;;  %v2223_v33 = vadd.f32 %v8134_v63, %v2222_v27  ;;  %v2903_v34 = vadd.f32 %v8134_v63, %v2902_v28 }
 0x1ee   : > { %v6751_v35 = vpop.f32.mrf.mxu0  ;;  %v7091_v36 = vpop.f32.mrf.mxu1 }
 0x1ef   : > { %5069 = vst.msk [vmem:[%s7799_s10 + $0x100] sm:$0xf] %vm5004_vm3, %v6156_v31  ;;  %5239 = vst.msk [vmem:[%s7799_s10 + $0x3a8] sm:$0xf] %vm5004_vm3, %v6326_v32  ;;  %v3379_v37 = vmax.f32 %v2223_v33, 0.0  ;;  %v3549_v38 = vmax.f32 %v2903_v34, 0.0 }
 0x1f0   : > { %v2227_v39 = vpop.f32.mrf.mxu0  ;;  %6849 = vmatmul.mubr.msk.bf16.gmra.mxu0 %vm1417_vm2, %v7441_v29  ;;  %v2907_v40 = vpop.f32.mrf.mxu1  ;;  %7189 = vmatmul.mubr.msk.bf16.gmra.mxu1 %vm1417_vm2, %v7442_v30  ;;  %v7447_v33 = vld [vmem:[%s7568_s26 + $0x1e0] sm:$0xff]   ;;  %v7448_v34 = vld [vmem:[%s7568_s26 + $0x488] sm:$0xff]  }
 0x1f1   : > { %v6157_v41 = vpack.c.bf16 %v3379_v37, %v3379_v37  ;;  %v6327_v42 = vpack.c.bf16 %v3549_v38, %v3549_v38  ;;  %v2228_v43 = vadd.f32 %v8134_v63, %v2227_v39  ;;  %v2908_v44 = vadd.f32 %v8134_v63, %v2907_v40  ;;  %6852 = vmatprep.mubr.msk.bf16.mxu0 %vm7509_vm1, %v7508_v1 }
 0x1f2   : > { %v6754_v45 = vpop.f32.mrf.mxu0  ;;  %v7094_v46 = vpop.f32.mrf.mxu1  ;;  %7192 = vmatprep.mubr.msk.bf16.mxu1 %vm7509_vm1, %v7508_v1 }
 0x1f3   : > { %5070 = vst.msk [vmem:[%s7799_s10 + $0x104] sm:$0xf] %vm5004_vm3, %v6157_v41  ;;  %5240 = vst.msk [vmem:[%s7799_s10 + $0x3ac] sm:$0xf] %vm5004_vm3, %v6327_v42  ;;  %v3380_v47 = vmax.f32 %v2228_v43, 0.0  ;;  %v3550_v48 = vmax.f32 %v2908_v44, 0.0 }
 0x1f4   : > { %v2230_v49 = vpop.f32.mrf.mxu0  ;;  %v2910_v50 = vpop.f32.mrf.mxu1 }
 0x1f5   : > { %v6158_v53 = vpack.c.bf16 %v3380_v47, %v3380_v47  ;;  %v6328_v54 = vpack.c.bf16 %v3550_v48, %v3550_v48  ;;  %v2231_v55 = vadd.f32 %v8134_v63, %v2230_v49  ;;  %v2911_v56 = vadd.f32 %v8134_v63, %v2910_v50 }
 0x1f6   : > { %v6755_v57 = vpop.f32.mrf.mxu0  ;;  %v7095_v58 = vpop.f32.mrf.mxu1 }
 0x1f7   : > { %5071 = vst.msk [vmem:[%s7799_s10 + $0x108] sm:$0xf] %vm5004_vm3, %v6158_v53  ;;  %5241 = vst.msk [vmem:[%s7799_s10 + $0x3b0] sm:$0xf] %vm5004_vm3, %v6328_v54  ;;  %v3381_v60 = vmax.f32 %v2231_v55, 0.0  ;;  %v3551_v61 = vmax.f32 %v2911_v56, 0.0 }
 0x1f8   : > { %v2235_v62 = vpop.f32.mrf.mxu0  ;;  %6853 = vmatmul.mubr.msk.bf16.gmra.mxu0 %vm1417_vm2, %v7443_v51  ;;  %v2915_v59 = vpop.f32.mrf.mxu1  ;;  %7193 = vmatmul.mubr.msk.bf16.gmra.mxu1 %vm1417_vm2, %v7444_v52  ;;  %v7449_v55 = vld [vmem:[%s7568_s26 + $0x1e8] sm:$0xff]   ;;  %v7450_v56 = vld [vmem:[%s7568_s26 + $0x490] sm:$0xff]  }
 0x1f9   : > { %v6159_v0 = vpack.c.bf16 %v3381_v60, %v3381_v60  ;;  %v6329_v2 = vpack.c.bf16 %v3551_v61, %v3551_v61  ;;  %v2236_v3 = vadd.f32 %v8134_v63, %v2235_v62  ;;  %v2916_v4 = vadd.f32 %v8134_v63, %v2915_v59  ;;  %6856 = vmatprep.mubr.msk.bf16.mxu0 %vm7509_vm1, %v7508_v1  ;;  %v7446_v63 = vld [vmem:[%s7568_s26 + $0x480] sm:$0xff]  }
 0x1fa   : > { %v6758_v5 = vpop.f32.mrf.mxu0  ;;  %v7098_v6 = vpop.f32.mrf.mxu1  ;;  %7196 = vmatprep.mubr.msk.bf16.mxu1 %vm7509_vm1, %v7508_v1 }
 0x1fb   : > { %5072 = vst.msk [vmem:[%s7799_s10 + $0x10c] sm:$0xf] %vm5004_vm3, %v6159_v0  ;;  %5242 = vst.msk [vmem:[%s7799_s10 + $0x3b4] sm:$0xf] %vm5004_vm3, %v6329_v2  ;;  %v3382_v7 = vmax.f32 %v2236_v3, 0.0  ;;  %v3552_v8 = vmax.f32 %v2916_v4, 0.0 }
 0x1fc   : > { %v2238_v9 = vpop.f32.mrf.mxu0  ;;  %v2918_v10 = vpop.f32.mrf.mxu1 }
 0x1fd   : > { %v6160_v12 = vpack.c.bf16 %v3382_v7, %v3382_v7  ;;  %v6330_v13 = vpack.c.bf16 %v3552_v8, %v3552_v8  ;;  %v2239_v15 = vadd.f32 %v8491_v14, %v2238_v9  ;;  %v2919_v16 = vadd.f32 %v8491_v14, %v2918_v10 }
 0x1fe   : > { %v6759_v17 = vpop.f32.mrf.mxu0  ;;  %v7099_v18 = vpop.f32.mrf.mxu1 }
 0x1ff   : > { %5073 = vst.msk [vmem:[%s7799_s10 + $0x110] sm:$0xf] %vm5004_vm3, %v6160_v12  ;;  %5243 = vst.msk [vmem:[%s7799_s10 + $0x3b8] sm:$0xf] %vm5004_vm3, %v6330_v13  ;;  %v3383_v19 = vmax.f32 %v2239_v15, 0.0  ;;  %v3553_v20 = vmax.f32 %v2919_v16, 0.0 }
 0x200   : > { %v2243_v21 = vpop.f32.mrf.mxu0  ;;  %6857 = vmatmul.mubr.msk.bf16.gmra.mxu0 %vm1417_vm2, %v7445_v11  ;;  %v2923_v22 = vpop.f32.mrf.mxu1  ;;  %7197 = vmatmul.mubr.msk.bf16.gmra.mxu1 %vm1417_vm2, %v7446_v63  ;;  %v7451_v15 = vld [vmem:[%s7568_s26 + $0x1f0] sm:$0xff]   ;;  %v7452_v16 = vld [vmem:[%s7568_s26 + $0x498] sm:$0xff]  }
 0x201   : > { %v6161_v23 = vpack.c.bf16 %v3383_v19, %v3383_v19  ;;  %v6331_v24 = vpack.c.bf16 %v3553_v20, %v3553_v20  ;;  %v2244_v25 = vadd.f32 %v8491_v14, %v2243_v21  ;;  %v2924_v26 = vadd.f32 %v8491_v14, %v2923_v22  ;;  %6860 = vmatprep.mubr.msk.bf16.mxu0 %vm7509_vm1, %v7508_v1 }
 0x202   : > { %v6762_v27 = vpop.f32.mrf.mxu0  ;;  %v7102_v28 = vpop.f32.mrf.mxu1  ;;  %7200 = vmatprep.mubr.msk.bf16.mxu1 %vm7509_vm1, %v7508_v1 }
 0x203   : > { %5074 = vst.msk [vmem:[%s7799_s10 + $0x114] sm:$0xf] %vm5004_vm3, %v6161_v23  ;;  %5244 = vst.msk [vmem:[%s7799_s10 + $0x3bc] sm:$0xf] %vm5004_vm3, %v6331_v24  ;;  %v3384_v29 = vmax.f32 %v2244_v25, 0.0  ;;  %v3554_v30 = vmax.f32 %v2924_v26, 0.0 }
 0x204   : > { %v2246_v31 = vpop.f32.mrf.mxu0  ;;  %v2926_v32 = vpop.f32.mrf.mxu1 }
 0x205   : > { %v6162_v35 = vpack.c.bf16 %v3384_v29, %v3384_v29  ;;  %v6332_v36 = vpack.c.bf16 %v3554_v30, %v3554_v30  ;;  %v2247_v37 = vadd.f32 %v8491_v14, %v2246_v31  ;;  %v2927_v38 = vadd.f32 %v8491_v14, %v2926_v32 }
 0x206   : > { %v6763_v39 = vpop.f32.mrf.mxu0  ;;  %v7103_v40 = vpop.f32.mrf.mxu1 }
 0x207   : > { %5075 = vst.msk [vmem:[%s7799_s10 + $0x118] sm:$0xf] %vm5004_vm3, %v6162_v35  ;;  %5245 = vst.msk [vmem:[%s7799_s10 + $0x3c0] sm:$0xf] %vm5004_vm3, %v6332_v36  ;;  %v3385_v41 = vmax.f32 %v2247_v37, 0.0  ;;  %v3555_v42 = vmax.f32 %v2927_v38, 0.0 }
 0x208   : > { %v2251_v43 = vpop.f32.mrf.mxu0  ;;  %6861 = vmatmul.mubr.msk.bf16.gmra.mxu0 %vm1417_vm2, %v7447_v33  ;;  %v2931_v44 = vpop.f32.mrf.mxu1  ;;  %7201 = vmatmul.mubr.msk.bf16.gmra.mxu1 %vm1417_vm2, %v7448_v34  ;;  %v7453_v37 = vld [vmem:[%s7568_s26 + $0x1f8] sm:$0xff]   ;;  %v7454_v38 = vld [vmem:[%s7568_s26 + $0x4a0] sm:$0xff]  }
 0x209   : > { %v6163_v45 = vpack.c.bf16 %v3385_v41, %v3385_v41  ;;  %v6333_v46 = vpack.c.bf16 %v3555_v42, %v3555_v42  ;;  %v2252_v47 = vadd.f32 %v8491_v14, %v2251_v43  ;;  %v2932_v48 = vadd.f32 %v8491_v14, %v2931_v44  ;;  %6864 = vmatprep.mubr.msk.bf16.mxu0 %vm7509_vm1, %v7508_v1 }
 0x20a   : > { %v6766_v49 = vpop.f32.mrf.mxu0  ;;  %v7106_v50 = vpop.f32.mrf.mxu1  ;;  %7204 = vmatprep.mubr.msk.bf16.mxu1 %vm7509_vm1, %v7508_v1 }
 0x20b   : > { %5076 = vst.msk [vmem:[%s7799_s10 + $0x11c] sm:$0xf] %vm5004_vm3, %v6163_v45  ;;  %5246 = vst.msk [vmem:[%s7799_s10 + $0x3c4] sm:$0xf] %vm5004_vm3, %v6333_v46  ;;  %v3386_v51 = vmax.f32 %v2252_v47, 0.0  ;;  %v3556_v52 = vmax.f32 %v2932_v48, 0.0 }
 0x20c   : > { %v2254_v53 = vpop.f32.mrf.mxu0  ;;  %v2934_v54 = vpop.f32.mrf.mxu1 }
 0x20d   : > { %v6164_v57 = vpack.c.bf16 %v3386_v51, %v3386_v51  ;;  %v6334_v58 = vpack.c.bf16 %v3556_v52, %v3556_v52  ;;  %v2255_v60 = vadd.f32 %v8491_v14, %v2254_v53  ;;  %v2935_v61 = vadd.f32 %v8491_v14, %v2934_v54 }
 0x20e   : > { %v6767_v62 = vpop.f32.mrf.mxu0  ;;  %v7107_v59 = vpop.f32.mrf.mxu1 }
 0x20f   : > { %5077 = vst.msk [vmem:[%s7799_s10 + $0x120] sm:$0xf] %vm5004_vm3, %v6164_v57  ;;  %5247 = vst.msk [vmem:[%s7799_s10 + $0x3c8] sm:$0xf] %vm5004_vm3, %v6334_v58  ;;  %v3387_v0 = vmax.f32 %v2255_v60, 0.0  ;;  %v3557_v2 = vmax.f32 %v2935_v61, 0.0 }
 0x210   : > { %v2259_v3 = vpop.f32.mrf.mxu0  ;;  %6865 = vmatmul.mubr.msk.bf16.gmra.mxu0 %vm1417_vm2, %v7449_v55  ;;  %v2939_v4 = vpop.f32.mrf.mxu1  ;;  %7205 = vmatmul.mubr.msk.bf16.gmra.mxu1 %vm1417_vm2, %v7450_v56  ;;  %v7455_v60 = vld [vmem:[%s7568_s26 + $0x200] sm:$0xff]   ;;  %v7456_v61 = vld [vmem:[%s7568_s26 + $0x4a8] sm:$0xff]  }
 0x211   : > { %v6165_v5 = vpack.c.bf16 %v3387_v0, %v3387_v0  ;;  %v6335_v6 = vpack.c.bf16 %v3557_v2, %v3557_v2  ;;  %v2260_v7 = vadd.f32 %v8491_v14, %v2259_v3  ;;  %v2940_v8 = vadd.f32 %v8491_v14, %v2939_v4  ;;  %6868 = vmatprep.mubr.msk.bf16.mxu0 %vm7509_vm1, %v7508_v1 }
 0x212   : > { %v6770_v9 = vpop.f32.mrf.mxu0  ;;  %v7110_v10 = vpop.f32.mrf.mxu1  ;;  %7208 = vmatprep.mubr.msk.bf16.mxu1 %vm7509_vm1, %v7508_v1 }
 0x213   : > { %5078 = vst.msk [vmem:[%s7799_s10 + $0x124] sm:$0xf] %vm5004_vm3, %v6165_v5  ;;  %5248 = vst.msk [vmem:[%s7799_s10 + $0x3cc] sm:$0xf] %vm5004_vm3, %v6335_v6  ;;  %v3388_v11 = vmax.f32 %v2260_v7, 0.0  ;;  %v3558_v63 = vmax.f32 %v2940_v8, 0.0 }
 0x214   : > { %v2262_v12 = vpop.f32.mrf.mxu0  ;;  %v2942_v13 = vpop.f32.mrf.mxu1 }
 0x215   : > { %v6166_v17 = vpack.c.bf16 %v3388_v11, %v3388_v11  ;;  %v6336_v18 = vpack.c.bf16 %v3558_v63, %v3558_v63  ;;  %v2263_v19 = vadd.f32 %v8491_v14, %v2262_v12  ;;  %v2943_v20 = vadd.f32 %v8491_v14, %v2942_v13 }
 0x216   : > { %v6771_v21 = vpop.f32.mrf.mxu0  ;;  %v7111_v22 = vpop.f32.mrf.mxu1 }
 0x217   : > { %5079 = vst.msk [vmem:[%s7799_s10 + $0x128] sm:$0xf] %vm5004_vm3, %v6166_v17  ;;  %5249 = vst.msk [vmem:[%s7799_s10 + $0x3d0] sm:$0xf] %vm5004_vm3, %v6336_v18  ;;  %v3389_v23 = vmax.f32 %v2263_v19, 0.0  ;;  %v3559_v24 = vmax.f32 %v2943_v20, 0.0 }
 0x218   : > { %v2267_v25 = vpop.f32.mrf.mxu0  ;;  %6869 = vmatmul.mubr.msk.bf16.gmra.mxu0 %vm1417_vm2, %v7451_v15  ;;  %v2947_v26 = vpop.f32.mrf.mxu1  ;;  %7209 = vmatmul.mubr.msk.bf16.gmra.mxu1 %vm1417_vm2, %v7452_v16  ;;  %v7457_v19 = vld [vmem:[%s7568_s26 + $0x208] sm:$0xff]   ;;  %v7458_v20 = vld [vmem:[%s7568_s26 + $0x4b0] sm:$0xff]  }
 0x219   : > { %v6167_v27 = vpack.c.bf16 %v3389_v23, %v3389_v23  ;;  %v6337_v28 = vpack.c.bf16 %v3559_v24, %v3559_v24  ;;  %v2268_v29 = vadd.f32 %v8491_v14, %v2267_v25  ;;  %v2948_v30 = vadd.f32 %v8491_v14, %v2947_v26  ;;  %6872 = vmatprep.mubr.msk.bf16.mxu0 %vm7509_vm1, %v7508_v1 }
 0x21a   : > { %v6774_v31 = vpop.f32.mrf.mxu0  ;;  %v7114_v32 = vpop.f32.mrf.mxu1  ;;  %7212 = vmatprep.mubr.msk.bf16.mxu1 %vm7509_vm1, %v7508_v1 }
 0x21b   : > { %5080 = vst.msk [vmem:[%s7799_s10 + $0x12c] sm:$0xf] %vm5004_vm3, %v6167_v27  ;;  %5250 = vst.msk [vmem:[%s7799_s10 + $0x3d4] sm:$0xf] %vm5004_vm3, %v6337_v28  ;;  %v3390_v33 = vmax.f32 %v2268_v29, 0.0  ;;  %v3560_v34 = vmax.f32 %v2948_v30, 0.0 }
 0x21c   : > { %v2270_v35 = vpop.f32.mrf.mxu0  ;;  %v2950_v36 = vpop.f32.mrf.mxu1 }
 0x21d   : > { %v6168_v39 = vpack.c.bf16 %v3390_v33, %v3390_v33  ;;  %v6338_v40 = vpack.c.bf16 %v3560_v34, %v3560_v34  ;;  %v2271_v41 = vadd.f32 %v8491_v14, %v2270_v35  ;;  %v2951_v42 = vadd.f32 %v8491_v14, %v2950_v36 }
 0x21e   : > { %v6775_v43 = vpop.f32.mrf.mxu0  ;;  %v7115_v44 = vpop.f32.mrf.mxu1 }
 0x21f   : > { %5081 = vst.msk [vmem:[%s7799_s10 + $0x130] sm:$0xf] %vm5004_vm3, %v6168_v39  ;;  %5251 = vst.msk [vmem:[%s7799_s10 + $0x3d8] sm:$0xf] %vm5004_vm3, %v6338_v40  ;;  %v3391_v45 = vmax.f32 %v2271_v41, 0.0  ;;  %v3561_v46 = vmax.f32 %v2951_v42, 0.0 }
 0x220   : > { %v2275_v47 = vpop.f32.mrf.mxu0  ;;  %6873 = vmatmul.mubr.msk.bf16.gmra.mxu0 %vm1417_vm2, %v7453_v37  ;;  %v2955_v48 = vpop.f32.mrf.mxu1  ;;  %7213 = vmatmul.mubr.msk.bf16.gmra.mxu1 %vm1417_vm2, %v7454_v38  ;;  %v7459_v41 = vld [vmem:[%s7568_s26 + $0x210] sm:$0xff]   ;;  %v7460_v42 = vld [vmem:[%s7568_s26 + $0x4b8] sm:$0xff]  }
 0x221   : > { %v6169_v49 = vpack.c.bf16 %v3391_v45, %v3391_v45  ;;  %v6339_v50 = vpack.c.bf16 %v3561_v46, %v3561_v46  ;;  %v2276_v51 = vadd.f32 %v8491_v14, %v2275_v47  ;;  %v2956_v52 = vadd.f32 %v8491_v14, %v2955_v48  ;;  %6876 = vmatprep.mubr.msk.bf16.mxu0 %vm7509_vm1, %v7508_v1 }
 0x222   : > { %v6778_v53 = vpop.f32.mrf.mxu0  ;;  %v7118_v54 = vpop.f32.mrf.mxu1  ;;  %7216 = vmatprep.mubr.msk.bf16.mxu1 %vm7509_vm1, %v7508_v1 }
 0x223   : > { %5082 = vst.msk [vmem:[%s7799_s10 + $0x134] sm:$0xf] %vm5004_vm3, %v6169_v49  ;;  %5252 = vst.msk [vmem:[%s7799_s10 + $0x3dc] sm:$0xf] %vm5004_vm3, %v6339_v50  ;;  %v3392_v55 = vmax.f32 %v2276_v51, 0.0  ;;  %v3562_v56 = vmax.f32 %v2956_v52, 0.0 }
 0x224   : > { %v2278_v57 = vpop.f32.mrf.mxu0  ;;  %v2958_v58 = vpop.f32.mrf.mxu1 }
 0x225   : > { %v6170_v62 = vpack.c.bf16 %v3392_v55, %v3392_v55  ;;  %v6340_v59 = vpack.c.bf16 %v3562_v56, %v3562_v56  ;;  %v2279_v0 = vadd.f32 %v8491_v14, %v2278_v57  ;;  %v2959_v2 = vadd.f32 %v8491_v14, %v2958_v58 }
 0x226   : > { %v6779_v3 = vpop.f32.mrf.mxu0  ;;  %v7119_v4 = vpop.f32.mrf.mxu1 }
 0x227   : > { %5083 = vst.msk [vmem:[%s7799_s10 + $0x138] sm:$0xf] %vm5004_vm3, %v6170_v62  ;;  %5253 = vst.msk [vmem:[%s7799_s10 + $0x3e0] sm:$0xf] %vm5004_vm3, %v6340_v59  ;;  %v3393_v5 = vmax.f32 %v2279_v0, 0.0  ;;  %v3563_v6 = vmax.f32 %v2959_v2, 0.0 }
 0x228   : > { %v2283_v7 = vpop.f32.mrf.mxu0  ;;  %6877 = vmatmul.mubr.msk.bf16.gmra.mxu0 %vm1417_vm2, %v7455_v60  ;;  %v2963_v8 = vpop.f32.mrf.mxu1  ;;  %7217 = vmatmul.mubr.msk.bf16.gmra.mxu1 %vm1417_vm2, %v7456_v61  ;;  %v7461_v0 = vld [vmem:[%s7568_s26 + $0x218] sm:$0xff]   ;;  %v7462_v2 = vld [vmem:[%s7568_s26 + $0x4c0] sm:$0xff]  }
 0x229   : > { %v6171_v9 = vpack.c.bf16 %v3393_v5, %v3393_v5  ;;  %v6341_v10 = vpack.c.bf16 %v3563_v6, %v3563_v6  ;;  %v2284_v11 = vadd.f32 %v8491_v14, %v2283_v7  ;;  %v2964_v63 = vadd.f32 %v8491_v14, %v2963_v8  ;;  %6880 = vmatprep.mubr.msk.bf16.mxu0 %vm7509_vm1, %v7508_v1 }
 0x22a   : > { %v6782_v12 = vpop.f32.mrf.mxu0  ;;  %v7122_v13 = vpop.f32.mrf.mxu1  ;;  %7220 = vmatprep.mubr.msk.bf16.mxu1 %vm7509_vm1, %v7508_v1 }
 0x22b   : > { %5084 = vst.msk [vmem:[%s7799_s10 + $0x13c] sm:$0xf] %vm5004_vm3, %v6171_v9  ;;  %5254 = vst.msk [vmem:[%s7799_s10 + $0x3e4] sm:$0xf] %vm5004_vm3, %v6341_v10  ;;  %v3394_v15 = vmax.f32 %v2284_v11, 0.0  ;;  %v3564_v16 = vmax.f32 %v2964_v63, 0.0 }
 0x22c   : > { %v2286_v17 = vpop.f32.mrf.mxu0  ;;  %v2966_v18 = vpop.f32.mrf.mxu1 }
 0x22d   : > { %v6172_v21 = vpack.c.bf16 %v3394_v15, %v3394_v15  ;;  %v6342_v22 = vpack.c.bf16 %v3564_v16, %v3564_v16  ;;  %v2287_v23 = vadd.f32 %v8491_v14, %v2286_v17  ;;  %v2967_v24 = vadd.f32 %v8491_v14, %v2966_v18 }
 0x22e   : > { %v6783_v25 = vpop.f32.mrf.mxu0  ;;  %v7123_v26 = vpop.f32.mrf.mxu1 }
 0x22f   : > { %5085 = vst.msk [vmem:[%s7799_s10 + $0x140] sm:$0xf] %vm5004_vm3, %v6172_v21  ;;  %5255 = vst.msk [vmem:[%s7799_s10 + $0x3e8] sm:$0xf] %vm5004_vm3, %v6342_v22  ;;  %v3395_v27 = vmax.f32 %v2287_v23, 0.0  ;;  %v3565_v28 = vmax.f32 %v2967_v24, 0.0 }
 0x230   : > { %v2291_v29 = vpop.f32.mrf.mxu0  ;;  %6881 = vmatmul.mubr.msk.bf16.gmra.mxu0 %vm1417_vm2, %v7457_v19  ;;  %v2971_v30 = vpop.f32.mrf.mxu1  ;;  %7221 = vmatmul.mubr.msk.bf16.gmra.mxu1 %vm1417_vm2, %v7458_v20  ;;  %v7463_v23 = vld [vmem:[%s7568_s26 + $0x220] sm:$0xff]   ;;  %v7464_v24 = vld [vmem:[%s7568_s26 + $0x4c8] sm:$0xff]  }
 0x231   : > { %v6173_v31 = vpack.c.bf16 %v3395_v27, %v3395_v27  ;;  %v6343_v32 = vpack.c.bf16 %v3565_v28, %v3565_v28  ;;  %v2292_v33 = vadd.f32 %v8491_v14, %v2291_v29  ;;  %v2972_v34 = vadd.f32 %v8491_v14, %v2971_v30  ;;  %6884 = vmatprep.mubr.msk.bf16.mxu0 %vm7509_vm1, %v7508_v1 }
 0x232   : > { %v6786_v35 = vpop.f32.mrf.mxu0  ;;  %v7126_v36 = vpop.f32.mrf.mxu1  ;;  %7224 = vmatprep.mubr.msk.bf16.mxu1 %vm7509_vm1, %v7508_v1 }
 0x233   : > { %5086 = vst.msk [vmem:[%s7799_s10 + $0x144] sm:$0xf] %vm5004_vm3, %v6173_v31  ;;  %5256 = vst.msk [vmem:[%s7799_s10 + $0x3ec] sm:$0xf] %vm5004_vm3, %v6343_v32  ;;  %v3396_v37 = vmax.f32 %v2292_v33, 0.0  ;;  %v3566_v38 = vmax.f32 %v2972_v34, 0.0 }
 0x234   : > { %v2294_v39 = vpop.f32.mrf.mxu0  ;;  %v2974_v40 = vpop.f32.mrf.mxu1 }
 0x235   : > { %v6174_v43 = vpack.c.bf16 %v3396_v37, %v3396_v37  ;;  %v6344_v44 = vpack.c.bf16 %v3566_v38, %v3566_v38  ;;  %v2295_v45 = vadd.f32 %v8491_v14, %v2294_v39  ;;  %v2975_v46 = vadd.f32 %v8491_v14, %v2974_v40 }
 0x236   : > { %v6787_v47 = vpop.f32.mrf.mxu0  ;;  %v7127_v48 = vpop.f32.mrf.mxu1 }
 0x237   : > { %5087 = vst.msk [vmem:[%s7799_s10 + $0x148] sm:$0xf] %vm5004_vm3, %v6174_v43  ;;  %5257 = vst.msk [vmem:[%s7799_s10 + $0x3f0] sm:$0xf] %vm5004_vm3, %v6344_v44  ;;  %v3397_v49 = vmax.f32 %v2295_v45, 0.0  ;;  %v3567_v50 = vmax.f32 %v2975_v46, 0.0 }
 0x238   : > { %v2299_v51 = vpop.f32.mrf.mxu0  ;;  %6885 = vmatmul.mubr.msk.bf16.gmra.mxu0 %vm1417_vm2, %v7459_v41  ;;  %v2979_v52 = vpop.f32.mrf.mxu1  ;;  %7225 = vmatmul.mubr.msk.bf16.gmra.mxu1 %vm1417_vm2, %v7460_v42  ;;  %v7465_v45 = vld [vmem:[%s7568_s26 + $0x228] sm:$0xff]   ;;  %v7466_v46 = vld [vmem:[%s7568_s26 + $0x4d0] sm:$0xff]  }
 0x239   : > { %v6175_v53 = vpack.c.bf16 %v3397_v49, %v3397_v49  ;;  %v6345_v54 = vpack.c.bf16 %v3567_v50, %v3567_v50  ;;  %v2300_v55 = vadd.f32 %v8491_v14, %v2299_v51  ;;  %v2980_v56 = vadd.f32 %v8491_v14, %v2979_v52  ;;  %6888 = vmatprep.mubr.msk.bf16.mxu0 %vm7509_vm1, %v7508_v1 }
 0x23a   : > { %v6790_v57 = vpop.f32.mrf.mxu0  ;;  %v7130_v58 = vpop.f32.mrf.mxu1  ;;  %7228 = vmatprep.mubr.msk.bf16.mxu1 %vm7509_vm1, %v7508_v1 }
 0x23b   : > { %5088 = vst.msk [vmem:[%s7799_s10 + $0x14c] sm:$0xf] %vm5004_vm3, %v6175_v53  ;;  %5258 = vst.msk [vmem:[%s7799_s10 + $0x3f4] sm:$0xf] %vm5004_vm3, %v6345_v54  ;;  %v3398_v60 = vmax.f32 %v2300_v55, 0.0  ;;  %v3568_v61 = vmax.f32 %v2980_v56, 0.0 }
 0x23c   : > { %v2302_v62 = vpop.f32.mrf.mxu0  ;;  %v2982_v59 = vpop.f32.mrf.mxu1 }
 0x23d   : > { %v6176_v3 = vpack.c.bf16 %v3398_v60, %v3398_v60  ;;  %v6346_v4 = vpack.c.bf16 %v3568_v61, %v3568_v61  ;;  %v2303_v5 = vadd.f32 %v8491_v14, %v2302_v62  ;;  %v2983_v6 = vadd.f32 %v8491_v14, %v2982_v59 }
 0x23e   : > { %v6791_v7 = vpop.f32.mrf.mxu0  ;;  %v7131_v8 = vpop.f32.mrf.mxu1 }
 0x23f   : > { %5089 = vst.msk [vmem:[%s7799_s10 + $0x150] sm:$0xf] %vm5004_vm3, %v6176_v3  ;;  %5259 = vst.msk [vmem:[%s7799_s10 + $0x3f8] sm:$0xf] %vm5004_vm3, %v6346_v4  ;;  %v3399_v9 = vmax.f32 %v2303_v5, 0.0  ;;  %v3569_v10 = vmax.f32 %v2983_v6, 0.0 }
 0x240   : > { %v2307_v11 = vpop.f32.mrf.mxu0  ;;  %6889 = vmatmul.mubr.msk.bf16.gmra.mxu0 %vm1417_vm2, %v7461_v0  ;;  %v2987_v63 = vpop.f32.mrf.mxu1  ;;  %7229 = vmatmul.mubr.msk.bf16.gmra.mxu1 %vm1417_vm2, %v7462_v2  ;;  %v7467_v5 = vld [vmem:[%s7568_s26 + $0x230] sm:$0xff]   ;;  %v7468_v6 = vld [vmem:[%s7568_s26 + $0x4d8] sm:$0xff]  }
 0x241   : > { %v6177_v12 = vpack.c.bf16 %v3399_v9, %v3399_v9  ;;  %v6347_v13 = vpack.c.bf16 %v3569_v10, %v3569_v10  ;;  %v2308_v15 = vadd.f32 %v8491_v14, %v2307_v11  ;;  %v2988_v16 = vadd.f32 %v8491_v14, %v2987_v63  ;;  %6892 = vmatprep.mubr.msk.bf16.mxu0 %vm7509_vm1, %v7508_v1 }
 0x242   : > { %v6794_v17 = vpop.f32.mrf.mxu0  ;;  %v7134_v18 = vpop.f32.mrf.mxu1  ;;  %7232 = vmatprep.mubr.msk.bf16.mxu1 %vm7509_vm1, %v7508_v1 }
 0x243   : > { %5090 = vst.msk [vmem:[%s7799_s10 + $0x154] sm:$0xf] %vm5004_vm3, %v6177_v12  ;;  %5260 = vst.msk [vmem:[%s7799_s10 + $0x3fc] sm:$0xf] %vm5004_vm3, %v6347_v13  ;;  %v3400_v19 = vmax.f32 %v2308_v15, 0.0  ;;  %v3570_v20 = vmax.f32 %v2988_v16, 0.0 }
 0x244   : > { %v2310_v21 = vpop.f32.mrf.mxu0  ;;  %v2990_v22 = vpop.f32.mrf.mxu1 }
 0x245   : > { %v6178_v25 = vpack.c.bf16 %v3400_v19, %v3400_v19  ;;  %v6348_v26 = vpack.c.bf16 %v3570_v20, %v3570_v20  ;;  %v2311_v27 = vadd.f32 %v8491_v14, %v2310_v21  ;;  %v2991_v28 = vadd.f32 %v8491_v14, %v2990_v22 }
 0x246   : > { %v6795_v29 = vpop.f32.mrf.mxu0  ;;  %v7135_v30 = vpop.f32.mrf.mxu1 }
 0x247   : > { %5091 = vst.msk [vmem:[%s7799_s10 + $0x158] sm:$0xf] %vm5004_vm3, %v6178_v25  ;;  %5261 = vst.msk [vmem:[%s7799_s10 + $0x400] sm:$0xf] %vm5004_vm3, %v6348_v26  ;;  %v3401_v31 = vmax.f32 %v2311_v27, 0.0  ;;  %v3571_v32 = vmax.f32 %v2991_v28, 0.0 }
 0x248   : > { %v2315_v33 = vpop.f32.mrf.mxu0  ;;  %6893 = vmatmul.mubr.msk.bf16.gmra.mxu0 %vm1417_vm2, %v7463_v23  ;;  %v2995_v34 = vpop.f32.mrf.mxu1  ;;  %7233 = vmatmul.mubr.msk.bf16.gmra.mxu1 %vm1417_vm2, %v7464_v24  ;;  %v7469_v27 = vld [vmem:[%s7568_s26 + $0x238] sm:$0xff]   ;;  %v7470_v28 = vld [vmem:[%s7568_s26 + $0x4e0] sm:$0xff]  }
 0x249   : > { %v6179_v35 = vpack.c.bf16 %v3401_v31, %v3401_v31  ;;  %v6349_v36 = vpack.c.bf16 %v3571_v32, %v3571_v32  ;;  %v2316_v37 = vadd.f32 %v8491_v14, %v2315_v33  ;;  %v2996_v38 = vadd.f32 %v8491_v14, %v2995_v34  ;;  %6896 = vmatprep.mubr.msk.bf16.mxu0 %vm7509_vm1, %v7508_v1 }
 0x24a   : > { %v6798_v39 = vpop.f32.mrf.mxu0  ;;  %v7138_v40 = vpop.f32.mrf.mxu1  ;;  %7236 = vmatprep.mubr.msk.bf16.mxu1 %vm7509_vm1, %v7508_v1 }
 0x24b   : > { %5092 = vst.msk [vmem:[%s7799_s10 + $0x15c] sm:$0xf] %vm5004_vm3, %v6179_v35  ;;  %5262 = vst.msk [vmem:[%s7799_s10 + $0x404] sm:$0xf] %vm5004_vm3, %v6349_v36  ;;  %v3402_v41 = vmax.f32 %v2316_v37, 0.0  ;;  %v3572_v42 = vmax.f32 %v2996_v38, 0.0 }
 0x24c   : > { %v2318_v43 = vpop.f32.mrf.mxu0  ;;  %v2998_v44 = vpop.f32.mrf.mxu1 }
 0x24d   : > { %v6180_v47 = vpack.c.bf16 %v3402_v41, %v3402_v41  ;;  %v6350_v48 = vpack.c.bf16 %v3572_v42, %v3572_v42  ;;  %v2319_v49 = vadd.f32 %v8491_v14, %v2318_v43  ;;  %v2999_v50 = vadd.f32 %v8491_v14, %v2998_v44 }
 0x24e   : > { %v6799_v51 = vpop.f32.mrf.mxu0  ;;  %v7139_v52 = vpop.f32.mrf.mxu1 }
 0x24f   : > { %5093 = vst.msk [vmem:[%s7799_s10 + $0x160] sm:$0xf] %vm5004_vm3, %v6180_v47  ;;  %5263 = vst.msk [vmem:[%s7799_s10 + $0x408] sm:$0xf] %vm5004_vm3, %v6350_v48  ;;  %v3403_v53 = vmax.f32 %v2319_v49, 0.0  ;;  %v3573_v54 = vmax.f32 %v2999_v50, 0.0 }
 0x250   : > { %v2323_v55 = vpop.f32.mrf.mxu0  ;;  %6897 = vmatmul.mubr.msk.bf16.gmra.mxu0 %vm1417_vm2, %v7465_v45  ;;  %v3003_v56 = vpop.f32.mrf.mxu1  ;;  %7237 = vmatmul.mubr.msk.bf16.gmra.mxu1 %vm1417_vm2, %v7466_v46  ;;  %v7471_v49 = vld [vmem:[%s7568_s26 + $0x240] sm:$0xff]   ;;  %v7472_v50 = vld [vmem:[%s7568_s26 + $0x4e8] sm:$0xff]  }
 0x251   : > { %v6181_v57 = vpack.c.bf16 %v3403_v53, %v3403_v53  ;;  %v6351_v58 = vpack.c.bf16 %v3573_v54, %v3573_v54  ;;  %v2324_v60 = vadd.f32 %v8491_v14, %v2323_v55  ;;  %v3004_v61 = vadd.f32 %v8491_v14, %v3003_v56  ;;  %6900 = vmatprep.mubr.msk.bf16.mxu0 %vm7509_vm1, %v7508_v1 }
 0x252   : > { %v6802_v62 = vpop.f32.mrf.mxu0  ;;  %v7142_v59 = vpop.f32.mrf.mxu1  ;;  %7240 = vmatprep.mubr.msk.bf16.mxu1 %vm7509_vm1, %v7508_v1 }
 0x253   : > { %5094 = vst.msk [vmem:[%s7799_s10 + $0x164] sm:$0xf] %vm5004_vm3, %v6181_v57  ;;  %5264 = vst.msk [vmem:[%s7799_s10 + $0x40c] sm:$0xf] %vm5004_vm3, %v6351_v58  ;;  %v3404_v0 = vmax.f32 %v2324_v60, 0.0  ;;  %v3574_v2 = vmax.f32 %v3004_v61, 0.0 }
 0x254   : > { %v2326_v3 = vpop.f32.mrf.mxu0  ;;  %v3006_v4 = vpop.f32.mrf.mxu1 }
 0x255   : > { %v6182_v7 = vpack.c.bf16 %v3404_v0, %v3404_v0  ;;  %v6352_v8 = vpack.c.bf16 %v3574_v2, %v3574_v2  ;;  %v2327_v9 = vadd.f32 %v8491_v14, %v2326_v3  ;;  %v3007_v10 = vadd.f32 %v8491_v14, %v3006_v4 }
 0x256   : > { %v6803_v11 = vpop.f32.mrf.mxu0  ;;  %v7143_v63 = vpop.f32.mrf.mxu1 }
 0x257   : > { %5095 = vst.msk [vmem:[%s7799_s10 + $0x168] sm:$0xf] %vm5004_vm3, %v6182_v7  ;;  %5265 = vst.msk [vmem:[%s7799_s10 + $0x410] sm:$0xf] %vm5004_vm3, %v6352_v8  ;;  %v3405_v12 = vmax.f32 %v2327_v9, 0.0  ;;  %v3575_v13 = vmax.f32 %v3007_v10, 0.0 }
 0x258   : > { %v2331_v15 = vpop.f32.mrf.mxu0  ;;  %6901 = vmatmul.mubr.msk.bf16.gmra.mxu0 %vm1417_vm2, %v7467_v5  ;;  %v3011_v16 = vpop.f32.mrf.mxu1  ;;  %7241 = vmatmul.mubr.msk.bf16.gmra.mxu1 %vm1417_vm2, %v7468_v6  ;;  %v7473_v9 = vld [vmem:[%s7568_s26 + $0x248] sm:$0xff]   ;;  %v7474_v10 = vld [vmem:[%s7568_s26 + $0x4f0] sm:$0xff]  }
 0x259   : > { %v6183_v17 = vpack.c.bf16 %v3405_v12, %v3405_v12  ;;  %v6353_v18 = vpack.c.bf16 %v3575_v13, %v3575_v13  ;;  %v2332_v19 = vadd.f32 %v8491_v14, %v2331_v15  ;;  %v3012_v20 = vadd.f32 %v8491_v14, %v3011_v16  ;;  %6904 = vmatprep.mubr.msk.bf16.mxu0 %vm7509_vm1, %v7508_v1 }
 0x25a   : > { %v6806_v21 = vpop.f32.mrf.mxu0  ;;  %v7146_v22 = vpop.f32.mrf.mxu1  ;;  %7244 = vmatprep.mubr.msk.bf16.mxu1 %vm7509_vm1, %v7508_v1 }
 0x25b   : > { %5096 = vst.msk [vmem:[%s7799_s10 + $0x16c] sm:$0xf] %vm5004_vm3, %v6183_v17  ;;  %5266 = vst.msk [vmem:[%s7799_s10 + $0x414] sm:$0xf] %vm5004_vm3, %v6353_v18  ;;  %v3406_v23 = vmax.f32 %v2332_v19, 0.0  ;;  %v3576_v24 = vmax.f32 %v3012_v20, 0.0 }
 0x25c   : > { %v2334_v25 = vpop.f32.mrf.mxu0  ;;  %v3014_v26 = vpop.f32.mrf.mxu1 }
 0x25d   : > { %v6184_v29 = vpack.c.bf16 %v3406_v23, %v3406_v23  ;;  %v6354_v30 = vpack.c.bf16 %v3576_v24, %v3576_v24  ;;  %v2335_v31 = vadd.f32 %v8491_v14, %v2334_v25  ;;  %v3015_v32 = vadd.f32 %v8491_v14, %v3014_v26 }
 0x25e   : > { %v6807_v33 = vpop.f32.mrf.mxu0  ;;  %v7147_v34 = vpop.f32.mrf.mxu1 }
 0x25f   : > { %5097 = vst.msk [vmem:[%s7799_s10 + $0x170] sm:$0xf] %vm5004_vm3, %v6184_v29  ;;  %5267 = vst.msk [vmem:[%s7799_s10 + $0x418] sm:$0xf] %vm5004_vm3, %v6354_v30  ;;  %v3407_v35 = vmax.f32 %v2335_v31, 0.0  ;;  %v3577_v36 = vmax.f32 %v3015_v32, 0.0 }
 0x260   : > { %v2339_v37 = vpop.f32.mrf.mxu0  ;;  %6905 = vmatmul.mubr.msk.bf16.gmra.mxu0 %vm1417_vm2, %v7469_v27  ;;  %v3019_v38 = vpop.f32.mrf.mxu1  ;;  %7245 = vmatmul.mubr.msk.bf16.gmra.mxu1 %vm1417_vm2, %v7470_v28  ;;  %v7475_v31 = vld [vmem:[%s7568_s26 + $0x250] sm:$0xff]   ;;  %v7476_v32 = vld [vmem:[%s7568_s26 + $0x4f8] sm:$0xff]  }
 0x261   : > { %v6185_v39 = vpack.c.bf16 %v3407_v35, %v3407_v35  ;;  %v6355_v40 = vpack.c.bf16 %v3577_v36, %v3577_v36  ;;  %v2340_v41 = vadd.f32 %v8491_v14, %v2339_v37  ;;  %v3020_v42 = vadd.f32 %v8491_v14, %v3019_v38  ;;  %6908 = vmatprep.mubr.msk.bf16.mxu0 %vm7509_vm1, %v7508_v1 }
 0x262   : > { %v6810_v43 = vpop.f32.mrf.mxu0  ;;  %v7150_v44 = vpop.f32.mrf.mxu1  ;;  %7248 = vmatprep.mubr.msk.bf16.mxu1 %vm7509_vm1, %v7508_v1 }
 0x263   : > { %5098 = vst.msk [vmem:[%s7799_s10 + $0x174] sm:$0xf] %vm5004_vm3, %v6185_v39  ;;  %5268 = vst.msk [vmem:[%s7799_s10 + $0x41c] sm:$0xf] %vm5004_vm3, %v6355_v40  ;;  %v3408_v45 = vmax.f32 %v2340_v41, 0.0  ;;  %v3578_v46 = vmax.f32 %v3020_v42, 0.0 }
 0x264   : > { %v2342_v47 = vpop.f32.mrf.mxu0  ;;  %v3022_v48 = vpop.f32.mrf.mxu1 }
 0x265   : > { %v6186_v51 = vpack.c.bf16 %v3408_v45, %v3408_v45  ;;  %v6356_v52 = vpack.c.bf16 %v3578_v46, %v3578_v46  ;;  %v2343_v53 = vadd.f32 %v8491_v14, %v2342_v47  ;;  %v3023_v54 = vadd.f32 %v8491_v14, %v3022_v48 }
 0x266   : > { %v6811_v55 = vpop.f32.mrf.mxu0  ;;  %v7151_v56 = vpop.f32.mrf.mxu1 }
 0x267   : > { %5099 = vst.msk [vmem:[%s7799_s10 + $0x178] sm:$0xf] %vm5004_vm3, %v6186_v51  ;;  %5269 = vst.msk [vmem:[%s7799_s10 + $0x420] sm:$0xf] %vm5004_vm3, %v6356_v52  ;;  %v3409_v57 = vmax.f32 %v2343_v53, 0.0  ;;  %v3579_v58 = vmax.f32 %v3023_v54, 0.0 }
 0x268   : > { %v2347_v60 = vpop.f32.mrf.mxu0  ;;  %6909 = vmatmul.mubr.msk.bf16.gmra.mxu0 %vm1417_vm2, %v7471_v49  ;;  %v3027_v61 = vpop.f32.mrf.mxu1  ;;  %7249 = vmatmul.mubr.msk.bf16.gmra.mxu1 %vm1417_vm2, %v7472_v50  ;;  %v7477_v53 = vld [vmem:[%s7568_s26 + $0x258] sm:$0xff]   ;;  %v7478_v54 = vld [vmem:[%s7568_s26 + $0x500] sm:$0xff]  }
 0x269   : > { %v6187_v62 = vpack.c.bf16 %v3409_v57, %v3409_v57  ;;  %v6357_v59 = vpack.c.bf16 %v3579_v58, %v3579_v58  ;;  %v2348_v0 = vadd.f32 %v8491_v14, %v2347_v60  ;;  %v3028_v2 = vadd.f32 %v8491_v14, %v3027_v61  ;;  %6912 = vmatprep.mubr.msk.bf16.mxu0 %vm7509_vm1, %v7508_v1 }
 0x26a   : > { %v6814_v3 = vpop.f32.mrf.mxu0  ;;  %v7154_v4 = vpop.f32.mrf.mxu1  ;;  %7252 = vmatprep.mubr.msk.bf16.mxu1 %vm7509_vm1, %v7508_v1 }
 0x26b   : > { %5100 = vst.msk [vmem:[%s7799_s10 + $0x17c] sm:$0xf] %vm5004_vm3, %v6187_v62  ;;  %5270 = vst.msk [vmem:[%s7799_s10 + $0x424] sm:$0xf] %vm5004_vm3, %v6357_v59  ;;  %v3410_v5 = vmax.f32 %v2348_v0, 0.0  ;;  %v3580_v6 = vmax.f32 %v3028_v2, 0.0 }
 0x26c   : > { %v2350_v7 = vpop.f32.mrf.mxu0  ;;  %v3030_v8 = vpop.f32.mrf.mxu1 }
 0x26d   : > { %v6188_v11 = vpack.c.bf16 %v3410_v5, %v3410_v5  ;;  %v6358_v63 = vpack.c.bf16 %v3580_v6, %v3580_v6  ;;  %v2351_v12 = vadd.f32 %v8491_v14, %v2350_v7  ;;  %v3031_v13 = vadd.f32 %v8491_v14, %v3030_v8 }
 0x26e   : > { %v6815_v15 = vpop.f32.mrf.mxu0  ;;  %v7155_v16 = vpop.f32.mrf.mxu1 }
 0x26f   : > { %5101 = vst.msk [vmem:[%s7799_s10 + $0x180] sm:$0xf] %vm5004_vm3, %v6188_v11  ;;  %5271 = vst.msk [vmem:[%s7799_s10 + $0x428] sm:$0xf] %vm5004_vm3, %v6358_v63  ;;  %v3411_v17 = vmax.f32 %v2351_v12, 0.0  ;;  %v3581_v18 = vmax.f32 %v3031_v13, 0.0 }
 0x270   : > { %v2355_v19 = vpop.f32.mrf.mxu0  ;;  %6913 = vmatmul.mubr.msk.bf16.gmra.mxu0 %vm1417_vm2, %v7473_v9  ;;  %v3035_v20 = vpop.f32.mrf.mxu1  ;;  %7253 = vmatmul.mubr.msk.bf16.gmra.mxu1 %vm1417_vm2, %v7474_v10  ;;  %v7479_v12 = vld [vmem:[%s7568_s26 + $0x260] sm:$0xff]   ;;  %v7480_v13 = vld [vmem:[%s7568_s26 + $0x508] sm:$0xff]  }
 0x271   : > { %v6189_v21 = vpack.c.bf16 %v3411_v17, %v3411_v17  ;;  %v6359_v22 = vpack.c.bf16 %v3581_v18, %v3581_v18  ;;  %v2356_v23 = vadd.f32 %v8491_v14, %v2355_v19  ;;  %v3036_v24 = vadd.f32 %v8491_v14, %v3035_v20  ;;  %6916 = vmatprep.mubr.msk.bf16.mxu0 %vm7509_vm1, %v7508_v1 }
 0x272   : > { %v6818_v25 = vpop.f32.mrf.mxu0  ;;  %v7158_v26 = vpop.f32.mrf.mxu1  ;;  %7256 = vmatprep.mubr.msk.bf16.mxu1 %vm7509_vm1, %v7508_v1 }
 0x273   : > { %5102 = vst.msk [vmem:[%s7799_s10 + $0x184] sm:$0xf] %vm5004_vm3, %v6189_v21  ;;  %5272 = vst.msk [vmem:[%s7799_s10 + $0x42c] sm:$0xf] %vm5004_vm3, %v6359_v22  ;;  %v3412_v27 = vmax.f32 %v2356_v23, 0.0  ;;  %v3582_v28 = vmax.f32 %v3036_v24, 0.0 }
 0x274   : > { %v2358_v29 = vpop.f32.mrf.mxu0  ;;  %v3038_v30 = vpop.f32.mrf.mxu1  ;;  %v8844_v26 = vld [vmem:[%s9310_s2] ss:$0 sm:$0xff] }
 0x275   : > { %v6190_v33 = vpack.c.bf16 %v3412_v27, %v3412_v27  ;;  %v6360_v34 = vpack.c.bf16 %v3582_v28, %v3582_v28  ;;  %v2359_v35 = vadd.f32 %v8491_v14, %v2358_v29  ;;  %v3039_v36 = vadd.f32 %v8491_v14, %v3038_v30 }
 0x276   : > { %v6819_v37 = vpop.f32.mrf.mxu0  ;;  %v7159_v38 = vpop.f32.mrf.mxu1 }
 0x277   : > { %5103 = vst.msk [vmem:[%s7799_s10 + $0x188] sm:$0xf] %vm5004_vm3, %v6190_v33  ;;  %5273 = vst.msk [vmem:[%s7799_s10 + $0x430] sm:$0xf] %vm5004_vm3, %v6360_v34  ;;  %v3413_v39 = vmax.f32 %v2359_v35, 0.0  ;;  %v3583_v40 = vmax.f32 %v3039_v36, 0.0 }
 0x278   : > { %v2363_v41 = vpop.f32.mrf.mxu0  ;;  %6917 = vmatmul.mubr.msk.bf16.gmra.mxu0 %vm1417_vm2, %v7475_v31  ;;  %v3043_v42 = vpop.f32.mrf.mxu1  ;;  %7257 = vmatmul.mubr.msk.bf16.gmra.mxu1 %vm1417_vm2, %v7476_v32  ;;  %v7481_v35 = vld [vmem:[%s7568_s26 + $0x268] sm:$0xff]   ;;  %v7482_v36 = vld [vmem:[%s7568_s26 + $0x510] sm:$0xff]  }
 0x279   : > { %v6191_v43 = vpack.c.bf16 %v3413_v39, %v3413_v39  ;;  %v6361_v44 = vpack.c.bf16 %v3583_v40, %v3583_v40  ;;  %v2364_v45 = vadd.f32 %v8491_v14, %v2363_v41  ;;  %v3044_v46 = vadd.f32 %v8491_v14, %v3043_v42  ;;  %6920 = vmatprep.mubr.msk.bf16.mxu0 %vm7509_vm1, %v7508_v1 }
 0x27a   : > { %v6822_v47 = vpop.f32.mrf.mxu0  ;;  %v7162_v48 = vpop.f32.mrf.mxu1  ;;  %7260 = vmatprep.mubr.msk.bf16.mxu1 %vm7509_vm1, %v7508_v1 }
 0x27b   : > { %5104 = vst.msk [vmem:[%s7799_s10 + $0x18c] sm:$0xf] %vm5004_vm3, %v6191_v43  ;;  %5274 = vst.msk [vmem:[%s7799_s10 + $0x434] sm:$0xf] %vm5004_vm3, %v6361_v44  ;;  %v3414_v49 = vmax.f32 %v2364_v45, 0.0  ;;  %v3584_v50 = vmax.f32 %v3044_v46, 0.0 }
 0x27c   : > { %v2366_v51 = vpop.f32.mrf.mxu0  ;;  %v3046_v52 = vpop.f32.mrf.mxu1 }
 0x27d   : > { %v6192_v55 = vpack.c.bf16 %v3414_v49, %v3414_v49  ;;  %v6362_v56 = vpack.c.bf16 %v3584_v50, %v3584_v50  ;;  %v2367_v57 = vadd.f32 %v8491_v14, %v2366_v51  ;;  %v3047_v58 = vadd.f32 %v8491_v14, %v3046_v52 }
 0x27e   : > { %v6823_v60 = vpop.f32.mrf.mxu0  ;;  %v7163_v61 = vpop.f32.mrf.mxu1 }
 0x27f   : > { %5105 = vst.msk [vmem:[%s7799_s10 + $0x190] sm:$0xf] %vm5004_vm3, %v6192_v55  ;;  %5275 = vst.msk [vmem:[%s7799_s10 + $0x438] sm:$0xf] %vm5004_vm3, %v6362_v56  ;;  %v3415_v62 = vmax.f32 %v2367_v57, 0.0  ;;  %v3585_v59 = vmax.f32 %v3047_v58, 0.0 }
 0x280   : > { %v2371_v0 = vpop.f32.mrf.mxu0  ;;  %6921 = vmatmul.mubr.msk.bf16.gmra.mxu0 %vm1417_vm2, %v7477_v53  ;;  %v3051_v2 = vpop.f32.mrf.mxu1  ;;  %7261 = vmatmul.mubr.msk.bf16.gmra.mxu1 %vm1417_vm2, %v7478_v54  ;;  %v7483_v57 = vld [vmem:[%s7568_s26 + $0x270] sm:$0xff]   ;;  %v7484_v58 = vld [vmem:[%s7568_s26 + $0x518] sm:$0xff]  }
 0x281   : > { %v6193_v3 = vpack.c.bf16 %v3415_v62, %v3415_v62  ;;  %v6363_v4 = vpack.c.bf16 %v3585_v59, %v3585_v59  ;;  %v2372_v5 = vadd.f32 %v8491_v14, %v2371_v0  ;;  %v3052_v6 = vadd.f32 %v8491_v14, %v3051_v2  ;;  %6924 = vmatprep.mubr.msk.bf16.mxu0 %vm7509_vm1, %v7508_v1 }
 0x282   : > { %v6826_v7 = vpop.f32.mrf.mxu0  ;;  %v7166_v8 = vpop.f32.mrf.mxu1  ;;  %7264 = vmatprep.mubr.msk.bf16.mxu1 %vm7509_vm1, %v7508_v1 }
 0x283   : > { %5106 = vst.msk [vmem:[%s7799_s10 + $0x194] sm:$0xf] %vm5004_vm3, %v6193_v3  ;;  %5276 = vst.msk [vmem:[%s7799_s10 + $0x43c] sm:$0xf] %vm5004_vm3, %v6363_v4  ;;  %v3416_v9 = vmax.f32 %v2372_v5, 0.0  ;;  %v3586_v10 = vmax.f32 %v3052_v6, 0.0 }
 0x284   : > { %v2374_v11 = vpop.f32.mrf.mxu0  ;;  %v3054_v63 = vpop.f32.mrf.mxu1 }
 0x285   : > { %v6194_v15 = vpack.c.bf16 %v3416_v9, %v3416_v9  ;;  %v6364_v16 = vpack.c.bf16 %v3586_v10, %v3586_v10  ;;  %v2375_v17 = vadd.f32 %v8491_v14, %v2374_v11  ;;  %v3055_v18 = vadd.f32 %v8491_v14, %v3054_v63 }
 0x286   : > { %v6827_v19 = vpop.f32.mrf.mxu0  ;;  %v7167_v20 = vpop.f32.mrf.mxu1 }
 0x287   : > { %5107 = vst.msk [vmem:[%s7799_s10 + $0x198] sm:$0xf] %vm5004_vm3, %v6194_v15  ;;  %5277 = vst.msk [vmem:[%s7799_s10 + $0x440] sm:$0xf] %vm5004_vm3, %v6364_v16  ;;  %v3417_v21 = vmax.f32 %v2375_v17, 0.0  ;;  %v3587_v22 = vmax.f32 %v3055_v18, 0.0 }
 0x288   : > { %v2379_v23 = vpop.f32.mrf.mxu0  ;;  %6925 = vmatmul.mubr.msk.bf16.gmra.mxu0 %vm1417_vm2, %v7479_v12  ;;  %v3059_v24 = vpop.f32.mrf.mxu1  ;;  %7265 = vmatmul.mubr.msk.bf16.gmra.mxu1 %vm1417_vm2, %v7480_v13  ;;  %v7485_v17 = vld [vmem:[%s7568_s26 + $0x278] sm:$0xff]   ;;  %v7486_v18 = vld [vmem:[%s7568_s26 + $0x520] sm:$0xff]  }
 0x289   : > { %v6195_v25 = vpack.c.bf16 %v3417_v21, %v3417_v21  ;;  %v6365_v14 = vpack.c.bf16 %v3587_v22, %v3587_v22  ;;  %v2380_v27 = vadd.f32 %v8844_v26, %v2379_v23  ;;  %v3060_v28 = vadd.f32 %v8844_v26, %v3059_v24  ;;  %6928 = vmatprep.mubr.msk.bf16.mxu0 %vm7509_vm1, %v7508_v1 }
 0x28a   : > { %v6830_v29 = vpop.f32.mrf.mxu0  ;;  %v7170_v30 = vpop.f32.mrf.mxu1  ;;  %7268 = vmatprep.mubr.msk.bf16.mxu1 %vm7509_vm1, %v7508_v1 }
 0x28b   : > { %5108 = vst.msk [vmem:[%s7799_s10 + $0x19c] sm:$0xf] %vm5004_vm3, %v6195_v25  ;;  %5278 = vst.msk [vmem:[%s7799_s10 + $0x444] sm:$0xf] %vm5004_vm3, %v6365_v14  ;;  %v3418_v31 = vmax.f32 %v2380_v27, 0.0  ;;  %v3588_v32 = vmax.f32 %v3060_v28, 0.0 }
 0x28c   : > { %v2382_v33 = vpop.f32.mrf.mxu0  ;;  %v3062_v34 = vpop.f32.mrf.mxu1 }
 0x28d   : > { %v6196_v37 = vpack.c.bf16 %v3418_v31, %v3418_v31  ;;  %v6366_v38 = vpack.c.bf16 %v3588_v32, %v3588_v32  ;;  %v2383_v39 = vadd.f32 %v8844_v26, %v2382_v33  ;;  %v3063_v40 = vadd.f32 %v8844_v26, %v3062_v34 }
 0x28e   : > { %v6831_v41 = vpop.f32.mrf.mxu0  ;;  %v7171_v42 = vpop.f32.mrf.mxu1 }
 0x28f   : > { %5109 = vst.msk [vmem:[%s7799_s10 + $0x1a0] sm:$0xf] %vm5004_vm3, %v6196_v37  ;;  %5279 = vst.msk [vmem:[%s7799_s10 + $0x448] sm:$0xf] %vm5004_vm3, %v6366_v38  ;;  %v3419_v43 = vmax.f32 %v2383_v39, 0.0  ;;  %v3589_v44 = vmax.f32 %v3063_v40, 0.0 }
 0x290   : > { %v2387_v45 = vpop.f32.mrf.mxu0  ;;  %6929 = vmatmul.mubr.msk.bf16.gmra.mxu0 %vm1417_vm2, %v7481_v35  ;;  %v3067_v46 = vpop.f32.mrf.mxu1  ;;  %7269 = vmatmul.mubr.msk.bf16.gmra.mxu1 %vm1417_vm2, %v7482_v36  ;;  %v7487_v39 = vld [vmem:[%s7568_s26 + $0x280] sm:$0xff]   ;;  %v7488_v40 = vld [vmem:[%s7568_s26 + $0x528] sm:$0xff]  }
 0x291   : > { %v6197_v47 = vpack.c.bf16 %v3419_v43, %v3419_v43  ;;  %v6367_v48 = vpack.c.bf16 %v3589_v44, %v3589_v44  ;;  %v2388_v49 = vadd.f32 %v8844_v26, %v2387_v45  ;;  %v3068_v50 = vadd.f32 %v8844_v26, %v3067_v46  ;;  %6932 = vmatprep.mubr.msk.bf16.mxu0 %vm7509_vm1, %v7508_v1 }
 0x292   : > { %v6834_v51 = vpop.f32.mrf.mxu0  ;;  %v7174_v52 = vpop.f32.mrf.mxu1  ;;  %7272 = vmatprep.mubr.msk.bf16.mxu1 %vm7509_vm1, %v7508_v1 }
 0x293   : > { %5110 = vst.msk [vmem:[%s7799_s10 + $0x1a4] sm:$0xf] %vm5004_vm3, %v6197_v47  ;;  %5280 = vst.msk [vmem:[%s7799_s10 + $0x44c] sm:$0xf] %vm5004_vm3, %v6367_v48  ;;  %v3420_v53 = vmax.f32 %v2388_v49, 0.0  ;;  %v3590_v54 = vmax.f32 %v3068_v50, 0.0 }
 0x294   : > { %v2390_v55 = vpop.f32.mrf.mxu0  ;;  %v3070_v56 = vpop.f32.mrf.mxu1 }
 0x295   : > { %v6198_v60 = vpack.c.bf16 %v3420_v53, %v3420_v53  ;;  %v6368_v61 = vpack.c.bf16 %v3590_v54, %v3590_v54  ;;  %v2391_v62 = vadd.f32 %v8844_v26, %v2390_v55  ;;  %v3071_v59 = vadd.f32 %v8844_v26, %v3070_v56 }
 0x296   : > { %v6835_v0 = vpop.f32.mrf.mxu0  ;;  %v7175_v2 = vpop.f32.mrf.mxu1 }
 0x297   : > { %5111 = vst.msk [vmem:[%s7799_s10 + $0x1a8] sm:$0xf] %vm5004_vm3, %v6198_v60  ;;  %5281 = vst.msk [vmem:[%s7799_s10 + $0x450] sm:$0xf] %vm5004_vm3, %v6368_v61  ;;  %v3421_v3 = vmax.f32 %v2391_v62, 0.0  ;;  %v3591_v4 = vmax.f32 %v3071_v59, 0.0 }
 0x298   : > { %v2395_v5 = vpop.f32.mrf.mxu0  ;;  %6933 = vmatmul.mubr.msk.bf16.gmra.mxu0 %vm1417_vm2, %v7483_v57  ;;  %v3075_v6 = vpop.f32.mrf.mxu1  ;;  %7273 = vmatmul.mubr.msk.bf16.gmra.mxu1 %vm1417_vm2, %v7484_v58  ;;  %v7489_v62 = vld [vmem:[%s7568_s26 + $0x288] sm:$0xff]   ;;  %v7490_v59 = vld [vmem:[%s7568_s26 + $0x530] sm:$0xff]  }
 0x299   : > { %v6199_v7 = vpack.c.bf16 %v3421_v3, %v3421_v3  ;;  %v6369_v8 = vpack.c.bf16 %v3591_v4, %v3591_v4  ;;  %v2396_v9 = vadd.f32 %v8844_v26, %v2395_v5  ;;  %v3076_v10 = vadd.f32 %v8844_v26, %v3075_v6  ;;  %6936 = vmatprep.mubr.msk.bf16.mxu0 %vm7509_vm1, %v7508_v1 }
 0x29a   : > { %v6838_v11 = vpop.f32.mrf.mxu0  ;;  %v7178_v63 = vpop.f32.mrf.mxu1  ;;  %7276 = vmatprep.mubr.msk.bf16.mxu1 %vm7509_vm1, %v7508_v1 }
 0x29b   : > { %5112 = vst.msk [vmem:[%s7799_s10 + $0x1ac] sm:$0xf] %vm5004_vm3, %v6199_v7  ;;  %5282 = vst.msk [vmem:[%s7799_s10 + $0x454] sm:$0xf] %vm5004_vm3, %v6369_v8  ;;  %v3422_v12 = vmax.f32 %v2396_v9, 0.0  ;;  %v3592_v13 = vmax.f32 %v3076_v10, 0.0 }
 0x29c   : > { %v2398_v15 = vpop.f32.mrf.mxu0  ;;  %v3078_v16 = vpop.f32.mrf.mxu1 }
 0x29d   : > { %v6200_v19 = vpack.c.bf16 %v3422_v12, %v3422_v12  ;;  %v6370_v20 = vpack.c.bf16 %v3592_v13, %v3592_v13  ;;  %v2399_v21 = vadd.f32 %v8844_v26, %v2398_v15  ;;  %v3079_v22 = vadd.f32 %v8844_v26, %v3078_v16 }
 0x29e   : > { %v6839_v23 = vpop.f32.mrf.mxu0  ;;  %v7179_v24 = vpop.f32.mrf.mxu1 }
 0x29f   : > { %5113 = vst.msk [vmem:[%s7799_s10 + $0x1b0] sm:$0xf] %vm5004_vm3, %v6200_v19  ;;  %5283 = vst.msk [vmem:[%s7799_s10 + $0x458] sm:$0xf] %vm5004_vm3, %v6370_v20  ;;  %v3423_v25 = vmax.f32 %v2399_v21, 0.0  ;;  %v3593_v14 = vmax.f32 %v3079_v22, 0.0 }
 0x2a0   : > { %v2403_v27 = vpop.f32.mrf.mxu0  ;;  %6937 = vmatmul.mubr.msk.bf16.gmra.mxu0 %vm1417_vm2, %v7485_v17  ;;  %v3083_v28 = vpop.f32.mrf.mxu1  ;;  %7277 = vmatmul.mubr.msk.bf16.gmra.mxu1 %vm1417_vm2, %v7486_v18  ;;  %v7491_v21 = vld [vmem:[%s7568_s26 + $0x290] sm:$0xff]   ;;  %v7492_v22 = vld [vmem:[%s7568_s26 + $0x538] sm:$0xff]  }
 0x2a1   : > { %v6201_v29 = vpack.c.bf16 %v3423_v25, %v3423_v25  ;;  %v6371_v30 = vpack.c.bf16 %v3593_v14, %v3593_v14  ;;  %v2404_v31 = vadd.f32 %v8844_v26, %v2403_v27  ;;  %v3084_v32 = vadd.f32 %v8844_v26, %v3083_v28  ;;  %6940 = vmatprep.mubr.msk.bf16.mxu0 %vm7509_vm1, %v7508_v1 }
 0x2a2   : > { %v6842_v33 = vpop.f32.mrf.mxu0  ;;  %v7182_v34 = vpop.f32.mrf.mxu1  ;;  %7280 = vmatprep.mubr.msk.bf16.mxu1 %vm7509_vm1, %v7508_v1 }
 0x2a3   : > { %5114 = vst.msk [vmem:[%s7799_s10 + $0x1b4] sm:$0xf] %vm5004_vm3, %v6201_v29  ;;  %5284 = vst.msk [vmem:[%s7799_s10 + $0x45c] sm:$0xf] %vm5004_vm3, %v6371_v30  ;;  %v3424_v35 = vmax.f32 %v2404_v31, 0.0  ;;  %v3594_v36 = vmax.f32 %v3084_v32, 0.0 }
 0x2a4   : > { %v2406_v37 = vpop.f32.mrf.mxu0  ;;  %v3086_v38 = vpop.f32.mrf.mxu1 }
 0x2a5   : > { %v6202_v41 = vpack.c.bf16 %v3424_v35, %v3424_v35  ;;  %v6372_v42 = vpack.c.bf16 %v3594_v36, %v3594_v36  ;;  %v2407_v43 = vadd.f32 %v8844_v26, %v2406_v37  ;;  %v3087_v44 = vadd.f32 %v8844_v26, %v3086_v38 }
 0x2a6   : > { %v6843_v45 = vpop.f32.mrf.mxu0  ;;  %v7183_v46 = vpop.f32.mrf.mxu1 }
 0x2a7   : > { %5115 = vst.msk [vmem:[%s7799_s10 + $0x1b8] sm:$0xf] %vm5004_vm3, %v6202_v41  ;;  %5285 = vst.msk [vmem:[%s7799_s10 + $0x460] sm:$0xf] %vm5004_vm3, %v6372_v42  ;;  %v3425_v47 = vmax.f32 %v2407_v43, 0.0  ;;  %v3595_v48 = vmax.f32 %v3087_v44, 0.0 }
 0x2a8   : > { %v2411_v49 = vpop.f32.mrf.mxu0  ;;  %6941 = vmatmul.mubr.msk.bf16.gmra.mxu0 %vm1417_vm2, %v7487_v39  ;;  %v3091_v50 = vpop.f32.mrf.mxu1  ;;  %7281 = vmatmul.mubr.msk.bf16.gmra.mxu1 %vm1417_vm2, %v7488_v40  ;;  %v7493_v43 = vld [vmem:[%s7568_s26 + $0x298] sm:$0xff]   ;;  %v7494_v44 = vld [vmem:[%s7568_s26 + $0x540] sm:$0xff]  }
 0x2a9   : > { %v6203_v51 = vpack.c.bf16 %v3425_v47, %v3425_v47  ;;  %v6373_v52 = vpack.c.bf16 %v3595_v48, %v3595_v48  ;;  %v2412_v53 = vadd.f32 %v8844_v26, %v2411_v49  ;;  %v3092_v54 = vadd.f32 %v8844_v26, %v3091_v50  ;;  %6944 = vmatprep.mubr.msk.bf16.mxu0 %vm7509_vm1, %v7508_v1 }
 0x2aa   : > { %v6846_v55 = vpop.f32.mrf.mxu0  ;;  %v7186_v56 = vpop.f32.mrf.mxu1  ;;  %7284 = vmatprep.mubr.msk.bf16.mxu1 %vm7509_vm1, %v7508_v1 }
 0x2ab   : > { %5116 = vst.msk [vmem:[%s7799_s10 + $0x1bc] sm:$0xf] %vm5004_vm3, %v6203_v51  ;;  %5286 = vst.msk [vmem:[%s7799_s10 + $0x464] sm:$0xf] %vm5004_vm3, %v6373_v52  ;;  %v3426_v57 = vmax.f32 %v2412_v53, 0.0  ;;  %v3596_v58 = vmax.f32 %v3092_v54, 0.0 }
 0x2ac   : > { %v2414_v60 = vpop.f32.mrf.mxu0  ;;  %v3094_v61 = vpop.f32.mrf.mxu1 }
 0x2ad   : > { %v6204_v0 = vpack.c.bf16 %v3426_v57, %v3426_v57  ;;  %v6374_v2 = vpack.c.bf16 %v3596_v58, %v3596_v58  ;;  %v2415_v3 = vadd.f32 %v8844_v26, %v2414_v60  ;;  %v3095_v4 = vadd.f32 %v8844_v26, %v3094_v61 }
 0x2ae   : > { %v6847_v5 = vpop.f32.mrf.mxu0  ;;  %v7187_v6 = vpop.f32.mrf.mxu1 }
 0x2af   : > { %5117 = vst.msk [vmem:[%s7799_s10 + $0x1c0] sm:$0xf] %vm5004_vm3, %v6204_v0  ;;  %5287 = vst.msk [vmem:[%s7799_s10 + $0x468] sm:$0xf] %vm5004_vm3, %v6374_v2  ;;  %v3427_v7 = vmax.f32 %v2415_v3, 0.0  ;;  %v3597_v8 = vmax.f32 %v3095_v4, 0.0 }
 0x2b0   : > { %v2419_v9 = vpop.f32.mrf.mxu0  ;;  %6945 = vmatmul.mubr.msk.bf16.gmra.mxu0 %vm1417_vm2, %v7489_v62  ;;  %v3099_v10 = vpop.f32.mrf.mxu1  ;;  %7285 = vmatmul.mubr.msk.bf16.gmra.mxu1 %vm1417_vm2, %v7490_v59  ;;  %v7495_v3 = vld [vmem:[%s7568_s26 + $0x2a0] sm:$0xff]  }
 0x2b1   : > { %v6205_v11 = vpack.c.bf16 %v3427_v7, %v3427_v7  ;;  %v6375_v63 = vpack.c.bf16 %v3597_v8, %v3597_v8  ;;  %v2420_v12 = vadd.f32 %v8844_v26, %v2419_v9  ;;  %v3100_v13 = vadd.f32 %v8844_v26, %v3099_v10  ;;  %6948 = vmatprep.mubr.msk.bf16.mxu0 %vm7509_vm1, %v7508_v1 }
 0x2b2   : > { %v6850_v15 = vpop.f32.mrf.mxu0  ;;  %v7190_v16 = vpop.f32.mrf.mxu1  ;;  %7288 = vmatprep.mubr.msk.bf16.mxu1 %vm7509_vm1, %v7508_v1 }
 0x2b3   : > { %5118 = vst.msk [vmem:[%s7799_s10 + $0x1c4] sm:$0xf] %vm5004_vm3, %v6205_v11  ;;  %5288 = vst.msk [vmem:[%s7799_s10 + $0x46c] sm:$0xf] %vm5004_vm3, %v6375_v63  ;;  %v3428_v17 = vmax.f32 %v2420_v12, 0.0  ;;  %v3598_v18 = vmax.f32 %v3100_v13, 0.0 }
 0x2b4   : > { %v2422_v19 = vpop.f32.mrf.mxu0  ;;  %v3102_v20 = vpop.f32.mrf.mxu1 }
 0x2b5   : > { %v6206_v23 = vpack.c.bf16 %v3428_v17, %v3428_v17  ;;  %v6376_v24 = vpack.c.bf16 %v3598_v18, %v3598_v18  ;;  %v2423_v25 = vadd.f32 %v8844_v26, %v2422_v19  ;;  %v3103_v14 = vadd.f32 %v8844_v26, %v3102_v20 }
 0x2b6   : > { %v6851_v27 = vpop.f32.mrf.mxu0  ;;  %v7191_v28 = vpop.f32.mrf.mxu1 }
 0x2b7   : > { %5119 = vst.msk [vmem:[%s7799_s10 + $0x1c8] sm:$0xf] %vm5004_vm3, %v6206_v23  ;;  %5289 = vst.msk [vmem:[%s7799_s10 + $0x470] sm:$0xf] %vm5004_vm3, %v6376_v24  ;;  %v3429_v29 = vmax.f32 %v2423_v25, 0.0  ;;  %v3599_v30 = vmax.f32 %v3103_v14, 0.0 }
 0x2b8   : > { %v2427_v31 = vpop.f32.mrf.mxu0  ;;  %6949 = vmatmul.mubr.msk.bf16.gmra.mxu0 %vm1417_vm2, %v7491_v21  ;;  %v3107_v32 = vpop.f32.mrf.mxu1  ;;  %7289 = vmatmul.mubr.msk.bf16.gmra.mxu1 %vm1417_vm2, %v7492_v22 }
 0x2b9   : > { %v6207_v33 = vpack.c.bf16 %v3429_v29, %v3429_v29  ;;  %v6377_v34 = vpack.c.bf16 %v3599_v30, %v3599_v30  ;;  %v2428_v35 = vadd.f32 %v8844_v26, %v2427_v31  ;;  %v3108_v36 = vadd.f32 %v8844_v26, %v3107_v32  ;;  %6952 = vmatprep.mubr.msk.bf16.mxu0 %vm7509_vm1, %v7508_v1 }
 0x2ba   : > { %v6854_v37 = vpop.f32.mrf.mxu0  ;;  %v7194_v38 = vpop.f32.mrf.mxu1  ;;  %7292 = vmatprep.mubr.msk.bf16.mxu1 %vm7509_vm1, %v7508_v1 }
 0x2bb   : > { %5120 = vst.msk [vmem:[%s7799_s10 + $0x1cc] sm:$0xf] %vm5004_vm3, %v6207_v33  ;;  %5290 = vst.msk [vmem:[%s7799_s10 + $0x474] sm:$0xf] %vm5004_vm3, %v6377_v34  ;;  %v3430_v39 = vmax.f32 %v2428_v35, 0.0  ;;  %v3600_v40 = vmax.f32 %v3108_v36, 0.0 }
 0x2bc   : > { %v2430_v41 = vpop.f32.mrf.mxu0  ;;  %v3110_v42 = vpop.f32.mrf.mxu1 }
 0x2bd   : > { %v6208_v45 = vpack.c.bf16 %v3430_v39, %v3430_v39  ;;  %v6378_v46 = vpack.c.bf16 %v3600_v40, %v3600_v40  ;;  %v2431_v47 = vadd.f32 %v8844_v26, %v2430_v41  ;;  %v3111_v48 = vadd.f32 %v8844_v26, %v3110_v42 }
 0x2be   : > { %v6855_v49 = vpop.f32.mrf.mxu0  ;;  %v7195_v50 = vpop.f32.mrf.mxu1 }
 0x2bf   : > { %5121 = vst.msk [vmem:[%s7799_s10 + $0x1d0] sm:$0xf] %vm5004_vm3, %v6208_v45  ;;  %5291 = vst.msk [vmem:[%s7799_s10 + $0x478] sm:$0xf] %vm5004_vm3, %v6378_v46  ;;  %v3431_v51 = vmax.f32 %v2431_v47, 0.0  ;;  %v3601_v52 = vmax.f32 %v3111_v48, 0.0 }
 0x2c0   : > { %v2435_v53 = vpop.f32.mrf.mxu0  ;;  %6953 = vmatmul.mubr.msk.bf16.gmra.mxu0 %vm1417_vm2, %v7493_v43  ;;  %v3115_v54 = vpop.f32.mrf.mxu1  ;;  %7293 = vmatmul.mubr.msk.bf16.gmra.mxu1 %vm1417_vm2, %v7494_v44 }
 0x2c1   : > { %v6209_v55 = vpack.c.bf16 %v3431_v51, %v3431_v51  ;;  %v6379_v56 = vpack.c.bf16 %v3601_v52, %v3601_v52  ;;  %v2436_v57 = vadd.f32 %v8844_v26, %v2435_v53  ;;  %v3116_v58 = vadd.f32 %v8844_v26, %v3115_v54  ;;  %6956 = vmatprep.mubr.msk.bf16.mxu0 %vm7509_vm1, %v7508_v1 }
 0x2c2   : > { %v6858_v60 = vpop.f32.mrf.mxu0  ;;  %v7198_v61 = vpop.f32.mrf.mxu1 }
 0x2c3   : > { %5122 = vst.msk [vmem:[%s7799_s10 + $0x1d4] sm:$0xf] %vm5004_vm3, %v6209_v55  ;;  %5292 = vst.msk [vmem:[%s7799_s10 + $0x47c] sm:$0xf] %vm5004_vm3, %v6379_v56  ;;  %v3432_v62 = vmax.f32 %v2436_v57, 0.0  ;;  %v3602_v59 = vmax.f32 %v3116_v58, 0.0 }
 0x2c4   : > { %v2438_v0 = vpop.f32.mrf.mxu0  ;;  %v3118_v2 = vpop.f32.mrf.mxu1 }
 0x2c5   : > { %v6210_v4 = vpack.c.bf16 %v3432_v62, %v3432_v62  ;;  %v6380_v5 = vpack.c.bf16 %v3602_v59, %v3602_v59  ;;  %v2439_v6 = vadd.f32 %v8844_v26, %v2438_v0  ;;  %v3119_v7 = vadd.f32 %v8844_v26, %v3118_v2 }
 0x2c6   : > { %v6859_v1 = vpop.f32.mrf.mxu0  ;;  %v7199_v8 = vpop.f32.mrf.mxu1 }
 0x2c7   : > { %5123 = vst.msk [vmem:[%s7799_s10 + $0x1d8] sm:$0xf] %vm5004_vm3, %v6210_v4  ;;  %5293 = vst.msk [vmem:[%s7799_s10 + $0x480] sm:$0xf] %vm5004_vm3, %v6380_v5  ;;  %v3433_v9 = vmax.f32 %v2439_v6, 0.0  ;;  %v3603_v10 = vmax.f32 %v3119_v7, 0.0 }
 0x2c8   : > { %v2443_v11 = vpop.f32.mrf.mxu0  ;;  %6957 = vmatmul.mubr.msk.bf16.gmra.mxu0 %vm1417_vm2, %v7495_v3  ;;  %v3123_v63 = vpop.f32.mrf.mxu1 }
 0x2c9   : > { %v6211_v12 = vpack.c.bf16 %v3433_v9, %v3433_v9  ;;  %v6381_v13 = vpack.c.bf16 %v3603_v10, %v3603_v10  ;;  %v2444_v15 = vadd.f32 %v8844_v26, %v2443_v11  ;;  %v3124_v16 = vadd.f32 %v8844_v26, %v3123_v63 }
 0x2ca   : > { %v6862_v17 = vpop.f32.mrf.mxu0  ;;  %v7202_v18 = vpop.f32.mrf.mxu1 }
 0x2cb   : > { %5124 = vst.msk [vmem:[%s7799_s10 + $0x1dc] sm:$0xf] %vm5004_vm3, %v6211_v12  ;;  %5294 = vst.msk [vmem:[%s7799_s10 + $0x484] sm:$0xf] %vm5004_vm3, %v6381_v13  ;;  %v3434_v19 = vmax.f32 %v2444_v15, 0.0  ;;  %v3604_v20 = vmax.f32 %v3124_v16, 0.0 }
 0x2cc   : > { %v2446_v21 = vpop.f32.mrf.mxu0  ;;  %v3126_v22 = vpop.f32.mrf.mxu1 }
 0x2cd   : > { %v6212_v23 = vpack.c.bf16 %v3434_v19, %v3434_v19  ;;  %v6382_v24 = vpack.c.bf16 %v3604_v20, %v3604_v20  ;;  %v2447_v25 = vadd.f32 %v8844_v26, %v2446_v21  ;;  %v3127_v14 = vadd.f32 %v8844_v26, %v3126_v22 }
 0x2ce   : > { %v6863_v27 = vpop.f32.mrf.mxu0  ;;  %v7203_v28 = vpop.f32.mrf.mxu1 }
 0x2cf   : > { %5125 = vst.msk [vmem:[%s7799_s10 + $0x1e0] sm:$0xf] %vm5004_vm3, %v6212_v23  ;;  %5295 = vst.msk [vmem:[%s7799_s10 + $0x488] sm:$0xf] %vm5004_vm3, %v6382_v24  ;;  %v3435_v29 = vmax.f32 %v2447_v25, 0.0  ;;  %v3605_v30 = vmax.f32 %v3127_v14, 0.0 }
 0x2d0   : > { %v2451_v31 = vpop.f32.mrf.mxu0  ;;  %v3131_v32 = vpop.f32.mrf.mxu1 }
 0x2d1   : > { %v6213_v33 = vpack.c.bf16 %v3435_v29, %v3435_v29  ;;  %v6383_v34 = vpack.c.bf16 %v3605_v30, %v3605_v30  ;;  %v2452_v35 = vadd.f32 %v8844_v26, %v2451_v31  ;;  %v3132_v36 = vadd.f32 %v8844_v26, %v3131_v32 }
 0x2d2   : > { %v6866_v37 = vpop.f32.mrf.mxu0  ;;  %v7206_v38 = vpop.f32.mrf.mxu1 }
 0x2d3   : > { %5126 = vst.msk [vmem:[%s7799_s10 + $0x1e4] sm:$0xf] %vm5004_vm3, %v6213_v33  ;;  %5296 = vst.msk [vmem:[%s7799_s10 + $0x48c] sm:$0xf] %vm5004_vm3, %v6383_v34  ;;  %v3436_v39 = vmax.f32 %v2452_v35, 0.0  ;;  %v3606_v40 = vmax.f32 %v3132_v36, 0.0 }
 0x2d4   : > { %v2454_v41 = vpop.f32.mrf.mxu0  ;;  %v3134_v42 = vpop.f32.mrf.mxu1 }
 0x2d5   : > { %v6214_v43 = vpack.c.bf16 %v3436_v39, %v3436_v39  ;;  %v6384_v44 = vpack.c.bf16 %v3606_v40, %v3606_v40  ;;  %v2455_v45 = vadd.f32 %v8844_v26, %v2454_v41  ;;  %v3135_v46 = vadd.f32 %v8844_v26, %v3134_v42 }
 0x2d6   : > { %v6867_v47 = vpop.f32.mrf.mxu0  ;;  %v7207_v48 = vpop.f32.mrf.mxu1 }
 0x2d7   : > { %5127 = vst.msk [vmem:[%s7799_s10 + $0x1e8] sm:$0xf] %vm5004_vm3, %v6214_v43  ;;  %5297 = vst.msk [vmem:[%s7799_s10 + $0x490] sm:$0xf] %vm5004_vm3, %v6384_v44  ;;  %v3437_v49 = vmax.f32 %v2455_v45, 0.0  ;;  %v3607_v50 = vmax.f32 %v3135_v46, 0.0 }
 0x2d8   : > { %v2459_v51 = vpop.f32.mrf.mxu0  ;;  %v3139_v52 = vpop.f32.mrf.mxu1 }
 0x2d9   : > { %v6215_v53 = vpack.c.bf16 %v3437_v49, %v3437_v49  ;;  %v6385_v54 = vpack.c.bf16 %v3607_v50, %v3607_v50  ;;  %v2460_v55 = vadd.f32 %v8844_v26, %v2459_v51  ;;  %v3140_v56 = vadd.f32 %v8844_v26, %v3139_v52 }
 0x2da   : > { %v6870_v57 = vpop.f32.mrf.mxu0  ;;  %v7210_v58 = vpop.f32.mrf.mxu1 }
 0x2db   : > { %5128 = vst.msk [vmem:[%s7799_s10 + $0x1ec] sm:$0xf] %vm5004_vm3, %v6215_v53  ;;  %5298 = vst.msk [vmem:[%s7799_s10 + $0x494] sm:$0xf] %vm5004_vm3, %v6385_v54  ;;  %v3438_v60 = vmax.f32 %v2460_v55, 0.0  ;;  %v3608_v61 = vmax.f32 %v3140_v56, 0.0 }
 0x2dc   : > { %v2462_v62 = vpop.f32.mrf.mxu0  ;;  %v3142_v59 = vpop.f32.mrf.mxu1 }
 0x2dd   : > { %v6216_v0 = vpack.c.bf16 %v3438_v60, %v3438_v60  ;;  %v6386_v2 = vpack.c.bf16 %v3608_v61, %v3608_v61  ;;  %v2463_v3 = vadd.f32 %v8844_v26, %v2462_v62  ;;  %v3143_v4 = vadd.f32 %v8844_v26, %v3142_v59 }
 0x2de   : > { %v6871_v5 = vpop.f32.mrf.mxu0  ;;  %v7211_v6 = vpop.f32.mrf.mxu1 }
 0x2df   : > { %5129 = vst.msk [vmem:[%s7799_s10 + $0x1f0] sm:$0xf] %vm5004_vm3, %v6216_v0  ;;  %5299 = vst.msk [vmem:[%s7799_s10 + $0x498] sm:$0xf] %vm5004_vm3, %v6386_v2  ;;  %v3439_v7 = vmax.f32 %v2463_v3, 0.0  ;;  %v3609_v1 = vmax.f32 %v3143_v4, 0.0 }
 0x2e0   : > { %v2467_v8 = vpop.f32.mrf.mxu0  ;;  %v3147_v9 = vpop.f32.mrf.mxu1 }
 0x2e1   : > { %v6217_v10 = vpack.c.bf16 %v3439_v7, %v3439_v7  ;;  %v6387_v11 = vpack.c.bf16 %v3609_v1, %v3609_v1  ;;  %v2468_v63 = vadd.f32 %v8844_v26, %v2467_v8  ;;  %v3148_v12 = vadd.f32 %v8844_v26, %v3147_v9 }
 0x2e2   : > { %v6874_v13 = vpop.f32.mrf.mxu0  ;;  %v7214_v15 = vpop.f32.mrf.mxu1 }
 0x2e3   : > { %5130 = vst.msk [vmem:[%s7799_s10 + $0x1f4] sm:$0xf] %vm5004_vm3, %v6217_v10  ;;  %5300 = vst.msk [vmem:[%s7799_s10 + $0x49c] sm:$0xf] %vm5004_vm3, %v6387_v11  ;;  %v3440_v16 = vmax.f32 %v2468_v63, 0.0  ;;  %v3610_v17 = vmax.f32 %v3148_v12, 0.0 }
 0x2e4   : > { %v2470_v18 = vpop.f32.mrf.mxu0  ;;  %v3150_v19 = vpop.f32.mrf.mxu1 }
 0x2e5   : > { %v6218_v20 = vpack.c.bf16 %v3440_v16, %v3440_v16  ;;  %v6388_v21 = vpack.c.bf16 %v3610_v17, %v3610_v17  ;;  %v2471_v22 = vadd.f32 %v8844_v26, %v2470_v18  ;;  %v3151_v23 = vadd.f32 %v8844_v26, %v3150_v19 }
 0x2e6   : > { %v6875_v24 = vpop.f32.mrf.mxu0  ;;  %v7215_v25 = vpop.f32.mrf.mxu1 }
 0x2e7   : > { %5131 = vst.msk [vmem:[%s7799_s10 + $0x1f8] sm:$0xf] %vm5004_vm3, %v6218_v20  ;;  %5301 = vst.msk [vmem:[%s7799_s10 + $0x4a0] sm:$0xf] %vm5004_vm3, %v6388_v21  ;;  %v3441_v14 = vmax.f32 %v2471_v22, 0.0  ;;  %v3611_v27 = vmax.f32 %v3151_v23, 0.0 }
 0x2e8   : > { %v2475_v28 = vpop.f32.mrf.mxu0  ;;  %v3155_v29 = vpop.f32.mrf.mxu1 }
 0x2e9   : > { %v6219_v30 = vpack.c.bf16 %v3441_v14, %v3441_v14  ;;  %v6389_v31 = vpack.c.bf16 %v3611_v27, %v3611_v27  ;;  %v2476_v32 = vadd.f32 %v8844_v26, %v2475_v28  ;;  %v3156_v33 = vadd.f32 %v8844_v26, %v3155_v29 }
 0x2ea   : > { %v6878_v34 = vpop.f32.mrf.mxu0  ;;  %v7218_v35 = vpop.f32.mrf.mxu1 }
 0x2eb   : > { %5132 = vst.msk [vmem:[%s7799_s10 + $0x1fc] sm:$0xf] %vm5004_vm3, %v6219_v30  ;;  %5302 = vst.msk [vmem:[%s7799_s10 + $0x4a4] sm:$0xf] %vm5004_vm3, %v6389_v31  ;;  %v3442_v36 = vmax.f32 %v2476_v32, 0.0  ;;  %v3612_v37 = vmax.f32 %v3156_v33, 0.0 }
 0x2ec   : > { %v2478_v38 = vpop.f32.mrf.mxu0  ;;  %v3158_v39 = vpop.f32.mrf.mxu1 }
 0x2ed   : > { %v6220_v40 = vpack.c.bf16 %v3442_v36, %v3442_v36  ;;  %v6390_v41 = vpack.c.bf16 %v3612_v37, %v3612_v37  ;;  %v2479_v42 = vadd.f32 %v8844_v26, %v2478_v38  ;;  %v3159_v43 = vadd.f32 %v8844_v26, %v3158_v39 }
 0x2ee   : > { %v6879_v44 = vpop.f32.mrf.mxu0  ;;  %v7219_v45 = vpop.f32.mrf.mxu1 }
 0x2ef   : > { %5133 = vst.msk [vmem:[%s7799_s10 + $0x200] sm:$0xf] %vm5004_vm3, %v6220_v40  ;;  %5303 = vst.msk [vmem:[%s7799_s10 + $0x4a8] sm:$0xf] %vm5004_vm3, %v6390_v41  ;;  %v3443_v46 = vmax.f32 %v2479_v42, 0.0  ;;  %v3613_v47 = vmax.f32 %v3159_v43, 0.0 }
 0x2f0   : > { %v2483_v48 = vpop.f32.mrf.mxu0  ;;  %v3163_v49 = vpop.f32.mrf.mxu1 }
 0x2f1   : > { %v6221_v50 = vpack.c.bf16 %v3443_v46, %v3443_v46  ;;  %v6391_v51 = vpack.c.bf16 %v3613_v47, %v3613_v47  ;;  %v2484_v52 = vadd.f32 %v8844_v26, %v2483_v48  ;;  %v3164_v53 = vadd.f32 %v8844_v26, %v3163_v49 }
 0x2f2   : > { %v6882_v54 = vpop.f32.mrf.mxu0  ;;  %v7222_v55 = vpop.f32.mrf.mxu1 }
 0x2f3   : > { %5134 = vst.msk [vmem:[%s7799_s10 + $0x204] sm:$0xf] %vm5004_vm3, %v6221_v50  ;;  %5304 = vst.msk [vmem:[%s7799_s10 + $0x4ac] sm:$0xf] %vm5004_vm3, %v6391_v51  ;;  %v3444_v56 = vmax.f32 %v2484_v52, 0.0  ;;  %v3614_v57 = vmax.f32 %v3164_v53, 0.0 }
 0x2f4   : > { %v2486_v58 = vpop.f32.mrf.mxu0  ;;  %v3166_v60 = vpop.f32.mrf.mxu1 }
 0x2f5   : > { %v6222_v61 = vpack.c.bf16 %v3444_v56, %v3444_v56  ;;  %v6392_v62 = vpack.c.bf16 %v3614_v57, %v3614_v57  ;;  %v2487_v59 = vadd.f32 %v8844_v26, %v2486_v58  ;;  %v3167_v0 = vadd.f32 %v8844_v26, %v3166_v60 }
 0x2f6   : > { %v6883_v2 = vpop.f32.mrf.mxu0  ;;  %v7223_v3 = vpop.f32.mrf.mxu1 }
 0x2f7   : > { %5135 = vst.msk [vmem:[%s7799_s10 + $0x208] sm:$0xf] %vm5004_vm3, %v6222_v61  ;;  %5305 = vst.msk [vmem:[%s7799_s10 + $0x4b0] sm:$0xf] %vm5004_vm3, %v6392_v62  ;;  %v3445_v4 = vmax.f32 %v2487_v59, 0.0  ;;  %v3615_v5 = vmax.f32 %v3167_v0, 0.0 }
 0x2f8   : > { %v2491_v6 = vpop.f32.mrf.mxu0  ;;  %v3171_v7 = vpop.f32.mrf.mxu1 }
 0x2f9   : > { %v6223_v1 = vpack.c.bf16 %v3445_v4, %v3445_v4  ;;  %v6393_v8 = vpack.c.bf16 %v3615_v5, %v3615_v5  ;;  %v2492_v9 = vadd.f32 %v8844_v26, %v2491_v6  ;;  %v3172_v10 = vadd.f32 %v8844_v26, %v3171_v7 }
 0x2fa   : > { %v6886_v11 = vpop.f32.mrf.mxu0  ;;  %v7226_v63 = vpop.f32.mrf.mxu1 }
 0x2fb   : > { %5136 = vst.msk [vmem:[%s7799_s10 + $0x20c] sm:$0xf] %vm5004_vm3, %v6223_v1  ;;  %5306 = vst.msk [vmem:[%s7799_s10 + $0x4b4] sm:$0xf] %vm5004_vm3, %v6393_v8  ;;  %v3446_v12 = vmax.f32 %v2492_v9, 0.0  ;;  %v3616_v13 = vmax.f32 %v3172_v10, 0.0 }
 0x2fc   : > { %v2494_v15 = vpop.f32.mrf.mxu0  ;;  %v3174_v16 = vpop.f32.mrf.mxu1 }
 0x2fd   : > { %v6224_v17 = vpack.c.bf16 %v3446_v12, %v3446_v12  ;;  %v6394_v18 = vpack.c.bf16 %v3616_v13, %v3616_v13  ;;  %v2495_v19 = vadd.f32 %v8844_v26, %v2494_v15  ;;  %v3175_v20 = vadd.f32 %v8844_v26, %v3174_v16 }
 0x2fe   : > { %v6887_v21 = vpop.f32.mrf.mxu0  ;;  %v7227_v22 = vpop.f32.mrf.mxu1 }
 0x2ff   : > { %5137 = vst.msk [vmem:[%s7799_s10 + $0x210] sm:$0xf] %vm5004_vm3, %v6224_v17  ;;  %5307 = vst.msk [vmem:[%s7799_s10 + $0x4b8] sm:$0xf] %vm5004_vm3, %v6394_v18  ;;  %v3447_v23 = vmax.f32 %v2495_v19, 0.0  ;;  %v3617_v24 = vmax.f32 %v3175_v20, 0.0 }
 0x300   : > { %v2499_v25 = vpop.f32.mrf.mxu0  ;;  %v3179_v14 = vpop.f32.mrf.mxu1 }
 0x301   : > { %v6225_v27 = vpack.c.bf16 %v3447_v23, %v3447_v23  ;;  %v6395_v28 = vpack.c.bf16 %v3617_v24, %v3617_v24  ;;  %v2500_v29 = vadd.f32 %v8844_v26, %v2499_v25  ;;  %v3180_v30 = vadd.f32 %v8844_v26, %v3179_v14 }
 0x302   : > { %v6890_v31 = vpop.f32.mrf.mxu0  ;;  %v7230_v32 = vpop.f32.mrf.mxu1 }
 0x303   : > { %5138 = vst.msk [vmem:[%s7799_s10 + $0x214] sm:$0xf] %vm5004_vm3, %v6225_v27  ;;  %5308 = vst.msk [vmem:[%s7799_s10 + $0x4bc] sm:$0xf] %vm5004_vm3, %v6395_v28  ;;  %v3448_v33 = vmax.f32 %v2500_v29, 0.0  ;;  %v3618_v34 = vmax.f32 %v3180_v30, 0.0 }
 0x304   : > { %v2502_v35 = vpop.f32.mrf.mxu0  ;;  %v3182_v36 = vpop.f32.mrf.mxu1 }
 0x305   : > { %v6226_v37 = vpack.c.bf16 %v3448_v33, %v3448_v33  ;;  %v6396_v38 = vpack.c.bf16 %v3618_v34, %v3618_v34  ;;  %v2503_v39 = vadd.f32 %v8844_v26, %v2502_v35  ;;  %v3183_v40 = vadd.f32 %v8844_v26, %v3182_v36 }
 0x306   : > { %v6891_v41 = vpop.f32.mrf.mxu0  ;;  %v7231_v42 = vpop.f32.mrf.mxu1 }
 0x307   : > { %5139 = vst.msk [vmem:[%s7799_s10 + $0x218] sm:$0xf] %vm5004_vm3, %v6226_v37  ;;  %5309 = vst.msk [vmem:[%s7799_s10 + $0x4c0] sm:$0xf] %vm5004_vm3, %v6396_v38  ;;  %v3449_v43 = vmax.f32 %v2503_v39, 0.0  ;;  %v3619_v44 = vmax.f32 %v3183_v40, 0.0 }
 0x308   : > { %v2507_v45 = vpop.f32.mrf.mxu0  ;;  %v3187_v46 = vpop.f32.mrf.mxu1 }
 0x309   : > { %v6227_v47 = vpack.c.bf16 %v3449_v43, %v3449_v43  ;;  %v6397_v48 = vpack.c.bf16 %v3619_v44, %v3619_v44  ;;  %v2508_v49 = vadd.f32 %v8844_v26, %v2507_v45  ;;  %v3188_v50 = vadd.f32 %v8844_v26, %v3187_v46 }
 0x30a   : > { %v6894_v51 = vpop.f32.mrf.mxu0  ;;  %v7234_v52 = vpop.f32.mrf.mxu1 }
 0x30b   : > { %5140 = vst.msk [vmem:[%s7799_s10 + $0x21c] sm:$0xf] %vm5004_vm3, %v6227_v47  ;;  %5310 = vst.msk [vmem:[%s7799_s10 + $0x4c4] sm:$0xf] %vm5004_vm3, %v6397_v48  ;;  %v3450_v53 = vmax.f32 %v2508_v49, 0.0  ;;  %v3620_v54 = vmax.f32 %v3188_v50, 0.0 }
 0x30c   : > { %v2510_v55 = vpop.f32.mrf.mxu0  ;;  %v3190_v56 = vpop.f32.mrf.mxu1 }
 0x30d   : > { %v6228_v57 = vpack.c.bf16 %v3450_v53, %v3450_v53  ;;  %v6398_v58 = vpack.c.bf16 %v3620_v54, %v3620_v54  ;;  %v2511_v60 = vadd.f32 %v8844_v26, %v2510_v55  ;;  %v3191_v61 = vadd.f32 %v8844_v26, %v3190_v56  ;;  %v9143_v56 = vld [vmem:[%s9310_s2] ss:$0 sm:$0xff] }
 0x30e   : > { %v6895_v62 = vpop.f32.mrf.mxu0  ;;  %v7235_v59 = vpop.f32.mrf.mxu1 }
 0x30f   : > { %5141 = vst.msk [vmem:[%s7799_s10 + $0x220] sm:$0xf] %vm5004_vm3, %v6228_v57  ;;  %5311 = vst.msk [vmem:[%s7799_s10 + $0x4c8] sm:$0xf] %vm5004_vm3, %v6398_v58  ;;  %v3451_v0 = vmax.f32 %v2511_v60, 0.0  ;;  %v3621_v2 = vmax.f32 %v3191_v61, 0.0 }
 0x310   : > { %v2515_v3 = vpop.f32.mrf.mxu0  ;;  %v3195_v4 = vpop.f32.mrf.mxu1 }
 0x311   : > { %v6229_v5 = vpack.c.bf16 %v3451_v0, %v3451_v0  ;;  %v6399_v6 = vpack.c.bf16 %v3621_v2, %v3621_v2  ;;  %v2516_v7 = vadd.f32 %v8844_v26, %v2515_v3  ;;  %v3196_v1 = vadd.f32 %v8844_v26, %v3195_v4 }
 0x312   : > { %v6898_v8 = vpop.f32.mrf.mxu0  ;;  %v7238_v9 = vpop.f32.mrf.mxu1 }
 0x313   : > { %5142 = vst.msk [vmem:[%s7799_s10 + $0x224] sm:$0xf] %vm5004_vm3, %v6229_v5  ;;  %5312 = vst.msk [vmem:[%s7799_s10 + $0x4cc] sm:$0xf] %vm5004_vm3, %v6399_v6  ;;  %v3452_v10 = vmax.f32 %v2516_v7, 0.0  ;;  %v3622_v11 = vmax.f32 %v3196_v1, 0.0 }
 0x314   : > { %v2518_v63 = vpop.f32.mrf.mxu0  ;;  %v3198_v12 = vpop.f32.mrf.mxu1 }
 0x315   : > { %v6230_v13 = vpack.c.bf16 %v3452_v10, %v3452_v10  ;;  %v6400_v15 = vpack.c.bf16 %v3622_v11, %v3622_v11  ;;  %v2519_v16 = vadd.f32 %v8844_v26, %v2518_v63  ;;  %v3199_v17 = vadd.f32 %v8844_v26, %v3198_v12 }
 0x316   : > { %v6899_v18 = vpop.f32.mrf.mxu0  ;;  %v7239_v19 = vpop.f32.mrf.mxu1 }
 0x317   : > { %5143 = vst.msk [vmem:[%s7799_s10 + $0x228] sm:$0xf] %vm5004_vm3, %v6230_v13  ;;  %5313 = vst.msk [vmem:[%s7799_s10 + $0x4d0] sm:$0xf] %vm5004_vm3, %v6400_v15  ;;  %v3453_v20 = vmax.f32 %v2519_v16, 0.0  ;;  %v3623_v21 = vmax.f32 %v3199_v17, 0.0 }
 0x318   : > { %v2523_v22 = vpop.f32.mrf.mxu0  ;;  %v3203_v23 = vpop.f32.mrf.mxu1 }
 0x319   : > { %v6231_v24 = vpack.c.bf16 %v3453_v20, %v3453_v20  ;;  %v6401_v25 = vpack.c.bf16 %v3623_v21, %v3623_v21  ;;  %v2524_v14 = vadd.f32 %v8844_v26, %v2523_v22  ;;  %v3204_v27 = vadd.f32 %v8844_v26, %v3203_v23 }
 0x31a   : > { %v6902_v28 = vpop.f32.mrf.mxu0  ;;  %v7242_v29 = vpop.f32.mrf.mxu1 }
 0x31b   : > { %5144 = vst.msk [vmem:[%s7799_s10 + $0x22c] sm:$0xf] %vm5004_vm3, %v6231_v24  ;;  %5314 = vst.msk [vmem:[%s7799_s10 + $0x4d4] sm:$0xf] %vm5004_vm3, %v6401_v25  ;;  %v3454_v30 = vmax.f32 %v2524_v14, 0.0  ;;  %v3624_v31 = vmax.f32 %v3204_v27, 0.0 }
 0x31c   : > { %v2526_v32 = vpop.f32.mrf.mxu0  ;;  %v3206_v33 = vpop.f32.mrf.mxu1 }
 0x31d   : > { %v6232_v34 = vpack.c.bf16 %v3454_v30, %v3454_v30  ;;  %v6402_v35 = vpack.c.bf16 %v3624_v31, %v3624_v31  ;;  %v2527_v36 = vadd.f32 %v8844_v26, %v2526_v32  ;;  %v3207_v37 = vadd.f32 %v8844_v26, %v3206_v33 }
 0x31e   : > { %v6903_v38 = vpop.f32.mrf.mxu0  ;;  %v7243_v39 = vpop.f32.mrf.mxu1 }
 0x31f   : > { %5145 = vst.msk [vmem:[%s7799_s10 + $0x230] sm:$0xf] %vm5004_vm3, %v6232_v34  ;;  %5315 = vst.msk [vmem:[%s7799_s10 + $0x4d8] sm:$0xf] %vm5004_vm3, %v6402_v35  ;;  %v3455_v40 = vmax.f32 %v2527_v36, 0.0  ;;  %v3625_v41 = vmax.f32 %v3207_v37, 0.0 }
 0x320   : > { %v2531_v42 = vpop.f32.mrf.mxu0  ;;  %v3211_v43 = vpop.f32.mrf.mxu1 }
 0x321   : > { %v6233_v44 = vpack.c.bf16 %v3455_v40, %v3455_v40  ;;  %v6403_v45 = vpack.c.bf16 %v3625_v41, %v3625_v41  ;;  %v2532_v46 = vadd.f32 %v8844_v26, %v2531_v42  ;;  %v3212_v47 = vadd.f32 %v8844_v26, %v3211_v43 }
 0x322   : > { %v6906_v48 = vpop.f32.mrf.mxu0  ;;  %v7246_v49 = vpop.f32.mrf.mxu1 }
 0x323   : > { %5146 = vst.msk [vmem:[%s7799_s10 + $0x234] sm:$0xf] %vm5004_vm3, %v6233_v44  ;;  %5316 = vst.msk [vmem:[%s7799_s10 + $0x4dc] sm:$0xf] %vm5004_vm3, %v6403_v45  ;;  %v3456_v50 = vmax.f32 %v2532_v46, 0.0  ;;  %v3626_v51 = vmax.f32 %v3212_v47, 0.0 }
 0x324   : > { %v2534_v52 = vpop.f32.mrf.mxu0  ;;  %v3214_v53 = vpop.f32.mrf.mxu1 }
 0x325   : > { %v6234_v54 = vpack.c.bf16 %v3456_v50, %v3456_v50  ;;  %v6404_v55 = vpack.c.bf16 %v3626_v51, %v3626_v51  ;;  %v2535_v26 = vadd.f32 %v9143_v56, %v2534_v52  ;;  %v3215_v57 = vadd.f32 %v9143_v56, %v3214_v53 }
 0x326   : > { %v6907_v58 = vpop.f32.mrf.mxu0  ;;  %v7247_v60 = vpop.f32.mrf.mxu1 }
 0x327   : > { %5147 = vst.msk [vmem:[%s7799_s10 + $0x238] sm:$0xf] %vm5004_vm3, %v6234_v54  ;;  %5317 = vst.msk [vmem:[%s7799_s10 + $0x4e0] sm:$0xf] %vm5004_vm3, %v6404_v55  ;;  %v3457_v61 = vmax.f32 %v2535_v26, 0.0  ;;  %v3627_v62 = vmax.f32 %v3215_v57, 0.0 }
 0x328   : > { %v2539_v59 = vpop.f32.mrf.mxu0  ;;  %v3219_v0 = vpop.f32.mrf.mxu1 }
 0x329   : > { %v6235_v2 = vpack.c.bf16 %v3457_v61, %v3457_v61  ;;  %v6405_v3 = vpack.c.bf16 %v3627_v62, %v3627_v62  ;;  %v2540_v4 = vadd.f32 %v9143_v56, %v2539_v59  ;;  %v3220_v5 = vadd.f32 %v9143_v56, %v3219_v0 }
 0x32a   : > { %v6910_v6 = vpop.f32.mrf.mxu0  ;;  %v7250_v7 = vpop.f32.mrf.mxu1 }
 0x32b   : > { %5148 = vst.msk [vmem:[%s7799_s10 + $0x23c] sm:$0xf] %vm5004_vm3, %v6235_v2  ;;  %5318 = vst.msk [vmem:[%s7799_s10 + $0x4e4] sm:$0xf] %vm5004_vm3, %v6405_v3  ;;  %v3458_v1 = vmax.f32 %v2540_v4, 0.0  ;;  %v3628_v8 = vmax.f32 %v3220_v5, 0.0 }
 0x32c   : > { %v2542_v9 = vpop.f32.mrf.mxu0  ;;  %v3222_v10 = vpop.f32.mrf.mxu1 }
 0x32d   : > { %v6236_v11 = vpack.c.bf16 %v3458_v1, %v3458_v1  ;;  %v6406_v63 = vpack.c.bf16 %v3628_v8, %v3628_v8  ;;  %v2543_v12 = vadd.f32 %v9143_v56, %v2542_v9  ;;  %v3223_v13 = vadd.f32 %v9143_v56, %v3222_v10 }
 0x32e   : > { %v6911_v15 = vpop.f32.mrf.mxu0  ;;  %v7251_v16 = vpop.f32.mrf.mxu1 }
 0x32f   : > { %5149 = vst.msk [vmem:[%s7799_s10 + $0x240] sm:$0xf] %vm5004_vm3, %v6236_v11  ;;  %5319 = vst.msk [vmem:[%s7799_s10 + $0x4e8] sm:$0xf] %vm5004_vm3, %v6406_v63  ;;  %v3459_v17 = vmax.f32 %v2543_v12, 0.0  ;;  %v3629_v18 = vmax.f32 %v3223_v13, 0.0 }
 0x330   : > { %v2547_v19 = vpop.f32.mrf.mxu0  ;;  %v3227_v20 = vpop.f32.mrf.mxu1 }
 0x331   : > { %v6237_v21 = vpack.c.bf16 %v3459_v17, %v3459_v17  ;;  %v6407_v22 = vpack.c.bf16 %v3629_v18, %v3629_v18  ;;  %v2548_v23 = vadd.f32 %v9143_v56, %v2547_v19  ;;  %v3228_v24 = vadd.f32 %v9143_v56, %v3227_v20 }
 0x332   : > { %v6914_v25 = vpop.f32.mrf.mxu0  ;;  %v7254_v14 = vpop.f32.mrf.mxu1 }
 0x333   : > { %5150 = vst.msk [vmem:[%s7799_s10 + $0x244] sm:$0xf] %vm5004_vm3, %v6237_v21  ;;  %5320 = vst.msk [vmem:[%s7799_s10 + $0x4ec] sm:$0xf] %vm5004_vm3, %v6407_v22  ;;  %v3460_v27 = vmax.f32 %v2548_v23, 0.0  ;;  %v3630_v28 = vmax.f32 %v3228_v24, 0.0 }
 0x334   : > { %v2550_v29 = vpop.f32.mrf.mxu0  ;;  %v3230_v30 = vpop.f32.mrf.mxu1 }
 0x335   : > { %v6238_v31 = vpack.c.bf16 %v3460_v27, %v3460_v27  ;;  %v6408_v32 = vpack.c.bf16 %v3630_v28, %v3630_v28  ;;  %v2551_v33 = vadd.f32 %v9143_v56, %v2550_v29  ;;  %v3231_v34 = vadd.f32 %v9143_v56, %v3230_v30 }
 0x336   : > { %v6915_v35 = vpop.f32.mrf.mxu0  ;;  %v7255_v36 = vpop.f32.mrf.mxu1 }
 0x337   : > { %5151 = vst.msk [vmem:[%s7799_s10 + $0x248] sm:$0xf] %vm5004_vm3, %v6238_v31  ;;  %5321 = vst.msk [vmem:[%s7799_s10 + $0x4f0] sm:$0xf] %vm5004_vm3, %v6408_v32  ;;  %v3461_v37 = vmax.f32 %v2551_v33, 0.0  ;;  %v3631_v38 = vmax.f32 %v3231_v34, 0.0 }
 0x338   : > { %v2555_v39 = vpop.f32.mrf.mxu0  ;;  %v3235_v40 = vpop.f32.mrf.mxu1 }
 0x339   : > { %v6239_v41 = vpack.c.bf16 %v3461_v37, %v3461_v37  ;;  %v6409_v42 = vpack.c.bf16 %v3631_v38, %v3631_v38  ;;  %v2556_v43 = vadd.f32 %v9143_v56, %v2555_v39  ;;  %v3236_v44 = vadd.f32 %v9143_v56, %v3235_v40 }
 0x33a   : > { %v6918_v45 = vpop.f32.mrf.mxu0  ;;  %v7258_v46 = vpop.f32.mrf.mxu1 }
 0x33b   : > { %5152 = vst.msk [vmem:[%s7799_s10 + $0x24c] sm:$0xf] %vm5004_vm3, %v6239_v41  ;;  %5322 = vst.msk [vmem:[%s7799_s10 + $0x4f4] sm:$0xf] %vm5004_vm3, %v6409_v42  ;;  %v3462_v47 = vmax.f32 %v2556_v43, 0.0  ;;  %v3632_v48 = vmax.f32 %v3236_v44, 0.0 }
 0x33c   : > { %v2558_v49 = vpop.f32.mrf.mxu0  ;;  %v3238_v50 = vpop.f32.mrf.mxu1 }
 0x33d   : > { %v6240_v51 = vpack.c.bf16 %v3462_v47, %v3462_v47  ;;  %v6410_v52 = vpack.c.bf16 %v3632_v48, %v3632_v48  ;;  %v2559_v53 = vadd.f32 %v9143_v56, %v2558_v49  ;;  %v3239_v54 = vadd.f32 %v9143_v56, %v3238_v50 }
 0x33e   : > { %v6919_v55 = vpop.f32.mrf.mxu0  ;;  %v7259_v26 = vpop.f32.mrf.mxu1 }
 0x33f   : > { %5153 = vst.msk [vmem:[%s7799_s10 + $0x250] sm:$0xf] %vm5004_vm3, %v6240_v51  ;;  %5323 = vst.msk [vmem:[%s7799_s10 + $0x4f8] sm:$0xf] %vm5004_vm3, %v6410_v52  ;;  %v3463_v57 = vmax.f32 %v2559_v53, 0.0  ;;  %v3633_v58 = vmax.f32 %v3239_v54, 0.0 }
 0x340   : > { %v2563_v60 = vpop.f32.mrf.mxu0  ;;  %v3243_v61 = vpop.f32.mrf.mxu1 }
 0x341   : > { %v6241_v62 = vpack.c.bf16 %v3463_v57, %v3463_v57  ;;  %v6411_v59 = vpack.c.bf16 %v3633_v58, %v3633_v58  ;;  %v2564_v0 = vadd.f32 %v9143_v56, %v2563_v60  ;;  %v3244_v2 = vadd.f32 %v9143_v56, %v3243_v61 }
 0x342   : > { %v6922_v3 = vpop.f32.mrf.mxu0  ;;  %v7262_v4 = vpop.f32.mrf.mxu1 }
 0x343   : > { %5154 = vst.msk [vmem:[%s7799_s10 + $0x254] sm:$0xf] %vm5004_vm3, %v6241_v62  ;;  %5324 = vst.msk [vmem:[%s7799_s10 + $0x4fc] sm:$0xf] %vm5004_vm3, %v6411_v59  ;;  %v3464_v5 = vmax.f32 %v2564_v0, 0.0  ;;  %v3634_v6 = vmax.f32 %v3244_v2, 0.0 }
 0x344   : > { %v2566_v7 = vpop.f32.mrf.mxu0  ;;  %v3246_v1 = vpop.f32.mrf.mxu1 }
 0x345   : > { %v6242_v8 = vpack.c.bf16 %v3464_v5, %v3464_v5  ;;  %v6412_v9 = vpack.c.bf16 %v3634_v6, %v3634_v6  ;;  %v2567_v10 = vadd.f32 %v9143_v56, %v2566_v7  ;;  %v3247_v11 = vadd.f32 %v9143_v56, %v3246_v1 }
 0x346   : > { %v6923_v63 = vpop.f32.mrf.mxu0  ;;  %v7263_v12 = vpop.f32.mrf.mxu1 }
 0x347   : > { %5155 = vst.msk [vmem:[%s7799_s10 + $0x258] sm:$0xf] %vm5004_vm3, %v6242_v8  ;;  %5325 = vst.msk [vmem:[%s7799_s10 + $0x500] sm:$0xf] %vm5004_vm3, %v6412_v9  ;;  %v3465_v13 = vmax.f32 %v2567_v10, 0.0  ;;  %v3635_v15 = vmax.f32 %v3247_v11, 0.0 }
 0x348   : > { %v2571_v16 = vpop.f32.mrf.mxu0  ;;  %v3251_v17 = vpop.f32.mrf.mxu1 }
 0x349   : > { %v6243_v18 = vpack.c.bf16 %v3465_v13, %v3465_v13  ;;  %v6413_v19 = vpack.c.bf16 %v3635_v15, %v3635_v15  ;;  %v2572_v20 = vadd.f32 %v9143_v56, %v2571_v16  ;;  %v3252_v21 = vadd.f32 %v9143_v56, %v3251_v17 }
 0x34a   : > { %v6926_v22 = vpop.f32.mrf.mxu0  ;;  %v7266_v23 = vpop.f32.mrf.mxu1 }
 0x34b   : > { %5156 = vst.msk [vmem:[%s7799_s10 + $0x25c] sm:$0xf] %vm5004_vm3, %v6243_v18  ;;  %5326 = vst.msk [vmem:[%s7799_s10 + $0x504] sm:$0xf] %vm5004_vm3, %v6413_v19  ;;  %v3466_v24 = vmax.f32 %v2572_v20, 0.0  ;;  %v3636_v25 = vmax.f32 %v3252_v21, 0.0 }
 0x34c   : > { %v2574_v14 = vpop.f32.mrf.mxu0  ;;  %v3254_v27 = vpop.f32.mrf.mxu1 }
 0x34d   : > { %v6244_v28 = vpack.c.bf16 %v3466_v24, %v3466_v24  ;;  %v6414_v29 = vpack.c.bf16 %v3636_v25, %v3636_v25  ;;  %v2575_v30 = vadd.f32 %v9143_v56, %v2574_v14  ;;  %v3255_v31 = vadd.f32 %v9143_v56, %v3254_v27 }
 0x34e   : > { %v6927_v32 = vpop.f32.mrf.mxu0  ;;  %v7267_v33 = vpop.f32.mrf.mxu1 }
 0x34f   : > { %5157 = vst.msk [vmem:[%s7799_s10 + $0x260] sm:$0xf] %vm5004_vm3, %v6244_v28  ;;  %5327 = vst.msk [vmem:[%s7799_s10 + $0x508] sm:$0xf] %vm5004_vm3, %v6414_v29  ;;  %v3467_v34 = vmax.f32 %v2575_v30, 0.0  ;;  %v3637_v35 = vmax.f32 %v3255_v31, 0.0 }
 0x350   : > { %v2579_v36 = vpop.f32.mrf.mxu0  ;;  %v3259_v37 = vpop.f32.mrf.mxu1 }
 0x351   : > { %v6245_v38 = vpack.c.bf16 %v3467_v34, %v3467_v34  ;;  %v6415_v39 = vpack.c.bf16 %v3637_v35, %v3637_v35  ;;  %v2580_v40 = vadd.f32 %v9143_v56, %v2579_v36  ;;  %v3260_v41 = vadd.f32 %v9143_v56, %v3259_v37 }
 0x352   : > { %v6930_v42 = vpop.f32.mrf.mxu0  ;;  %v7270_v43 = vpop.f32.mrf.mxu1 }
 0x353   : > { %5158 = vst.msk [vmem:[%s7799_s10 + $0x264] sm:$0xf] %vm5004_vm3, %v6245_v38  ;;  %5328 = vst.msk [vmem:[%s7799_s10 + $0x50c] sm:$0xf] %vm5004_vm3, %v6415_v39  ;;  %v3468_v44 = vmax.f32 %v2580_v40, 0.0  ;;  %v3638_v45 = vmax.f32 %v3260_v41, 0.0 }
 0x354   : > { %v2582_v46 = vpop.f32.mrf.mxu0  ;;  %v3262_v47 = vpop.f32.mrf.mxu1 }
 0x355   : > { %v6246_v48 = vpack.c.bf16 %v3468_v44, %v3468_v44  ;;  %v6416_v49 = vpack.c.bf16 %v3638_v45, %v3638_v45  ;;  %v2583_v50 = vadd.f32 %v9143_v56, %v2582_v46  ;;  %v3263_v51 = vadd.f32 %v9143_v56, %v3262_v47 }
 0x356   : > { %v6931_v52 = vpop.f32.mrf.mxu0  ;;  %v7271_v53 = vpop.f32.mrf.mxu1 }
 0x357   : > { %5159 = vst.msk [vmem:[%s7799_s10 + $0x268] sm:$0xf] %vm5004_vm3, %v6246_v48  ;;  %5329 = vst.msk [vmem:[%s7799_s10 + $0x510] sm:$0xf] %vm5004_vm3, %v6416_v49  ;;  %v3469_v54 = vmax.f32 %v2583_v50, 0.0  ;;  %v3639_v55 = vmax.f32 %v3263_v51, 0.0 }
 0x358   : > { %v2587_v26 = vpop.f32.mrf.mxu0  ;;  %v3267_v57 = vpop.f32.mrf.mxu1 }
 0x359   : > { %v6247_v58 = vpack.c.bf16 %v3469_v54, %v3469_v54  ;;  %v6417_v60 = vpack.c.bf16 %v3639_v55, %v3639_v55  ;;  %v2588_v61 = vadd.f32 %v9143_v56, %v2587_v26  ;;  %v3268_v62 = vadd.f32 %v9143_v56, %v3267_v57 }
 0x35a   : > { %v6934_v59 = vpop.f32.mrf.mxu0  ;;  %v7274_v0 = vpop.f32.mrf.mxu1 }
 0x35b   : > { %5160 = vst.msk [vmem:[%s7799_s10 + $0x26c] sm:$0xf] %vm5004_vm3, %v6247_v58  ;;  %5330 = vst.msk [vmem:[%s7799_s10 + $0x514] sm:$0xf] %vm5004_vm3, %v6417_v60  ;;  %v3470_v2 = vmax.f32 %v2588_v61, 0.0  ;;  %v3640_v3 = vmax.f32 %v3268_v62, 0.0 }
 0x35c   : > { %v2590_v4 = vpop.f32.mrf.mxu0  ;;  %v3270_v5 = vpop.f32.mrf.mxu1 }
 0x35d   : > { %v6248_v6 = vpack.c.bf16 %v3470_v2, %v3470_v2  ;;  %v6418_v7 = vpack.c.bf16 %v3640_v3, %v3640_v3  ;;  %v2591_v1 = vadd.f32 %v9143_v56, %v2590_v4  ;;  %v3271_v8 = vadd.f32 %v9143_v56, %v3270_v5 }
 0x35e   : > { %v6935_v9 = vpop.f32.mrf.mxu0  ;;  %v7275_v10 = vpop.f32.mrf.mxu1 }
 0x35f   : > { %5161 = vst.msk [vmem:[%s7799_s10 + $0x270] sm:$0xf] %vm5004_vm3, %v6248_v6  ;;  %5331 = vst.msk [vmem:[%s7799_s10 + $0x518] sm:$0xf] %vm5004_vm3, %v6418_v7  ;;  %v3471_v11 = vmax.f32 %v2591_v1, 0.0  ;;  %v3641_v63 = vmax.f32 %v3271_v8, 0.0 }
 0x360   : > { %v2595_v12 = vpop.f32.mrf.mxu0  ;;  %v3275_v13 = vpop.f32.mrf.mxu1 }
 0x361   : > { %v6249_v15 = vpack.c.bf16 %v3471_v11, %v3471_v11  ;;  %v6419_v16 = vpack.c.bf16 %v3641_v63, %v3641_v63  ;;  %v2596_v17 = vadd.f32 %v9143_v56, %v2595_v12  ;;  %v3276_v18 = vadd.f32 %v9143_v56, %v3275_v13 }
 0x362   : > { %v6938_v19 = vpop.f32.mrf.mxu0  ;;  %v7278_v20 = vpop.f32.mrf.mxu1 }
 0x363   : > { %5162 = vst.msk [vmem:[%s7799_s10 + $0x274] sm:$0xf] %vm5004_vm3, %v6249_v15  ;;  %5332 = vst.msk [vmem:[%s7799_s10 + $0x51c] sm:$0xf] %vm5004_vm3, %v6419_v16  ;;  %v3472_v21 = vmax.f32 %v2596_v17, 0.0  ;;  %v3642_v22 = vmax.f32 %v3276_v18, 0.0 }
 0x364   : > { %v2598_v23 = vpop.f32.mrf.mxu0  ;;  %v3278_v24 = vpop.f32.mrf.mxu1 }
 0x365   : > { %v6250_v25 = vpack.c.bf16 %v3472_v21, %v3472_v21  ;;  %v6420_v14 = vpack.c.bf16 %v3642_v22, %v3642_v22  ;;  %v2599_v27 = vadd.f32 %v9143_v56, %v2598_v23  ;;  %v3279_v28 = vadd.f32 %v9143_v56, %v3278_v24 }
 0x366   : > { %v6939_v29 = vpop.f32.mrf.mxu0  ;;  %v7279_v30 = vpop.f32.mrf.mxu1 }
 0x367   : > { %5163 = vst.msk [vmem:[%s7799_s10 + $0x278] sm:$0xf] %vm5004_vm3, %v6250_v25  ;;  %5333 = vst.msk [vmem:[%s7799_s10 + $0x520] sm:$0xf] %vm5004_vm3, %v6420_v14  ;;  %v3473_v31 = vmax.f32 %v2599_v27, 0.0  ;;  %v3643_v32 = vmax.f32 %v3279_v28, 0.0 }
 0x368   : > { %v2603_v33 = vpop.f32.mrf.mxu0  ;;  %v3283_v34 = vpop.f32.mrf.mxu1 }
 0x369   : > { %v6251_v35 = vpack.c.bf16 %v3473_v31, %v3473_v31  ;;  %v6421_v36 = vpack.c.bf16 %v3643_v32, %v3643_v32  ;;  %v2604_v37 = vadd.f32 %v9143_v56, %v2603_v33  ;;  %v3284_v38 = vadd.f32 %v9143_v56, %v3283_v34 }
 0x36a   : > { %v6942_v39 = vpop.f32.mrf.mxu0  ;;  %v7282_v40 = vpop.f32.mrf.mxu1 }
 0x36b   : > { %5164 = vst.msk [vmem:[%s7799_s10 + $0x27c] sm:$0xf] %vm5004_vm3, %v6251_v35  ;;  %5334 = vst.msk [vmem:[%s7799_s10 + $0x524] sm:$0xf] %vm5004_vm3, %v6421_v36  ;;  %v3474_v41 = vmax.f32 %v2604_v37, 0.0  ;;  %v3644_v42 = vmax.f32 %v3284_v38, 0.0 }
 0x36c   : > { %v2606_v43 = vpop.f32.mrf.mxu0  ;;  %v3286_v44 = vpop.f32.mrf.mxu1 }
 0x36d   : > { %v6252_v45 = vpack.c.bf16 %v3474_v41, %v3474_v41  ;;  %v6422_v46 = vpack.c.bf16 %v3644_v42, %v3644_v42  ;;  %v2607_v47 = vadd.f32 %v9143_v56, %v2606_v43  ;;  %v3287_v48 = vadd.f32 %v9143_v56, %v3286_v44 }
 0x36e   : > { %v6943_v49 = vpop.f32.mrf.mxu0  ;;  %v7283_v50 = vpop.f32.mrf.mxu1 }
 0x36f   : > { %5165 = vst.msk [vmem:[%s7799_s10 + $0x280] sm:$0xf] %vm5004_vm3, %v6252_v45  ;;  %5335 = vst.msk [vmem:[%s7799_s10 + $0x528] sm:$0xf] %vm5004_vm3, %v6422_v46  ;;  %v3475_v51 = vmax.f32 %v2607_v47, 0.0  ;;  %v3645_v52 = vmax.f32 %v3287_v48, 0.0 }
 0x370   : > { %v2611_v53 = vpop.f32.mrf.mxu0  ;;  %v3291_v54 = vpop.f32.mrf.mxu1 }
 0x371   : > { %v6253_v55 = vpack.c.bf16 %v3475_v51, %v3475_v51  ;;  %v6423_v26 = vpack.c.bf16 %v3645_v52, %v3645_v52  ;;  %v2612_v57 = vadd.f32 %v9143_v56, %v2611_v53  ;;  %v3292_v58 = vadd.f32 %v9143_v56, %v3291_v54 }
 0x372   : > { %v6946_v60 = vpop.f32.mrf.mxu0  ;;  %v7286_v61 = vpop.f32.mrf.mxu1 }
 0x373   : > { %5166 = vst.msk [vmem:[%s7799_s10 + $0x284] sm:$0xf] %vm5004_vm3, %v6253_v55  ;;  %5336 = vst.msk [vmem:[%s7799_s10 + $0x52c] sm:$0xf] %vm5004_vm3, %v6423_v26  ;;  %v3476_v62 = vmax.f32 %v2612_v57, 0.0  ;;  %v3646_v59 = vmax.f32 %v3292_v58, 0.0 }
 0x374   : > { %v2614_v0 = vpop.f32.mrf.mxu0  ;;  %v3294_v2 = vpop.f32.mrf.mxu1 }
 0x375   : > { %v6254_v3 = vpack.c.bf16 %v3476_v62, %v3476_v62  ;;  %v6424_v4 = vpack.c.bf16 %v3646_v59, %v3646_v59  ;;  %v2615_v5 = vadd.f32 %v9143_v56, %v2614_v0  ;;  %v3295_v6 = vadd.f32 %v9143_v56, %v3294_v2 }
 0x376   : > { %v6947_v7 = vpop.f32.mrf.mxu0  ;;  %v7287_v1 = vpop.f32.mrf.mxu1 }
 0x377   : > { %5167 = vst.msk [vmem:[%s7799_s10 + $0x288] sm:$0xf] %vm5004_vm3, %v6254_v3  ;;  %5337 = vst.msk [vmem:[%s7799_s10 + $0x530] sm:$0xf] %vm5004_vm3, %v6424_v4  ;;  %v3477_v8 = vmax.f32 %v2615_v5, 0.0  ;;  %v3647_v9 = vmax.f32 %v3295_v6, 0.0 }
 0x378   : > { %v2619_v10 = vpop.f32.mrf.mxu0  ;;  %v3299_v11 = vpop.f32.mrf.mxu1 }
 0x379   : > { %v6255_v63 = vpack.c.bf16 %v3477_v8, %v3477_v8  ;;  %v6425_v12 = vpack.c.bf16 %v3647_v9, %v3647_v9  ;;  %v2620_v13 = vadd.f32 %v9143_v56, %v2619_v10  ;;  %v3300_v15 = vadd.f32 %v9143_v56, %v3299_v11 }
 0x37a   : > { %v6950_v16 = vpop.f32.mrf.mxu0  ;;  %v7290_v17 = vpop.f32.mrf.mxu1 }
 0x37b   : > { %5168 = vst.msk [vmem:[%s7799_s10 + $0x28c] sm:$0xf] %vm5004_vm3, %v6255_v63  ;;  %5338 = vst.msk [vmem:[%s7799_s10 + $0x534] sm:$0xf] %vm5004_vm3, %v6425_v12  ;;  %v3478_v18 = vmax.f32 %v2620_v13, 0.0  ;;  %v3648_v19 = vmax.f32 %v3300_v15, 0.0 }
 0x37c   : > { %v2622_v20 = vpop.f32.mrf.mxu0  ;;  %v3302_v21 = vpop.f32.mrf.mxu1 }
 0x37d   : > { %v6256_v22 = vpack.c.bf16 %v3478_v18, %v3478_v18  ;;  %v6426_v23 = vpack.c.bf16 %v3648_v19, %v3648_v19  ;;  %v2623_v24 = vadd.f32 %v9143_v56, %v2622_v20  ;;  %v3303_v25 = vadd.f32 %v9143_v56, %v3302_v21 }
 0x37e   : > { %v6951_v14 = vpop.f32.mrf.mxu0  ;;  %v7291_v27 = vpop.f32.mrf.mxu1 }
 0x37f   : > { %5169 = vst.msk [vmem:[%s7799_s10 + $0x290] sm:$0xf] %vm5004_vm3, %v6256_v22  ;;  %5339 = vst.msk [vmem:[%s7799_s10 + $0x538] sm:$0xf] %vm5004_vm3, %v6426_v23  ;;  %v3479_v28 = vmax.f32 %v2623_v24, 0.0  ;;  %v3649_v29 = vmax.f32 %v3303_v25, 0.0 }
 0x380   : > { %v2627_v30 = vpop.f32.mrf.mxu0  ;;  %v3307_v31 = vpop.f32.mrf.mxu1 }
 0x381   : > { %v6257_v32 = vpack.c.bf16 %v3479_v28, %v3479_v28  ;;  %v6427_v33 = vpack.c.bf16 %v3649_v29, %v3649_v29  ;;  %v2628_v34 = vadd.f32 %v9143_v56, %v2627_v30  ;;  %v3308_v35 = vadd.f32 %v9143_v56, %v3307_v31 }
 0x382   : > { %v6954_v36 = vpop.f32.mrf.mxu0  ;;  %v7294_v37 = vpop.f32.mrf.mxu1 }
 0x383   : > { %5170 = vst.msk [vmem:[%s7799_s10 + $0x294] sm:$0xf] %vm5004_vm3, %v6257_v32  ;;  %5340 = vst.msk [vmem:[%s7799_s10 + $0x53c] sm:$0xf] %vm5004_vm3, %v6427_v33  ;;  %v3480_v38 = vmax.f32 %v2628_v34, 0.0  ;;  %v3650_v39 = vmax.f32 %v3308_v35, 0.0 }
 0x384   : > { %v2630_v40 = vpop.f32.mrf.mxu0  ;;  %v3310_v41 = vpop.f32.mrf.mxu1 }
 0x385   : > { %v6258_v42 = vpack.c.bf16 %v3480_v38, %v3480_v38  ;;  %v6428_v43 = vpack.c.bf16 %v3650_v39, %v3650_v39  ;;  %v2631_v44 = vadd.f32 %v9143_v56, %v2630_v40  ;;  %v3311_v45 = vadd.f32 %v9143_v56, %v3310_v41 }
 0x386   : > { %v6955_v46 = vpop.f32.mrf.mxu0  ;;  %v7295_v47 = vpop.f32.mrf.mxu1 }
 0x387   : > { %5171 = vst.msk [vmem:[%s7799_s10 + $0x298] sm:$0xf] %vm5004_vm3, %v6258_v42  ;;  %5341 = vst.msk [vmem:[%s7799_s10 + $0x540] sm:$0xf] %vm5004_vm3, %v6428_v43  ;;  %v3481_v48 = vmax.f32 %v2631_v44, 0.0  ;;  %v3651_v49 = vmax.f32 %v3311_v45, 0.0 }
 0x388   : > { %v2635_v50 = vpop.f32.mrf.mxu0 }
 0x389   : > { %v6259_v51 = vpack.c.bf16 %v3481_v48, %v3481_v48  ;;  %v6429_v52 = vpack.c.bf16 %v3651_v49, %v3651_v49  ;;  %v2636_v53 = vadd.f32 %v9143_v56, %v2635_v50 }
 0x38a   : > { %v6958_v54 = vpop.f32.mrf.mxu0 }
 0x38b   : > { %5172 = vst.msk [vmem:[%s7799_s10 + $0x29c] sm:$0xf] %vm5004_vm3, %v6259_v51  ;;  %5342 = vst.msk [vmem:[%s7799_s10 + $0x544] sm:$0xf] %vm5004_vm3, %v6429_v52  ;;  %v3482_v55 = vmax.f32 %v2636_v53, 0.0 }
 0x38c   : > { %v2638_v26 = vpop.f32.mrf.mxu0 }
 0x38d   : > { %v6260_v57 = vpack.c.bf16 %v3482_v55, %v3482_v55  ;;  %v2639_v58 = vadd.f32 %v9143_v56, %v2638_v26 }
 0x38e   : > { %v6959_v60 = vpop.f32.mrf.mxu0 }
 0x38f   : > { %5173 = vst.msk [vmem:[%s7799_s10 + $0x2a0] sm:$0xf] %vm5004_vm3, %v6260_v57  ;;  %v3483_v61 = vmax.f32 %v2639_v58, 0.0 }
 0x391   : > { %v6261_v62 = vpack.c.bf16 %v3483_v61, %v3483_v61 }
 0x393   : > { %5174 = vst.msk [vmem:[%s7799_s10 + $0x2a4] sm:$0xf] %vm5004_vm3, %v6261_v62 }
 0x394 PF: > { %s13_s12 = sadd.s32 1, %s7506_s12  }
 0x395   : > { %p10_p4 = scmp.ge.s32.totalorder %s13_s12, 4  }
 0x397   :  { %12 = sbr.rel (!%p10_p4) target bundleno = 1 (0x1), region = 62 }

// kernel: cnn_critic_forward.5
= control target key start
LH: loop header
LB: loop body
LE: loop exit
PB: predicated region body
PF: predicated region fallthrough
CT: control target
= control target key end

     0   :  { %s3536_s12 = smov 0   ;;  %s4265_s0 = inlined_call_operand.vmem [shape: bf16[1360,400], index: 0, kind: input, shape index: {}]   ;;  %s4266_s1 = inlined_call_operand.vmem [shape: bf16[400,32], index: 1, kind: input, shape index: {}]   ;;  %s4267_s2 = inlined_call_operand.vmem [shape: f32[1,32], index: 2, kind: input, shape index: {}]   ;;  %s4268_s3 = inlined_call_operand.vmem [shape: bf16[1360,32], index: 3, kind: output, shape index: {}]  }
   0x1 LB: > { %s2816_s13 = sadd.s32 4294967295, %s3513_s12   ;;  %p2820_p0 = scmp.ge.s32.totalorder %s3513_s12, 1  ;;  %s3513_s12 = sphi %s3536_s12, %s13_s12  }
   0x2   : > { %p139_p1 = scmp.lt.s32.totalorder %s3513_s12, 3 }
   0x4   : > { %p140_p2 = pnand %p2820_p0, %p139_p1 }
   0x5   : > { %s164_s22 = smul.u32 (!%p140_p2), 85, %s2816_s13 }
   0x6   : > { %143 = sbr.rel (%p140_p2) target bundleno = 614 (0x266), region = 32 }
   0x7   : > { %p165_p3 = scmp.lt.s32.totalorder (!%p140_p2), %s164_s22, 169 }
   0xb   : > { %v3247_v0 = vld [vmem:[%s4266_s1 + $0x38] sm:$0xff]   ;;  %v3515_v1 = vmov 0   ;;  %v3248_v2 = vld [vmem:[%s4266_s1 + $0x30] sm:$0xff]   ;;  %v3249_v3 = vld [vmem:[%s4266_s1 + $0x28] sm:$0xff]   ;;  %s4270_s22 = smov (!%p165_p3, %s164_s22), 169  ;;  %vm1366_vm0 = vcmask 130048  }
   0xc   : > { %1496 = vmatprep.subr.bf16.mxu0 %v3515_v1  ;;  %1872 = vmatprep.subr.bf16.mxu1 %v3515_v1  ;;  %v3254_v4 = vld [vmem:[%s4266_s1 + $0xb8] sm:$0xff]   ;;  %v3256_v5 = vld [vmem:[%s4266_s1 + $0xb0] sm:$0xff]   ;;  %v3250_v6 = vld [vmem:[%s4266_s1 + $0x20] sm:$0xff]   ;;  %s3152_s8 = sshll.u32 %s4270_s22, 4  ;;  %s2823_s21 = sshll.u32 %s4270_s22, 2  ;;  %vm2674_vm1 = vcmask 257024  }
   0xd   : > { %1497 = vmatpush1.bf16.msra.mxu0 %v3247_v0  ;;  %1873 = vmatpush1.bf16.msra.mxu1 %v3254_v4  ;;  %v3258_v7 = vld [vmem:[%s4266_s1 + $0xa8] sm:$0xff]   ;;  %v3251_v8 = vld [vmem:[%s4266_s1 + $0x18] sm:$0xff]   ;;  %v3260_v9 = vld [vmem:[%s4266_s1 + $0xa0] sm:$0xff]   ;;  %s3597_s16 = scalar_lea.vmem %s4265_s0, %s3152_s8  ;;  %s3819_s24 = scalar_lea.vmem %s4268_s3, %s2823_s21 }
   0xe   : > { %1498 = vmatprep.subr.bf16.mxu0 %v3515_v1  ;;  %1874 = vmatprep.subr.bf16.mxu1 %v3515_v1  ;;  %v3252_v10 = vld [vmem:[%s4266_s1 + $0x10] sm:$0xff]   ;;  %v3262_v11 = vld [vmem:[%s4266_s1 + $0x98] sm:$0xff]   ;;  %v3253_v12 = vld [vmem:[%s4266_s1 + $0x8] sm:$0xff]  }
   0xf   : > { %v3264_v13 = vld [vmem:[%s4266_s1 + $0x90] sm:$0xff]   ;;  %v3273_v14 = vld [vmem:[%s3597_s16 + $0xc] ss:$16 sps:$4 sm:$0xff]   ;;  %v3255_v15 = vld [vmem:[%s4266_s1] sm:$0xff]  }
  0x10   : > { %3022 = vmatprep.mubr.msk.bf16.mxu1 %vm1366_vm0, %v3273_v14  ;;  %v3277_v16 = vld [vmem:[%s3597_s16 + $0x4] ss:$16 sps:$4 sm:$0xff]   ;;  %v3266_v17 = vld [vmem:[%s4266_s1 + $0x88] sm:$0xff]   ;;  %v3257_v18 = vld [vmem:[%s4266_s1 + $0x78] sm:$0xff]  }
  0x11   : > { %1499 = vmatpush1.bf16.msra.mxu0 %v3248_v2  ;;  %1875 = vmatpush1.bf16.msra.mxu1 %v3256_v5  ;;  %v3268_v19 = vld [vmem:[%s4266_s1 + $0x80] sm:$0xff]   ;;  %v3259_v20 = vld [vmem:[%s4266_s1 + $0x70] sm:$0xff]   ;;  %v3261_v22 = vld [vmem:[%s4266_s1 + $0x68] sm:$0xff]  }
  0x12   : > { %1500 = vmatprep.subr.bf16.mxu0 %v3515_v1  ;;  %1876 = vmatprep.subr.bf16.mxu1 %v3515_v1  ;;  %v3270_v21 = vld [vmem:[%s4266_s1 + $0xc0] sm:$0xff]   ;;  %v3271_v23 = vld [vmem:[%s3597_s16 + $0x8] ss:$16 sps:$4 sm:$0xff]   ;;  %v3278_v24 = vld [vmem:[%s3597_s16 + $0x2c] ss:$16 sps:$4 sm:$0xff]  }
  0x13   : > { %1528 = vmatprep.mubr.bf16.mxu0 %v3277_v16  ;;  %v3263_v25 = vld [vmem:[%s4266_s1 + $0x60] sm:$0xff]   ;;  %v3265_v26 = vld [vmem:[%s4266_s1 + $0x58] sm:$0xff]   ;;  %v3267_v29 = vld [vmem:[%s4266_s1 + $0x50] sm:$0xff]  }
  0x14   : > { %v3280_v27 = vld [vmem:[%s3597_s16 + $0x28] ss:$16 sps:$4 sm:$0xff]   ;;  %v3284_v28 = vld [vmem:[%s3597_s16 + $0x4c] ss:$16 sps:$4 sm:$0xff]   ;;  %v3274_v33 = vld [vmem:[%s4266_s1 + $0x40] sm:$0xff]  }
  0x15   : > { %1501 = vmatpush1.bf16.msra.mxu0 %v3249_v3  ;;  %1877 = vmatpush1.bf16.msra.mxu1 %v3258_v7  ;;  %v3269_v30 = vld [vmem:[%s4266_s1 + $0x48] sm:$0xff]   ;;  %v3275_v34 = vld [vmem:[%s3597_s16] ss:$16 sps:$4 sm:$0xff]   ;;  %v3281_v35 = vld [vmem:[%s3597_s16 + $0x24] ss:$16 sps:$4 sm:$0xff]  }
  0x16   : > { %1502 = vmatprep.subr.bf16.mxu0 %v3515_v1  ;;  %1878 = vmatprep.subr.bf16.mxu1 %v3515_v1  ;;  %v3286_v31 = vld [vmem:[%s3597_s16 + $0x48] ss:$16 sps:$4 sm:$0xff]   ;;  %v3290_v32 = vld [vmem:[%s3597_s16 + $0x6c] ss:$16 sps:$4 sm:$0xff]   ;;  %v3283_v38 = vld [vmem:[%s3597_s16 + $0x20] ss:$16 sps:$4 sm:$0xff]  }
  0x17   : > { %v3292_v36 = vld [vmem:[%s3597_s16 + $0x68] ss:$16 sps:$4 sm:$0xff]   ;;  %v3296_v37 = vld [vmem:[%s3597_s16 + $0x8c] ss:$16 sps:$4 sm:$0xff]   ;;  %v3287_v39 = vld [vmem:[%s3597_s16 + $0x44] ss:$16 sps:$4 sm:$0xff]  }
  0x18   : > { %v3298_v40 = vld [vmem:[%s3597_s16 + $0x88] ss:$16 sps:$4 sm:$0xff]   ;;  %v3302_v41 = vld [vmem:[%s3597_s16 + $0xac] ss:$16 sps:$4 sm:$0xff]   ;;  %v3289_v42 = vld [vmem:[%s3597_s16 + $0x40] ss:$16 sps:$4 sm:$0xff]  }
  0x19   : > { %1503 = vmatpush1.bf16.msra.mxu0 %v3250_v6  ;;  %1879 = vmatpush1.bf16.msra.mxu1 %v3260_v9  ;;  %v3293_v43 = vld [vmem:[%s3597_s16 + $0x64] ss:$16 sps:$4 sm:$0xff]   ;;  %v3304_v44 = vld [vmem:[%s3597_s16 + $0xa8] ss:$16 sps:$4 sm:$0xff]   ;;  %v3308_v45 = vld [vmem:[%s3597_s16 + $0xcc] ss:$16 sps:$4 sm:$0xff]  }
  0x1a   : > { %1504 = vmatprep.subr.bf16.mxu0 %v3515_v1  ;;  %1880 = vmatprep.subr.bf16.mxu1 %v3515_v1  ;;  %v3295_v46 = vld [vmem:[%s3597_s16 + $0x60] ss:$16 sps:$4 sm:$0xff]   ;;  %v3299_v47 = vld [vmem:[%s3597_s16 + $0x84] ss:$16 sps:$4 sm:$0xff]   ;;  %v3310_v48 = vld [vmem:[%s3597_s16 + $0xc8] ss:$16 sps:$4 sm:$0xff]  }
  0x1b   : > { %v3314_v49 = vld [vmem:[%s3597_s16 + $0xec] ss:$16 sps:$4 sm:$0xff]   ;;  %v3301_v50 = vld [vmem:[%s3597_s16 + $0x80] ss:$16 sps:$4 sm:$0xff]   ;;  %v3305_v51 = vld [vmem:[%s3597_s16 + $0xa4] ss:$16 sps:$4 sm:$0xff]  }
  0x1c   : > { %v3316_v52 = vld [vmem:[%s3597_s16 + $0xe8] ss:$16 sps:$4 sm:$0xff]   ;;  %v3320_v53 = vld [vmem:[%s3597_s16 + $0x10c] ss:$16 sps:$4 sm:$0xff]   ;;  %v3307_v54 = vld [vmem:[%s3597_s16 + $0xa0] ss:$16 sps:$4 sm:$0xff]  }
  0x1d   : > { %1505 = vmatpush1.bf16.msra.mxu0 %v3251_v8  ;;  %1881 = vmatpush1.bf16.msra.mxu1 %v3262_v11  ;;  %v3311_v55 = vld [vmem:[%s3597_s16 + $0xc4] ss:$16 sps:$4 sm:$0xff]   ;;  %v3322_v56 = vld [vmem:[%s3597_s16 + $0x108] ss:$16 sps:$4 sm:$0xff]   ;;  %v3326_v57 = vld [vmem:[%s3597_s16 + $0x12c] ss:$16 sps:$4 sm:$0xff]  }
  0x1e   : > { %1506 = vmatprep.subr.bf16.mxu0 %v3515_v1  ;;  %1882 = vmatprep.subr.bf16.mxu1 %v3515_v1  ;;  %v3313_v58 = vld [vmem:[%s3597_s16 + $0xc0] ss:$16 sps:$4 sm:$0xff]   ;;  %v3317_v59 = vld [vmem:[%s3597_s16 + $0xe4] ss:$16 sps:$4 sm:$0xff]   ;;  %v3328_v60 = vld [vmem:[%s3597_s16 + $0x128] ss:$16 sps:$4 sm:$0xff]  }
  0x1f   : > { %v3332_v61 = vld [vmem:[%s3597_s16 + $0x14c] ss:$16 sps:$4 sm:$0xff]   ;;  %v3319_v62 = vld [vmem:[%s3597_s16 + $0xe0] ss:$16 sps:$4 sm:$0xff]   ;;  %v3323_v63 = vld [vmem:[%s3597_s16 + $0x104] ss:$16 sps:$4 sm:$0xff]  }
  0x20   : > { %v3334_v0 = vld [vmem:[%s3597_s16 + $0x148] ss:$16 sps:$4 sm:$0xff]   ;;  %v3325_v2 = vld [vmem:[%s3597_s16 + $0x100] ss:$16 sps:$4 sm:$0xff]   ;;  %v3329_v3 = vld [vmem:[%s3597_s16 + $0x124] ss:$16 sps:$4 sm:$0xff]  }
  0x21   : > { %1507 = vmatpush1.bf16.msra.mxu0 %v3252_v10  ;;  %1883 = vmatpush1.bf16.msra.mxu1 %v3264_v13  ;;  %v3340_v4 = vld [vmem:[%s3597_s16 + $0x168] ss:$16 sps:$4 sm:$0xff]   ;;  %v3344_v5 = vld [vmem:[%s3597_s16 + $0x18c] ss:$16 sps:$4 sm:$0xff]   ;;  %v3331_v6 = vld [vmem:[%s3597_s16 + $0x120] ss:$16 sps:$4 sm:$0xff]  }
  0x22   : > { %1508 = vmatprep.subr.bf16.mxu0 %v3515_v1  ;;  %1884 = vmatprep.subr.bf16.mxu1 %v3515_v1  ;;  %v3335_v7 = vld [vmem:[%s3597_s16 + $0x144] ss:$16 sps:$4 sm:$0xff]   ;;  %v3346_v8 = vld [vmem:[%s3597_s16 + $0x188] ss:$16 sps:$4 sm:$0xff]   ;;  %v3350_v9 = vld [vmem:[%s3597_s16 + $0x1ac] ss:$16 sps:$4 sm:$0xff]  }
  0x23   : > { %v3337_v10 = vld [vmem:[%s3597_s16 + $0x140] ss:$16 sps:$4 sm:$0xff]   ;;  %v3341_v11 = vld [vmem:[%s3597_s16 + $0x164] ss:$16 sps:$4 sm:$0xff]   ;;  %v3356_v13 = vld [vmem:[%s3597_s16 + $0x1cc] ss:$16 sps:$4 sm:$0xff]  }
  0x24   : > { %v3343_v14 = vld [vmem:[%s3597_s16 + $0x160] ss:$16 sps:$4 sm:$0xff]   ;;  %v3358_v16 = vld [vmem:[%s3597_s16 + $0x1c8] ss:$16 sps:$4 sm:$0xff]  }
  0x25   : > { %1509 = vmatpush1.bf16.msra.mxu0 %v3253_v12  ;;  %1885 = vmatpush1.bf16.msra.mxu1 %v3266_v17  ;;  %v3352_v12 = vld [vmem:[%s3597_s16 + $0x1a8] ss:$16 sps:$4 sm:$0xff]   ;;  %v3362_v17 = vld [vmem:[%s3597_s16 + $0x1ec] ss:$16 sps:$4 sm:$0xff]  }
  0x26   : > { %1510 = vmatprep.subr.bf16.mxu0 %v3515_v1  ;;  %1886 = vmatprep.subr.bf16.mxu1 %v3515_v1 }
  0x29   : > { %1511 = vmatpush1.bf16.msra.mxu0 %v3255_v15  ;;  %1887 = vmatpush1.bf16.msra.mxu1 %v3268_v19  ;;  %v3347_v15 = vld [vmem:[%s3597_s16 + $0x184] ss:$16 sps:$4 sm:$0xff]  }
  0x2a   : > { %1512 = vmatprep.subr.bf16.mxu0 %v3515_v1  ;;  %1902 = vmatprep.subr.bf16.mxu1 %v3515_v1  ;;  %v3353_v19 = vld [vmem:[%s3597_s16 + $0x1a4] ss:$16 sps:$4 sm:$0xff]  }
  0x2d   : > { %1513 = vmatpush2.bf16.msra.mxu0 %v3257_v18  ;;  %1903 = vmatpush2.bf16.msra.mxu1 %v3270_v21  ;;  %v3349_v18 = vld [vmem:[%s3597_s16 + $0x180] ss:$16 sps:$4 sm:$0xff]   ;;  %v3368_v21 = vld [vmem:[%s3597_s16 + $0x20c] ss:$16 sps:$4 sm:$0xff]  }
  0x2e   : > { %1514 = vmatprep.subr.bf16.mxu0 %v3515_v1 }
  0x30   : > { %1905 = vmatmul.mubr.bf16.vlgmr.msra.gmra.mxu1 %v3271_v23  ;;  %v3359_v23 = vld [vmem:[%s3597_s16 + $0x1c4] ss:$16 sps:$4 sm:$0xff]  }
  0x31   : > { %1515 = vmatpush2.bf16.msra.mxu0 %v3259_v20  ;;  %3023 = vmatprep.mubr.msk.bf16.mxu1 %vm1366_vm0, %v3278_v24  ;;  %v3364_v20 = vld [vmem:[%s3597_s16 + $0x1e8] ss:$16 sps:$4 sm:$0xff]  }
  0x32   : > { %1516 = vmatprep.subr.bf16.mxu0 %v3515_v1  ;;  %v3370_v24 = vld [vmem:[%s3597_s16 + $0x208] ss:$16 sps:$4 sm:$0xff]  }
  0x35   : > { %1517 = vmatpush2.bf16.msra.mxu0 %v3261_v22  ;;  %v3355_v22 = vld [vmem:[%s3597_s16 + $0x1a0] ss:$16 sps:$4 sm:$0xff]  }
  0x36   : > { %1518 = vmatprep.subr.bf16.mxu0 %v3515_v1 }
  0x38   : > { %1913 = vmatmul.mubr.bf16.gmra.mxu1 %v3280_v27  ;;  %v3365_v27 = vld [vmem:[%s3597_s16 + $0x1e4] ss:$16 sps:$4 sm:$0xff]  }
  0x39   : > { %1519 = vmatpush2.bf16.msra.mxu0 %v3263_v25  ;;  %3024 = vmatprep.mubr.msk.bf16.mxu1 %vm1366_vm0, %v3284_v28  ;;  %v3374_v25 = vld [vmem:[%s3597_s16 + $0x22c] ss:$16 sps:$4 sm:$0xff]   ;;  %v3376_v28 = vld [vmem:[%s3597_s16 + $0x228] ss:$16 sps:$4 sm:$0xff]  }
  0x3a   : > { %1520 = vmatprep.subr.bf16.mxu0 %v3515_v1 }
  0x3d   : > { %1521 = vmatpush2.bf16.msra.mxu0 %v3265_v26  ;;  %v3361_v26 = vld [vmem:[%s3597_s16 + $0x1c0] ss:$16 sps:$4 sm:$0xff]  }
  0x3e   : > { %1522 = vmatprep.subr.bf16.mxu0 %v3515_v1 }
  0x40   : > { %1921 = vmatmul.mubr.bf16.gmra.mxu1 %v3286_v31  ;;  %v3371_v31 = vld [vmem:[%s3597_s16 + $0x204] ss:$16 sps:$4 sm:$0xff]  }
  0x41   : > { %1523 = vmatpush2.bf16.msra.mxu0 %v3267_v29  ;;  %3025 = vmatprep.mubr.msk.bf16.mxu1 %vm1366_vm0, %v3290_v32  ;;  %v3380_v29 = vld [vmem:[%s3597_s16 + $0x24c] ss:$16 sps:$4 sm:$0xff]   ;;  %v3382_v32 = vld [vmem:[%s3597_s16 + $0x248] ss:$16 sps:$4 sm:$0xff]  }
  0x42   : > { %1524 = vmatprep.subr.bf16.mxu0 %v3515_v1 }
  0x45   : > { %1525 = vmatpush2.bf16.msra.mxu0 %v3269_v30  ;;  %v3367_v30 = vld [vmem:[%s3597_s16 + $0x1e0] ss:$16 sps:$4 sm:$0xff]  }
  0x46   : > { %1526 = vmatprep.subr.bf16.mxu0 %v3515_v1  ;;  %v3338_v1 = vld [vmem:[%s3597_s16 + $0x16c] ss:$16 sps:$4 sm:$0xff]  }
  0x48   : > { %1929 = vmatmul.mubr.bf16.gmra.mxu1 %v3292_v36  ;;  %v3388_v36 = vld [vmem:[%s3597_s16 + $0x268] ss:$16 sps:$4 sm:$0xff]  }
  0x49   : > { %1527 = vmatpush2.bf16.msra.mxu0 %v3274_v33  ;;  %3026 = vmatprep.mubr.msk.bf16.mxu1 %vm1366_vm0, %v3296_v37  ;;  %v3386_v33 = vld [vmem:[%s3597_s16 + $0x26c] ss:$16 sps:$4 sm:$0xff]  }
  0x4a   : > { %v3392_v37 = vld [vmem:[%s3597_s16 + $0x28c] ss:$16 sps:$4 sm:$0xff]  }
  0x4c   : > { %1529 = vmatmul.mubr.bf16.vlgmr.msra.gmra.mxu0 %v3275_v34  ;;  %v3373_v34 = vld [vmem:[%s3597_s16 + $0x200] ss:$16 sps:$4 sm:$0xff]  }
  0x4d   : > { %1536 = vmatprep.mubr.bf16.mxu0 %v3281_v35  ;;  %v3377_v35 = vld [vmem:[%s3597_s16 + $0x224] ss:$16 sps:$4 sm:$0xff]  }
  0x50   : > { %1937 = vmatmul.mubr.bf16.gmra.mxu1 %v3298_v40  ;;  %v3394_v40 = vld [vmem:[%s3597_s16 + $0x288] ss:$16 sps:$4 sm:$0xff]  }
  0x51   : > { %3027 = vmatprep.mubr.msk.bf16.mxu1 %vm1366_vm0, %v3302_v41  ;;  %v3398_v41 = vld [vmem:[%s3597_s16 + $0x2ac] ss:$16 sps:$4 sm:$0xff]  }
  0x54   : > { %1537 = vmatmul.mubr.bf16.gmra.mxu0 %v3283_v38  ;;  %v3379_v38 = vld [vmem:[%s3597_s16 + $0x220] ss:$16 sps:$4 sm:$0xff]  }
  0x55   : > { %1544 = vmatprep.mubr.bf16.mxu0 %v3287_v39  ;;  %v3383_v39 = vld [vmem:[%s3597_s16 + $0x244] ss:$16 sps:$4 sm:$0xff]  }
  0x58   : > { %1945 = vmatmul.mubr.bf16.gmra.mxu1 %v3304_v44  ;;  %v3400_v44 = vld [vmem:[%s3597_s16 + $0x2a8] ss:$16 sps:$4 sm:$0xff]  }
  0x59   : > { %3028 = vmatprep.mubr.msk.bf16.mxu1 %vm1366_vm0, %v3308_v45  ;;  %v3404_v45 = vld [vmem:[%s3597_s16 + $0x2cc] ss:$16 sps:$4 sm:$0xff]  }
  0x5c   : > { %1545 = vmatmul.mubr.bf16.gmra.mxu0 %v3289_v42  ;;  %v3385_v42 = vld [vmem:[%s3597_s16 + $0x240] ss:$16 sps:$4 sm:$0xff]  }
  0x5d   : > { %1552 = vmatprep.mubr.bf16.mxu0 %v3293_v43  ;;  %v3389_v43 = vld [vmem:[%s3597_s16 + $0x264] ss:$16 sps:$4 sm:$0xff]  }
  0x60   : > { %1953 = vmatmul.mubr.bf16.gmra.mxu1 %v3310_v48  ;;  %v3406_v48 = vld [vmem:[%s3597_s16 + $0x2c8] ss:$16 sps:$4 sm:$0xff]  }
  0x61   : > { %3029 = vmatprep.mubr.msk.bf16.mxu1 %vm1366_vm0, %v3314_v49  ;;  %v3410_v49 = vld [vmem:[%s3597_s16 + $0x2ec] ss:$16 sps:$4 sm:$0xff]  }
  0x64   : > { %1553 = vmatmul.mubr.bf16.gmra.mxu0 %v3295_v46  ;;  %v3391_v46 = vld [vmem:[%s3597_s16 + $0x260] ss:$16 sps:$4 sm:$0xff]  }
  0x65   : > { %1560 = vmatprep.mubr.bf16.mxu0 %v3299_v47  ;;  %v3395_v47 = vld [vmem:[%s3597_s16 + $0x284] ss:$16 sps:$4 sm:$0xff]  }
  0x68   : > { %1961 = vmatmul.mubr.bf16.gmra.mxu1 %v3316_v52  ;;  %v3412_v52 = vld [vmem:[%s3597_s16 + $0x2e8] ss:$16 sps:$4 sm:$0xff]  }
  0x69   : > { %3030 = vmatprep.mubr.msk.bf16.mxu1 %vm1366_vm0, %v3320_v53  ;;  %v3416_v53 = vld [vmem:[%s3597_s16 + $0x30c] ss:$16 sps:$4 sm:$0xff]  }
  0x6c   : > { %1561 = vmatmul.mubr.bf16.gmra.mxu0 %v3301_v50  ;;  %v3397_v50 = vld [vmem:[%s3597_s16 + $0x280] ss:$16 sps:$4 sm:$0xff]  }
  0x6d   : > { %1568 = vmatprep.mubr.bf16.mxu0 %v3305_v51  ;;  %v3401_v51 = vld [vmem:[%s3597_s16 + $0x2a4] ss:$16 sps:$4 sm:$0xff]  }
  0x70   : > { %1969 = vmatmul.mubr.bf16.gmra.mxu1 %v3322_v56  ;;  %v3418_v56 = vld [vmem:[%s3597_s16 + $0x308] ss:$16 sps:$4 sm:$0xff]  }
  0x71   : > { %3031 = vmatprep.mubr.msk.bf16.mxu1 %vm1366_vm0, %v3326_v57  ;;  %v3421_v57 = vld [vmem:[%s3597_s16 + $0x32c] ss:$16 sps:$4 sm:$0xff]  }
  0x74   : > { %1569 = vmatmul.mubr.bf16.gmra.mxu0 %v3307_v54  ;;  %v3403_v54 = vld [vmem:[%s3597_s16 + $0x2a0] ss:$16 sps:$4 sm:$0xff]  }
  0x75   : > { %1576 = vmatprep.mubr.bf16.mxu0 %v3311_v55  ;;  %v3407_v55 = vld [vmem:[%s3597_s16 + $0x2c4] ss:$16 sps:$4 sm:$0xff]  }
  0x78   : > { %1977 = vmatmul.mubr.bf16.gmra.mxu1 %v3328_v60  ;;  %v279_v60 = vld [vmem:[%s3597_s16 + $0x328] sm:$0xff] }
  0x79   : > { %3032 = vmatprep.mubr.msk.bf16.mxu1 %vm1366_vm0, %v3332_v61  ;;  %v281_v61 = vld [vmem:[%s3597_s16 + $0x338] sm:$0xff] }
  0x7c   : > { %1577 = vmatmul.mubr.bf16.gmra.mxu0 %v3313_v58 }
  0x7d   : > { %1584 = vmatprep.mubr.bf16.mxu0 %v3317_v59  ;;  %v3409_v59 = vld [vmem:[%s3597_s16 + $0x2c0] ss:$16 sps:$4 sm:$0xff]  }
  0x80   : > { %1985 = vmatmul.mubr.bf16.gmra.mxu1 %v3334_v0 }
  0x81   : > { %3033 = vmatprep.mubr.msk.bf16.mxu1 %vm1366_vm0, %v3338_v1  ;;  %v2927_v1 = vcombine.low %v279_v60, %v281_v61  ;;  %v295_v60 = vld [vmem:[%s3597_s16 + $0x3a8] sm:$0xff]  ;;  %v297_v61 = vld [vmem:[%s3597_s16 + $0x3b8] sm:$0xff] }
  0x84   : > { %1585 = vmatmul.mubr.bf16.gmra.mxu0 %v3319_v62  ;;  %v3413_v62 = vld [vmem:[%s3597_s16 + $0x2e4] ss:$16 sps:$4 sm:$0xff]  }
  0x85   : > { %1592 = vmatprep.mubr.bf16.mxu0 %v3323_v63 }
  0x88   : > { %1993 = vmatmul.mubr.bf16.gmra.mxu1 %v3340_v4 }
  0x89   : > { %3034 = vmatprep.mubr.msk.bf16.mxu1 %vm1366_vm0, %v3344_v5  ;;  %v3415_v5 = vld [vmem:[%s3597_s16 + $0x2e0] ss:$16 sps:$4 sm:$0xff]  }
  0x8c   : > { %1593 = vmatmul.mubr.bf16.gmra.mxu0 %v3325_v2  ;;  %v3425_v2 = vld [vmem:[%s3597_s16 + $0x34c] ss:$16 sps:$4 sm:$0xff]  }
  0x8d   : > { %1600 = vmatprep.mubr.bf16.mxu0 %v3329_v3 }
  0x90   : > { %2001 = vmatmul.mubr.bf16.gmra.mxu1 %v3346_v8  ;;  %v3419_v8 = vld [vmem:[%s3597_s16 + $0x304] ss:$16 sps:$4 sm:$0xff]  }
  0x91   : > { %3035 = vmatprep.mubr.msk.bf16.mxu1 %vm1366_vm0, %v3350_v9 }
  0x94   : > { %1601 = vmatmul.mubr.bf16.gmra.mxu0 %v3331_v6  ;;  %v283_v6 = vld [vmem:[%s3597_s16 + $0x348] sm:$0xff] }
  0x95   : > { %1608 = vmatprep.mubr.bf16.mxu0 %v3335_v7  ;;  %v285_v7 = vld [vmem:[%s3597_s16 + $0x358] sm:$0xff] }
  0x98   : > { %2009 = vmatmul.mubr.bf16.gmra.mxu1 %v3352_v12  ;;  %v3429_v12 = vld [vmem:[%s3597_s16 + $0x36c] ss:$16 sps:$4 sm:$0xff]  }
  0x99   : > { %3036 = vmatprep.mubr.msk.bf16.mxu1 %vm1366_vm0, %v3356_v13  ;;  %v274_v13 = vld [vmem:[%s3597_s16 + $0x300] sm:$0xff] }
  0x9c   : > { %1609 = vmatmul.mubr.bf16.gmra.mxu0 %v3337_v10 }
  0x9d   : > { %1616 = vmatprep.mubr.bf16.mxu0 %v3341_v11  ;;  %v2931_v11 = vcombine.low %v283_v6, %v285_v7  ;;  %v2943_v6 = vcombine.low %v295_v60, %v297_v61 }
  0xa0   : > { %2017 = vmatmul.mubr.bf16.gmra.mxu1 %v3358_v16 }
  0xa1   : > { %3037 = vmatprep.mubr.msk.bf16.mxu1 %vm1366_vm0, %v3362_v17 }
  0xa4   : > { %1617 = vmatmul.mubr.bf16.gmra.mxu0 %v3343_v14  ;;  %v276_v14 = vld [vmem:[%s3597_s16 + $0x310] sm:$0xff] }
  0xa5   : > { %1624 = vmatprep.mubr.bf16.mxu0 %v3347_v15  ;;  %v2921_v17 = vcombine.low %v274_v13, %v276_v14  ;;  %v288_v13 = vld [vmem:[%s3597_s16 + $0x370] sm:$0xff] }
  0xa8   : > { %2025 = vmatmul.mubr.bf16.gmra.mxu1 %v3364_v20  ;;  %v3423_v20 = vld [vmem:[%s3597_s16 + $0x324] ss:$16 sps:$4 sm:$0xff]  }
  0xa9   : > { %3038 = vmatprep.mubr.msk.bf16.mxu1 %vm1366_vm0, %v3368_v21 }
  0xac   : > { %1625 = vmatmul.mubr.bf16.gmra.mxu0 %v3349_v18  ;;  %v287_v18 = vld [vmem:[%s3597_s16 + $0x368] sm:$0xff] }
  0xad   : > { %1632 = vmatprep.mubr.bf16.mxu0 %v3353_v19  ;;  %v289_v19 = vld [vmem:[%s3597_s16 + $0x378] sm:$0xff] }
  0xb0   : > { %2033 = vmatmul.mubr.bf16.gmra.mxu1 %v3370_v24  ;;  %v2935_v24 = vcombine.low %v287_v18, %v289_v19 }
  0xb1   : > { %3039 = vmatprep.mubr.msk.bf16.mxu1 %vm1366_vm0, %v3374_v25 }
  0xb4   : > { %1633 = vmatmul.mubr.bf16.gmra.mxu0 %v3355_v22  ;;  %v3800_v22 = vld [vmem:[%s4267_s2] ss:$0 sm:$0xff] }
  0xb5   : > { %1640 = vmatprep.mubr.bf16.mxu0 %v3359_v23 }
  0xb8   : > { %2041 = vmatmul.mubr.bf16.gmra.mxu1 %v3376_v28  ;;  %v278_v28 = vld [vmem:[%s3597_s16 + $0x320] sm:$0xff] }
  0xb9   : > { %3040 = vmatprep.mubr.msk.bf16.mxu1 %vm1366_vm0, %v3380_v29  ;;  %v280_v29 = vld [vmem:[%s3597_s16 + $0x330] sm:$0xff] }
  0xbc   : > { %1641 = vmatmul.mubr.bf16.gmra.mxu0 %v3361_v26  ;;  %v3433_v26 = vld [vmem:[%s3597_s16 + $0x38c] ss:$16 sps:$4 sm:$0xff]  }
  0xbd   : > { %1648 = vmatprep.mubr.bf16.mxu0 %v3365_v27 }
  0xc0   : > { %2049 = vmatmul.mubr.bf16.gmra.mxu1 %v3382_v32 }
  0xc1   : > { %3041 = vmatprep.mubr.msk.bf16.mxu1 %vm1366_vm0, %v3386_v33 }
  0xc4   : > { %1649 = vmatmul.mubr.bf16.gmra.mxu0 %v3367_v30 }
  0xc5   : > { %1656 = vmatprep.mubr.bf16.mxu0 %v3371_v31 }
  0xc8   : > { %2057 = vmatmul.mubr.bf16.gmra.mxu1 %v3388_v36  ;;  %v291_v36 = vld [vmem:[%s3597_s16 + $0x388] sm:$0xff] }
  0xc9   : > { %3042 = vmatprep.mubr.msk.bf16.mxu1 %vm1366_vm0, %v3392_v37  ;;  %v293_v37 = vld [vmem:[%s3597_s16 + $0x398] sm:$0xff] }
  0xcc   : > { %1657 = vmatmul.mubr.bf16.gmra.mxu0 %v3373_v34 }
  0xcd   : > { %1664 = vmatprep.mubr.bf16.mxu0 %v3377_v35  ;;  %v2925_v35 = vcombine.low %v278_v28, %v280_v29 }
  0xd0   : > { %2065 = vmatmul.mubr.bf16.gmra.mxu1 %v3394_v40  ;;  %v3427_v40 = vld [vmem:[%s3597_s16 + $0x344] ss:$16 sps:$4 sm:$0xff]  }
  0xd1   : > { %3043 = vmatprep.mubr.msk.bf16.mxu1 %vm1366_vm0, %v3398_v41 }
  0xd4   : > { %1665 = vmatmul.mubr.bf16.gmra.mxu0 %v3379_v38 }
  0xd5   : > { %1672 = vmatprep.mubr.bf16.mxu0 %v3383_v39 }
  0xd8   : > { %2073 = vmatmul.mubr.bf16.gmra.mxu1 %v3400_v44 }
  0xd9   : > { %3044 = vmatprep.mubr.msk.bf16.mxu1 %vm1366_vm0, %v3404_v45 }
  0xdc   : > { %1673 = vmatmul.mubr.bf16.gmra.mxu0 %v3385_v42 }
  0xdd   : > { %1680 = vmatprep.mubr.bf16.mxu0 %v3389_v43 }
  0xe0   : > { %2081 = vmatmul.mubr.bf16.gmra.mxu1 %v3406_v48  ;;  %v3438_v48 = vld [vmem:[%s3597_s16 + $0x3ac] ss:$16 sps:$4 sm:$0xff]  }
  0xe1   : > { %3045 = vmatprep.mubr.msk.bf16.mxu1 %vm1366_vm0, %v3410_v49 }
  0xe4   : > { %1681 = vmatmul.mubr.bf16.gmra.mxu0 %v3391_v46  ;;  %v2939_v46 = vcombine.low %v291_v36, %v293_v37 }
  0xe5   : > { %1688 = vmatprep.mubr.bf16.mxu0 %v3395_v47 }
  0xe8   : > { %2089 = vmatmul.mubr.bf16.gmra.mxu1 %v3412_v52  ;;  %v284_v52 = vld [vmem:[%s3597_s16 + $0x350] sm:$0xff] }
  0xe9   : > { %3046 = vmatprep.mubr.msk.bf16.mxu1 %vm1366_vm0, %v3416_v53 }
  0xec   : > { %1689 = vmatmul.mubr.bf16.gmra.mxu0 %v3397_v50 }
  0xed   : > { %1696 = vmatprep.mubr.bf16.mxu0 %v3401_v51  ;;  %v282_v51 = vld [vmem:[%s3597_s16 + $0x340] sm:$0xff] }
  0xf0   : > { %v1906_v58 = vpop.f32.mrf.mxu1  ;;  %2097 = vmatmul.mubr.bf16.gmra.mxu1 %v3418_v56 }
  0xf1   : > { %3047 = vmatprep.mubr.msk.bf16.mxu1 %vm1366_vm0, %v3421_v57 }
  0xf2   : > { %v1908_v63 = vpop.f32.mrf.mxu1 }
  0xf4   : > { %1697 = vmatmul.mubr.bf16.gmra.mxu0 %v3403_v54  ;;  %v1909_v0 = vpop.f32.mrf.mxu1 }
  0xf5   : > { %1704 = vmatprep.mubr.bf16.mxu0 %v3407_v55 }
  0xf6   : > { %v1911_v3 = vpop.f32.mrf.mxu1 }
  0xf8   : > { %v3779_v4 = vpop.f32.mrf.mxu1  ;;  %2105 = vmatmul.mubr.bf16.gmra.mxu1 %v2927_v1 }
  0xf9   : > { %3048 = vmatprep.mubr.msk.bf16.mxu1 %vm1366_vm0, %v3425_v2 }
  0xfa   : > { %v1916_v9 = vpop.f32.mrf.mxu1 }
  0xfc   : > { %1705 = vmatmul.mubr.bf16.gmra.mxu0 %v3409_v59  ;;  %v3786_v10 = vpop.f32.mrf.mxu1  ;;  %v2929_v59 = vcombine.low %v282_v51, %v284_v52 }
  0xfd   : > { %1712 = vmatprep.mubr.bf16.mxu0 %v3413_v62 }
  0xfe   : > { %v1919_v15 = vpop.f32.mrf.mxu1 }
 0x100   : > { %v3791_v16 = vpop.f32.mrf.mxu1  ;;  %2113 = vmatmul.mubr.bf16.gmra.mxu1 %v2931_v11 }
 0x101   : > { %3049 = vmatprep.mubr.msk.bf16.mxu1 %vm1366_vm0, %v3429_v12  ;;  %v286_v12 = vld [vmem:[%s3597_s16 + $0x360] sm:$0xff] }
 0x102   : > { %v1924_v21 = vpop.f32.mrf.mxu1 }
 0x103   : > { %v299_v21 = vld [vmem:[%s3597_s16 + $0x3c8] sm:$0xff] }
 0x104   : > { %1713 = vmatmul.mubr.bf16.gmra.mxu0 %v3415_v5  ;;  %v3802_v23 = vpop.f32.mrf.mxu1 }
 0x105   : > { %1720 = vmatprep.mubr.bf16.mxu0 %v3419_v8  ;;  %v3443_v8 = vld [vmem:[%s3597_s16 + $0x3cc] ss:$16 sps:$4 sm:$0xff]  }
 0x106   : > { %v1927_v30 = vpop.f32.mrf.mxu1 }
 0x108   : > { %v3809_v33 = vpop.f32.mrf.mxu1  ;;  %2121 = vmatmul.mubr.bf16.gmra.mxu1 %v2935_v24  ;;  %v301_v24 = vld [vmem:[%s3597_s16 + $0x3d8] sm:$0xff] }
 0x109   : > { %3050 = vmatprep.mubr.msk.bf16.mxu1 %vm1366_vm0, %v3433_v26 }
 0x10a   : > { %v1932_v41 = vpop.f32.mrf.mxu1 }
 0x10c   : > { %v1530_v25 = vpop.f32.mrf.mxu0  ;;  %1721 = vmatmul.mubr.bf16.gmra.mxu0 %v2921_v17  ;;  %v3821_v45 = vpop.f32.mrf.mxu1 }
 0x10d   : > { %v1531_v27 = vadd.f32 %v3800_v22, %v1530_v25  ;;  %1728 = vmatprep.mubr.bf16.mxu0 %v3423_v20  ;;  %v2933_v20 = vcombine.low %v286_v12, %v288_v13 }
 0x10e   : > { %v1532_v31 = vpop.f32.mrf.mxu0  ;;  %v1935_v53 = vpop.f32.mrf.mxu1 }
 0x10f   : > { %v1907_v32 = vadd.f32 %v1906_v58, %v1531_v27  ;;  %v3437_v27 = vld [vmem:[%s3597_s16 + $0x384] ss:$16 sps:$4 sm:$0xff]  }
 0x110   : > { %v1533_v34 = vpop.f32.mrf.mxu0  ;;  %v3830_v57 = vpop.f32.mrf.mxu1  ;;  %2129 = vmatmul.mubr.bf16.gmra.mxu1 %v2939_v46  ;;  %v305_v46 = vld [vmem:[%s3597_s16 + $0x3f8] sm:$0xff] }
 0x111   : > { %v2248_v38 = vmax.f32 %v1907_v32, 0.0  ;;  %v1534_v39 = vadd.f32 %v3800_v22, %v1533_v34  ;;  %3051 = vmatprep.mubr.msk.bf16.mxu1 %vm1366_vm0, %v3438_v48  ;;  %v2947_v32 = vcombine.low %v299_v21, %v301_v24 }
 0x112   : > { %v1535_v42 = vpop.f32.mrf.mxu0  ;;  %v1940_v1 = vpop.f32.mrf.mxu1 }
 0x113   : > { %v3153_v43 = vpack.c.bf16 %v2248_v38, %v2248_v38  ;;  %v1910_v44 = vadd.f32 %v1909_v0, %v1534_v39  ;;  %v3431_v0 = vld [vmem:[%s3597_s16 + $0x364] ss:$16 sps:$4 sm:$0xff]   ;;  %v3440_v1 = vld [vmem:[%s3597_s16 + $0x3a0] ss:$16 sps:$4 sm:$0xff]  }
 0x114   : > { %v1538_v47 = vpop.f32.mrf.mxu0  ;;  %1729 = vmatmul.mubr.bf16.gmra.mxu0 %v2925_v35  ;;  %v3840_v5 = vpop.f32.mrf.mxu1  ;;  %v3448_v35 = vld [vmem:[%s3597_s16 + $0x3ec] ss:$16 sps:$4 sm:$0xff]  }
 0x115   : > { %2675 = vst.msk [vmem:[%s3819_s24] sm:$0xf] %vm2674_vm1, %v3153_v43  ;;  %v2249_v49 = vmax.f32 %v1910_v44, 0.0  ;;  %v1539_v50 = vadd.f32 %v3800_v22, %v1538_v47  ;;  %1736 = vmatprep.mubr.bf16.mxu0 %v3427_v40  ;;  %v3435_v43 = vld [vmem:[%s3597_s16 + $0x380] ss:$16 sps:$4 sm:$0xff]   ;;  %v303_v44 = vld [vmem:[%s3597_s16 + $0x3e8] sm:$0xff] }
 0x116   : > { %v1540_v54 = vpop.f32.mrf.mxu0  ;;  %v1943_v14 = vpop.f32.mrf.mxu1 }
 0x117   : > { %v3154_v55 = vpack.c.bf16 %v2249_v49, %v2249_v49  ;;  %v1915_v56 = vadd.f32 %v3779_v4, %v1539_v50  ;;  %v3442_v49 = vld [vmem:[%s3597_s16 + $0x3a4] ss:$16 sps:$4 sm:$0xff]   ;;  %v2951_v54 = vcombine.low %v303_v44, %v305_v46 }
 0x118   : > { %v1541_v58 = vpop.f32.mrf.mxu0  ;;  %v3849_v18 = vpop.f32.mrf.mxu1  ;;  %2137 = vmatmul.mubr.bf16.gmra.mxu1 %v2943_v6 }
 0x119   : > { %2676 = vst.msk [vmem:[%s3819_s24 + $0x4] sm:$0xf] %vm2674_vm1, %v3154_v55  ;;  %v2250_v62 = vmax.f32 %v1915_v56, 0.0  ;;  %v1542_v63 = vadd.f32 %v3800_v22, %v1541_v58  ;;  %3052 = vmatprep.mubr.msk.bf16.mxu1 %vm1366_vm0, %v3443_v8  ;;  %v3453_v56 = vld [vmem:[%s3597_s16 + $0x40c] ss:$16 sps:$4 sm:$0xff]  }
 0x11a   : > { %v1543_v2 = vpop.f32.mrf.mxu0  ;;  %v1948_v28 = vpop.f32.mrf.mxu1 }
 0x11b   : > { %v3155_v3 = vpack.c.bf16 %v2250_v62, %v2250_v62  ;;  %v1918_v4 = vadd.f32 %v3786_v10, %v1542_v63  ;;  %v307_v2 = vld [vmem:[%s3597_s16 + $0x408] sm:$0xff]  ;;  %v313_v28 = vld [vmem:[%s3597_s16 + $0x438] sm:$0xff] }
 0x11c   : > { %v1546_v7 = vpop.f32.mrf.mxu0  ;;  %1737 = vmatmul.mubr.bf16.gmra.mxu0 %v2929_v59  ;;  %v3859_v31 = vpop.f32.mrf.mxu1 }
 0x11d   : > { %2677 = vst.msk [vmem:[%s3819_s24 + $0x8] sm:$0xf] %vm2674_vm1, %v3155_v3  ;;  %v2251_v9 = vmax.f32 %v1918_v4, 0.0  ;;  %v1547_v11 = vadd.f32 %v3800_v22, %v1546_v7  ;;  %1744 = vmatprep.mubr.bf16.mxu0 %v3431_v0  ;;  %v309_v3 = vld [vmem:[%s3597_s16 + $0x418] sm:$0xff]  ;;  %v3447_v7 = vld [vmem:[%s3597_s16 + $0x3c4] ss:$16 sps:$4 sm:$0xff]  }
 0x11e   : > { %v1548_v10 = vpop.f32.mrf.mxu0  ;;  %v1951_v38 = vpop.f32.mrf.mxu1  ;;  %v2955_v13 = vcombine.low %v307_v2, %v309_v3 }
 0x11f   : > { %v3156_v15 = vpack.c.bf16 %v2251_v9, %v2251_v9  ;;  %v1923_v17 = vadd.f32 %v3791_v16, %v1547_v11  ;;  %v3458_v10 = vld [vmem:[%s3597_s16 + $0x42c] ss:$16 sps:$4 sm:$0xff]  }
 0x120   : > { %v1549_v19 = vpop.f32.mrf.mxu0  ;;  %v3866_v41 = vpop.f32.mrf.mxu1  ;;  %2145 = vmatmul.mubr.bf16.gmra.mxu1 %v2947_v32 }
 0x121   : > { %2678 = vst.msk [vmem:[%s3819_s24 + $0xc] sm:$0xf] %vm2674_vm1, %v3156_v15  ;;  %v2252_v25 = vmax.f32 %v1923_v17, 0.0  ;;  %v1550_v26 = vadd.f32 %v3800_v22, %v1549_v19  ;;  %3053 = vmatprep.mubr.msk.bf16.mxu1 %vm1366_vm0, %v3448_v35 }
 0x122   : > { %v1551_v29 = vpop.f32.mrf.mxu0  ;;  %v1956_v50 = vpop.f32.mrf.mxu1 }
 0x123   : > { %v3157_v16 = vpack.c.bf16 %v2252_v25, %v2252_v25  ;;  %v1926_v30 = vadd.f32 %v3802_v23, %v1550_v26  ;;  %v3445_v26 = vld [vmem:[%s3597_s16 + $0x3c0] ss:$16 sps:$4 sm:$0xff]   ;;  %v317_v50 = vld [vmem:[%s3597_s16 + $0x458] sm:$0xff] }
 0x124   : > { %v1554_v34 = vpop.f32.mrf.mxu0  ;;  %1745 = vmatmul.mubr.bf16.gmra.mxu0 %v2933_v20  ;;  %v3877_v53 = vpop.f32.mrf.mxu1 }
 0x125   : > { %2679 = vst.msk [vmem:[%s3819_s24 + $0x10] sm:$0xf] %vm2674_vm1, %v3157_v16  ;;  %v2253_v36 = vmax.f32 %v1926_v30, 0.0  ;;  %v1555_v37 = vadd.f32 %v3800_v22, %v1554_v34  ;;  %1752 = vmatprep.mubr.bf16.mxu0 %v3437_v27  ;;  %v311_v27 = vld [vmem:[%s3597_s16 + $0x428] sm:$0xff]  ;;  %v3452_v30 = vld [vmem:[%s3597_s16 + $0x3e4] ss:$16 sps:$4 sm:$0xff]  }
 0x126   : > { %v1556_v39 = vpop.f32.mrf.mxu0  ;;  %v1959_v60 = vpop.f32.mrf.mxu1 }
 0x127   : > { %v3158_v23 = vpack.c.bf16 %v2253_v36, %v2253_v36  ;;  %v1931_v40 = vadd.f32 %v3809_v33, %v1555_v37  ;;  %v2959_v37 = vcombine.low %v311_v27, %v313_v28  ;;  %v3463_v39 = vld [vmem:[%s3597_s16 + $0x44c] ss:$16 sps:$4 sm:$0xff]  }
 0x128   : > { %v1557_v42 = vpop.f32.mrf.mxu0  ;;  %v3884_v63 = vpop.f32.mrf.mxu1  ;;  %2153 = vmatmul.mubr.bf16.gmra.mxu1 %v2951_v54 }
 0x129   : > { %2680 = vst.msk [vmem:[%s3819_s24 + $0x14] sm:$0xf] %vm2674_vm1, %v3158_v23  ;;  %v2254_v47 = vmax.f32 %v1931_v40, 0.0  ;;  %v1558_v48 = vadd.f32 %v3800_v22, %v1557_v42  ;;  %3054 = vmatprep.mubr.msk.bf16.mxu1 %vm1366_vm0, %v3453_v56 }
 0x12a   : > { %v1559_v51 = vpop.f32.mrf.mxu0  ;;  %v1964_v8 = vpop.f32.mrf.mxu1 }
 0x12b   : > { %v3159_v33 = vpack.c.bf16 %v2254_v47, %v2254_v47  ;;  %v1934_v52 = vadd.f32 %v3821_v45, %v1558_v48  ;;  %v3450_v48 = vld [vmem:[%s3597_s16 + $0x3e0] ss:$16 sps:$4 sm:$0xff]   ;;  %v321_v8 = vld [vmem:[%s3597_s16 + $0x478] sm:$0xff] }
 0x12c   : > { %v1562_v55 = vpop.f32.mrf.mxu0  ;;  %1753 = vmatmul.mubr.bf16.gmra.mxu0 %v3435_v43  ;;  %v3895_v12 = vpop.f32.mrf.mxu1 }
 0x12d   : > { %2681 = vst.msk [vmem:[%s3819_s24 + $0x18] sm:$0xf] %vm2674_vm1, %v3159_v33  ;;  %v2255_v58 = vmax.f32 %v1934_v52, 0.0  ;;  %v1563_v59 = vadd.f32 %v3800_v22, %v1562_v55  ;;  %1760 = vmatprep.mubr.bf16.mxu0 %v3442_v49  ;;  %v315_v49 = vld [vmem:[%s3597_s16 + $0x448] sm:$0xff]  ;;  %v3457_v52 = vld [vmem:[%s3597_s16 + $0x404] ss:$16 sps:$4 sm:$0xff]  }
 0x12e   : > { %v1564_v61 = vpop.f32.mrf.mxu0  ;;  %v1967_v19 = vpop.f32.mrf.mxu1 }
 0x12f   : > { %v3160_v45 = vpack.c.bf16 %v2255_v58, %v2255_v58  ;;  %v1939_v62 = vadd.f32 %v3830_v57, %v1563_v59  ;;  %v2963_v59 = vcombine.low %v315_v49, %v317_v50  ;;  %v3468_v61 = vld [vmem:[%s3597_s16 + $0x46c] ss:$16 sps:$4 sm:$0xff]  }
 0x130   : > { %v1565_v0 = vpop.f32.mrf.mxu0  ;;  %v3902_v24 = vpop.f32.mrf.mxu1  ;;  %2161 = vmatmul.mubr.bf16.gmra.mxu1 %v2955_v13 }
 0x131   : > { %2682 = vst.msk [vmem:[%s3819_s24 + $0x1c] sm:$0xf] %vm2674_vm1, %v3160_v45  ;;  %v2256_v4 = vmax.f32 %v1939_v62, 0.0  ;;  %v1566_v6 = vadd.f32 %v3800_v22, %v1565_v0  ;;  %3055 = vmatprep.mubr.msk.bf16.mxu1 %vm1366_vm0, %v3458_v10 }
 0x132   : > { %v1567_v9 = vpop.f32.mrf.mxu0  ;;  %v1972_v32 = vpop.f32.mrf.mxu1 }
 0x133   : > { %v3161_v57 = vpack.c.bf16 %v2256_v4, %v2256_v4  ;;  %v1942_v11 = vadd.f32 %v3840_v5, %v1566_v6  ;;  %v3455_v6 = vld [vmem:[%s3597_s16 + $0x400] ss:$16 sps:$4 sm:$0xff]   ;;  %v325_v32 = vld [vmem:[%s3597_s16 + $0x498] sm:$0xff] }
 0x134   : > { %v1570_v14 = vpop.f32.mrf.mxu0  ;;  %1761 = vmatmul.mubr.bf16.gmra.mxu0 %v3440_v1  ;;  %v3913_v36 = vpop.f32.mrf.mxu1 }
 0x135   : > { %2683 = vst.msk [vmem:[%s3819_s24 + $0x20] sm:$0xf] %vm2674_vm1, %v3161_v57  ;;  %v2257_v15 = vmax.f32 %v1942_v11, 0.0  ;;  %v1571_v17 = vadd.f32 %v3800_v22, %v1570_v14  ;;  %1768 = vmatprep.mubr.bf16.mxu0 %v3447_v7  ;;  %v319_v7 = vld [vmem:[%s3597_s16 + $0x468] sm:$0xff]  ;;  %v3462_v11 = vld [vmem:[%s3597_s16 + $0x424] ss:$16 sps:$4 sm:$0xff]  }
 0x136   : > { %v1572_v20 = vpop.f32.mrf.mxu0  ;;  %v1975_v42 = vpop.f32.mrf.mxu1 }
 0x137   : > { %v3162_v5 = vpack.c.bf16 %v2257_v15, %v2257_v15  ;;  %v1947_v21 = vadd.f32 %v3849_v18, %v1571_v17  ;;  %v2967_v17 = vcombine.low %v319_v7, %v321_v8  ;;  %v3473_v20 = vld [vmem:[%s3597_s16 + $0x48c] ss:$16 sps:$4 sm:$0xff]  }
 0x138   : > { %v1573_v25 = vpop.f32.mrf.mxu0  ;;  %v3920_v46 = vpop.f32.mrf.mxu1  ;;  %2169 = vmatmul.mubr.bf16.gmra.mxu1 %v2959_v37 }
 0x139   : > { %2684 = vst.msk [vmem:[%s3819_s24 + $0x24] sm:$0xf] %vm2674_vm1, %v3162_v5  ;;  %v2258_v29 = vmax.f32 %v1947_v21, 0.0  ;;  %v1574_v16 = vadd.f32 %v3800_v22, %v1573_v25  ;;  %3056 = vmatprep.mubr.msk.bf16.mxu1 %vm1366_vm0, %v3463_v39 }
 0x13a   : > { %v1575_v34 = vpop.f32.mrf.mxu0  ;;  %v1980_v54 = vpop.f32.mrf.mxu1 }
 0x13b   : > { %v3163_v18 = vpack.c.bf16 %v2258_v29, %v2258_v29  ;;  %v1950_v35 = vadd.f32 %v3859_v31, %v1574_v16  ;;  %v3460_v16 = vld [vmem:[%s3597_s16 + $0x420] ss:$16 sps:$4 sm:$0xff]   ;;  %v329_v54 = vld [vmem:[%s3597_s16 + $0x4b8] sm:$0xff] }
 0x13c   : > { %v1578_v38 = vpop.f32.mrf.mxu0  ;;  %1769 = vmatmul.mubr.bf16.gmra.mxu0 %v3445_v26  ;;  %v3931_v58 = vpop.f32.mrf.mxu1 }
 0x13d   : > { %2685 = vst.msk [vmem:[%s3819_s24 + $0x28] sm:$0xf] %vm2674_vm1, %v3163_v18  ;;  %v2259_v23 = vmax.f32 %v1950_v35, 0.0  ;;  %v1579_v40 = vadd.f32 %v3800_v22, %v1578_v38  ;;  %1776 = vmatprep.mubr.bf16.mxu0 %v3452_v30  ;;  %v323_v30 = vld [vmem:[%s3597_s16 + $0x488] sm:$0xff]  ;;  %v3467_v35 = vld [vmem:[%s3597_s16 + $0x444] ss:$16 sps:$4 sm:$0xff]  }
 0x13e   : > { %v1580_v43 = vpop.f32.mrf.mxu0  ;;  %v1983_v0 = vpop.f32.mrf.mxu1 }
 0x13f   : > { %v3164_v31 = vpack.c.bf16 %v2259_v23, %v2259_v23  ;;  %v1955_v44 = vadd.f32 %v3866_v41, %v1579_v40  ;;  %v2971_v40 = vcombine.low %v323_v30, %v325_v32  ;;  %v3478_v43 = vld [vmem:[%s3597_s16 + $0x4ac] ss:$16 sps:$4 sm:$0xff]  }
 0x140   : > { %v1581_v47 = vpop.f32.mrf.mxu0  ;;  %v3938_v3 = vpop.f32.mrf.mxu1  ;;  %2177 = vmatmul.mubr.bf16.gmra.mxu1 %v2963_v59 }
 0x141   : > { %2686 = vst.msk [vmem:[%s3819_s24 + $0x2c] sm:$0xf] %vm2674_vm1, %v3164_v31  ;;  %v2260_v51 = vmax.f32 %v1955_v44, 0.0  ;;  %v1582_v33 = vadd.f32 %v3800_v22, %v1581_v47  ;;  %3057 = vmatprep.mubr.msk.bf16.mxu1 %vm1366_vm0, %v3468_v61 }
 0x142   : > { %v1583_v55 = vpop.f32.mrf.mxu0  ;;  %v1988_v13 = vpop.f32.mrf.mxu1 }
 0x143   : > { %v3165_v41 = vpack.c.bf16 %v2260_v51, %v2260_v51  ;;  %v1958_v56 = vadd.f32 %v3877_v53, %v1582_v33  ;;  %v3465_v33 = vld [vmem:[%s3597_s16 + $0x440] ss:$16 sps:$4 sm:$0xff]   ;;  %v333_v13 = vld [vmem:[%s3597_s16 + $0x4d8] sm:$0xff] }
 0x144   : > { %v1586_v60 = vpop.f32.mrf.mxu0  ;;  %1777 = vmatmul.mubr.bf16.gmra.mxu0 %v3450_v48  ;;  %v3949_v15 = vpop.f32.mrf.mxu1 }
 0x145   : > { %2687 = vst.msk [vmem:[%s3819_s24 + $0x30] sm:$0xf] %vm2674_vm1, %v3165_v41  ;;  %v2261_v45 = vmax.f32 %v1958_v56, 0.0  ;;  %v1587_v62 = vadd.f32 %v3800_v22, %v1586_v60  ;;  %1784 = vmatprep.mubr.bf16.mxu0 %v3457_v52  ;;  %v327_v52 = vld [vmem:[%s3597_s16 + $0x4a8] sm:$0xff]  ;;  %v3472_v56 = vld [vmem:[%s3597_s16 + $0x464] ss:$16 sps:$4 sm:$0xff]  }
 0x146   : > { %v1588_v1 = vpop.f32.mrf.mxu0  ;;  %v1991_v25 = vpop.f32.mrf.mxu1 }
 0x147   : > { %v3166_v53 = vpack.c.bf16 %v2261_v45, %v2261_v45  ;;  %v1963_v2 = vadd.f32 %v3884_v63, %v1587_v62  ;;  %v2975_v62 = vcombine.low %v327_v52, %v329_v54  ;;  %v3483_v1 = vld [vmem:[%s3597_s16 + $0x4cc] ss:$16 sps:$4 sm:$0xff]  }
 0x148   : > { %v1589_v4 = vpop.f32.mrf.mxu0  ;;  %v3956_v28 = vpop.f32.mrf.mxu1  ;;  %2185 = vmatmul.mubr.bf16.gmra.mxu1 %v2967_v17 }
 0x149   : > { %2688 = vst.msk [vmem:[%s3819_s24 + $0x34] sm:$0xf] %vm2674_vm1, %v3166_v53  ;;  %v2262_v9 = vmax.f32 %v1963_v2, 0.0  ;;  %v1590_v57 = vadd.f32 %v3800_v22, %v1589_v4  ;;  %3058 = vmatprep.mubr.msk.bf16.mxu1 %vm1366_vm0, %v3473_v20 }
 0x14a   : > { %v1591_v14 = vpop.f32.mrf.mxu0  ;;  %v1996_v37 = vpop.f32.mrf.mxu1 }
 0x14b   : > { %v3167_v63 = vpack.c.bf16 %v2262_v9, %v2262_v9  ;;  %v1966_v10 = vadd.f32 %v3895_v12, %v1590_v57  ;;  %v3470_v57 = vld [vmem:[%s3597_s16 + $0x460] ss:$16 sps:$4 sm:$0xff]   ;;  %v337_v37 = vld [vmem:[%s3597_s16 + $0x4f8] sm:$0xff] }
 0x14c   : > { %v1594_v19 = vpop.f32.mrf.mxu0  ;;  %1785 = vmatmul.mubr.bf16.gmra.mxu0 %v3455_v6  ;;  %v3967_v23 = vpop.f32.mrf.mxu1 }
 0x14d   : > { %2689 = vst.msk [vmem:[%s3819_s24 + $0x38] sm:$0xf] %vm2674_vm1, %v3167_v63  ;;  %v2263_v5 = vmax.f32 %v1966_v10, 0.0  ;;  %v1595_v21 = vadd.f32 %v3800_v22, %v1594_v19  ;;  %1792 = vmatprep.mubr.bf16.mxu0 %v3462_v11  ;;  %v331_v11 = vld [vmem:[%s3597_s16 + $0x4c8] sm:$0xff]  ;;  %v3477_v10 = vld [vmem:[%s3597_s16 + $0x484] ss:$16 sps:$4 sm:$0xff]  }
 0x14e   : > { %v1596_v26 = vpop.f32.mrf.mxu0  ;;  %v1999_v47 = vpop.f32.mrf.mxu1 }
 0x14f   : > { %v3168_v12 = vpack.c.bf16 %v2263_v5, %v2263_v5  ;;  %v1971_v27 = vadd.f32 %v3902_v24, %v1595_v21  ;;  %v2979_v21 = vcombine.low %v331_v11, %v333_v13  ;;  %v3488_v26 = vld [vmem:[%s3597_s16 + $0x4ec] ss:$16 sps:$4 sm:$0xff]  }
 0x150   : > { %v1597_v29 = vpop.f32.mrf.mxu0  ;;  %v3974_v50 = vpop.f32.mrf.mxu1  ;;  %2193 = vmatmul.mubr.bf16.gmra.mxu1 %v2971_v40 }
 0x151   : > { %2690 = vst.msk [vmem:[%s3819_s24 + $0x3c] sm:$0xf] %vm2674_vm1, %v3168_v12  ;;  %v2264_v34 = vmax.f32 %v1971_v27, 0.0  ;;  %v1598_v18 = vadd.f32 %v3800_v22, %v1597_v29  ;;  %3059 = vmatprep.mubr.msk.bf16.mxu1 %vm1366_vm0, %v3478_v43 }
 0x152   : > { %v1599_v38 = vpop.f32.mrf.mxu0  ;;  %v2004_v59 = vpop.f32.mrf.mxu1 }
 0x153   : > { %v3169_v24 = vpack.c.bf16 %v2264_v34, %v2264_v34  ;;  %v1974_v39 = vadd.f32 %v3913_v36, %v1598_v18  ;;  %v3475_v18 = vld [vmem:[%s3597_s16 + $0x480] ss:$16 sps:$4 sm:$0xff]   ;;  %v341_v59 = vld [vmem:[%s3597_s16 + $0x518] sm:$0xff] }
 0x154   : > { %v1602_v42 = vpop.f32.mrf.mxu0  ;;  %1793 = vmatmul.mubr.bf16.gmra.mxu0 %v3460_v16  ;;  %v3985_v45 = vpop.f32.mrf.mxu1 }
 0x155   : > { %2691 = vst.msk [vmem:[%s3819_s24 + $0x40] sm:$0xf] %vm2674_vm1, %v3169_v24  ;;  %v2265_v31 = vmax.f32 %v1974_v39, 0.0  ;;  %v1603_v44 = vadd.f32 %v3800_v22, %v1602_v42  ;;  %1800 = vmatprep.mubr.bf16.mxu0 %v3467_v35  ;;  %v335_v35 = vld [vmem:[%s3597_s16 + $0x4e8] sm:$0xff]  ;;  %v3482_v39 = vld [vmem:[%s3597_s16 + $0x4a4] ss:$16 sps:$4 sm:$0xff]  }
 0x156   : > { %v1604_v48 = vpop.f32.mrf.mxu0  ;;  %v2007_v4 = vpop.f32.mrf.mxu1 }
 0x157   : > { %v3170_v36 = vpack.c.bf16 %v2265_v31, %v2265_v31  ;;  %v1979_v49 = vadd.f32 %v3920_v46, %v1603_v44  ;;  %v2983_v44 = vcombine.low %v335_v35, %v337_v37  ;;  %v3493_v48 = vld [vmem:[%s3597_s16 + $0x50c] ss:$16 sps:$4 sm:$0xff]  }
 0x158   : > { %v1605_v51 = vpop.f32.mrf.mxu0  ;;  %v3992_v8 = vpop.f32.mrf.mxu1  ;;  %2201 = vmatmul.mubr.bf16.gmra.mxu1 %v2975_v62 }
 0x159   : > { %2692 = vst.msk [vmem:[%s3819_s24 + $0x44] sm:$0xf] %vm2674_vm1, %v3170_v36  ;;  %v2266_v55 = vmax.f32 %v1979_v49, 0.0  ;;  %v1606_v41 = vadd.f32 %v3800_v22, %v1605_v51  ;;  %3060 = vmatprep.mubr.msk.bf16.mxu1 %vm1366_vm0, %v3483_v1 }
 0x15a   : > { %v1607_v60 = vpop.f32.mrf.mxu0  ;;  %v2012_v17 = vpop.f32.mrf.mxu1 }
 0x15b   : > { %v3171_v46 = vpack.c.bf16 %v2266_v55, %v2266_v55  ;;  %v1982_v61 = vadd.f32 %v3931_v58, %v1606_v41  ;;  %v3480_v41 = vld [vmem:[%s3597_s16 + $0x4a0] ss:$16 sps:$4 sm:$0xff]   ;;  %v345_v17 = vld [vmem:[%s3597_s16 + $0x538] sm:$0xff] }
 0x15c   : > { %v1610_v0 = vpop.f32.mrf.mxu0  ;;  %1801 = vmatmul.mubr.bf16.gmra.mxu0 %v3465_v33  ;;  %v4003_v5 = vpop.f32.mrf.mxu1 }
 0x15d   : > { %2693 = vst.msk [vmem:[%s3819_s24 + $0x48] sm:$0xf] %vm2674_vm1, %v3171_v46  ;;  %v2267_v53 = vmax.f32 %v1982_v61, 0.0  ;;  %v1611_v2 = vadd.f32 %v3800_v22, %v1610_v0  ;;  %1808 = vmatprep.mubr.bf16.mxu0 %v3472_v56  ;;  %v339_v56 = vld [vmem:[%s3597_s16 + $0x508] sm:$0xff]  ;;  %v3487_v61 = vld [vmem:[%s3597_s16 + $0x4c4] ss:$16 sps:$4 sm:$0xff]  }
 0x15e   : > { %v1612_v6 = vpop.f32.mrf.mxu0  ;;  %v2015_v29 = vpop.f32.mrf.mxu1 }
 0x15f   : > { %v3172_v58 = vpack.c.bf16 %v2267_v53, %v2267_v53  ;;  %v1987_v7 = vadd.f32 %v3938_v3, %v1611_v2  ;;  %v2987_v2 = vcombine.low %v339_v56, %v341_v59  ;;  %v3498_v6 = vld [vmem:[%s3597_s16 + $0x52c] ss:$16 sps:$4 sm:$0xff]   ;;  %v3495_v59 = vld [vmem:[%s3597_s16 + $0x500] ss:$16 sps:$4 sm:$0xff]  }
 0x160   : > { %v1613_v9 = vpop.f32.mrf.mxu0  ;;  %v4010_v32 = vpop.f32.mrf.mxu1  ;;  %2209 = vmatmul.mubr.bf16.gmra.mxu1 %v2979_v21 }
 0x161   : > { %2694 = vst.msk [vmem:[%s3819_s24 + $0x4c] sm:$0xf] %vm2674_vm1, %v3172_v58  ;;  %v2268_v14 = vmax.f32 %v1987_v7, 0.0  ;;  %v1614_v63 = vadd.f32 %v3800_v22, %v1613_v9  ;;  %3061 = vmatprep.mubr.msk.bf16.mxu1 %vm1366_vm0, %v3488_v26 }
 0x162   : > { %v1615_v19 = vpop.f32.mrf.mxu0  ;;  %v2020_v40 = vpop.f32.mrf.mxu1 }
 0x163   : > { %v3173_v3 = vpack.c.bf16 %v2268_v14, %v2268_v14  ;;  %v1990_v20 = vadd.f32 %v3949_v15, %v1614_v63  ;;  %v3485_v63 = vld [vmem:[%s3597_s16 + $0x4c0] ss:$16 sps:$4 sm:$0xff]  }
 0x164   : > { %v1618_v25 = vpop.f32.mrf.mxu0  ;;  %1809 = vmatmul.mubr.bf16.gmra.mxu0 %v3470_v57  ;;  %v4021_v31 = vpop.f32.mrf.mxu1 }
 0x165   : > { %2695 = vst.msk [vmem:[%s3819_s24 + $0x50] sm:$0xf] %vm2674_vm1, %v3173_v3  ;;  %v2269_v12 = vmax.f32 %v1990_v20, 0.0  ;;  %v1619_v27 = vadd.f32 %v3800_v22, %v1618_v25  ;;  %1816 = vmatprep.mubr.bf16.mxu0 %v3477_v10  ;;  %v343_v10 = vld [vmem:[%s3597_s16 + $0x528] sm:$0xff]  ;;  %v3492_v20 = vld [vmem:[%s3597_s16 + $0x4e4] ss:$16 sps:$4 sm:$0xff]  }
 0x166   : > { %v1620_v16 = vpop.f32.mrf.mxu0  ;;  %v2023_v51 = vpop.f32.mrf.mxu1  ;;  %v347_v25 = vld [vmem:[%s3597_s16 + $0x548] sm:$0xff]  ;;  %v2991_v29 = vcombine.low %v343_v10, %v345_v17 }
 0x167   : > { %v3174_v15 = vpack.c.bf16 %v2269_v12, %v2269_v12  ;;  %v1995_v30 = vadd.f32 %v3956_v28, %v1619_v27 }
 0x168   : > { %v1621_v34 = vpop.f32.mrf.mxu0  ;;  %v4028_v54 = vpop.f32.mrf.mxu1  ;;  %2217 = vmatmul.mubr.bf16.gmra.mxu1 %v2983_v44 }
 0x169   : > { %2696 = vst.msk [vmem:[%s3819_s24 + $0x54] sm:$0xf] %vm2674_vm1, %v3174_v15  ;;  %v2270_v38 = vmax.f32 %v1995_v30, 0.0  ;;  %v1622_v24 = vadd.f32 %v3800_v22, %v1621_v34  ;;  %3062 = vmatprep.mubr.msk.bf16.mxu1 %vm1366_vm0, %v3493_v48  ;;  %v2996_v15 = vcombine.high %v347_v25, %v347_v25 }
 0x16a   : > { %v1623_v42 = vpop.f32.mrf.mxu0  ;;  %v2028_v62 = vpop.f32.mrf.mxu1 }
 0x16b   : > { %v3175_v28 = vpack.c.bf16 %v2270_v38, %v2270_v38  ;;  %v1998_v43 = vadd.f32 %v3967_v23, %v1622_v24 }
 0x16c   : > { %v1626_v47 = vpop.f32.mrf.mxu0  ;;  %1817 = vmatmul.mubr.bf16.gmra.mxu0 %v3475_v18  ;;  %v4039_v53 = vpop.f32.mrf.mxu1 }
 0x16d   : > { %2697 = vst.msk [vmem:[%s3819_s24 + $0x58] sm:$0xf] %vm2674_vm1, %v3175_v28  ;;  %v2271_v36 = vmax.f32 %v1998_v43, 0.0  ;;  %v1627_v49 = vadd.f32 %v3800_v22, %v1626_v47  ;;  %1824 = vmatprep.mubr.bf16.mxu0 %v3482_v39  ;;  %v3490_v39 = vld [vmem:[%s3597_s16 + $0x4e0] ss:$16 sps:$4 sm:$0xff]  }
 0x16e   : > { %v1628_v33 = vpop.f32.mrf.mxu0  ;;  %v2031_v9 = vpop.f32.mrf.mxu1  ;;  %v3497_v28 = vld [vmem:[%s3597_s16 + $0x504] ss:$16 sps:$4 sm:$0xff]  }
 0x16f   : > { %v3176_v23 = vpack.c.bf16 %v2271_v36, %v2271_v36  ;;  %v2003_v52 = vadd.f32 %v3974_v50, %v1627_v49  ;;  %v2995_v36 = vcombine.low %v347_v25, %v347_v25  ;;  %v346_v9 = vld [vmem:[%s3597_s16 + $0x540] sm:$0xff] }
 0x170   : > { %v1629_v55 = vpop.f32.mrf.mxu0  ;;  %v4046_v13 = vpop.f32.mrf.mxu1  ;;  %2225 = vmatmul.mubr.bf16.gmra.mxu1 %v2987_v2  ;;  %v2994_v17 = vcombine.high %v346_v9, %v346_v9 }
 0x171   : > { %2698 = vst.msk [vmem:[%s3819_s24 + $0x5c] sm:$0xf] %vm2674_vm1, %v3176_v23  ;;  %v2272_v60 = vmax.f32 %v2003_v52, 0.0  ;;  %v1630_v46 = vadd.f32 %v3800_v22, %v1629_v55  ;;  %3063 = vmatprep.mubr.msk.bf16.mxu1 %vm1366_vm0, %v3498_v6 }
 0x172   : > { %v1631_v0 = vpop.f32.mrf.mxu0  ;;  %v2036_v21 = vpop.f32.mrf.mxu1 }
 0x173   : > { %v3177_v50 = vpack.c.bf16 %v2272_v60, %v2272_v60  ;;  %v2006_v1 = vadd.f32 %v3985_v45, %v1630_v46 }
 0x174   : > { %v1634_v4 = vpop.f32.mrf.mxu0  ;;  %1825 = vmatmul.mubr.bf16.gmra.mxu0 %v3480_v41  ;;  %v4058_v27 = vpop.f32.mrf.mxu1 }
 0x175   : > { %2699 = vst.msk [vmem:[%s3819_s24 + $0x60] sm:$0xf] %vm2674_vm1, %v3177_v50  ;;  %v2273_v58 = vmax.f32 %v2006_v1, 0.0  ;;  %v1635_v7 = vadd.f32 %v3800_v22, %v1634_v4  ;;  %1832 = vmatprep.mubr.bf16.mxu0 %v3487_v61  ;;  %v3502_v61 = vld [vmem:[%s3597_s16 + $0x524] ss:$16 sps:$4 sm:$0xff]  }
 0x176   : > { %v1636_v45 = vpop.f32.mrf.mxu0  ;;  %v2039_v18 = vpop.f32.mrf.mxu1 }
 0x177   : > { %v3178_v57 = vpack.c.bf16 %v2273_v58, %v2273_v58  ;;  %v2011_v11 = vadd.f32 %v3992_v8, %v1635_v7  ;;  %v2993_v18 = vcombine.low %v346_v9, %v346_v9 }
 0x178   : > { %v1637_v14 = vpop.f32.mrf.mxu0  ;;  %v4064_v38 = vpop.f32.mrf.mxu1  ;;  %2233 = vmatmul.mubr.bf16.gmra.mxu1 %v2991_v29 }
 0x179   : > { %2700 = vst.msk [vmem:[%s3819_s24 + $0x64] sm:$0xf] %vm2674_vm1, %v3178_v57  ;;  %v2274_v19 = vmax.f32 %v2011_v11, 0.0  ;;  %v1638_v3 = vadd.f32 %v3800_v22, %v1637_v14  ;;  %3064 = vmatprep.mubr.msk.bf16.mxu1 %vm1366_vm0, %v2996_v15 }
 0x17a   : > { %v1639_v26 = vpop.f32.mrf.mxu0  ;;  %v2044_v43 = vpop.f32.mrf.mxu1 }
 0x17b   : > { %v3179_v8 = vpack.c.bf16 %v2274_v19, %v2274_v19  ;;  %v2014_v12 = vadd.f32 %v4003_v5, %v1638_v3 }
 0x17c   : > { %v1642_v16 = vpop.f32.mrf.mxu0  ;;  %1833 = vmatmul.mubr.bf16.gmra.mxu0 %v3485_v63 }
 0x17d   : > { %2701 = vst.msk [vmem:[%s3819_s24 + $0x68] sm:$0xf] %vm2674_vm1, %v3179_v8  ;;  %v2275_v30 = vmax.f32 %v2014_v12, 0.0  ;;  %v1643_v34 = vadd.f32 %v3800_v22, %v1642_v16  ;;  %1840 = vmatprep.mubr.bf16.mxu0 %v3492_v20 }
 0x17e   : > { %v1644_v35 = vpop.f32.mrf.mxu0 }
 0x17f   : > { %v3180_v37 = vpack.c.bf16 %v2275_v30, %v2275_v30  ;;  %v2019_v5 = vadd.f32 %v4010_v32, %v1643_v34  ;;  %v4073_v32 = vpop.f32.mrf.mxu1 }
 0x180   : > { %v1645_v24 = vpop.f32.mrf.mxu0  ;;  %2241 = vmatmul.mubr.bf16.gmra.mxu1 %v2995_v36 }
 0x181   : > { %2702 = vst.msk [vmem:[%s3819_s24 + $0x6c] sm:$0xf] %vm2674_vm1, %v3180_v37  ;;  %v2276_v40 = vmax.f32 %v2019_v5, 0.0  ;;  %v1646_v42 = vadd.f32 %v3800_v22, %v1645_v24  ;;  %v2047_v23 = vpop.f32.mrf.mxu1 }
 0x182   : > { %v1647_v44 = vpop.f32.mrf.mxu0 }
 0x183   : > { %v3181_v47 = vpack.c.bf16 %v2276_v40, %v2276_v40  ;;  %v2022_v48 = vadd.f32 %v4021_v31, %v1646_v42  ;;  %v4079_v31 = vpop.f32.mrf.mxu1 }
 0x184   : > { %v1650_v49 = vpop.f32.mrf.mxu0  ;;  %1841 = vmatmul.mubr.bf16.gmra.mxu0 %v3490_v39 }
 0x185   : > { %2703 = vst.msk [vmem:[%s3819_s24 + $0x70] sm:$0xf] %vm2674_vm1, %v3181_v47  ;;  %v2277_v51 = vmax.f32 %v2022_v48, 0.0  ;;  %v1651_v33 = vadd.f32 %v3800_v22, %v1650_v49  ;;  %1848 = vmatprep.mubr.bf16.mxu0 %v3497_v28  ;;  %v2052_v62 = vpop.f32.mrf.mxu1 }
 0x186   : > { %v1652_v52 = vpop.f32.mrf.mxu0 }
 0x187   : > { %v3182_v55 = vpack.c.bf16 %v2277_v51, %v2277_v51  ;;  %v2027_v41 = vadd.f32 %v4028_v54, %v1651_v33  ;;  %v2053_v54 = vpop.f32.mrf.mxu1 }
 0x188   : > { %v1653_v56 = vpop.f32.mrf.mxu0 }
 0x189   : > { %2704 = vst.msk [vmem:[%s3819_s24 + $0x74] sm:$0xf] %vm2674_vm1, %v3182_v55  ;;  %v2278_v60 = vmax.f32 %v2027_v41, 0.0  ;;  %v1654_v46 = vadd.f32 %v3800_v22, %v1653_v56  ;;  %v2055_v58 = vpop.f32.mrf.mxu1 }
 0x18a   : > { %v1655_v0 = vpop.f32.mrf.mxu0 }
 0x18b   : > { %v3183_v50 = vpack.c.bf16 %v2278_v60, %v2278_v60  ;;  %v2030_v1 = vadd.f32 %v4039_v53, %v1654_v46  ;;  %v2058_v11 = vpop.f32.mrf.mxu1  ;;  %v3500_v53 = vld [vmem:[%s3597_s16 + $0x520] ss:$16 sps:$4 sm:$0xff]  }
 0x18c   : > { %v1658_v2 = vpop.f32.mrf.mxu0  ;;  %1849 = vmatmul.mubr.bf16.gmra.mxu0 %v3495_v59 }
 0x18d   : > { %2705 = vst.msk [vmem:[%s3819_s24 + $0x78] sm:$0xf] %vm2674_vm1, %v3183_v50  ;;  %v2279_v4 = vmax.f32 %v2030_v1, 0.0  ;;  %v1659_v6 = vadd.f32 %v3800_v22, %v1658_v2  ;;  %1856 = vmatprep.mubr.bf16.mxu0 %v3502_v61  ;;  %v2060_v19 = vpop.f32.mrf.mxu1 }
 0x18e   : > { %v1660_v7 = vpop.f32.mrf.mxu0 }
 0x18f   : > { %v3184_v45 = vpack.c.bf16 %v2279_v4, %v2279_v4  ;;  %v2035_v57 = vadd.f32 %v4046_v13, %v1659_v6  ;;  %v2061_v25 = vpop.f32.mrf.mxu1 }
 0x190   : > { %v1661_v14 = vpop.f32.mrf.mxu0 }
 0x191   : > { %2706 = vst.msk [vmem:[%s3819_s24 + $0x7c] sm:$0xf] %vm2674_vm1, %v3184_v45  ;;  %v2280_v63 = vmax.f32 %v2035_v57, 0.0  ;;  %v1662_v10 = vadd.f32 %v3800_v22, %v1661_v14  ;;  %v2063_v12 = vpop.f32.mrf.mxu1 }
 0x192   : > { %v1663_v3 = vpop.f32.mrf.mxu0 }
 0x193   : > { %v3185_v20 = vpack.c.bf16 %v2280_v63, %v2280_v63  ;;  %v2038_v21 = vadd.f32 %v4058_v27, %v1662_v10  ;;  %v2066_v30 = vpop.f32.mrf.mxu1 }
 0x194   : > { %v1666_v26 = vpop.f32.mrf.mxu0  ;;  %1857 = vmatmul.mubr.bf16.gmra.mxu0 %v3500_v53 }
 0x195   : > { %2707 = vst.msk [vmem:[%s3819_s24 + $0x80] sm:$0xf] %vm2674_vm1, %v3185_v20  ;;  %v2281_v13 = vmax.f32 %v2038_v21, 0.0  ;;  %v1667_v8 = vadd.f32 %v3800_v22, %v1666_v26  ;;  %1864 = vmatprep.mubr.bf16.mxu0 %v2994_v17  ;;  %v2068_v37 = vpop.f32.mrf.mxu1 }
 0x196   : > { %v1668_v29 = vpop.f32.mrf.mxu0 }
 0x197   : > { %v3186_v16 = vpack.c.bf16 %v2281_v13, %v2281_v13  ;;  %v2043_v15 = vadd.f32 %v4064_v38, %v1667_v8  ;;  %v2069_v40 = vpop.f32.mrf.mxu1 }
 0x198   : > { %v1669_v34 = vpop.f32.mrf.mxu0 }
 0x199   : > { %2708 = vst.msk [vmem:[%s3819_s24 + $0x84] sm:$0xf] %vm2674_vm1, %v3186_v16  ;;  %v2282_v27 = vmax.f32 %v2043_v15, 0.0  ;;  %v1670_v35 = vadd.f32 %v3800_v22, %v1669_v34  ;;  %v2071_v43 = vpop.f32.mrf.mxu1 }
 0x19a   : > { %v1671_v5 = vpop.f32.mrf.mxu0 }
 0x19b   : > { %v3187_v24 = vpack.c.bf16 %v2282_v27, %v2282_v27  ;;  %v2046_v39 = vadd.f32 %v4073_v32, %v1670_v35  ;;  %v2074_v36 = vpop.f32.mrf.mxu1 }
 0x19c   : > { %v1674_v42 = vpop.f32.mrf.mxu0  ;;  %1865 = vmatmul.mubr.bf16.gmra.mxu0 %v2993_v18 }
 0x19d   : > { %2709 = vst.msk [vmem:[%s3819_s24 + $0x88] sm:$0xf] %vm2674_vm1, %v3187_v24  ;;  %v2283_v38 = vmax.f32 %v2046_v39, 0.0  ;;  %v1675_v28 = vadd.f32 %v3800_v22, %v1674_v42  ;;  %v2076_v33 = vpop.f32.mrf.mxu1 }
 0x19e   : > { %v1676_v44 = vpop.f32.mrf.mxu0 }
 0x19f   : > { %v3188_v47 = vpack.c.bf16 %v2283_v38, %v2283_v38  ;;  %v2051_v48 = vadd.f32 %v4079_v31, %v1675_v28  ;;  %v2077_v41 = vpop.f32.mrf.mxu1  ;;  %v4117_v31 = vld [vmem:[%s4267_s2] ss:$0 sm:$0xff] }
 0x1a0   : > { %v1677_v49 = vpop.f32.mrf.mxu0 }
 0x1a1   : > { %2710 = vst.msk [vmem:[%s3819_s24 + $0x8c] sm:$0xf] %vm2674_vm1, %v3188_v47  ;;  %v2284_v51 = vmax.f32 %v2051_v48, 0.0  ;;  %v1678_v32 = vadd.f32 %v3800_v22, %v1677_v49  ;;  %v2079_v46 = vpop.f32.mrf.mxu1 }
 0x1a2   : > { %v1679_v23 = vpop.f32.mrf.mxu0 }
 0x1a3   : > { %v3189_v52 = vpack.c.bf16 %v2284_v51, %v2284_v51  ;;  %v2054_v55 = vadd.f32 %v2053_v54, %v1678_v32  ;;  %v2082_v0 = vpop.f32.mrf.mxu1 }
 0x1a4   : > { %v1682_v56 = vpop.f32.mrf.mxu0 }
 0x1a5   : > { %2711 = vst.msk [vmem:[%s3819_s24 + $0x90] sm:$0xf] %vm2674_vm1, %v3189_v52  ;;  %v2285_v59 = vmax.f32 %v2054_v55, 0.0  ;;  %v1683_v60 = vadd.f32 %v4117_v31, %v1682_v56  ;;  %v2084_v2 = vpop.f32.mrf.mxu1 }
 0x1a6   : > { %v1684_v22 = vpop.f32.mrf.mxu0 }
 0x1a7   : > { %v3190_v61 = vpack.c.bf16 %v2285_v59, %v2285_v59  ;;  %v2059_v62 = vadd.f32 %v2058_v11, %v1683_v60  ;;  %v2085_v7 = vpop.f32.mrf.mxu1 }
 0x1a8   : > { %v1685_v50 = vpop.f32.mrf.mxu0 }
 0x1a9   : > { %2712 = vst.msk [vmem:[%s3819_s24 + $0x94] sm:$0xf] %vm2674_vm1, %v3190_v61  ;;  %v2286_v1 = vmax.f32 %v2059_v62, 0.0  ;;  %v1686_v54 = vadd.f32 %v4117_v31, %v1685_v50  ;;  %v2087_v11 = vpop.f32.mrf.mxu1 }
 0x1aa   : > { %v1687_v4 = vpop.f32.mrf.mxu0 }
 0x1ab   : > { %v3191_v6 = vpack.c.bf16 %v2286_v1, %v2286_v1  ;;  %v2062_v58 = vadd.f32 %v2061_v25, %v1686_v54  ;;  %v2090_v10 = vpop.f32.mrf.mxu1 }
 0x1ac   : > { %v1690_v9 = vpop.f32.mrf.mxu0 }
 0x1ad   : > { %2713 = vst.msk [vmem:[%s3819_s24 + $0x98] sm:$0xf] %vm2674_vm1, %v3191_v6  ;;  %v2287_v45 = vmax.f32 %v2062_v58, 0.0  ;;  %v1691_v57 = vadd.f32 %v4117_v31, %v1690_v9  ;;  %v2092_v20 = vpop.f32.mrf.mxu1 }
 0x1ae   : > { %v1692_v14 = vpop.f32.mrf.mxu0 }
 0x1af   : > { %v3192_v53 = vpack.c.bf16 %v2287_v45, %v2287_v45  ;;  %v2067_v63 = vadd.f32 %v2066_v30, %v1691_v57  ;;  %v2093_v13 = vpop.f32.mrf.mxu1 }
 0x1b0   : > { %v1693_v17 = vpop.f32.mrf.mxu0 }
 0x1b1   : > { %2714 = vst.msk [vmem:[%s3819_s24 + $0x9c] sm:$0xf] %vm2674_vm1, %v3192_v53  ;;  %v2288_v19 = vmax.f32 %v2067_v63, 0.0  ;;  %v1694_v3 = vadd.f32 %v4117_v31, %v1693_v17  ;;  %v2095_v16 = vpop.f32.mrf.mxu1 }
 0x1b2   : > { %v1695_v21 = vpop.f32.mrf.mxu0 }
 0x1b3   : > { %v3193_v25 = vpack.c.bf16 %v2288_v19, %v2288_v19  ;;  %v2070_v26 = vadd.f32 %v2069_v40, %v1694_v3  ;;  %v2098_v18 = vpop.f32.mrf.mxu1 }
 0x1b4   : > { %v1698_v8 = vpop.f32.mrf.mxu0 }
 0x1b5   : > { %2715 = vst.msk [vmem:[%s3819_s24 + $0xa0] sm:$0xf] %vm2674_vm1, %v3193_v25  ;;  %v2289_v12 = vmax.f32 %v2070_v26, 0.0  ;;  %v1699_v29 = vadd.f32 %v4117_v31, %v1698_v8  ;;  %v2100_v5 = vpop.f32.mrf.mxu1 }
 0x1b6   : > { %v1700_v15 = vpop.f32.mrf.mxu0 }
 0x1b7   : > { %v3194_v30 = vpack.c.bf16 %v2289_v12, %v2289_v12  ;;  %v2075_v34 = vadd.f32 %v2074_v36, %v1699_v29  ;;  %v2101_v42 = vpop.f32.mrf.mxu1 }
 0x1b8   : > { %v1701_v27 = vpop.f32.mrf.mxu0 }
 0x1b9   : > { %2716 = vst.msk [vmem:[%s3819_s24 + $0xa4] sm:$0xf] %vm2674_vm1, %v3194_v30  ;;  %v2290_v35 = vmax.f32 %v2075_v34, 0.0  ;;  %v1702_v37 = vadd.f32 %v4117_v31, %v1701_v27  ;;  %v2103_v44 = vpop.f32.mrf.mxu1 }
 0x1ba   : > { %v1703_v24 = vpop.f32.mrf.mxu0 }
 0x1bb   : > { %v3195_v39 = vpack.c.bf16 %v2290_v35, %v2290_v35  ;;  %v2078_v40 = vadd.f32 %v2077_v41, %v1702_v37  ;;  %v2106_v49 = vpop.f32.mrf.mxu1 }
 0x1bc   : > { %v1706_v38 = vpop.f32.mrf.mxu0 }
 0x1bd   : > { %2717 = vst.msk [vmem:[%s3819_s24 + $0xa8] sm:$0xf] %vm2674_vm1, %v3195_v39  ;;  %v2291_v28 = vmax.f32 %v2078_v40, 0.0  ;;  %v1707_v43 = vadd.f32 %v4117_v31, %v1706_v38  ;;  %v2108_v23 = vpop.f32.mrf.mxu1 }
 0x1be   : > { %v1708_v47 = vpop.f32.mrf.mxu0 }
 0x1bf   : > { %v3196_v48 = vpack.c.bf16 %v2291_v28, %v2291_v28  ;;  %v2083_v36 = vadd.f32 %v2082_v0, %v1707_v43  ;;  %v2109_v56 = vpop.f32.mrf.mxu1 }
 0x1c0   : > { %v1709_v51 = vpop.f32.mrf.mxu0 }
 0x1c1   : > { %2718 = vst.msk [vmem:[%s3819_s24 + $0xac] sm:$0xf] %vm2674_vm1, %v3196_v48  ;;  %v2292_v32 = vmax.f32 %v2083_v36, 0.0  ;;  %v1710_v33 = vadd.f32 %v4117_v31, %v1709_v51  ;;  %v2111_v22 = vpop.f32.mrf.mxu1 }
 0x1c2   : > { %v1711_v52 = vpop.f32.mrf.mxu0 }
 0x1c3   : > { %v3197_v55 = vpack.c.bf16 %v2292_v32, %v2292_v32  ;;  %v2086_v41 = vadd.f32 %v2085_v7, %v1710_v33  ;;  %v2114_v50 = vpop.f32.mrf.mxu1 }
 0x1c4   : > { %v1714_v59 = vpop.f32.mrf.mxu0 }
 0x1c5   : > { %2719 = vst.msk [vmem:[%s3819_s24 + $0xb0] sm:$0xf] %vm2674_vm1, %v3197_v55  ;;  %v2293_v60 = vmax.f32 %v2086_v41, 0.0  ;;  %v1715_v46 = vadd.f32 %v4117_v31, %v1714_v59  ;;  %v2116_v4 = vpop.f32.mrf.mxu1 }
 0x1c6   : > { %v1716_v61 = vpop.f32.mrf.mxu0 }
 0x1c7   : > { %v3198_v62 = vpack.c.bf16 %v2293_v60, %v2293_v60  ;;  %v2091_v0 = vadd.f32 %v2090_v10, %v1715_v46  ;;  %v2117_v9 = vpop.f32.mrf.mxu1 }
 0x1c8   : > { %v1717_v1 = vpop.f32.mrf.mxu0 }
 0x1c9   : > { %2720 = vst.msk [vmem:[%s3819_s24 + $0xb4] sm:$0xf] %vm2674_vm1, %v3198_v62  ;;  %v2294_v54 = vmax.f32 %v2091_v0, 0.0  ;;  %v1718_v2 = vadd.f32 %v4117_v31, %v1717_v1  ;;  %v2119_v14 = vpop.f32.mrf.mxu1 }
 0x1ca   : > { %v1719_v6 = vpop.f32.mrf.mxu0 }
 0x1cb   : > { %v3199_v58 = vpack.c.bf16 %v2294_v54, %v2294_v54  ;;  %v2094_v7 = vadd.f32 %v2093_v13, %v1718_v2  ;;  %v2122_v17 = vpop.f32.mrf.mxu1 }
 0x1cc   : > { %v1722_v45 = vpop.f32.mrf.mxu0 }
 0x1cd   : > { %2721 = vst.msk [vmem:[%s3819_s24 + $0xb8] sm:$0xf] %vm2674_vm1, %v3199_v58  ;;  %v2295_v57 = vmax.f32 %v2094_v7, 0.0  ;;  %v1723_v11 = vadd.f32 %v4117_v31, %v1722_v45  ;;  %v2124_v21 = vpop.f32.mrf.mxu1 }
 0x1ce   : > { %v1724_v53 = vpop.f32.mrf.mxu0 }
 0x1cf   : > { %v3200_v63 = vpack.c.bf16 %v2295_v57, %v2295_v57  ;;  %v2099_v10 = vadd.f32 %v2098_v18, %v1723_v11  ;;  %v2125_v8 = vpop.f32.mrf.mxu1 }
 0x1d0   : > { %v1725_v19 = vpop.f32.mrf.mxu0 }
 0x1d1   : > { %2722 = vst.msk [vmem:[%s3819_s24 + $0xbc] sm:$0xf] %vm2674_vm1, %v3200_v63  ;;  %v2296_v3 = vmax.f32 %v2099_v10, 0.0  ;;  %v1726_v20 = vadd.f32 %v4117_v31, %v1725_v19  ;;  %v2127_v15 = vpop.f32.mrf.mxu1 }
 0x1d2   : > { %v1727_v25 = vpop.f32.mrf.mxu0 }
 0x1d3   : > { %v3201_v26 = vpack.c.bf16 %v2296_v3, %v2296_v3  ;;  %v2102_v13 = vadd.f32 %v2101_v42, %v1726_v20  ;;  %v2130_v27 = vpop.f32.mrf.mxu1 }
 0x1d4   : > { %v1730_v12 = vpop.f32.mrf.mxu0 }
 0x1d5   : > { %2723 = vst.msk [vmem:[%s3819_s24 + $0xc0] sm:$0xf] %vm2674_vm1, %v3201_v26  ;;  %v2297_v29 = vmax.f32 %v2102_v13, 0.0  ;;  %v1731_v16 = vadd.f32 %v4117_v31, %v1730_v12  ;;  %v2132_v24 = vpop.f32.mrf.mxu1 }
 0x1d6   : > { %v1732_v30 = vpop.f32.mrf.mxu0 }
 0x1d7   : > { %v3202_v34 = vpack.c.bf16 %v2297_v29, %v2297_v29  ;;  %v2107_v18 = vadd.f32 %v2106_v49, %v1731_v16  ;;  %v2133_v38 = vpop.f32.mrf.mxu1 }
 0x1d8   : > { %v1733_v35 = vpop.f32.mrf.mxu0 }
 0x1d9   : > { %2724 = vst.msk [vmem:[%s3819_s24 + $0xc4] sm:$0xf] %vm2674_vm1, %v3202_v34  ;;  %v2298_v37 = vmax.f32 %v2107_v18, 0.0  ;;  %v1734_v5 = vadd.f32 %v4117_v31, %v1733_v35  ;;  %v2135_v47 = vpop.f32.mrf.mxu1 }
 0x1da   : > { %v1735_v39 = vpop.f32.mrf.mxu0 }
 0x1db   : > { %v3203_v40 = vpack.c.bf16 %v2298_v37, %v2298_v37  ;;  %v2110_v42 = vadd.f32 %v2109_v56, %v1734_v5  ;;  %v2138_v51 = vpop.f32.mrf.mxu1 }
 0x1dc   : > { %v1738_v28 = vpop.f32.mrf.mxu0 }
 0x1dd   : > { %2725 = vst.msk [vmem:[%s3819_s24 + $0xc8] sm:$0xf] %vm2674_vm1, %v3203_v40  ;;  %v2299_v43 = vmax.f32 %v2110_v42, 0.0  ;;  %v1739_v44 = vadd.f32 %v4117_v31, %v1738_v28  ;;  %v2140_v52 = vpop.f32.mrf.mxu1 }
 0x1de   : > { %v1740_v48 = vpop.f32.mrf.mxu0 }
 0x1df   : > { %v3204_v36 = vpack.c.bf16 %v2299_v43, %v2299_v43  ;;  %v2115_v49 = vadd.f32 %v2114_v50, %v1739_v44  ;;  %v2141_v59 = vpop.f32.mrf.mxu1 }
 0x1e0   : > { %v1741_v32 = vpop.f32.mrf.mxu0 }
 0x1e1   : > { %2726 = vst.msk [vmem:[%s3819_s24 + $0xcc] sm:$0xf] %vm2674_vm1, %v3204_v36  ;;  %v2300_v33 = vmax.f32 %v2115_v49, 0.0  ;;  %v1742_v23 = vadd.f32 %v4117_v31, %v1741_v32  ;;  %v2143_v61 = vpop.f32.mrf.mxu1 }
 0x1e2   : > { %v1743_v55 = vpop.f32.mrf.mxu0 }
 0x1e3   : > { %v3205_v41 = vpack.c.bf16 %v2300_v33, %v2300_v33  ;;  %v2118_v56 = vadd.f32 %v2117_v9, %v1742_v23  ;;  %v2146_v1 = vpop.f32.mrf.mxu1 }
 0x1e4   : > { %v1746_v60 = vpop.f32.mrf.mxu0 }
 0x1e5   : > { %2727 = vst.msk [vmem:[%s3819_s24 + $0xd0] sm:$0xf] %vm2674_vm1, %v3205_v41  ;;  %v2301_v46 = vmax.f32 %v2118_v56, 0.0  ;;  %v1747_v22 = vadd.f32 %v4117_v31, %v1746_v60  ;;  %v2148_v6 = vpop.f32.mrf.mxu1 }
 0x1e6   : > { %v1748_v62 = vpop.f32.mrf.mxu0 }
 0x1e7   : > { %v3206_v0 = vpack.c.bf16 %v2301_v46, %v2301_v46  ;;  %v2123_v50 = vadd.f32 %v2122_v17, %v1747_v22  ;;  %v2149_v45 = vpop.f32.mrf.mxu1 }
 0x1e8   : > { %v1749_v54 = vpop.f32.mrf.mxu0 }
 0x1e9   : > { %2728 = vst.msk [vmem:[%s3819_s24 + $0xd4] sm:$0xf] %vm2674_vm1, %v3206_v0  ;;  %v2302_v2 = vmax.f32 %v2123_v50, 0.0  ;;  %v1750_v4 = vadd.f32 %v4117_v31, %v1749_v54  ;;  %v2151_v53 = vpop.f32.mrf.mxu1 }
 0x1ea   : > { %v1751_v58 = vpop.f32.mrf.mxu0 }
 0x1eb   : > { %v3207_v7 = vpack.c.bf16 %v2302_v2, %v2302_v2  ;;  %v2126_v9 = vadd.f32 %v2125_v8, %v1750_v4  ;;  %v2154_v19 = vpop.f32.mrf.mxu1 }
 0x1ec   : > { %v1754_v57 = vpop.f32.mrf.mxu0 }
 0x1ed   : > { %2729 = vst.msk [vmem:[%s3819_s24 + $0xd8] sm:$0xf] %vm2674_vm1, %v3207_v7  ;;  %v2303_v11 = vmax.f32 %v2126_v9, 0.0  ;;  %v1755_v14 = vadd.f32 %v4117_v31, %v1754_v57  ;;  %v2156_v25 = vpop.f32.mrf.mxu1 }
 0x1ee   : > { %v1756_v63 = vpop.f32.mrf.mxu0 }
 0x1ef   : > { %v3208_v10 = vpack.c.bf16 %v2303_v11, %v2303_v11  ;;  %v2131_v17 = vadd.f32 %v2130_v27, %v1755_v14  ;;  %v2157_v12 = vpop.f32.mrf.mxu1 }
 0x1f0   : > { %v1757_v3 = vpop.f32.mrf.mxu0 }
 0x1f1   : > { %2730 = vst.msk [vmem:[%s3819_s24 + $0xdc] sm:$0xf] %vm2674_vm1, %v3208_v10  ;;  %v2304_v20 = vmax.f32 %v2131_v17, 0.0  ;;  %v1758_v21 = vadd.f32 %v4117_v31, %v1757_v3  ;;  %v2159_v30 = vpop.f32.mrf.mxu1 }
 0x1f2   : > { %v1759_v26 = vpop.f32.mrf.mxu0 }
 0x1f3   : > { %v3209_v13 = vpack.c.bf16 %v2304_v20, %v2304_v20  ;;  %v2134_v8 = vadd.f32 %v2133_v38, %v1758_v21  ;;  %v2162_v35 = vpop.f32.mrf.mxu1 }
 0x1f4   : > { %v1762_v29 = vpop.f32.mrf.mxu0 }
 0x1f5   : > { %2731 = vst.msk [vmem:[%s3819_s24 + $0xe0] sm:$0xf] %vm2674_vm1, %v3209_v13  ;;  %v2305_v16 = vmax.f32 %v2134_v8, 0.0  ;;  %v1763_v15 = vadd.f32 %v4117_v31, %v1762_v29  ;;  %v2164_v39 = vpop.f32.mrf.mxu1 }
 0x1f6   : > { %v1764_v34 = vpop.f32.mrf.mxu0 }
 0x1f7   : > { %v3210_v18 = vpack.c.bf16 %v2305_v16, %v2305_v16  ;;  %v2139_v27 = vadd.f32 %v2138_v51, %v1763_v15  ;;  %v2165_v28 = vpop.f32.mrf.mxu1 }
 0x1f8   : > { %v1765_v37 = vpop.f32.mrf.mxu0 }
 0x1f9   : > { %2732 = vst.msk [vmem:[%s3819_s24 + $0xe4] sm:$0xf] %vm2674_vm1, %v3210_v18  ;;  %v2306_v5 = vmax.f32 %v2139_v27, 0.0  ;;  %v1766_v24 = vadd.f32 %v4117_v31, %v1765_v37  ;;  %v2167_v48 = vpop.f32.mrf.mxu1 }
 0x1fa   : > { %v1767_v40 = vpop.f32.mrf.mxu0 }
 0x1fb   : > { %v3211_v42 = vpack.c.bf16 %v2306_v5, %v2306_v5  ;;  %v2142_v38 = vadd.f32 %v2141_v59, %v1766_v24  ;;  %v2170_v32 = vpop.f32.mrf.mxu1 }
 0x1fc   : > { %v1770_v43 = vpop.f32.mrf.mxu0 }
 0x1fd   : > { %2733 = vst.msk [vmem:[%s3819_s24 + $0xe8] sm:$0xf] %vm2674_vm1, %v3211_v42  ;;  %v2307_v44 = vmax.f32 %v2142_v38, 0.0  ;;  %v1771_v47 = vadd.f32 %v4117_v31, %v1770_v43  ;;  %v2172_v55 = vpop.f32.mrf.mxu1 }
 0x1fe   : > { %v1772_v36 = vpop.f32.mrf.mxu0 }
 0x1ff   : > { %v3212_v49 = vpack.c.bf16 %v2307_v44, %v2307_v44  ;;  %v2147_v51 = vadd.f32 %v2146_v1, %v1771_v47  ;;  %v2173_v60 = vpop.f32.mrf.mxu1 }
 0x200   : > { %v1773_v33 = vpop.f32.mrf.mxu0 }
 0x201   : > { %2734 = vst.msk [vmem:[%s3819_s24 + $0xec] sm:$0xf] %vm2674_vm1, %v3212_v49  ;;  %v2308_v23 = vmax.f32 %v2147_v51, 0.0  ;;  %v1774_v52 = vadd.f32 %v4117_v31, %v1773_v33  ;;  %v2175_v62 = vpop.f32.mrf.mxu1 }
 0x202   : > { %v1775_v41 = vpop.f32.mrf.mxu0 }
 0x203   : > { %v3213_v56 = vpack.c.bf16 %v2308_v23, %v2308_v23  ;;  %v2150_v59 = vadd.f32 %v2149_v45, %v1774_v52  ;;  %v2178_v54 = vpop.f32.mrf.mxu1 }
 0x204   : > { %v1778_v46 = vpop.f32.mrf.mxu0 }
 0x205   : > { %2735 = vst.msk [vmem:[%s3819_s24 + $0xf0] sm:$0xf] %vm2674_vm1, %v3213_v56  ;;  %v2309_v22 = vmax.f32 %v2150_v59, 0.0  ;;  %v1779_v61 = vadd.f32 %v4117_v31, %v1778_v46  ;;  %v2180_v58 = vpop.f32.mrf.mxu1 }
 0x206   : > { %v1780_v0 = vpop.f32.mrf.mxu0 }
 0x207   : > { %v3214_v50 = vpack.c.bf16 %v2309_v22, %v2309_v22  ;;  %v2155_v1 = vadd.f32 %v2154_v19, %v1779_v61  ;;  %v2181_v57 = vpop.f32.mrf.mxu1 }
 0x208   : > { %v1781_v2 = vpop.f32.mrf.mxu0 }
 0x209   : > { %2736 = vst.msk [vmem:[%s3819_s24 + $0xf4] sm:$0xf] %vm2674_vm1, %v3214_v50  ;;  %v2310_v4 = vmax.f32 %v2155_v1, 0.0  ;;  %v1782_v6 = vadd.f32 %v4117_v31, %v1781_v2  ;;  %v2183_v63 = vpop.f32.mrf.mxu1 }
 0x20a   : > { %v1783_v7 = vpop.f32.mrf.mxu0 }
 0x20b   : > { %v3215_v9 = vpack.c.bf16 %v2310_v4, %v2310_v4  ;;  %v2158_v45 = vadd.f32 %v2157_v12, %v1782_v6  ;;  %v2186_v3 = vpop.f32.mrf.mxu1 }
 0x20c   : > { %v1786_v11 = vpop.f32.mrf.mxu0 }
 0x20d   : > { %2737 = vst.msk [vmem:[%s3819_s24 + $0xf8] sm:$0xf] %vm2674_vm1, %v3215_v9  ;;  %v2311_v14 = vmax.f32 %v2158_v45, 0.0  ;;  %v1787_v53 = vadd.f32 %v4117_v31, %v1786_v11  ;;  %v2188_v26 = vpop.f32.mrf.mxu1 }
 0x20e   : > { %v1788_v10 = vpop.f32.mrf.mxu0 }
 0x20f   : > { %v3216_v17 = vpack.c.bf16 %v2311_v14, %v2311_v14  ;;  %v2163_v19 = vadd.f32 %v2162_v35, %v1787_v53  ;;  %v2189_v29 = vpop.f32.mrf.mxu1 }
 0x210   : > { %v1789_v20 = vpop.f32.mrf.mxu0 }
 0x211   : > { %2738 = vst.msk [vmem:[%s3819_s24 + $0xfc] sm:$0xf] %vm2674_vm1, %v3216_v17  ;;  %v2312_v21 = vmax.f32 %v2163_v19, 0.0  ;;  %v1790_v25 = vadd.f32 %v4117_v31, %v1789_v20  ;;  %v2191_v34 = vpop.f32.mrf.mxu1 }
 0x212   : > { %v1791_v13 = vpop.f32.mrf.mxu0 }
 0x213   : > { %v3217_v8 = vpack.c.bf16 %v2312_v21, %v2312_v21  ;;  %v2166_v12 = vadd.f32 %v2165_v28, %v1790_v25  ;;  %v2194_v37 = vpop.f32.mrf.mxu1 }
 0x214   : > { %v1794_v16 = vpop.f32.mrf.mxu0 }
 0x215   : > { %2739 = vst.msk [vmem:[%s3819_s24 + $0x100] sm:$0xf] %vm2674_vm1, %v3217_v8  ;;  %v2313_v15 = vmax.f32 %v2166_v12, 0.0  ;;  %v1795_v30 = vadd.f32 %v4117_v31, %v1794_v16  ;;  %v2196_v40 = vpop.f32.mrf.mxu1 }
 0x216   : > { %v1796_v18 = vpop.f32.mrf.mxu0 }
 0x217   : > { %v3218_v27 = vpack.c.bf16 %v2313_v15, %v2313_v15  ;;  %v2171_v35 = vadd.f32 %v2170_v32, %v1795_v30  ;;  %v2197_v43 = vpop.f32.mrf.mxu1 }
 0x218   : > { %v1797_v5 = vpop.f32.mrf.mxu0 }
 0x219   : > { %2740 = vst.msk [vmem:[%s3819_s24 + $0x104] sm:$0xf] %vm2674_vm1, %v3218_v27  ;;  %v2314_v24 = vmax.f32 %v2171_v35, 0.0  ;;  %v1798_v39 = vadd.f32 %v4117_v31, %v1797_v5  ;;  %v2199_v36 = vpop.f32.mrf.mxu1 }
 0x21a   : > { %v1799_v42 = vpop.f32.mrf.mxu0 }
 0x21b   : > { %v3219_v38 = vpack.c.bf16 %v2314_v24, %v2314_v24  ;;  %v2174_v28 = vadd.f32 %v2173_v60, %v1798_v39  ;;  %v2202_v33 = vpop.f32.mrf.mxu1 }
 0x21c   : > { %v1802_v44 = vpop.f32.mrf.mxu0 }
 0x21d   : > { %2741 = vst.msk [vmem:[%s3819_s24 + $0x108] sm:$0xf] %vm2674_vm1, %v3219_v38  ;;  %v2315_v47 = vmax.f32 %v2174_v28, 0.0  ;;  %v1803_v48 = vadd.f32 %v4117_v31, %v1802_v44  ;;  %v2204_v41 = vpop.f32.mrf.mxu1 }
 0x21e   : > { %v1804_v49 = vpop.f32.mrf.mxu0 }
 0x21f   : > { %v3220_v51 = vpack.c.bf16 %v2315_v47, %v2315_v47  ;;  %v2179_v32 = vadd.f32 %v2178_v54, %v1803_v48  ;;  %v2205_v46 = vpop.f32.mrf.mxu1 }
 0x220   : > { %v1805_v23 = vpop.f32.mrf.mxu0 }
 0x221   : > { %2742 = vst.msk [vmem:[%s3819_s24 + $0x10c] sm:$0xf] %vm2674_vm1, %v3220_v51  ;;  %v2316_v52 = vmax.f32 %v2179_v32, 0.0  ;;  %v1806_v55 = vadd.f32 %v4117_v31, %v1805_v23  ;;  %v2207_v0 = vpop.f32.mrf.mxu1 }
 0x222   : > { %v1807_v56 = vpop.f32.mrf.mxu0 }
 0x223   : > { %v3221_v59 = vpack.c.bf16 %v2316_v52, %v2316_v52  ;;  %v2182_v60 = vadd.f32 %v2181_v57, %v1806_v55  ;;  %v2210_v2 = vpop.f32.mrf.mxu1 }
 0x224   : > { %v1810_v22 = vpop.f32.mrf.mxu0 }
 0x225   : > { %2743 = vst.msk [vmem:[%s3819_s24 + $0x110] sm:$0xf] %vm2674_vm1, %v3221_v59  ;;  %v2317_v61 = vmax.f32 %v2182_v60, 0.0  ;;  %v1811_v62 = vadd.f32 %v4117_v31, %v1810_v22  ;;  %v2212_v7 = vpop.f32.mrf.mxu1 }
 0x226   : > { %v1812_v50 = vpop.f32.mrf.mxu0 }
 0x227   : > { %v3222_v1 = vpack.c.bf16 %v2317_v61, %v2317_v61  ;;  %v2187_v54 = vadd.f32 %v2186_v3, %v1811_v62  ;;  %v2213_v11 = vpop.f32.mrf.mxu1 }
 0x228   : > { %v1813_v4 = vpop.f32.mrf.mxu0 }
 0x229   : > { %2744 = vst.msk [vmem:[%s3819_s24 + $0x114] sm:$0xf] %vm2674_vm1, %v3222_v1  ;;  %v2318_v6 = vmax.f32 %v2187_v54, 0.0  ;;  %v1814_v58 = vadd.f32 %v4117_v31, %v1813_v4  ;;  %v2215_v10 = vpop.f32.mrf.mxu1 }
 0x22a   : > { %v1815_v9 = vpop.f32.mrf.mxu0 }
 0x22b   : > { %v3223_v45 = vpack.c.bf16 %v2318_v6, %v2318_v6  ;;  %v2190_v57 = vadd.f32 %v2189_v29, %v1814_v58  ;;  %v2218_v20 = vpop.f32.mrf.mxu1 }
 0x22c   : > { %v1818_v14 = vpop.f32.mrf.mxu0 }
 0x22d   : > { %2745 = vst.msk [vmem:[%s3819_s24 + $0x118] sm:$0xf] %vm2674_vm1, %v3223_v45  ;;  %v2319_v53 = vmax.f32 %v2190_v57, 0.0  ;;  %v1819_v63 = vadd.f32 %v4117_v31, %v1818_v14  ;;  %v2220_v13 = vpop.f32.mrf.mxu1 }
 0x22e   : > { %v1820_v17 = vpop.f32.mrf.mxu0 }
 0x22f   : > { %v3224_v19 = vpack.c.bf16 %v2319_v53, %v2319_v53  ;;  %v2195_v3 = vadd.f32 %v2194_v37, %v1819_v63  ;;  %v2221_v16 = vpop.f32.mrf.mxu1 }
 0x230   : > { %v1821_v21 = vpop.f32.mrf.mxu0 }
 0x231   : > { %2746 = vst.msk [vmem:[%s3819_s24 + $0x11c] sm:$0xf] %vm2674_vm1, %v3224_v19  ;;  %v2320_v25 = vmax.f32 %v2195_v3, 0.0  ;;  %v1822_v26 = vadd.f32 %v4117_v31, %v1821_v21  ;;  %v2223_v18 = vpop.f32.mrf.mxu1 }
 0x232   : > { %v1823_v8 = vpop.f32.mrf.mxu0 }
 0x233   : > { %v3225_v12 = vpack.c.bf16 %v2320_v25, %v2320_v25  ;;  %v2198_v29 = vadd.f32 %v2197_v43, %v1822_v26  ;;  %v2226_v5 = vpop.f32.mrf.mxu1 }
 0x234   : > { %v1826_v15 = vpop.f32.mrf.mxu0 }
 0x235   : > { %2747 = vst.msk [vmem:[%s3819_s24 + $0x120] sm:$0xf] %vm2674_vm1, %v3225_v12  ;;  %v2321_v30 = vmax.f32 %v2198_v29, 0.0  ;;  %v1827_v34 = vadd.f32 %v4117_v31, %v1826_v15  ;;  %v2228_v42 = vpop.f32.mrf.mxu1 }
 0x236   : > { %v1828_v27 = vpop.f32.mrf.mxu0 }
 0x237   : > { %v3226_v35 = vpack.c.bf16 %v2321_v30, %v2321_v30  ;;  %v2203_v37 = vadd.f32 %v2202_v33, %v1827_v34  ;;  %v2229_v44 = vpop.f32.mrf.mxu1 }
 0x238   : > { %v1829_v24 = vpop.f32.mrf.mxu0 }
 0x239   : > { %2748 = vst.msk [vmem:[%s3819_s24 + $0x124] sm:$0xf] %vm2674_vm1, %v3226_v35  ;;  %v2322_v39 = vmax.f32 %v2203_v37, 0.0  ;;  %v1830_v40 = vadd.f32 %v4117_v31, %v1829_v24  ;;  %v2231_v49 = vpop.f32.mrf.mxu1 }
 0x23a   : > { %v1831_v38 = vpop.f32.mrf.mxu0 }
 0x23b   : > { %v3227_v28 = vpack.c.bf16 %v2322_v39, %v2322_v39  ;;  %v2206_v43 = vadd.f32 %v2205_v46, %v1830_v40  ;;  %v2234_v23 = vpop.f32.mrf.mxu1 }
 0x23c   : > { %v1834_v47 = vpop.f32.mrf.mxu0 }
 0x23d   : > { %2749 = vst.msk [vmem:[%s3819_s24 + $0x128] sm:$0xf] %vm2674_vm1, %v3227_v28  ;;  %v2323_v48 = vmax.f32 %v2206_v43, 0.0  ;;  %v1835_v36 = vadd.f32 %v4117_v31, %v1834_v47  ;;  %v2236_v56 = vpop.f32.mrf.mxu1 }
 0x23e   : > { %v1836_v51 = vpop.f32.mrf.mxu0 }
 0x23f   : > { %v3228_v32 = vpack.c.bf16 %v2323_v48, %v2323_v48  ;;  %v2211_v33 = vadd.f32 %v2210_v2, %v1835_v36  ;;  %v2237_v22 = vpop.f32.mrf.mxu1 }
 0x240   : > { %v1837_v52 = vpop.f32.mrf.mxu0 }
 0x241   : > { %2750 = vst.msk [vmem:[%s3819_s24 + $0x12c] sm:$0xf] %vm2674_vm1, %v3228_v32  ;;  %v2324_v55 = vmax.f32 %v2211_v33, 0.0  ;;  %v1838_v41 = vadd.f32 %v4117_v31, %v1837_v52  ;;  %v2239_v50 = vpop.f32.mrf.mxu1 }
 0x242   : > { %v1839_v59 = vpop.f32.mrf.mxu0 }
 0x243   : > { %v3229_v60 = vpack.c.bf16 %v2324_v55, %v2324_v55  ;;  %v2214_v46 = vadd.f32 %v2213_v11, %v1838_v41  ;;  %v2242_v4 = vpop.f32.mrf.mxu1 }
 0x244   : > { %v1842_v61 = vpop.f32.mrf.mxu0 }
 0x245   : > { %2751 = vst.msk [vmem:[%s3819_s24 + $0x130] sm:$0xf] %vm2674_vm1, %v3229_v60  ;;  %v2325_v62 = vmax.f32 %v2214_v46, 0.0  ;;  %v1843_v0 = vadd.f32 %v4117_v31, %v1842_v61  ;;  %v2244_v9 = vpop.f32.mrf.mxu1 }
 0x246   : > { %v1844_v1 = vpop.f32.mrf.mxu0 }
 0x247   : > { %v3230_v54 = vpack.c.bf16 %v2325_v62, %v2325_v62  ;;  %v2219_v2 = vadd.f32 %v2218_v20, %v1843_v0  ;;  %v2245_v14 = vpop.f32.mrf.mxu1 }
 0x248   : > { %v1845_v6 = vpop.f32.mrf.mxu0 }
 0x249   : > { %2752 = vst.msk [vmem:[%s3819_s24 + $0x134] sm:$0xf] %vm2674_vm1, %v3230_v54  ;;  %v2326_v58 = vmax.f32 %v2219_v2, 0.0  ;;  %v1846_v7 = vadd.f32 %v4117_v31, %v1845_v6  ;;  %v2246_v17 = vpop.f32.mrf.mxu1 }
 0x24a   : > { %v1847_v45 = vpop.f32.mrf.mxu0 }
 0x24b   : > { %v3231_v57 = vpack.c.bf16 %v2326_v58, %v2326_v58  ;;  %v2222_v11 = vadd.f32 %v2221_v16, %v1846_v7 }
 0x24c   : > { %v1850_v53 = vpop.f32.mrf.mxu0 }
 0x24d   : > { %2753 = vst.msk [vmem:[%s3819_s24 + $0x138] sm:$0xf] %vm2674_vm1, %v3231_v57  ;;  %v2327_v63 = vmax.f32 %v2222_v11, 0.0  ;;  %v1851_v10 = vadd.f32 %v4117_v31, %v1850_v53 }
 0x24e   : > { %v1852_v19 = vpop.f32.mrf.mxu0 }
 0x24f   : > { %v3232_v3 = vpack.c.bf16 %v2327_v63, %v2327_v63  ;;  %v2227_v20 = vadd.f32 %v2226_v5, %v1851_v10 }
 0x250   : > { %v1853_v21 = vpop.f32.mrf.mxu0 }
 0x251   : > { %2754 = vst.msk [vmem:[%s3819_s24 + $0x13c] sm:$0xf] %vm2674_vm1, %v3232_v3  ;;  %v2328_v25 = vmax.f32 %v2227_v20, 0.0  ;;  %v1854_v26 = vadd.f32 %v4117_v31, %v1853_v21 }
 0x252   : > { %v1855_v13 = vpop.f32.mrf.mxu0 }
 0x253   : > { %v3233_v8 = vpack.c.bf16 %v2328_v25, %v2328_v25  ;;  %v2230_v12 = vadd.f32 %v2229_v44, %v1854_v26 }
 0x254   : > { %v1858_v29 = vpop.f32.mrf.mxu0 }
 0x255   : > { %2755 = vst.msk [vmem:[%s3819_s24 + $0x140] sm:$0xf] %vm2674_vm1, %v3233_v8  ;;  %v2329_v16 = vmax.f32 %v2230_v12, 0.0  ;;  %v1859_v15 = vadd.f32 %v4117_v31, %v1858_v29 }
 0x256   : > { %v1860_v30 = vpop.f32.mrf.mxu0 }
 0x257   : > { %v3234_v34 = vpack.c.bf16 %v2329_v16, %v2329_v16  ;;  %v2235_v18 = vadd.f32 %v2234_v23, %v1859_v15 }
 0x258   : > { %v1861_v27 = vpop.f32.mrf.mxu0 }
 0x259   : > { %2756 = vst.msk [vmem:[%s3819_s24 + $0x144] sm:$0xf] %vm2674_vm1, %v3234_v34  ;;  %v2330_v35 = vmax.f32 %v2235_v18, 0.0  ;;  %v1862_v37 = vadd.f32 %v4117_v31, %v1861_v27 }
 0x25a   : > { %v1863_v5 = vpop.f32.mrf.mxu0 }
 0x25b   : > { %v3235_v24 = vpack.c.bf16 %v2330_v35, %v2330_v35  ;;  %v2238_v39 = vadd.f32 %v2237_v22, %v1862_v37 }
 0x25c   : > { %v1866_v40 = vpop.f32.mrf.mxu0 }
 0x25d   : > { %2757 = vst.msk [vmem:[%s3819_s24 + $0x148] sm:$0xf] %vm2674_vm1, %v3235_v24  ;;  %v2331_v42 = vmax.f32 %v2238_v39, 0.0  ;;  %v1867_v38 = vadd.f32 %v4117_v31, %v1866_v40 }
 0x25e   : > { %v1868_v28 = vpop.f32.mrf.mxu0 }
 0x25f   : > { %v3236_v43 = vpack.c.bf16 %v2331_v42, %v2331_v42  ;;  %v2243_v44 = vadd.f32 %v2242_v4, %v1867_v38 }
 0x260   : > { %v1869_v47 = vpop.f32.mrf.mxu0 }
 0x261   : > { %2758 = vst.msk [vmem:[%s3819_s24 + $0x14c] sm:$0xf] %vm2674_vm1, %v3236_v43  ;;  %v2332_v48 = vmax.f32 %v2243_v44, 0.0 }
 0x262   : > { %v1870_v36 = vpop.f32.mrf.mxu0 }
 0x263   : > { %v3237_v49 = vpack.c.bf16 %v2332_v48, %v2332_v48 }
 0x265   : > { %2759 = vst.msk [vmem:[%s3819_s24 + $0x150] sm:$0xf] %vm2674_vm1, %v3237_v49 }
 0x266 PF: > { %s13_s12 = sadd.s32 1, %s3513_s12  }
 0x267   : > { %p10_p4 = scmp.ge.s32.totalorder %s13_s12, 4  }
 0x269   :  { %12 = sbr.rel (!%p10_p4) target bundleno = 1 (0x1), region = 62 }

// kernel: cnn_critic_forward.6
= control target key start
LH: loop header
LB: loop body
LE: loop exit
PB: predicated region body
PF: predicated region fallthrough
CT: control target
= control target key end

     0   :  { %s2465_s12 = smov 0   ;;  %s2891_s0 = inlined_call_operand.vmem [shape: bf16[352,800], index: 0, kind: input, shape index: {}]   ;;  %s2892_s1 = inlined_call_operand.vmem [shape: bf16[800,64], index: 1, kind: input, shape index: {}]   ;;  %s2893_s2 = inlined_call_operand.vmem [shape: f32[1,64], index: 2, kind: input, shape index: {}]   ;;  %s2894_s3 = inlined_call_operand.vmem [shape: bf16[352,64], index: 3, kind: output, shape index: {}]  }
   0x1 LB: > { %s1765_s13 = sadd.s32 4294967295, %s2441_s12   ;;  %p1769_p0 = scmp.ge.s32.totalorder %s2441_s12, 1  ;;  %s2441_s12 = sphi %s2465_s12, %s13_s12  }
   0x2   : > { %p139_p1 = scmp.lt.s32.totalorder %s2441_s12, 3 }
   0x4   : > { %p140_p2 = pnand %p1769_p0, %p139_p1 }
   0x5   : > { %s164_s17 = smul.u32 (!%p140_p2), 22, %s1765_s13 }
   0x6   : > { %143 = sbr.rel (%p140_p2) target bundleno = 422 (0x1a6), region = 32 }
   0x7   : > { %p165_p3 = scmp.lt.s32.totalorder (!%p140_p2), %s164_s17, 43 }
   0xb   : > { %v2275_v0 = vld [vmem:[%s2892_s1 + $0x78] sm:$0xff]   ;;  %v2279_v4 = vld [vmem:[%s2892_s1 + $0x70] sm:$0xff]   ;;  %v2283_v8 = vld [vmem:[%s2892_s1 + $0x68] sm:$0xff]   ;;  %s2896_s17 = smov (!%p165_p3, %s164_s17), 43  ;;  %v2443_v36 = vmov 0.0   ;;  %vm2444_vm0 = vmmov 0  }
   0xc   : > { %v2276_v1 = vld [vmem:[%s2892_s1 + $0x38] sm:$0xff]   ;;  %1957 = vmatprep.subr.bf16.mxu0 %v2275_v0  ;;  %v2280_v5 = vld [vmem:[%s2892_s1 + $0x30] sm:$0xff]   ;;  %v2284_v9 = vld [vmem:[%s2892_s1 + $0x28] sm:$0xff]   ;;  %s2264_s16 = smul.u32 28, %s2896_s17  ;;  %vm1058_vm1 = vcmask 261120   ;;  %vm1686_vm2 = vcmask 519168  }
   0xd   : > { %v2277_v2 = vld [vmem:[%s2892_s1 + $0xf8] sm:$0xff]   ;;  %1958 = vmatpush3.bf16.msra.mxu0 %v2276_v1  ;;  %v2281_v6 = vld [vmem:[%s2892_s1 + $0xf0] sm:$0xff]   ;;  %v2285_v10 = vld [vmem:[%s2892_s1 + $0xe8] sm:$0xff]  }
   0xe   : > { %v2278_v3 = vld [vmem:[%s2892_s1 + $0xb8] sm:$0xff]   ;;  %2039 = vmatprep.subr.bf16.mxu1 %v2277_v2  ;;  %1959 = vmatprep.subr.bf16.mxu0 %v2279_v4  ;;  %v2282_v7 = vld [vmem:[%s2892_s1 + $0xb0] sm:$0xff]   ;;  %v2286_v11 = vld [vmem:[%s2892_s1 + $0xa8] sm:$0xff]   ;;  %s2571_s27 = scalar_lea.vmem %s2891_s0, %s2264_s16 }
   0xf   : > { %2040 = vmatpush3.bf16.msra.mxu1 %v2278_v3  ;;  %v2287_v12 = vld [vmem:[%s2892_s1 + $0x60] sm:$0xff]   ;;  %v2291_v16 = vld [vmem:[%s2892_s1 + $0x58] sm:$0xff]   ;;  %v2295_v20 = vld [vmem:[%s2892_s1 + $0x50] sm:$0xff]  }
  0x10   : > { %2041 = vmatprep.subr.bf16.mxu1 %v2281_v6  ;;  %v2288_v13 = vld [vmem:[%s2892_s1 + $0x20] sm:$0xff]   ;;  %v2292_v17 = vld [vmem:[%s2892_s1 + $0x18] sm:$0xff]   ;;  %v2296_v21 = vld [vmem:[%s2892_s1 + $0x10] sm:$0xff]  }
  0x11   : > { %1960 = vmatpush3.bf16.msra.mxu0 %v2280_v5  ;;  %v2289_v14 = vld [vmem:[%s2892_s1 + $0xe0] sm:$0xff]   ;;  %v2293_v18 = vld [vmem:[%s2892_s1 + $0xd8] sm:$0xff]   ;;  %v2297_v22 = vld [vmem:[%s2892_s1 + $0xd0] sm:$0xff]  }
  0x12   : > { %1961 = vmatprep.subr.bf16.mxu0 %v2283_v8  ;;  %v2290_v15 = vld [vmem:[%s2892_s1 + $0xa0] sm:$0xff]   ;;  %v2294_v19 = vld [vmem:[%s2892_s1 + $0x98] sm:$0xff]   ;;  %v2298_v23 = vld [vmem:[%s2892_s1 + $0x90] sm:$0xff]  }
  0x13   : > { %2042 = vmatpush3.bf16.msra.mxu1 %v2282_v7  ;;  %v2299_v24 = vld [vmem:[%s2892_s1 + $0x48] sm:$0xff]   ;;  %v2303_v28 = vld [vmem:[%s2892_s1 + $0x40] sm:$0xff]   ;;  %v2313_v37 = vld [vmem:[%s2892_s1 + $0x178] sm:$0xff]  }
  0x14   : > { %2043 = vmatprep.subr.bf16.mxu1 %v2285_v10  ;;  %v2300_v25 = vld [vmem:[%s2892_s1 + $0x8] sm:$0xff]   ;;  %v2304_v29 = vld [vmem:[%s2892_s1] sm:$0xff]   ;;  %v2314_v38 = vld [vmem:[%s2892_s1 + $0x138] sm:$0xff]  }
  0x15   : > { %1962 = vmatpush3.bf16.msra.mxu0 %v2284_v9  ;;  %v2301_v26 = vld [vmem:[%s2892_s1 + $0xc8] sm:$0xff]   ;;  %v2305_v30 = vld [vmem:[%s2892_s1 + $0xc0] sm:$0xff]   ;;  %v2315_v39 = vld [vmem:[%s2571_s27 + $0x3c] ss:$28 sps:$4 sm:$0xff]  }
  0x16   : > { %1963 = vmatprep.subr.bf16.mxu0 %v2287_v12  ;;  %v2302_v27 = vld [vmem:[%s2892_s1 + $0x88] sm:$0xff]   ;;  %v2306_v31 = vld [vmem:[%s2892_s1 + $0x80] sm:$0xff]   ;;  %v2318_v41 = vld [vmem:[%s2571_s27 + $0x38] ss:$28 sps:$4 sm:$0xff]  }
  0x17   : > { %2044 = vmatpush3.bf16.msra.mxu1 %v2286_v11  ;;  %v2307_v32 = vld [vmem:[%s2571_s27] ss:$28 sps:$4 sm:$0xff]   ;;  %v2310_v34 = vld [vmem:[%s2571_s27 + $0x8] ss:$28 sps:$4 sm:$0xff]   ;;  %v2322_v44 = vld [vmem:[%s2892_s1 + $0x170] sm:$0xff]  }
  0x18   : > { %2045 = vmatprep.subr.bf16.mxu1 %v2289_v14  ;;  %v2309_v33 = vld [vmem:[%s2571_s27 + $0x4] ss:$28 sps:$4 sm:$0xff]   ;;  %v2312_v35 = vld [vmem:[%s2571_s27 + $0xc] ss:$28 sps:$4 sm:$0xff]   ;;  %v2323_v45 = vld [vmem:[%s2892_s1 + $0x130] sm:$0xff]  }
  0x19   : > { %1964 = vmatpush3.bf16.msra.mxu0 %v2288_v13  ;;  %1124 = vmatprep.mubr.bf16.mxu0 %v2309_v33  ;;  %v2317_v40 = vld [vmem:[%s2892_s1 + $0x188] sm:$0xff]   ;;  %v2319_v42 = vld [vmem:[%s2571_s27 + $0x44] ss:$28 sps:$4 sm:$0xff]   ;;  %v2324_v46 = vld [vmem:[%s2571_s27 + $0x74] ss:$28 sps:$4 sm:$0xff]  }
  0x1a   : > { %1965 = vmatprep.subr.bf16.mxu0 %v2291_v16  ;;  %1245 = vmatprep.mubr.bf16.mxu1 %v2312_v35  ;;  %v2321_v43 = vld [vmem:[%s2571_s27 + $0x40] ss:$28 sps:$4 sm:$0xff]   ;;  %v2330_v48 = vld [vmem:[%s2892_s1 + $0x168] sm:$0xff]   ;;  %v2329_v51 = vld [vmem:[%s2571_s27 + $0x78] ss:$28 sps:$4 sm:$0xff]  }
  0x1b   : > { %2046 = vmatpush3.bf16.msra.mxu1 %v2290_v15  ;;  %v2327_v47 = vld [vmem:[%s2571_s27 + $0x7c] ss:$28 sps:$4 sm:$0xff]   ;;  %v2333_v49 = vld [vmem:[%s2892_s1 + $0x128] sm:$0xff]   ;;  %v2335_v53 = vld [vmem:[%s2571_s27 + $0xb4] ss:$28 sps:$4 sm:$0xff]  }
  0x1c   : > { %2047 = vmatprep.subr.bf16.mxu1 %v2293_v18  ;;  %v2326_v50 = vld [vmem:[%s2571_s27 + $0x70] ss:$28 sps:$4 sm:$0xff]   ;;  %v2344_v54 = vld [vmem:[%s2892_s1 + $0x160] sm:$0xff]   ;;  %v2352_v60 = vld [vmem:[%s2892_s1 + $0x158] sm:$0xff]  }
  0x1d   : > { %1966 = vmatpush3.bf16.msra.mxu0 %v2292_v17  ;;  %v2331_v52 = vld [vmem:[%s2571_s27 + $0xac] ss:$28 sps:$4 sm:$0xff]   ;;  %v2345_v55 = vld [vmem:[%s2892_s1 + $0x120] sm:$0xff]   ;;  %v2353_v61 = vld [vmem:[%s2892_s1 + $0x118] sm:$0xff]  }
  0x1e   : > { %1967 = vmatprep.subr.bf16.mxu0 %v2295_v20  ;;  %v2334_v56 = vld [vmem:[%s2571_s27 + $0xa8] ss:$28 sps:$4 sm:$0xff]   ;;  %v2337_v57 = vld [vmem:[%s2571_s27 + $0xb0] ss:$28 sps:$4 sm:$0xff]   ;;  %v2340_v62 = vld [vmem:[%s2571_s27 + $0xe0] ss:$28 sps:$4 sm:$0xff]  }
  0x1f   : > { %2048 = vmatpush3.bf16.msra.mxu1 %v2294_v19  ;;  %v2338_v58 = vld [vmem:[%s2571_s27 + $0xe4] ss:$28 sps:$4 sm:$0xff]   ;;  %v2341_v59 = vld [vmem:[%s2571_s27 + $0xec] ss:$28 sps:$4 sm:$0xff]   ;;  %v2346_v1 = vld [vmem:[%s2571_s27 + $0x11c] ss:$28 sps:$4 sm:$0xff]  }
  0x20   : > { %2049 = vmatprep.subr.bf16.mxu1 %v2297_v22  ;;  %v2360_v63 = vld [vmem:[%s2892_s1 + $0x180] sm:$0xff]   ;;  %v2363_v2 = vld [vmem:[%s2892_s1 + $0x150] sm:$0xff]   ;;  %v2375_v6 = vld [vmem:[%s2892_s1 + $0x148] sm:$0xff]  }
  0x21   : > { %1968 = vmatpush3.bf16.msra.mxu0 %v2296_v21  ;;  %v2343_v0 = vld [vmem:[%s2571_s27 + $0xe8] ss:$28 sps:$4 sm:$0xff]   ;;  %v2367_v4 = vld [vmem:[%s2892_s1 + $0x110] sm:$0xff]   ;;  %v2351_v8 = vld [vmem:[%s2571_s27 + $0x120] ss:$28 sps:$4 sm:$0xff]  }
  0x22   : > { %1969 = vmatprep.subr.bf16.mxu0 %v2299_v24  ;;  %v2349_v3 = vld [vmem:[%s2571_s27 + $0x124] ss:$28 sps:$4 sm:$0xff]   ;;  %v2348_v5 = vld [vmem:[%s2571_s27 + $0x118] ss:$28 sps:$4 sm:$0xff]   ;;  %v2376_v7 = vld [vmem:[%s2892_s1 + $0x108] sm:$0xff]  }
  0x23   : > { %2050 = vmatpush3.bf16.msra.mxu1 %v2298_v23  ;;  %v2354_v9 = vld [vmem:[%s2571_s27 + $0x154] ss:$28 sps:$4 sm:$0xff]   ;;  %v2357_v10 = vld [vmem:[%s2571_s27 + $0x15c] ss:$28 sps:$4 sm:$0xff]   ;;  %v2383_v11 = vld [vmem:[%s2892_s1 + $0x140] sm:$0xff]  }
  0x24   : > { %2051 = vmatprep.subr.bf16.mxu1 %v2301_v26  ;;  %v2384_v12 = vld [vmem:[%s2892_s1 + $0x100] sm:$0xff]   ;;  %v2356_v13 = vld [vmem:[%s2571_s27 + $0x150] ss:$28 sps:$4 sm:$0xff]   ;;  %v2359_v14 = vld [vmem:[%s2571_s27 + $0x158] ss:$28 sps:$4 sm:$0xff]  }
  0x25   : > { %1970 = vmatpush3.bf16.msra.mxu0 %v2300_v25  ;;  %v2361_v15 = vld [vmem:[%s2571_s27 + $0x18c] ss:$28 sps:$4 sm:$0xff]   ;;  %v2365_v16 = vld [vmem:[%s2571_s27 + $0x194] ss:$28 sps:$4 sm:$0xff]   ;;  %v2369_v19 = vld [vmem:[%s2571_s27 + $0x1c4] ss:$28 sps:$4 sm:$0xff]  }
  0x26   : > { %1971 = vmatprep.subr.bf16.mxu0 %v2303_v28  ;;  %v2364_v17 = vld [vmem:[%s2571_s27 + $0x188] ss:$28 sps:$4 sm:$0xff]   ;;  %v2368_v18 = vld [vmem:[%s2571_s27 + $0x190] ss:$28 sps:$4 sm:$0xff]   ;;  %v2371_v21 = vld [vmem:[%s2571_s27 + $0x1c0] ss:$28 sps:$4 sm:$0xff]  }
  0x27   : > { %2052 = vmatpush3.bf16.msra.mxu1 %v2302_v27  ;;  %v2372_v20 = vld [vmem:[%s2571_s27 + $0x1cc] ss:$28 sps:$4 sm:$0xff]   ;;  %v2377_v23 = vld [vmem:[%s2571_s27 + $0x1fc] ss:$28 sps:$4 sm:$0xff]   ;;  %v2380_v24 = vld [vmem:[%s2571_s27 + $0x204] ss:$28 sps:$4 sm:$0xff]  }
  0x28   : > { %2053 = vmatprep.subr.bf16.mxu1 %v2305_v30  ;;  %v2374_v22 = vld [vmem:[%s2571_s27 + $0x1c8] ss:$28 sps:$4 sm:$0xff]   ;;  %v2379_v25 = vld [vmem:[%s2571_s27 + $0x1f8] ss:$28 sps:$4 sm:$0xff]   ;;  %v2382_v26 = vld [vmem:[%s2571_s27 + $0x200] ss:$28 sps:$4 sm:$0xff]  }
  0x29   : > { %1972 = vmatpush3.bf16.msra.mxu0 %v2304_v29  ;;  %v2385_v27 = vld [vmem:[%s2571_s27 + $0x234] ss:$28 sps:$4 sm:$0xff]   ;;  %v2388_v28 = vld [vmem:[%s2571_s27 + $0x23c] ss:$28 sps:$4 sm:$0xff]   ;;  %v2397_v35 = vld [vmem:[%s2571_s27 + $0x48] ss:$28 sps:$4 sm:$0xff]  }
  0x2a   : > { %2121 = vmatprep.subr.bf16.mxu0 %v2313_v37  ;;  %v2387_v29 = vld [vmem:[%s2571_s27 + $0x230] ss:$28 sps:$4 sm:$0xff]   ;;  %v2390_v30 = vld [vmem:[%s2571_s27 + $0x238] ss:$28 sps:$4 sm:$0xff]  }
  0x2b   : > { %2054 = vmatpush3.bf16.msra.mxu1 %v2306_v31  ;;  %v2393_v31 = vld [vmem:[%s2571_s27 + $0x14] ss:$28 sps:$4 sm:$0xff]  }
  0x2c   : > { %2216 = vmatprep.subr.bf16.mxu1 %v2443_v36  ;;  %1125 = vmatmul.mubr.bf16.vlgmr.msra.gmra.mxu0 %v2307_v32  ;;  %v2391_v32 = vld [vmem:[%s2571_s27 + $0x10] ss:$28 sps:$4 sm:$0xff]   ;;  %v2394_v33 = vld [vmem:[%s2571_s27 + $0x18] ss:$28 sps:$4 sm:$0xff]  }
  0x2d   : > { %2122 = vmatpush3.bf16.msra.mxu0 %v2314_v38  ;;  %1132 = vmatprep.mubr.bf16.mxu0 %v2315_v39  ;;  %v2398_v37 = vld [vmem:[%s2571_s27 + $0x50] ss:$28 sps:$4 sm:$0xff]   ;;  %v2399_v38 = vld [vmem:[%s2571_s27 + $0x84] ss:$28 sps:$4 sm:$0xff]  }
  0x2e   : > { %1246 = vmatmul.mubr.bf16.vlgmr.msra.gmra.mxu1 %v2310_v34  ;;  %2123 = vmatprep.subr.bf16.mxu0 %v2322_v44  ;;  %v2395_v34 = vld [vmem:[%s2571_s27 + $0x4c] ss:$28 sps:$4 sm:$0xff]   ;;  %v2401_v39 = vld [vmem:[%s2571_s27 + $0x80] ss:$28 sps:$4 sm:$0xff]   ;;  %v2407_v44 = vld [vmem:[%s2571_s27 + $0xf4] ss:$28 sps:$4 sm:$0xff]  }
  0x2f   : > { %2217 = vmatpush3.bf16.msra.mxu1 %v2317_v40  ;;  %1253 = vmatprep.mubr.bf16.mxu1 %v2319_v42  ;;  %v2402_v40 = vld [vmem:[%s2571_s27 + $0x88] ss:$28 sps:$4 sm:$0xff]   ;;  %v2405_v42 = vld [vmem:[%s2571_s27 + $0xb8] ss:$28 sps:$4 sm:$0xff]  }
  0x30   : > { %2218 = vmatprep.subr.bf16.mxu1 %v2443_v36 }
  0x31   : > { %2124 = vmatpush3.bf16.msra.mxu0 %v2323_v45  ;;  %v2409_v45 = vld [vmem:[%s2571_s27 + $0xf0] ss:$28 sps:$4 sm:$0xff]  }
  0x32   : > { %2125 = vmatprep.subr.bf16.mxu0 %v2330_v48  ;;  %v2413_v48 = vld [vmem:[%s2571_s27 + $0x128] ss:$28 sps:$4 sm:$0xff]  }
  0x33   : > { %2219 = vmatpush3.bf16.msra.mxu1 %v2360_v63  ;;  %v2433_v63 = vld [vmem:[%s2571_s27 + $0x240] ss:$28 sps:$4 sm:$0xff]  }
  0x34   : > { %1133 = vmatmul.mubr.bf16.gmra.mxu0 %v2318_v41  ;;  %v2403_v41 = vld [vmem:[%s2571_s27 + $0xbc] ss:$28 sps:$4 sm:$0xff]  }
  0x35   : > { %1140 = vmatprep.mubr.bf16.mxu0 %v2324_v46  ;;  %2126 = vmatpush3.bf16.msra.mxu0 %v2333_v49  ;;  %v2410_v46 = vld [vmem:[%s2571_s27 + $0xf8] ss:$28 sps:$4 sm:$0xff]   ;;  %v2414_v49 = vld [vmem:[%s2571_s27 + $0x130] ss:$28 sps:$4 sm:$0xff]  }
  0x36   : > { %1254 = vmatmul.mubr.bf16.gmra.mxu1 %v2321_v43  ;;  %2127 = vmatprep.subr.bf16.mxu0 %v2344_v54  ;;  %v2406_v43 = vld [vmem:[%s2571_s27 + $0xc0] ss:$28 sps:$4 sm:$0xff]   ;;  %v2421_v54 = vld [vmem:[%s2571_s27 + $0x198] ss:$28 sps:$4 sm:$0xff]  }
  0x37   : > { %1261 = vmatprep.mubr.bf16.mxu1 %v2327_v47  ;;  %v2411_v47 = vld [vmem:[%s2571_s27 + $0x12c] ss:$28 sps:$4 sm:$0xff]  }
  0x39   : > { %2128 = vmatpush3.bf16.msra.mxu0 %v2345_v55  ;;  %v2422_v55 = vld [vmem:[%s2571_s27 + $0x1a0] ss:$28 sps:$4 sm:$0xff]  }
  0x3a   : > { %2129 = vmatprep.subr.bf16.mxu0 %v2352_v60  ;;  %v2429_v60 = vld [vmem:[%s2571_s27 + $0x208] ss:$28 sps:$4 sm:$0xff]  }
  0x3c   : > { %1141 = vmatmul.mubr.bf16.gmra.mxu0 %v2326_v50  ;;  %v2415_v50 = vld [vmem:[%s2571_s27 + $0x164] ss:$28 sps:$4 sm:$0xff]  }
  0x3d   : > { %1148 = vmatprep.mubr.bf16.mxu0 %v2331_v52  ;;  %2130 = vmatpush3.bf16.msra.mxu0 %v2353_v61  ;;  %v2418_v52 = vld [vmem:[%s2571_s27 + $0x168] ss:$28 sps:$4 sm:$0xff]   ;;  %v2430_v61 = vld [vmem:[%s2571_s27 + $0x210] ss:$28 sps:$4 sm:$0xff]  }
  0x3e   : > { %1262 = vmatmul.mubr.bf16.gmra.mxu1 %v2329_v51  ;;  %2131 = vmatprep.subr.bf16.mxu0 %v2363_v2  ;;  %v2417_v51 = vld [vmem:[%s2571_s27 + $0x160] ss:$28 sps:$4 sm:$0xff]  }
  0x3f   : > { %1269 = vmatprep.mubr.bf16.mxu1 %v2335_v53  ;;  %v2419_v53 = vld [vmem:[%s2571_s27 + $0x19c] ss:$28 sps:$4 sm:$0xff]  }
  0x41   : > { %2132 = vmatpush3.bf16.msra.mxu0 %v2367_v4 }
  0x42   : > { %2133 = vmatprep.subr.bf16.mxu0 %v2375_v6 }
  0x44   : > { %1149 = vmatmul.mubr.bf16.gmra.mxu0 %v2334_v56  ;;  %v2423_v56 = vld [vmem:[%s2571_s27 + $0x1d4] ss:$28 sps:$4 sm:$0xff]  }
  0x45   : > { %1156 = vmatprep.mubr.bf16.mxu0 %v2338_v58  ;;  %2134 = vmatpush3.bf16.msra.mxu0 %v2376_v7  ;;  %v2426_v58 = vld [vmem:[%s2571_s27 + $0x1d8] ss:$28 sps:$4 sm:$0xff]  }
  0x46   : > { %1270 = vmatmul.mubr.bf16.gmra.mxu1 %v2337_v57  ;;  %2135 = vmatprep.subr.bf16.mxu0 %v2383_v11  ;;  %v2425_v57 = vld [vmem:[%s2571_s27 + $0x1d0] ss:$28 sps:$4 sm:$0xff]  }
  0x47   : > { %1277 = vmatprep.mubr.bf16.mxu1 %v2341_v59  ;;  %v2427_v59 = vld [vmem:[%s2571_s27 + $0x20c] ss:$28 sps:$4 sm:$0xff]  }
  0x49   : > { %2136 = vmatpush3.bf16.msra.mxu0 %v2384_v12 }
  0x4c   : > { %1157 = vmatmul.mubr.bf16.gmra.mxu0 %v2340_v62  ;;  %v2431_v62 = vld [vmem:[%s2571_s27 + $0x244] ss:$28 sps:$4 sm:$0xff]  }
  0x4d   : > { %1164 = vmatprep.mubr.bf16.mxu0 %v2346_v1 }
  0x4e   : > { %1278 = vmatmul.mubr.bf16.gmra.mxu1 %v2343_v0  ;;  %v2434_v0 = vld [vmem:[%s2571_s27 + $0x248] ss:$28 sps:$4 sm:$0xff]   ;;  %s1771_s27 = sshll.u32 %s2896_s17, 2 }
  0x4f   : > { %1285 = vmatprep.mubr.bf16.mxu1 %v2349_v3  ;;  %v2748_v3 = vld [vmem:[%s2893_s2] ss:$0 sm:$0xff]  ;;  %s2822_s24 = scalar_lea.vmem %s2894_s3, %s1771_s27 }
  0x54   : > { %1165 = vmatmul.mubr.bf16.gmra.mxu0 %v2348_v5 }
  0x55   : > { %1172 = vmatprep.mubr.bf16.mxu0 %v2354_v9 }
  0x56   : > { %1286 = vmatmul.mubr.bf16.gmra.mxu1 %v2351_v8 }
  0x57   : > { %1293 = vmatprep.mubr.bf16.mxu1 %v2357_v10 }
  0x5c   : > { %1173 = vmatmul.mubr.bf16.gmra.mxu0 %v2356_v13 }
  0x5d   : > { %1180 = vmatprep.mubr.bf16.mxu0 %v2361_v15 }
  0x5e   : > { %1294 = vmatmul.mubr.bf16.gmra.mxu1 %v2359_v14 }
  0x5f   : > { %1301 = vmatprep.mubr.bf16.mxu1 %v2365_v16 }
  0x64   : > { %1181 = vmatmul.mubr.bf16.gmra.mxu0 %v2364_v17 }
  0x65   : > { %1188 = vmatprep.mubr.bf16.mxu0 %v2369_v19 }
  0x66   : > { %1302 = vmatmul.mubr.bf16.gmra.mxu1 %v2368_v18 }
  0x67   : > { %1309 = vmatprep.mubr.bf16.mxu1 %v2372_v20 }
  0x6c   : > { %1189 = vmatmul.mubr.bf16.gmra.mxu0 %v2371_v21 }
  0x6d   : > { %1196 = vmatprep.mubr.bf16.mxu0 %v2377_v23 }
  0x6e   : > { %1310 = vmatmul.mubr.bf16.gmra.mxu1 %v2374_v22 }
  0x6f   : > { %1317 = vmatprep.mubr.bf16.mxu1 %v2380_v24 }
  0x74   : > { %1197 = vmatmul.mubr.bf16.gmra.mxu0 %v2379_v25 }
  0x75   : > { %1204 = vmatprep.mubr.bf16.mxu0 %v2385_v27 }
  0x76   : > { %1318 = vmatmul.mubr.bf16.gmra.mxu1 %v2382_v26 }
  0x77   : > { %1325 = vmatprep.mubr.bf16.mxu1 %v2388_v28 }
  0x7c   : > { %1205 = vmatmul.mubr.bf16.gmra.mxu0 %v2387_v29 }
  0x7d   : > { %1366 = vmatprep.mubr.bf16.mxu0 %v2393_v31 }
  0x7e   : > { %1326 = vmatmul.mubr.bf16.gmra.mxu1 %v2390_v30 }
  0x7f   : > { %2220 = vmatprep.mubr.msk.bf16.mxu1 %vm2444_vm0, %v2443_v36 }
  0x84   : > { %1367 = vmatmul.mubr.bf16.vlgmr.msra.gmra.mxu0 %v2391_v32 }
  0x85   : > { %1374 = vmatprep.mubr.bf16.mxu0 %v2395_v34 }
  0x86   : > { %2221 = vmatmul.mubr.msk.bf16.vlgmr.msra.gmra.mxu1 %vm1058_vm1, %v2394_v33 }
  0x87   : > { %2224 = vmatprep.mubr.msk.bf16.mxu1 %vm2444_vm0, %v2443_v36 }
  0x8c   : > { %1375 = vmatmul.mubr.bf16.gmra.mxu0 %v2397_v35 }
  0x8d   : > { %1382 = vmatprep.mubr.bf16.mxu0 %v2399_v38 }
  0x8e   : > { %2225 = vmatmul.mubr.msk.bf16.gmra.mxu1 %vm1058_vm1, %v2398_v37 }
  0x8f   : > { %2228 = vmatprep.mubr.msk.bf16.mxu1 %vm2444_vm0, %v2443_v36 }
  0x94   : > { %1383 = vmatmul.mubr.bf16.gmra.mxu0 %v2401_v39 }
  0x95   : > { %1390 = vmatprep.mubr.bf16.mxu0 %v2403_v41 }
  0x96   : > { %2229 = vmatmul.mubr.msk.bf16.gmra.mxu1 %vm1058_vm1, %v2402_v40 }
  0x97   : > { %2232 = vmatprep.mubr.msk.bf16.mxu1 %vm2444_vm0, %v2443_v36 }
  0x9c   : > { %1391 = vmatmul.mubr.bf16.gmra.mxu0 %v2405_v42 }
  0x9d   : > { %1398 = vmatprep.mubr.bf16.mxu0 %v2407_v44 }
  0x9e   : > { %2233 = vmatmul.mubr.msk.bf16.gmra.mxu1 %vm1058_vm1, %v2406_v43 }
  0x9f   : > { %2236 = vmatprep.mubr.msk.bf16.mxu1 %vm2444_vm0, %v2443_v36 }
  0xa4   : > { %1399 = vmatmul.mubr.bf16.gmra.mxu0 %v2409_v45 }
  0xa5   : > { %1406 = vmatprep.mubr.bf16.mxu0 %v2411_v47 }
  0xa6   : > { %2237 = vmatmul.mubr.msk.bf16.gmra.mxu1 %vm1058_vm1, %v2410_v46 }
  0xa7   : > { %2240 = vmatprep.mubr.msk.bf16.mxu1 %vm2444_vm0, %v2443_v36 }
  0xac   : > { %1407 = vmatmul.mubr.bf16.gmra.mxu0 %v2413_v48 }
  0xad   : > { %1414 = vmatprep.mubr.bf16.mxu0 %v2415_v50 }
  0xae   : > { %2241 = vmatmul.mubr.msk.bf16.gmra.mxu1 %vm1058_vm1, %v2414_v49 }
  0xaf   : > { %2244 = vmatprep.mubr.msk.bf16.mxu1 %vm2444_vm0, %v2443_v36 }
  0xb4   : > { %1415 = vmatmul.mubr.bf16.gmra.mxu0 %v2417_v51 }
  0xb5   : > { %1422 = vmatprep.mubr.bf16.mxu0 %v2419_v53 }
  0xb6   : > { %2245 = vmatmul.mubr.msk.bf16.gmra.mxu1 %vm1058_vm1, %v2418_v52 }
  0xb7   : > { %2248 = vmatprep.mubr.msk.bf16.mxu1 %vm2444_vm0, %v2443_v36 }
  0xbc   : > { %1423 = vmatmul.mubr.bf16.gmra.mxu0 %v2421_v54 }
  0xbd   : > { %1430 = vmatprep.mubr.bf16.mxu0 %v2423_v56 }
  0xbe   : > { %2249 = vmatmul.mubr.msk.bf16.gmra.mxu1 %vm1058_vm1, %v2422_v55 }
  0xbf   : > { %2252 = vmatprep.mubr.msk.bf16.mxu1 %vm2444_vm0, %v2443_v36 }
  0xc4   : > { %1431 = vmatmul.mubr.bf16.gmra.mxu0 %v2425_v57 }
  0xc5   : > { %1438 = vmatprep.mubr.bf16.mxu0 %v2427_v59 }
  0xc6   : > { %2253 = vmatmul.mubr.msk.bf16.gmra.mxu1 %vm1058_vm1, %v2426_v58 }
  0xc7   : > { %2256 = vmatprep.mubr.msk.bf16.mxu1 %vm2444_vm0, %v2443_v36 }
  0xcc   : > { %1439 = vmatmul.mubr.bf16.gmra.mxu0 %v2429_v60 }
  0xcd   : > { %1446 = vmatprep.mubr.bf16.mxu0 %v2431_v62 }
  0xce   : > { %2257 = vmatmul.mubr.msk.bf16.gmra.mxu1 %vm1058_vm1, %v2430_v61 }
  0xcf   : > { %2260 = vmatprep.mubr.msk.bf16.mxu1 %vm2444_vm0, %v2443_v36 }
  0xd4   : > { %1447 = vmatmul.mubr.bf16.gmra.mxu0 %v2433_v63 }
  0xd6   : > { %2261 = vmatmul.mubr.msk.bf16.gmra.mxu1 %vm1058_vm1, %v2434_v0 }
  0xec   : > { %v1973_v1 = vpop.f32.mrf.mxu0 }
  0xee   : > { %v2055_v2 = vpop.f32.mrf.mxu1  ;;  %v1974_v4 = vpop.f32.mrf.mxu0 }
  0xef   : > { %v1975_v5 = vadd.f32 %v1974_v4, %v1973_v1 }
  0xf0   : > { %v2056_v6 = vpop.f32.mrf.mxu1  ;;  %v1976_v8 = vpop.f32.mrf.mxu0 }
  0xf1   : > { %v2057_v7 = vadd.f32 %v2056_v6, %v2055_v2  ;;  %v1127_v9 = vadd.f32 %v1975_v5, %v2748_v3 }
  0xf2   : > { %v2058_v36 = vpop.f32.mrf.mxu1  ;;  %v1977_v10 = vpop.f32.mrf.mxu0 }
  0xf3   : > { %v2751_v11 = vadd.f32 %v2057_v7, %v1127_v9  ;;  %v1978_v12 = vadd.f32 %v1977_v10, %v1976_v8 }
  0xf4   : > { %v2059_v13 = vpop.f32.mrf.mxu1  ;;  %v1979_v15 = vpop.f32.mrf.mxu0 }
  0xf5   : > { %v2060_v14 = vadd.f32 %v2059_v13, %v2058_v36  ;;  %v1130_v16 = vadd.f32 %v1978_v12, %v2748_v3 }
  0xf6   : > { %v2061_v17 = vpop.f32.mrf.mxu1  ;;  %v1980_v18 = vpop.f32.mrf.mxu0 }
  0xf7   : > { %v2754_v19 = vadd.f32 %v2060_v14, %v1130_v16  ;;  %v1981_v20 = vadd.f32 %v1980_v18, %v1979_v15 }
  0xf8   : > { %v2062_v21 = vpop.f32.mrf.mxu1  ;;  %v1982_v23 = vpop.f32.mrf.mxu0 }
  0xf9   : > { %v2063_v22 = vadd.f32 %v2062_v21, %v2061_v17  ;;  %v1135_v24 = vadd.f32 %v1981_v20, %v2748_v3 }
  0xfa   : > { %v2064_v25 = vpop.f32.mrf.mxu1  ;;  %v1983_v26 = vpop.f32.mrf.mxu0 }
  0xfb   : > { %v2757_v27 = vadd.f32 %v2063_v22, %v1135_v24  ;;  %v1984_v28 = vadd.f32 %v1983_v26, %v1982_v23 }
  0xfc   : > { %v2065_v29 = vpop.f32.mrf.mxu1  ;;  %v1985_v31 = vpop.f32.mrf.mxu0 }
  0xfd   : > { %v2066_v30 = vadd.f32 %v2065_v29, %v2064_v25  ;;  %v1138_v32 = vadd.f32 %v1984_v28, %v2748_v3 }
  0xfe   : > { %v2067_v33 = vpop.f32.mrf.mxu1  ;;  %v1986_v34 = vpop.f32.mrf.mxu0 }
  0xff   : > { %v2760_v35 = vadd.f32 %v2066_v30, %v1138_v32  ;;  %v1987_v37 = vadd.f32 %v1986_v34, %v1985_v31 }
 0x100   : > { %v2068_v38 = vpop.f32.mrf.mxu1  ;;  %v1988_v40 = vpop.f32.mrf.mxu0 }
 0x101   : > { %v2069_v39 = vadd.f32 %v2068_v38, %v2067_v33  ;;  %v1143_v41 = vadd.f32 %v1987_v37, %v2748_v3 }
 0x102   : > { %v2070_v42 = vpop.f32.mrf.mxu1  ;;  %v1989_v43 = vpop.f32.mrf.mxu0 }
 0x103   : > { %v2763_v44 = vadd.f32 %v2069_v39, %v1143_v41  ;;  %v1990_v45 = vadd.f32 %v1989_v43, %v1988_v40 }
 0x104   : > { %v2071_v46 = vpop.f32.mrf.mxu1  ;;  %v1991_v48 = vpop.f32.mrf.mxu0 }
 0x105   : > { %v2072_v47 = vadd.f32 %v2071_v46, %v2070_v42  ;;  %v1146_v49 = vadd.f32 %v1990_v45, %v2748_v3 }
 0x106   : > { %v2073_v50 = vpop.f32.mrf.mxu1  ;;  %v1992_v51 = vpop.f32.mrf.mxu0 }
 0x107   : > { %v2766_v52 = vadd.f32 %v2072_v47, %v1146_v49  ;;  %v1993_v53 = vadd.f32 %v1992_v51, %v1991_v48 }
 0x108   : > { %v2074_v54 = vpop.f32.mrf.mxu1  ;;  %v1994_v56 = vpop.f32.mrf.mxu0 }
 0x109   : > { %v2075_v55 = vadd.f32 %v2074_v54, %v2073_v50  ;;  %v1151_v57 = vadd.f32 %v1993_v53, %v2748_v3 }
 0x10a   : > { %v2076_v58 = vpop.f32.mrf.mxu1  ;;  %v1995_v59 = vpop.f32.mrf.mxu0 }
 0x10b   : > { %v2769_v60 = vadd.f32 %v2075_v55, %v1151_v57  ;;  %v1996_v61 = vadd.f32 %v1995_v59, %v1994_v56 }
 0x10c   : > { %v2077_v62 = vpop.f32.mrf.mxu1  ;;  %v1997_v0 = vpop.f32.mrf.mxu0 }
 0x10d   : > { %v2078_v63 = vadd.f32 %v2077_v62, %v2076_v58  ;;  %v1154_v1 = vadd.f32 %v1996_v61, %v2748_v3 }
 0x10e   : > { %v2079_v2 = vpop.f32.mrf.mxu1  ;;  %v1998_v4 = vpop.f32.mrf.mxu0 }
 0x10f   : > { %v2772_v5 = vadd.f32 %v2078_v63, %v1154_v1  ;;  %v1999_v6 = vadd.f32 %v1998_v4, %v1997_v0 }
 0x110   : > { %v2080_v7 = vpop.f32.mrf.mxu1  ;;  %v2000_v9 = vpop.f32.mrf.mxu0 }
 0x111   : > { %v2081_v8 = vadd.f32 %v2080_v7, %v2079_v2  ;;  %v1159_v36 = vadd.f32 %v1999_v6, %v2748_v3 }
 0x112   : > { %v2082_v10 = vpop.f32.mrf.mxu1  ;;  %v2001_v12 = vpop.f32.mrf.mxu0 }
 0x113   : > { %v2775_v13 = vadd.f32 %v2081_v8, %v1159_v36  ;;  %v2002_v14 = vadd.f32 %v2001_v12, %v2000_v9 }
 0x114   : > { %v2083_v15 = vpop.f32.mrf.mxu1  ;;  %v2003_v17 = vpop.f32.mrf.mxu0 }
 0x115   : > { %v2084_v16 = vadd.f32 %v2083_v15, %v2082_v10  ;;  %v1162_v18 = vadd.f32 %v2002_v14, %v2748_v3 }
 0x116   : > { %v2085_v20 = vpop.f32.mrf.mxu1  ;;  %v2004_v21 = vpop.f32.mrf.mxu0 }
 0x117   : > { %v2778_v22 = vadd.f32 %v2084_v16, %v1162_v18  ;;  %v2005_v23 = vadd.f32 %v2004_v21, %v2003_v17 }
 0x118   : > { %v2086_v24 = vpop.f32.mrf.mxu1  ;;  %v2006_v26 = vpop.f32.mrf.mxu0 }
 0x119   : > { %v2087_v25 = vadd.f32 %v2086_v24, %v2085_v20  ;;  %v1167_v28 = vadd.f32 %v2005_v23, %v2748_v3 }
 0x11a   : > { %v2088_v29 = vpop.f32.mrf.mxu1  ;;  %v2007_v30 = vpop.f32.mrf.mxu0 }
 0x11b   : > { %v2781_v31 = vadd.f32 %v2087_v25, %v1167_v28  ;;  %v2008_v32 = vadd.f32 %v2007_v30, %v2006_v26 }
 0x11c   : > { %v2089_v33 = vpop.f32.mrf.mxu1  ;;  %v2009_v37 = vpop.f32.mrf.mxu0 }
 0x11d   : > { %v2090_v34 = vadd.f32 %v2089_v33, %v2088_v29  ;;  %v1170_v38 = vadd.f32 %v2008_v32, %v2748_v3 }
 0x11e   : > { %v2091_v39 = vpop.f32.mrf.mxu1  ;;  %v2010_v40 = vpop.f32.mrf.mxu0 }
 0x11f   : > { %v2784_v41 = vadd.f32 %v2090_v34, %v1170_v38  ;;  %v2011_v42 = vadd.f32 %v2010_v40, %v2009_v37 }
 0x120   : > { %v2092_v43 = vpop.f32.mrf.mxu1  ;;  %v2012_v46 = vpop.f32.mrf.mxu0 }
 0x121   : > { %v2093_v45 = vadd.f32 %v2092_v43, %v2091_v39  ;;  %v1175_v47 = vadd.f32 %v2011_v42, %v2748_v3 }
 0x122   : > { %v2094_v48 = vpop.f32.mrf.mxu1  ;;  %v2013_v49 = vpop.f32.mrf.mxu0 }
 0x123   : > { %v2787_v50 = vadd.f32 %v2093_v45, %v1175_v47  ;;  %v2014_v51 = vadd.f32 %v2013_v49, %v2012_v46 }
 0x124   : > { %v2095_v53 = vpop.f32.mrf.mxu1  ;;  %v2015_v55 = vpop.f32.mrf.mxu0 }
 0x125   : > { %v2096_v54 = vadd.f32 %v2095_v53, %v2094_v48  ;;  %v1178_v56 = vadd.f32 %v2014_v51, %v2748_v3 }
 0x126   : > { %v2097_v57 = vpop.f32.mrf.mxu1  ;;  %v2016_v58 = vpop.f32.mrf.mxu0 }
 0x127   : > { %v2790_v59 = vadd.f32 %v2096_v54, %v1178_v56  ;;  %v2017_v61 = vadd.f32 %v2016_v58, %v2015_v55 }
 0x128   : > { %v2098_v62 = vpop.f32.mrf.mxu1  ;;  %v2018_v0 = vpop.f32.mrf.mxu0 }
 0x129   : > { %v2099_v63 = vadd.f32 %v2098_v62, %v2097_v57  ;;  %v1183_v1 = vadd.f32 %v2017_v61, %v2748_v3 }
 0x12a   : > { %v2100_v2 = vpop.f32.mrf.mxu1  ;;  %v2019_v4 = vpop.f32.mrf.mxu0 }
 0x12b   : > { %v2793_v6 = vadd.f32 %v2099_v63, %v1183_v1  ;;  %v2020_v7 = vadd.f32 %v2019_v4, %v2018_v0 }
 0x12c   : > { %v2101_v8 = vpop.f32.mrf.mxu1  ;;  %v2021_v36 = vpop.f32.mrf.mxu0 }
 0x12d   : > { %v2102_v9 = vadd.f32 %v2101_v8, %v2100_v2  ;;  %v1186_v10 = vadd.f32 %v2020_v7, %v2748_v3 }
 0x12e   : > { %v2103_v12 = vpop.f32.mrf.mxu1  ;;  %v2022_v14 = vpop.f32.mrf.mxu0 }
 0x12f   : > { %v2796_v15 = vadd.f32 %v2102_v9, %v1186_v10  ;;  %v2023_v16 = vadd.f32 %v2022_v14, %v2021_v36 }
 0x130   : > { %v2104_v17 = vpop.f32.mrf.mxu1  ;;  %v2024_v20 = vpop.f32.mrf.mxu0 }
 0x131   : > { %v2105_v18 = vadd.f32 %v2104_v17, %v2103_v12  ;;  %v1191_v21 = vadd.f32 %v2023_v16, %v2748_v3 }
 0x132   : > { %v2106_v23 = vpop.f32.mrf.mxu1  ;;  %v2025_v24 = vpop.f32.mrf.mxu0 }
 0x133   : > { %v2799_v25 = vadd.f32 %v2105_v18, %v1191_v21  ;;  %v2026_v26 = vadd.f32 %v2025_v24, %v2024_v20 }
 0x134   : > { %v2107_v28 = vpop.f32.mrf.mxu1  ;;  %v2027_v30 = vpop.f32.mrf.mxu0 }
 0x135   : > { %v2108_v29 = vadd.f32 %v2107_v28, %v2106_v23  ;;  %v1194_v32 = vadd.f32 %v2026_v26, %v2748_v3 }
 0x136   : > { %v2109_v33 = vpop.f32.mrf.mxu1  ;;  %v2028_v34 = vpop.f32.mrf.mxu0 }
 0x137   : > { %v2802_v37 = vadd.f32 %v2108_v29, %v1194_v32  ;;  %v2029_v38 = vadd.f32 %v2028_v34, %v2027_v30 }
 0x138   : > { %v2110_v39 = vpop.f32.mrf.mxu1  ;;  %v2030_v42 = vpop.f32.mrf.mxu0 }
 0x139   : > { %v2111_v40 = vadd.f32 %v2110_v39, %v2109_v33  ;;  %v1199_v43 = vadd.f32 %v2029_v38, %v2748_v3 }
 0x13a   : > { %v2112_v45 = vpop.f32.mrf.mxu1  ;;  %v2031_v46 = vpop.f32.mrf.mxu0 }
 0x13b   : > { %v2805_v47 = vadd.f32 %v2111_v40, %v1199_v43  ;;  %v2032_v48 = vadd.f32 %v2031_v46, %v2030_v42 }
 0x13c   : > { %v2113_v49 = vpop.f32.mrf.mxu1  ;;  %v2033_v53 = vpop.f32.mrf.mxu0 }
 0x13d   : > { %v2114_v51 = vadd.f32 %v2113_v49, %v2112_v45  ;;  %v1202_v54 = vadd.f32 %v2032_v48, %v2748_v3 }
 0x13e   : > { %v2115_v55 = vpop.f32.mrf.mxu1  ;;  %v2034_v56 = vpop.f32.mrf.mxu0 }
 0x13f   : > { %v2808_v57 = vadd.f32 %v2114_v51, %v1202_v54  ;;  %v2035_v58 = vadd.f32 %v2034_v56, %v2033_v53 }
 0x140   : > { %v2116_v61 = vpop.f32.mrf.mxu1  ;;  %v2036_v63 = vpop.f32.mrf.mxu0 }
 0x141   : > { %v2117_v62 = vadd.f32 %v2116_v61, %v2115_v55  ;;  %v1207_v0 = vadd.f32 %v2035_v58, %v2748_v3 }
 0x142   : > { %v2118_v1 = vpop.f32.mrf.mxu1  ;;  %v2037_v2 = vpop.f32.mrf.mxu0 }
 0x143   : > { %v2811_v4 = vadd.f32 %v2117_v62, %v1207_v0  ;;  %v2038_v7 = vadd.f32 %v2037_v2, %v2036_v63 }
 0x144   : > { %v2119_v8 = vpop.f32.mrf.mxu1  ;;  %v2137_v36 = vpop.f32.mrf.mxu0 }
 0x145   : > { %v2120_v9 = vadd.f32 %v2119_v8, %v2118_v1  ;;  %v1210_v10 = vadd.f32 %v2038_v7, %v2748_v3 }
 0x146   : > { %v1489_v12 = vpop.f32.mrf.mxu1  ;;  %v2138_v14 = vpop.f32.mrf.mxu0 }
 0x147   : > { %v2814_v16 = vadd.f32 %v2120_v9, %v1210_v10  ;;  %v2139_v17 = vadd.f32 %v2138_v14, %v2137_v36 }
 0x148   : > { %v2222_v18 = vpop.f32.mrf.mxu1  ;;  %v2140_v20 = vpop.f32.mrf.mxu0 }
 0x149   : > { %v1369_v21 = vadd.f32 %v2139_v17, %v2751_v11 }
 0x14a   : > { %v1492_v23 = vpop.f32.mrf.mxu1  ;;  %v2141_v24 = vpop.f32.mrf.mxu0 }
 0x14b   : > { %v1490_v26 = vadd.f32 %v1489_v12, %v1369_v21  ;;  %v2142_v28 = vadd.f32 %v2141_v24, %v2140_v20 }
 0x14c   : > { %v2223_v29 = vpop.f32.mrf.mxu1  ;;  %v2143_v30 = vpop.f32.mrf.mxu0 }
 0x14d   : > { %v1576_v32 = vmax.f32 %v1490_v26, 0.0  ;;  %v1372_v33 = vadd.f32 %v2142_v28, %v2754_v19 }
 0x14e   : > { %v1497_v3 = vpop.f32.mrf.mxu1  ;;  %v2144_v34 = vpop.f32.mrf.mxu0 }
 0x14f   : > { %v1935_v11 = vpack.c.bf16 %v1576_v32, %v1576_v32  ;;  %v1493_v38 = vadd.f32 %v1492_v23, %v1372_v33  ;;  %v2145_v39 = vadd.f32 %v2144_v34, %v2143_v30 }
 0x150   : > { %v2226_v40 = vpop.f32.mrf.mxu1  ;;  %v2146_v42 = vpop.f32.mrf.mxu0 }
 0x151   : > { %1687 = vst.msk [vmem:[%s2822_s24] sm:$0xf] %vm1686_vm2, %v1935_v11  ;;  %v1577_v43 = vmax.f32 %v1493_v38, 0.0  ;;  %v1377_v19 = vadd.f32 %v2145_v39, %v2757_v27 }
 0x152   : > { %v1500_v45 = vpop.f32.mrf.mxu1  ;;  %v2147_v46 = vpop.f32.mrf.mxu0 }
 0x153   : > { %v1936_v48 = vpack.c.bf16 %v1577_v43, %v1577_v43  ;;  %v1498_v49 = vadd.f32 %v1497_v3, %v1377_v19  ;;  %v2148_v51 = vadd.f32 %v2147_v46, %v2146_v42 }
 0x154   : > { %v2227_v53 = vpop.f32.mrf.mxu1  ;;  %v2149_v54 = vpop.f32.mrf.mxu0 }
 0x155   : > { %1688 = vst.msk [vmem:[%s2822_s24 + $0x4] sm:$0xf] %vm1686_vm2, %v1936_v48  ;;  %v1578_v55 = vmax.f32 %v1498_v49, 0.0  ;;  %v1380_v56 = vadd.f32 %v2148_v51, %v2760_v35 }
 0x156   : > { %v1505_v58 = vpop.f32.mrf.mxu1  ;;  %v2150_v61 = vpop.f32.mrf.mxu0 }
 0x157   : > { %v1937_v62 = vpack.c.bf16 %v1578_v55, %v1578_v55  ;;  %v1501_v63 = vadd.f32 %v1500_v45, %v1380_v56  ;;  %v2151_v0 = vadd.f32 %v2150_v61, %v2149_v54 }
 0x158   : > { %v2230_v27 = vpop.f32.mrf.mxu1  ;;  %v2152_v1 = vpop.f32.mrf.mxu0 }
 0x159   : > { %1689 = vst.msk [vmem:[%s2822_s24 + $0x8] sm:$0xf] %vm1686_vm2, %v1937_v62  ;;  %v1579_v2 = vmax.f32 %v1501_v63, 0.0  ;;  %v1385_v7 = vadd.f32 %v2151_v0, %v2763_v44 }
 0x15a   : > { %v1508_v8 = vpop.f32.mrf.mxu1  ;;  %v2153_v9 = vpop.f32.mrf.mxu0 }
 0x15b   : > { %v1938_v36 = vpack.c.bf16 %v1579_v2, %v1579_v2  ;;  %v1506_v10 = vadd.f32 %v1505_v58, %v1385_v7  ;;  %v2154_v12 = vadd.f32 %v2153_v9, %v2152_v1 }
 0x15c   : > { %v2231_v35 = vpop.f32.mrf.mxu1  ;;  %v2155_v14 = vpop.f32.mrf.mxu0 }
 0x15d   : > { %1690 = vst.msk [vmem:[%s2822_s24 + $0xc] sm:$0xf] %vm1686_vm2, %v1938_v36  ;;  %v1580_v17 = vmax.f32 %v1506_v10, 0.0  ;;  %v1388_v18 = vadd.f32 %v2154_v12, %v2766_v52 }
 0x15e   : > { %v1513_v20 = vpop.f32.mrf.mxu1  ;;  %v2156_v21 = vpop.f32.mrf.mxu0 }
 0x15f   : > { %v1939_v23 = vpack.c.bf16 %v1580_v17, %v1580_v17  ;;  %v1509_v24 = vadd.f32 %v1508_v8, %v1388_v18  ;;  %v2157_v26 = vadd.f32 %v2156_v21, %v2155_v14 }
 0x160   : > { %v2234_v44 = vpop.f32.mrf.mxu1  ;;  %v2158_v28 = vpop.f32.mrf.mxu0 }
 0x161   : > { %1691 = vst.msk [vmem:[%s2822_s24 + $0x10] sm:$0xf] %vm1686_vm2, %v1939_v23  ;;  %v1581_v29 = vmax.f32 %v1509_v24, 0.0  ;;  %v1393_v30 = vadd.f32 %v2157_v26, %v2769_v60 }
 0x162   : > { %v1516_v32 = vpop.f32.mrf.mxu1  ;;  %v2159_v33 = vpop.f32.mrf.mxu0 }
 0x163   : > { %v1940_v3 = vpack.c.bf16 %v1581_v29, %v1581_v29  ;;  %v1514_v34 = vadd.f32 %v1513_v20, %v1393_v30  ;;  %v2160_v11 = vadd.f32 %v2159_v33, %v2158_v28 }
 0x164   : > { %v2235_v52 = vpop.f32.mrf.mxu1  ;;  %v2161_v38 = vpop.f32.mrf.mxu0 }
 0x165   : > { %1692 = vst.msk [vmem:[%s2822_s24 + $0x14] sm:$0xf] %vm1686_vm2, %v1940_v3  ;;  %v1582_v39 = vmax.f32 %v1514_v34, 0.0  ;;  %v1396_v40 = vadd.f32 %v2160_v11, %v2772_v5 }
 0x166   : > { %v1521_v42 = vpop.f32.mrf.mxu1  ;;  %v2162_v43 = vpop.f32.mrf.mxu0 }
 0x167   : > { %v1941_v19 = vpack.c.bf16 %v1582_v39, %v1582_v39  ;;  %v1517_v45 = vadd.f32 %v1516_v32, %v1396_v40  ;;  %v2163_v46 = vadd.f32 %v2162_v43, %v2161_v38 }
 0x168   : > { %v2238_v60 = vpop.f32.mrf.mxu1  ;;  %v2164_v48 = vpop.f32.mrf.mxu0 }
 0x169   : > { %1693 = vst.msk [vmem:[%s2822_s24 + $0x18] sm:$0xf] %vm1686_vm2, %v1941_v19  ;;  %v1583_v49 = vmax.f32 %v1517_v45, 0.0  ;;  %v1401_v51 = vadd.f32 %v2163_v46, %v2775_v13 }
 0x16a   : > { %v1524_v53 = vpop.f32.mrf.mxu1  ;;  %v2165_v54 = vpop.f32.mrf.mxu0 }
 0x16b   : > { %v1942_v55 = vpack.c.bf16 %v1583_v49, %v1583_v49  ;;  %v1522_v56 = vadd.f32 %v1521_v42, %v1401_v51  ;;  %v2166_v58 = vadd.f32 %v2165_v54, %v2164_v48 }
 0x16c   : > { %v2239_v5 = vpop.f32.mrf.mxu1  ;;  %v2167_v61 = vpop.f32.mrf.mxu0 }
 0x16d   : > { %1694 = vst.msk [vmem:[%s2822_s24 + $0x1c] sm:$0xf] %vm1686_vm2, %v1942_v55  ;;  %v1584_v62 = vmax.f32 %v1522_v56, 0.0  ;;  %v1404_v63 = vadd.f32 %v2166_v58, %v2778_v22 }
 0x16e   : > { %v1529_v0 = vpop.f32.mrf.mxu1  ;;  %v2168_v27 = vpop.f32.mrf.mxu0 }
 0x16f   : > { %v1943_v1 = vpack.c.bf16 %v1584_v62, %v1584_v62  ;;  %v1525_v2 = vadd.f32 %v1524_v53, %v1404_v63  ;;  %v2169_v7 = vadd.f32 %v2168_v27, %v2167_v61 }
 0x170   : > { %v2242_v13 = vpop.f32.mrf.mxu1  ;;  %v2170_v8 = vpop.f32.mrf.mxu0 }
 0x171   : > { %1695 = vst.msk [vmem:[%s2822_s24 + $0x20] sm:$0xf] %vm1686_vm2, %v1943_v1  ;;  %v1585_v9 = vmax.f32 %v1525_v2, 0.0  ;;  %v1409_v36 = vadd.f32 %v2169_v7, %v2781_v31 }
 0x172   : > { %v1532_v10 = vpop.f32.mrf.mxu1  ;;  %v2171_v12 = vpop.f32.mrf.mxu0 }
 0x173   : > { %v1944_v35 = vpack.c.bf16 %v1585_v9, %v1585_v9  ;;  %v1530_v14 = vadd.f32 %v1529_v0, %v1409_v36  ;;  %v2172_v17 = vadd.f32 %v2171_v12, %v2170_v8 }
 0x174   : > { %v2243_v22 = vpop.f32.mrf.mxu1  ;;  %v2173_v18 = vpop.f32.mrf.mxu0 }
 0x175   : > { %1696 = vst.msk [vmem:[%s2822_s24 + $0x24] sm:$0xf] %vm1686_vm2, %v1944_v35  ;;  %v1586_v20 = vmax.f32 %v1530_v14, 0.0  ;;  %v1412_v21 = vadd.f32 %v2172_v17, %v2784_v41 }
 0x176   : > { %v1537_v23 = vpop.f32.mrf.mxu1  ;;  %v2174_v24 = vpop.f32.mrf.mxu0 }
 0x177   : > { %v1945_v26 = vpack.c.bf16 %v1586_v20, %v1586_v20  ;;  %v1533_v44 = vadd.f32 %v1532_v10, %v1412_v21  ;;  %v2175_v28 = vadd.f32 %v2174_v24, %v2173_v18 }
 0x178   : > { %v2246_v31 = vpop.f32.mrf.mxu1  ;;  %v2176_v29 = vpop.f32.mrf.mxu0 }
 0x179   : > { %1697 = vst.msk [vmem:[%s2822_s24 + $0x28] sm:$0xf] %vm1686_vm2, %v1945_v26  ;;  %v1587_v30 = vmax.f32 %v1533_v44, 0.0  ;;  %v1417_v32 = vadd.f32 %v2175_v28, %v2787_v50 }
 0x17a   : > { %v1540_v33 = vpop.f32.mrf.mxu1  ;;  %v2177_v3 = vpop.f32.mrf.mxu0 }
 0x17b   : > { %v1946_v34 = vpack.c.bf16 %v1587_v30, %v1587_v30  ;;  %v1538_v11 = vadd.f32 %v1537_v23, %v1417_v32  ;;  %v2178_v52 = vadd.f32 %v2177_v3, %v2176_v29 }
 0x17c   : > { %v2247_v41 = vpop.f32.mrf.mxu1  ;;  %v2179_v38 = vpop.f32.mrf.mxu0 }
 0x17d   : > { %1698 = vst.msk [vmem:[%s2822_s24 + $0x2c] sm:$0xf] %vm1686_vm2, %v1946_v34  ;;  %v1588_v39 = vmax.f32 %v1538_v11, 0.0  ;;  %v1420_v40 = vadd.f32 %v2178_v52, %v2790_v59 }
 0x17e   : > { %v1545_v42 = vpop.f32.mrf.mxu1  ;;  %v2180_v43 = vpop.f32.mrf.mxu0 }
 0x17f   : > { %v1947_v19 = vpack.c.bf16 %v1588_v39, %v1588_v39  ;;  %v1541_v45 = vadd.f32 %v1540_v33, %v1420_v40  ;;  %v2181_v46 = vadd.f32 %v2180_v43, %v2179_v38 }
 0x180   : > { %v2250_v50 = vpop.f32.mrf.mxu1  ;;  %v2182_v60 = vpop.f32.mrf.mxu0 }
 0x181   : > { %1699 = vst.msk [vmem:[%s2822_s24 + $0x30] sm:$0xf] %vm1686_vm2, %v1947_v19  ;;  %v1589_v48 = vmax.f32 %v1541_v45, 0.0  ;;  %v1425_v49 = vadd.f32 %v2181_v46, %v2793_v6 }
 0x182   : > { %v1548_v51 = vpop.f32.mrf.mxu1  ;;  %v2183_v53 = vpop.f32.mrf.mxu0 }
 0x183   : > { %v1948_v54 = vpack.c.bf16 %v1589_v48, %v1589_v48  ;;  %v1546_v55 = vadd.f32 %v1545_v42, %v1425_v49  ;;  %v2184_v56 = vadd.f32 %v2183_v53, %v2182_v60 }
 0x184   : > { %v2251_v59 = vpop.f32.mrf.mxu1  ;;  %v2185_v58 = vpop.f32.mrf.mxu0 }
 0x185   : > { %1700 = vst.msk [vmem:[%s2822_s24 + $0x34] sm:$0xf] %vm1686_vm2, %v1948_v54  ;;  %v1590_v5 = vmax.f32 %v1546_v55, 0.0  ;;  %v1428_v61 = vadd.f32 %v2184_v56, %v2796_v15 }
 0x186   : > { %v1553_v62 = vpop.f32.mrf.mxu1  ;;  %v2186_v63 = vpop.f32.mrf.mxu0 }
 0x187   : > { %v1949_v0 = vpack.c.bf16 %v1590_v5, %v1590_v5  ;;  %v1549_v27 = vadd.f32 %v1548_v51, %v1428_v61  ;;  %v2187_v1 = vadd.f32 %v2186_v63, %v2185_v58 }
 0x188   : > { %v2254_v6 = vpop.f32.mrf.mxu1  ;;  %v2188_v2 = vpop.f32.mrf.mxu0 }
 0x189   : > { %1701 = vst.msk [vmem:[%s2822_s24 + $0x38] sm:$0xf] %vm1686_vm2, %v1949_v0  ;;  %v1591_v7 = vmax.f32 %v1549_v27, 0.0  ;;  %v1433_v13 = vadd.f32 %v2187_v1, %v2799_v25 }
 0x18a   : > { %v1556_v8 = vpop.f32.mrf.mxu1  ;;  %v2189_v9 = vpop.f32.mrf.mxu0 }
 0x18b   : > { %v1950_v36 = vpack.c.bf16 %v1591_v7, %v1591_v7  ;;  %v1554_v10 = vadd.f32 %v1553_v62, %v1433_v13  ;;  %v2190_v12 = vadd.f32 %v2189_v9, %v2188_v2 }
 0x18c   : > { %v2255_v15 = vpop.f32.mrf.mxu1  ;;  %v2191_v35 = vpop.f32.mrf.mxu0 }
 0x18d   : > { %1702 = vst.msk [vmem:[%s2822_s24 + $0x3c] sm:$0xf] %vm1686_vm2, %v1950_v36  ;;  %v1592_v14 = vmax.f32 %v1554_v10, 0.0  ;;  %v1436_v17 = vadd.f32 %v2190_v12, %v2802_v37 }
 0x18e   : > { %v1561_v22 = vpop.f32.mrf.mxu1  ;;  %v2192_v18 = vpop.f32.mrf.mxu0 }
 0x18f   : > { %v1951_v20 = vpack.c.bf16 %v1592_v14, %v1592_v14  ;;  %v1557_v21 = vadd.f32 %v1556_v8, %v1436_v17  ;;  %v2193_v23 = vadd.f32 %v2192_v18, %v2191_v35 }
 0x190   : > { %v2258_v25 = vpop.f32.mrf.mxu1  ;;  %v2194_v24 = vpop.f32.mrf.mxu0 }
 0x191   : > { %1703 = vst.msk [vmem:[%s2822_s24 + $0x40] sm:$0xf] %vm1686_vm2, %v1951_v20  ;;  %v1593_v26 = vmax.f32 %v1557_v21, 0.0  ;;  %v1441_v44 = vadd.f32 %v2193_v23, %v2805_v47 }
 0x192   : > { %v1564_v28 = vpop.f32.mrf.mxu1  ;;  %v2195_v31 = vpop.f32.mrf.mxu0 }
 0x193   : > { %v1952_v29 = vpack.c.bf16 %v1593_v26, %v1593_v26  ;;  %v1562_v30 = vadd.f32 %v1561_v22, %v1441_v44  ;;  %v2196_v32 = vadd.f32 %v2195_v31, %v2194_v24 }
 0x194   : > { %v2259_v37 = vpop.f32.mrf.mxu1  ;;  %v2197_v33 = vpop.f32.mrf.mxu0 }
 0x195   : > { %1704 = vst.msk [vmem:[%s2822_s24 + $0x44] sm:$0xf] %vm1686_vm2, %v1952_v29  ;;  %v1594_v3 = vmax.f32 %v1562_v30, 0.0  ;;  %v1444_v34 = vadd.f32 %v2196_v32, %v2808_v57 }
 0x196   : > { %v1569_v11 = vpop.f32.mrf.mxu1  ;;  %v2198_v52 = vpop.f32.mrf.mxu0 }
 0x197   : > { %v1953_v41 = vpack.c.bf16 %v1594_v3, %v1594_v3  ;;  %v1565_v38 = vadd.f32 %v1564_v28, %v1444_v34  ;;  %v2199_v39 = vadd.f32 %v2198_v52, %v2197_v33 }
 0x198   : > { %v2262_v47 = vpop.f32.mrf.mxu1  ;;  %v2200_v40 = vpop.f32.mrf.mxu0 }
 0x199   : > { %1705 = vst.msk [vmem:[%s2822_s24 + $0x48] sm:$0xf] %vm1686_vm2, %v1953_v41  ;;  %v1595_v42 = vmax.f32 %v1565_v38, 0.0  ;;  %v1449_v43 = vadd.f32 %v2199_v39, %v2811_v4 }
 0x19a   : > { %v1572_v19 = vpop.f32.mrf.mxu1  ;;  %v2201_v45 = vpop.f32.mrf.mxu0 }
 0x19b   : > { %v1954_v46 = vpack.c.bf16 %v1595_v42, %v1595_v42  ;;  %v1570_v50 = vadd.f32 %v1569_v11, %v1449_v43  ;;  %v2202_v57 = vadd.f32 %v2201_v45, %v2200_v40 }
 0x19c   : > { %v2263_v60 = vpop.f32.mrf.mxu1 }
 0x19d   : > { %1706 = vst.msk [vmem:[%s2822_s24 + $0x4c] sm:$0xf] %vm1686_vm2, %v1954_v46  ;;  %v1596_v48 = vmax.f32 %v1570_v50, 0.0  ;;  %v1452_v49 = vadd.f32 %v2202_v57, %v2814_v16 }
 0x19f   : > { %v1955_v51 = vpack.c.bf16 %v1596_v48, %v1596_v48  ;;  %v1573_v53 = vadd.f32 %v1572_v19, %v1452_v49 }
 0x1a1   : > { %1707 = vst.msk [vmem:[%s2822_s24 + $0x50] sm:$0xf] %vm1686_vm2, %v1955_v51  ;;  %v1597_v54 = vmax.f32 %v1573_v53, 0.0 }
 0x1a3   : > { %v1956_v55 = vpack.c.bf16 %v1597_v54, %v1597_v54 }
 0x1a5   : > { %1708 = vst.msk [vmem:[%s2822_s24 + $0x54] sm:$0xf] %vm1686_vm2, %v1956_v55 }
 0x1a6 PF: > { %s13_s12 = sadd.s32 1, %s2441_s12  }
 0x1a7   : > { %p10_p4 = scmp.ge.s32.totalorder %s13_s12, 4  }
 0x1a9   :  { %12 = sbr.rel (!%p10_p4) target bundleno = 1 (0x1), region = 62 }

// kernel: cnn_critic_forward.7
= control target key start
LH: loop header
LB: loop body
LE: loop exit
PB: predicated region body
PF: predicated region fallthrough
CT: control target
= control target key end

     0   :  { %vm10121_vm0 = vmmov 0   ;;  %vm5778_vm1 = vcmask 523264   ;;  %vm7527_vm2 = vcmask 1043456   ;;  %vm7523_vm3 = vcmask 818176   ;;  %s12418_s1 = inlined_call_operand.vmem [shape: bf16[10816,100], index: 1, kind: input, shape index: {}]   ;;  %s12419_s0 = inlined_call_operand.vmem [shape: bf16[8,10816], index: 0, kind: input, shape index: {}]   ;;  %s12420_s2 = inlined_call_operand.vmem [shape: f32[1,100], index: 2, kind: input, shape index: {}]   ;;  %s12421_s3 = inlined_call_operand.vmem [shape: f32[100,1], index: 3, kind: input, shape index: {}]   ;;  %s12422_s4 = inlined_call_operand.<no memory space> [shape: f32[1,1], index: 4, kind: input, shape index: {}]   ;;  %s12423_s5 = inlined_call_operand.vmem [shape: f32[8,1], index: 5, kind: output, shape index: {}]  }
   0x1   :  { %v9359_v0 = vld [vmem:[%s12418_s1 + $0x78] sm:$0xff]   ;;  %v9363_v4 = vld [vmem:[%s12418_s1 + $0x70] sm:$0xff]   ;;  %v9367_v8 = vld [vmem:[%s12418_s1 + $0x68] sm:$0xff]   ;;  %vm7601_vm4 = vcmask 7168  }
   0x2   :  { %v9360_v1 = vld [vmem:[%s12418_s1 + $0x38] sm:$0xff]   ;;  %8373 = vmatprep.subr.bf16.mxu0 %v9359_v0  ;;  %v9364_v5 = vld [vmem:[%s12418_s1 + $0x30] sm:$0xff]   ;;  %v9368_v9 = vld [vmem:[%s12418_s1 + $0x28] sm:$0xff]  }
   0x3   :  { %v9361_v2 = vld [vmem:[%s12418_s1 + $0xf8] sm:$0xff]   ;;  %8374 = vmatpush3.bf16.msra.mxu0 %v9360_v1  ;;  %v9365_v6 = vld [vmem:[%s12418_s1 + $0xf0] sm:$0xff]   ;;  %v9369_v10 = vld [vmem:[%s12418_s1 + $0xe8] sm:$0xff]  }
   0x4   :  { %v9362_v3 = vld [vmem:[%s12418_s1 + $0xb8] sm:$0xff]   ;;  %8395 = vmatprep.subr.bf16.mxu1 %v9361_v2  ;;  %8375 = vmatprep.subr.bf16.mxu0 %v9363_v4  ;;  %v9366_v7 = vld [vmem:[%s12418_s1 + $0xb0] sm:$0xff]   ;;  %v9370_v11 = vld [vmem:[%s12418_s1 + $0xa8] sm:$0xff]  }
   0x5   :  { %8396 = vmatpush3.bf16.msra.mxu1 %v9362_v3  ;;  %v9371_v12 = vld [vmem:[%s12418_s1 + $0x60] sm:$0xff]   ;;  %v9375_v16 = vld [vmem:[%s12418_s1 + $0x58] sm:$0xff]   ;;  %v9379_v20 = vld [vmem:[%s12418_s1 + $0x50] sm:$0xff]  }
   0x6   :  { %8397 = vmatprep.subr.bf16.mxu1 %v9365_v6  ;;  %v9372_v13 = vld [vmem:[%s12418_s1 + $0x20] sm:$0xff]   ;;  %v9376_v17 = vld [vmem:[%s12418_s1 + $0x18] sm:$0xff]   ;;  %v9380_v21 = vld [vmem:[%s12418_s1 + $0x10] sm:$0xff]  }
   0x7   :  { %8376 = vmatpush3.bf16.msra.mxu0 %v9364_v5  ;;  %v9373_v14 = vld [vmem:[%s12418_s1 + $0xe0] sm:$0xff]   ;;  %v9377_v18 = vld [vmem:[%s12418_s1 + $0xd8] sm:$0xff]   ;;  %v9381_v22 = vld [vmem:[%s12418_s1 + $0xd0] sm:$0xff]  }
   0x8   :  { %8377 = vmatprep.subr.bf16.mxu0 %v9367_v8  ;;  %v9374_v15 = vld [vmem:[%s12418_s1 + $0xa0] sm:$0xff]   ;;  %v9378_v19 = vld [vmem:[%s12418_s1 + $0x98] sm:$0xff]   ;;  %v9382_v23 = vld [vmem:[%s12418_s1 + $0x90] sm:$0xff]  }
   0x9   :  { %8398 = vmatpush3.bf16.msra.mxu1 %v9366_v7  ;;  %v9383_v24 = vld [vmem:[%s12418_s1 + $0x48] sm:$0xff]   ;;  %v9387_v28 = vld [vmem:[%s12418_s1 + $0x40] sm:$0xff]   ;;  %v9393_v35 = vld [vmem:[%s12418_s1 + $0x178] sm:$0xff]  }
   0xa   :  { %8399 = vmatprep.subr.bf16.mxu1 %v9369_v10  ;;  %v9384_v25 = vld [vmem:[%s12418_s1 + $0x8] sm:$0xff]   ;;  %v9388_v29 = vld [vmem:[%s12418_s1] sm:$0xff]   ;;  %v9396_v39 = vld [vmem:[%s12418_s1 + $0x138] sm:$0xff]  }
   0xb   :  { %8378 = vmatpush3.bf16.msra.mxu0 %v9368_v9  ;;  %v9385_v26 = vld [vmem:[%s12418_s1 + $0xc8] sm:$0xff]   ;;  %v9389_v30 = vld [vmem:[%s12418_s1 + $0xc0] sm:$0xff]   ;;  %v9397_v40 = vld [vmem:[%s12418_s1 + $0x1f8] sm:$0xff]  }
   0xc   :  { %8379 = vmatprep.subr.bf16.mxu0 %v9371_v12  ;;  %v9386_v27 = vld [vmem:[%s12418_s1 + $0x88] sm:$0xff]   ;;  %v23_v31 = vld [vmem:[%s12419_s0] sm:$0xff]  ;;  %v9398_v41 = vld [vmem:[%s12418_s1 + $0x1b8] sm:$0xff]  }
   0xd   :  { %8400 = vmatpush3.bf16.msra.mxu1 %v9370_v11  ;;  %v7608_v32 = vcombine.low %v23_v31, %v23_v31  ;;  %v7609_v33 = vcombine.high %v23_v31, %v23_v31  ;;  %v9392_v34 = vld [vmem:[%s12418_s1 + $0x80] sm:$0xff]   ;;  %v24_v36 = vld [vmem:[%s12419_s0 + $0x8] sm:$0xff]  ;;  %v9399_v42 = vld [vmem:[%s12418_s1 + $0x170] sm:$0xff]  }
   0xe   :  { %8401 = vmatprep.subr.bf16.mxu1 %v9373_v14  ;;  %v7610_v37 = vcombine.low %v24_v36, %v24_v36  ;;  %v7611_v38 = vcombine.high %v24_v36, %v24_v36  ;;  %v9400_v43 = vld [vmem:[%s12418_s1 + $0x130] sm:$0xff]   ;;  %v9403_v46 = vld [vmem:[%s12418_s1 + $0x168] sm:$0xff]   ;;  %v9407_v50 = vld [vmem:[%s12418_s1 + $0x160] sm:$0xff]  }
   0xf   :  { %8380 = vmatpush3.bf16.msra.mxu0 %v9372_v13  ;;  %5814 = vmatprep.mubr.bf16.mxu0 %v7609_v33  ;;  %v9401_v44 = vld [vmem:[%s12418_s1 + $0x1f0] sm:$0xff]   ;;  %v9404_v47 = vld [vmem:[%s12418_s1 + $0x128] sm:$0xff]   ;;  %v9408_v51 = vld [vmem:[%s12418_s1 + $0x120] sm:$0xff]  }
  0x10   :  { %8381 = vmatprep.subr.bf16.mxu0 %v9375_v16  ;;  %5854 = vmatprep.mubr.bf16.mxu1 %v7611_v38  ;;  %v9402_v45 = vld [vmem:[%s12418_s1 + $0x1b0] sm:$0xff]   ;;  %v9405_v48 = vld [vmem:[%s12418_s1 + $0x1e8] sm:$0xff]   ;;  %v9409_v52 = vld [vmem:[%s12418_s1 + $0x1e0] sm:$0xff]  }
  0x11   :  { %8402 = vmatpush3.bf16.msra.mxu1 %v9374_v15  ;;  %v9406_v49 = vld [vmem:[%s12418_s1 + $0x1a8] sm:$0xff]   ;;  %v9410_v53 = vld [vmem:[%s12418_s1 + $0x1a0] sm:$0xff]   ;;  %v9411_v54 = vld [vmem:[%s12418_s1 + $0x158] sm:$0xff]  }
  0x12   :  { %8403 = vmatprep.subr.bf16.mxu1 %v9377_v18  ;;  %v9412_v55 = vld [vmem:[%s12418_s1 + $0x118] sm:$0xff]   ;;  %v9415_v58 = vld [vmem:[%s12418_s1 + $0x150] sm:$0xff]   ;;  %v9419_v62 = vld [vmem:[%s12418_s1 + $0x148] sm:$0xff]  }
  0x13   :  { %8382 = vmatpush3.bf16.msra.mxu0 %v9376_v17  ;;  %v9413_v56 = vld [vmem:[%s12418_s1 + $0x1d8] sm:$0xff]   ;;  %v9416_v59 = vld [vmem:[%s12418_s1 + $0x110] sm:$0xff]   ;;  %v9420_v63 = vld [vmem:[%s12418_s1 + $0x108] sm:$0xff]  }
  0x14   :  { %8383 = vmatprep.subr.bf16.mxu0 %v9379_v20  ;;  %v9414_v57 = vld [vmem:[%s12418_s1 + $0x198] sm:$0xff]   ;;  %v9417_v60 = vld [vmem:[%s12418_s1 + $0x1d0] sm:$0xff]   ;;  %v9421_v0 = vld [vmem:[%s12418_s1 + $0x1c8] sm:$0xff]  }
  0x15   :  { %8404 = vmatpush3.bf16.msra.mxu1 %v9378_v19  ;;  %v9418_v61 = vld [vmem:[%s12418_s1 + $0x190] sm:$0xff]   ;;  %v9422_v1 = vld [vmem:[%s12418_s1 + $0x188] sm:$0xff]   ;;  %v9423_v2 = vld [vmem:[%s12418_s1 + $0x140] sm:$0xff]  }
  0x16   :  { %8405 = vmatprep.subr.bf16.mxu1 %v9381_v22  ;;  %v9424_v3 = vld [vmem:[%s12418_s1 + $0x100] sm:$0xff]   ;;  %v25_v5 = vld [vmem:[%s12419_s0 + $0x10] sm:$0xff]  ;;  %v9429_v9 = vld [vmem:[%s12418_s1 + $0x278] sm:$0xff]  }
  0x17   :  { %8384 = vmatpush3.bf16.msra.mxu0 %v9380_v21  ;;  %v9425_v4 = vld [vmem:[%s12418_s1 + $0x1c0] sm:$0xff]   ;;  %v7612_v6 = vcombine.low %v25_v5, %v25_v5  ;;  %v7613_v7 = vcombine.high %v25_v5, %v25_v5  ;;  %v26_v10 = vld [vmem:[%s12419_s0 + $0x18] sm:$0xff]  ;;  %v9435_v16 = vld [vmem:[%s12418_s1 + $0x270] sm:$0xff]  }
  0x18   :  { %8385 = vmatprep.subr.bf16.mxu0 %v9383_v24  ;;  %v9428_v8 = vld [vmem:[%s12418_s1 + $0x180] sm:$0xff]   ;;  %v7614_v11 = vcombine.low %v26_v10, %v26_v10  ;;  %v7615_v12 = vcombine.high %v26_v10, %v26_v10  ;;  %v9432_v13 = vld [vmem:[%s12418_s1 + $0x238] sm:$0xff]   ;;  %v9436_v17 = vld [vmem:[%s12418_s1 + $0x230] sm:$0xff]  }
  0x19   :  { %8406 = vmatpush3.bf16.msra.mxu1 %v9382_v23  ;;  %v9433_v14 = vld [vmem:[%s12418_s1 + $0x2f8] sm:$0xff]   ;;  %v9437_v18 = vld [vmem:[%s12418_s1 + $0x2f0] sm:$0xff]   ;;  %v9439_v20 = vld [vmem:[%s12418_s1 + $0x268] sm:$0xff]  }
  0x1a   :  { %8407 = vmatprep.subr.bf16.mxu1 %v9385_v26  ;;  %v9434_v15 = vld [vmem:[%s12418_s1 + $0x2b8] sm:$0xff]   ;;  %v9438_v19 = vld [vmem:[%s12418_s1 + $0x2b0] sm:$0xff]   ;;  %v9440_v21 = vld [vmem:[%s12418_s1 + $0x228] sm:$0xff]  }
  0x1b   :  { %8386 = vmatpush3.bf16.msra.mxu0 %v9384_v25  ;;  %v9441_v22 = vld [vmem:[%s12418_s1 + $0x2e8] sm:$0xff]   ;;  %v9443_v24 = vld [vmem:[%s12418_s1 + $0x260] sm:$0xff]   ;;  %v9450_v31 = vld [vmem:[%s12418_s1 + $0x298] sm:$0xff]  }
  0x1c   :  { %8387 = vmatprep.subr.bf16.mxu0 %v9387_v28  ;;  %v9442_v23 = vld [vmem:[%s12418_s1 + $0x2a8] sm:$0xff]   ;;  %v9444_v25 = vld [vmem:[%s12418_s1 + $0x220] sm:$0xff]   ;;  %v9447_v28 = vld [vmem:[%s12418_s1 + $0x258] sm:$0xff]  }
  0x1d   :  { %8408 = vmatpush3.bf16.msra.mxu1 %v9386_v27  ;;  %v9445_v26 = vld [vmem:[%s12418_s1 + $0x2e0] sm:$0xff]   ;;  %v9452_v33 = vld [vmem:[%s12418_s1 + $0x210] sm:$0xff]   ;;  %v9455_v36 = vld [vmem:[%s12418_s1 + $0x248] sm:$0xff]  }
  0x1e   :  { %8409 = vmatprep.subr.bf16.mxu1 %v9389_v30  ;;  %v9446_v27 = vld [vmem:[%s12418_s1 + $0x2a0] sm:$0xff]   ;;  %v9449_v30 = vld [vmem:[%s12418_s1 + $0x2d8] sm:$0xff]   ;;  %v9457_v38 = vld [vmem:[%s12418_s1 + $0x2c8] sm:$0xff]  }
  0x1f   :  { %8388 = vmatpush3.bf16.msra.mxu0 %v9388_v29  ;;  %v9448_v29 = vld [vmem:[%s12418_s1 + $0x218] sm:$0xff]   ;;  %v9491_v10 = vld [vmem:[%s12418_s1 + $0x348] sm:$0xff]  }
  0x20   :  { %8417 = vmatprep.subr.bf16.mxu0 %v9393_v35  ;;  %v9454_v35 = vld [vmem:[%s12418_s1 + $0x290] sm:$0xff]   ;;  %v9486_v5 = vld [vmem:[%s12418_s1 + $0x398] sm:$0xff]  }
  0x21   :  { %8410 = vmatpush3.bf16.msra.mxu1 %v9392_v34  ;;  %v9453_v34 = vld [vmem:[%s12418_s1 + $0x2d0] sm:$0xff]  }
  0x22   :  { %5815 = vmatmul.mubr.bf16.vlgmr.msra.gmra.mxu0 %v7608_v32  ;;  %8439 = vmatprep.subr.bf16.mxu1 %v9397_v40  ;;  %v9451_v32 = vld [vmem:[%s12418_s1 + $0x250] sm:$0xff]   ;;  %v9459_v40 = vld [vmem:[%s12418_s1 + $0x240] sm:$0xff]  }
  0x23   :  { %8418 = vmatpush3.bf16.msra.mxu0 %v9396_v39  ;;  %5894 = vmatprep.mubr.bf16.mxu0 %v7613_v7  ;;  %v9458_v39 = vld [vmem:[%s12418_s1 + $0x288] sm:$0xff]   ;;  %v9488_v7 = vld [vmem:[%s12418_s1 + $0x310] sm:$0xff]  }
  0x24   :  { %5855 = vmatmul.mubr.bf16.vlgmr.msra.gmra.mxu1 %v7610_v37  ;;  %8419 = vmatprep.subr.bf16.mxu0 %v9399_v42  ;;  %v9456_v37 = vld [vmem:[%s12418_s1 + $0x208] sm:$0xff]   ;;  %v9461_v42 = vld [vmem:[%s12418_s1 + $0x2c0] sm:$0xff]  }
  0x25   :  { %8440 = vmatpush3.bf16.msra.mxu1 %v9398_v41  ;;  %5934 = vmatprep.mubr.bf16.mxu1 %v7615_v12  ;;  %v9460_v41 = vld [vmem:[%s12418_s1 + $0x200] sm:$0xff]   ;;  %v9493_v12 = vld [vmem:[%s12418_s1 + $0x3c8] sm:$0xff]  }
  0x26   :  { %8441 = vmatprep.subr.bf16.mxu1 %v9401_v44 }
  0x27   :  { %8420 = vmatpush3.bf16.msra.mxu0 %v9400_v43  ;;  %v27_v43 = vld [vmem:[%s12419_s0 + $0x20] sm:$0xff] }
  0x28   :  { %8421 = vmatprep.subr.bf16.mxu0 %v9403_v46  ;;  %v7616_v44 = vcombine.low %v27_v43, %v27_v43  ;;  %v9464_v46 = vld [vmem:[%s12418_s1 + $0x280] sm:$0xff]  }
  0x29   :  { %8442 = vmatpush3.bf16.msra.mxu1 %v9402_v45  ;;  %v7617_v45 = vcombine.high %v27_v43, %v27_v43  ;;  %v9522_v43 = vld [vmem:[%s12418_s1 + $0x498] sm:$0xff]  }
  0x2a   :  { %8443 = vmatprep.subr.bf16.mxu1 %v9405_v48  ;;  %v28_v48 = vld [vmem:[%s12419_s0 + $0x28] sm:$0xff] }
  0x2b   :  { %8422 = vmatpush3.bf16.msra.mxu0 %v9404_v47  ;;  %v9465_v47 = vld [vmem:[%s12418_s1 + $0x378] sm:$0xff]  }
  0x2c   :  { %8423 = vmatprep.subr.bf16.mxu0 %v9407_v50  ;;  %v7619_v50 = vcombine.high %v28_v48, %v28_v48 }
  0x2d   :  { %8444 = vmatpush3.bf16.msra.mxu1 %v9406_v49  ;;  %v7618_v49 = vcombine.low %v28_v48, %v28_v48  ;;  %v9527_v48 = vld [vmem:[%s12418_s1 + $0x448] sm:$0xff]  }
  0x2e   :  { %8445 = vmatprep.subr.bf16.mxu1 %v9409_v52  ;;  %v9469_v52 = vld [vmem:[%s12418_s1 + $0x3f8] sm:$0xff]  }
  0x2f   :  { %8424 = vmatpush3.bf16.msra.mxu0 %v9408_v51  ;;  %v9468_v51 = vld [vmem:[%s12418_s1 + $0x338] sm:$0xff]  }
  0x30   :  { %8425 = vmatprep.subr.bf16.mxu0 %v9411_v54  ;;  %v9471_v54 = vld [vmem:[%s12418_s1 + $0x370] sm:$0xff]  }
  0x31   :  { %8446 = vmatpush3.bf16.msra.mxu1 %v9410_v53  ;;  %v9470_v53 = vld [vmem:[%s12418_s1 + $0x3b8] sm:$0xff]  }
  0x32   :  { %8447 = vmatprep.subr.bf16.mxu1 %v9413_v56  ;;  %v9473_v56 = vld [vmem:[%s12418_s1 + $0x3f0] sm:$0xff]  }
  0x33   :  { %8426 = vmatpush3.bf16.msra.mxu0 %v9412_v55  ;;  %v9472_v55 = vld [vmem:[%s12418_s1 + $0x330] sm:$0xff]  }
  0x34   :  { %8427 = vmatprep.subr.bf16.mxu0 %v9415_v58  ;;  %v9475_v58 = vld [vmem:[%s12418_s1 + $0x368] sm:$0xff]  }
  0x35   :  { %8448 = vmatpush3.bf16.msra.mxu1 %v9414_v57  ;;  %v9474_v57 = vld [vmem:[%s12418_s1 + $0x3b0] sm:$0xff]  }
  0x36   :  { %8449 = vmatprep.subr.bf16.mxu1 %v9417_v60  ;;  %v9477_v60 = vld [vmem:[%s12418_s1 + $0x3e8] sm:$0xff]  }
  0x37   :  { %8428 = vmatpush3.bf16.msra.mxu0 %v9416_v59  ;;  %v9476_v59 = vld [vmem:[%s12418_s1 + $0x328] sm:$0xff]  }
  0x38   :  { %8429 = vmatprep.subr.bf16.mxu0 %v9419_v62  ;;  %v9479_v62 = vld [vmem:[%s12418_s1 + $0x360] sm:$0xff]  }
  0x39   :  { %8450 = vmatpush3.bf16.msra.mxu1 %v9418_v61  ;;  %v9478_v61 = vld [vmem:[%s12418_s1 + $0x3a8] sm:$0xff]  }
  0x3a   :  { %8451 = vmatprep.subr.bf16.mxu1 %v9421_v0  ;;  %v9481_v0 = vld [vmem:[%s12418_s1 + $0x3e0] sm:$0xff]  }
  0x3b   :  { %8430 = vmatpush3.bf16.msra.mxu0 %v9420_v63  ;;  %v9480_v63 = vld [vmem:[%s12418_s1 + $0x320] sm:$0xff]  }
  0x3c   :  { %8431 = vmatprep.subr.bf16.mxu0 %v9423_v2  ;;  %v9483_v2 = vld [vmem:[%s12418_s1 + $0x358] sm:$0xff]  }
  0x3d   :  { %8452 = vmatpush3.bf16.msra.mxu1 %v9422_v1  ;;  %v9482_v1 = vld [vmem:[%s12418_s1 + $0x3a0] sm:$0xff]  }
  0x3e   :  { %8453 = vmatprep.subr.bf16.mxu1 %v9425_v4  ;;  %v9485_v4 = vld [vmem:[%s12418_s1 + $0x3d8] sm:$0xff]  }
  0x3f   :  { %8432 = vmatpush3.bf16.msra.mxu0 %v9424_v3  ;;  %v9484_v3 = vld [vmem:[%s12418_s1 + $0x318] sm:$0xff]  }
  0x40   :  { %8461 = vmatprep.subr.bf16.mxu0 %v9429_v9  ;;  %v9490_v9 = vld [vmem:[%s12418_s1 + $0x390] sm:$0xff]  }
  0x41   :  { %8454 = vmatpush3.bf16.msra.mxu1 %v9428_v8  ;;  %v9489_v8 = vld [vmem:[%s12418_s1 + $0x3d0] sm:$0xff]  }
  0x42   :  { %5895 = vmatmul.mubr.bf16.vlgmr.msra.gmra.mxu0 %v7612_v6  ;;  %8483 = vmatprep.subr.bf16.mxu1 %v9433_v14  ;;  %v9487_v6 = vld [vmem:[%s12418_s1 + $0x350] sm:$0xff]   ;;  %v9495_v14 = vld [vmem:[%s12418_s1 + $0x340] sm:$0xff]  }
  0x43   :  { %8462 = vmatpush3.bf16.msra.mxu0 %v9432_v13  ;;  %5974 = vmatprep.mubr.bf16.mxu0 %v7617_v45  ;;  %v9494_v13 = vld [vmem:[%s12418_s1 + $0x388] sm:$0xff]   ;;  %v9524_v45 = vld [vmem:[%s12418_s1 + $0x410] sm:$0xff]  }
  0x44   :  { %5935 = vmatmul.mubr.bf16.vlgmr.msra.gmra.mxu1 %v7614_v11  ;;  %8463 = vmatprep.subr.bf16.mxu0 %v9435_v16  ;;  %v9492_v11 = vld [vmem:[%s12418_s1 + $0x308] sm:$0xff]   ;;  %v9497_v16 = vld [vmem:[%s12418_s1 + $0x3c0] sm:$0xff]  }
  0x45   :  { %8484 = vmatpush3.bf16.msra.mxu1 %v9434_v15  ;;  %6014 = vmatprep.mubr.bf16.mxu1 %v7619_v50  ;;  %v9496_v15 = vld [vmem:[%s12418_s1 + $0x300] sm:$0xff]   ;;  %v9529_v50 = vld [vmem:[%s12418_s1 + $0x4c8] sm:$0xff]  }
  0x46   :  { %8485 = vmatprep.subr.bf16.mxu1 %v9437_v18 }
  0x47   :  { %8464 = vmatpush3.bf16.msra.mxu0 %v9436_v17  ;;  %v29_v17 = vld [vmem:[%s12419_s0 + $0x30] sm:$0xff] }
  0x48   :  { %8465 = vmatprep.subr.bf16.mxu0 %v9439_v20  ;;  %v7620_v18 = vcombine.low %v29_v17, %v29_v17  ;;  %v9500_v20 = vld [vmem:[%s12418_s1 + $0x380] sm:$0xff]  }
  0x49   :  { %8486 = vmatpush3.bf16.msra.mxu1 %v9438_v19  ;;  %v7621_v19 = vcombine.high %v29_v17, %v29_v17  ;;  %v9558_v17 = vld [vmem:[%s12418_s1 + $0x598] sm:$0xff]  }
  0x4a   :  { %8487 = vmatprep.subr.bf16.mxu1 %v9441_v22  ;;  %v30_v22 = vld [vmem:[%s12419_s0 + $0x38] sm:$0xff] }
  0x4b   :  { %8466 = vmatpush3.bf16.msra.mxu0 %v9440_v21  ;;  %v9501_v21 = vld [vmem:[%s12418_s1 + $0x478] sm:$0xff]  }
  0x4c   :  { %8467 = vmatprep.subr.bf16.mxu0 %v9443_v24  ;;  %v7623_v24 = vcombine.high %v30_v22, %v30_v22 }
  0x4d   :  { %8488 = vmatpush3.bf16.msra.mxu1 %v9442_v23  ;;  %v7622_v23 = vcombine.low %v30_v22, %v30_v22  ;;  %v9563_v22 = vld [vmem:[%s12418_s1 + $0x548] sm:$0xff]  }
  0x4e   :  { %8489 = vmatprep.subr.bf16.mxu1 %v9445_v26  ;;  %v9505_v26 = vld [vmem:[%s12418_s1 + $0x4f8] sm:$0xff]  }
  0x4f   :  { %8468 = vmatpush3.bf16.msra.mxu0 %v9444_v25  ;;  %v9504_v25 = vld [vmem:[%s12418_s1 + $0x438] sm:$0xff]  }
  0x50   :  { %8469 = vmatprep.subr.bf16.mxu0 %v9447_v28  ;;  %v9507_v28 = vld [vmem:[%s12418_s1 + $0x470] sm:$0xff]  }
  0x51   :  { %8490 = vmatpush3.bf16.msra.mxu1 %v9446_v27  ;;  %v9506_v27 = vld [vmem:[%s12418_s1 + $0x4b8] sm:$0xff]  }
  0x52   :  { %8491 = vmatprep.subr.bf16.mxu1 %v9449_v30  ;;  %v9509_v30 = vld [vmem:[%s12418_s1 + $0x4f0] sm:$0xff]  }
  0x53   :  { %8470 = vmatpush3.bf16.msra.mxu0 %v9448_v29  ;;  %v9508_v29 = vld [vmem:[%s12418_s1 + $0x430] sm:$0xff]  }
  0x54   :  { %8471 = vmatprep.subr.bf16.mxu0 %v9451_v32  ;;  %v9511_v32 = vld [vmem:[%s12418_s1 + $0x468] sm:$0xff]  }
  0x55   :  { %8492 = vmatpush3.bf16.msra.mxu1 %v9450_v31  ;;  %v9510_v31 = vld [vmem:[%s12418_s1 + $0x4b0] sm:$0xff]  }
  0x56   :  { %8493 = vmatprep.subr.bf16.mxu1 %v9453_v34  ;;  %v9513_v34 = vld [vmem:[%s12418_s1 + $0x4e8] sm:$0xff]  }
  0x57   :  { %8472 = vmatpush3.bf16.msra.mxu0 %v9452_v33  ;;  %v9512_v33 = vld [vmem:[%s12418_s1 + $0x428] sm:$0xff]  }
  0x58   :  { %8473 = vmatprep.subr.bf16.mxu0 %v9455_v36  ;;  %v9515_v36 = vld [vmem:[%s12418_s1 + $0x460] sm:$0xff]  }
  0x59   :  { %8494 = vmatpush3.bf16.msra.mxu1 %v9454_v35  ;;  %v9514_v35 = vld [vmem:[%s12418_s1 + $0x4a8] sm:$0xff]  }
  0x5a   :  { %8495 = vmatprep.subr.bf16.mxu1 %v9457_v38  ;;  %v9517_v38 = vld [vmem:[%s12418_s1 + $0x4e0] sm:$0xff]  }
  0x5b   :  { %8474 = vmatpush3.bf16.msra.mxu0 %v9456_v37  ;;  %v9516_v37 = vld [vmem:[%s12418_s1 + $0x420] sm:$0xff]  }
  0x5c   :  { %8475 = vmatprep.subr.bf16.mxu0 %v9459_v40  ;;  %v9519_v40 = vld [vmem:[%s12418_s1 + $0x458] sm:$0xff]  }
  0x5d   :  { %8496 = vmatpush3.bf16.msra.mxu1 %v9458_v39  ;;  %v9518_v39 = vld [vmem:[%s12418_s1 + $0x4a0] sm:$0xff]  }
  0x5e   :  { %8497 = vmatprep.subr.bf16.mxu1 %v9461_v42  ;;  %v9521_v42 = vld [vmem:[%s12418_s1 + $0x4d8] sm:$0xff]  }
  0x5f   :  { %8476 = vmatpush3.bf16.msra.mxu0 %v9460_v41  ;;  %v9520_v41 = vld [vmem:[%s12418_s1 + $0x418] sm:$0xff]  }
  0x60   :  { %8505 = vmatprep.subr.bf16.mxu0 %v9465_v47  ;;  %v9526_v47 = vld [vmem:[%s12418_s1 + $0x490] sm:$0xff]  }
  0x61   :  { %8498 = vmatpush3.bf16.msra.mxu1 %v9464_v46  ;;  %v9525_v46 = vld [vmem:[%s12418_s1 + $0x4d0] sm:$0xff]  }
  0x62   :  { %5975 = vmatmul.mubr.bf16.vlgmr.msra.gmra.mxu0 %v7616_v44  ;;  %8527 = vmatprep.subr.bf16.mxu1 %v9469_v52  ;;  %v9523_v44 = vld [vmem:[%s12418_s1 + $0x450] sm:$0xff]   ;;  %v9531_v52 = vld [vmem:[%s12418_s1 + $0x440] sm:$0xff]  }
  0x63   :  { %8506 = vmatpush3.bf16.msra.mxu0 %v9468_v51  ;;  %6054 = vmatprep.mubr.bf16.mxu0 %v7621_v19  ;;  %v9530_v51 = vld [vmem:[%s12418_s1 + $0x488] sm:$0xff]   ;;  %v9560_v19 = vld [vmem:[%s12418_s1 + $0x510] sm:$0xff]  }
  0x64   :  { %6015 = vmatmul.mubr.bf16.vlgmr.msra.gmra.mxu1 %v7618_v49  ;;  %8507 = vmatprep.subr.bf16.mxu0 %v9471_v54  ;;  %v9528_v49 = vld [vmem:[%s12418_s1 + $0x408] sm:$0xff]   ;;  %v9533_v54 = vld [vmem:[%s12418_s1 + $0x4c0] sm:$0xff]  }
  0x65   :  { %8528 = vmatpush3.bf16.msra.mxu1 %v9470_v53  ;;  %6094 = vmatprep.mubr.bf16.mxu1 %v7623_v24  ;;  %v9532_v53 = vld [vmem:[%s12418_s1 + $0x400] sm:$0xff]   ;;  %v9565_v24 = vld [vmem:[%s12418_s1 + $0x5c8] sm:$0xff]  }
  0x66   :  { %8529 = vmatprep.subr.bf16.mxu1 %v9473_v56 }
  0x67   :  { %8508 = vmatpush3.bf16.msra.mxu0 %v9472_v55  ;;  %v31_v55 = vld [vmem:[%s12419_s0 + $0x40] sm:$0xff] }
  0x68   :  { %8509 = vmatprep.subr.bf16.mxu0 %v9475_v58  ;;  %v7624_v56 = vcombine.low %v31_v55, %v31_v55  ;;  %v9536_v58 = vld [vmem:[%s12418_s1 + $0x480] sm:$0xff]  }
  0x69   :  { %8530 = vmatpush3.bf16.msra.mxu1 %v9474_v57  ;;  %v7625_v57 = vcombine.high %v31_v55, %v31_v55  ;;  %v9594_v55 = vld [vmem:[%s12418_s1 + $0x698] sm:$0xff]  }
  0x6a   :  { %8531 = vmatprep.subr.bf16.mxu1 %v9477_v60  ;;  %v32_v60 = vld [vmem:[%s12419_s0 + $0x48] sm:$0xff] }
  0x6b   :  { %8510 = vmatpush3.bf16.msra.mxu0 %v9476_v59  ;;  %v9537_v59 = vld [vmem:[%s12418_s1 + $0x578] sm:$0xff]  }
  0x6c   :  { %8511 = vmatprep.subr.bf16.mxu0 %v9479_v62  ;;  %v7627_v62 = vcombine.high %v32_v60, %v32_v60 }
  0x6d   :  { %8532 = vmatpush3.bf16.msra.mxu1 %v9478_v61  ;;  %v7626_v61 = vcombine.low %v32_v60, %v32_v60  ;;  %v9599_v60 = vld [vmem:[%s12418_s1 + $0x648] sm:$0xff]  }
  0x6e   :  { %8533 = vmatprep.subr.bf16.mxu1 %v9481_v0  ;;  %v9541_v0 = vld [vmem:[%s12418_s1 + $0x5f8] sm:$0xff]  }
  0x6f   :  { %8512 = vmatpush3.bf16.msra.mxu0 %v9480_v63  ;;  %v9540_v63 = vld [vmem:[%s12418_s1 + $0x538] sm:$0xff]  }
  0x70   :  { %8513 = vmatprep.subr.bf16.mxu0 %v9483_v2  ;;  %v9543_v2 = vld [vmem:[%s12418_s1 + $0x570] sm:$0xff]  }
  0x71   :  { %8534 = vmatpush3.bf16.msra.mxu1 %v9482_v1  ;;  %v9542_v1 = vld [vmem:[%s12418_s1 + $0x5b8] sm:$0xff]  }
  0x72   :  { %8535 = vmatprep.subr.bf16.mxu1 %v9485_v4  ;;  %v9545_v4 = vld [vmem:[%s12418_s1 + $0x5f0] sm:$0xff]  }
  0x73   :  { %8514 = vmatpush3.bf16.msra.mxu0 %v9484_v3  ;;  %v9544_v3 = vld [vmem:[%s12418_s1 + $0x530] sm:$0xff]  }
  0x74   :  { %8515 = vmatprep.subr.bf16.mxu0 %v9487_v6  ;;  %v9547_v6 = vld [vmem:[%s12418_s1 + $0x568] sm:$0xff]  }
  0x75   :  { %8536 = vmatpush3.bf16.msra.mxu1 %v9486_v5  ;;  %v9546_v5 = vld [vmem:[%s12418_s1 + $0x5b0] sm:$0xff]  }
  0x76   :  { %8537 = vmatprep.subr.bf16.mxu1 %v9489_v8  ;;  %v9549_v8 = vld [vmem:[%s12418_s1 + $0x5e8] sm:$0xff]  }
  0x77   :  { %8516 = vmatpush3.bf16.msra.mxu0 %v9488_v7  ;;  %v9548_v7 = vld [vmem:[%s12418_s1 + $0x528] sm:$0xff]  }
  0x78   :  { %8517 = vmatprep.subr.bf16.mxu0 %v9491_v10  ;;  %v9551_v10 = vld [vmem:[%s12418_s1 + $0x560] sm:$0xff]  }
  0x79   :  { %8538 = vmatpush3.bf16.msra.mxu1 %v9490_v9  ;;  %v9550_v9 = vld [vmem:[%s12418_s1 + $0x5a8] sm:$0xff]  }
  0x7a   :  { %8539 = vmatprep.subr.bf16.mxu1 %v9493_v12  ;;  %v9553_v12 = vld [vmem:[%s12418_s1 + $0x5e0] sm:$0xff]  }
  0x7b   :  { %8518 = vmatpush3.bf16.msra.mxu0 %v9492_v11  ;;  %v9552_v11 = vld [vmem:[%s12418_s1 + $0x520] sm:$0xff]  }
  0x7c   :  { %8519 = vmatprep.subr.bf16.mxu0 %v9495_v14  ;;  %v9555_v14 = vld [vmem:[%s12418_s1 + $0x558] sm:$0xff]  }
  0x7d   :  { %8540 = vmatpush3.bf16.msra.mxu1 %v9494_v13  ;;  %v9554_v13 = vld [vmem:[%s12418_s1 + $0x5a0] sm:$0xff]  }
  0x7e   :  { %8541 = vmatprep.subr.bf16.mxu1 %v9497_v16  ;;  %v9557_v16 = vld [vmem:[%s12418_s1 + $0x5d8] sm:$0xff]  }
  0x7f   :  { %8520 = vmatpush3.bf16.msra.mxu0 %v9496_v15  ;;  %v9556_v15 = vld [vmem:[%s12418_s1 + $0x518] sm:$0xff]  }
  0x80   :  { %8549 = vmatprep.subr.bf16.mxu0 %v9501_v21  ;;  %v9562_v21 = vld [vmem:[%s12418_s1 + $0x590] sm:$0xff]  }
  0x81   :  { %8542 = vmatpush3.bf16.msra.mxu1 %v9500_v20  ;;  %v9561_v20 = vld [vmem:[%s12418_s1 + $0x5d0] sm:$0xff]  }
  0x82   :  { %6055 = vmatmul.mubr.bf16.vlgmr.msra.gmra.mxu0 %v7620_v18  ;;  %8571 = vmatprep.subr.bf16.mxu1 %v9505_v26  ;;  %v9559_v18 = vld [vmem:[%s12418_s1 + $0x550] sm:$0xff]   ;;  %v9567_v26 = vld [vmem:[%s12418_s1 + $0x540] sm:$0xff]  }
  0x83   :  { %8550 = vmatpush3.bf16.msra.mxu0 %v9504_v25  ;;  %6134 = vmatprep.mubr.bf16.mxu0 %v7625_v57  ;;  %v9566_v25 = vld [vmem:[%s12418_s1 + $0x588] sm:$0xff]   ;;  %v9596_v57 = vld [vmem:[%s12418_s1 + $0x610] sm:$0xff]  }
  0x84   :  { %6095 = vmatmul.mubr.bf16.vlgmr.msra.gmra.mxu1 %v7622_v23  ;;  %8551 = vmatprep.subr.bf16.mxu0 %v9507_v28  ;;  %v9564_v23 = vld [vmem:[%s12418_s1 + $0x508] sm:$0xff]   ;;  %v9569_v28 = vld [vmem:[%s12418_s1 + $0x5c0] sm:$0xff]  }
  0x85   :  { %8572 = vmatpush3.bf16.msra.mxu1 %v9506_v27  ;;  %6174 = vmatprep.mubr.bf16.mxu1 %v7627_v62  ;;  %v9568_v27 = vld [vmem:[%s12418_s1 + $0x500] sm:$0xff]   ;;  %v9601_v62 = vld [vmem:[%s12418_s1 + $0x6c8] sm:$0xff]  }
  0x86   :  { %8573 = vmatprep.subr.bf16.mxu1 %v9509_v30 }
  0x87   :  { %8552 = vmatpush3.bf16.msra.mxu0 %v9508_v29  ;;  %v33_v29 = vld [vmem:[%s12419_s0 + $0x50] sm:$0xff] }
  0x88   :  { %8553 = vmatprep.subr.bf16.mxu0 %v9511_v32  ;;  %v7628_v30 = vcombine.low %v33_v29, %v33_v29  ;;  %v9572_v32 = vld [vmem:[%s12418_s1 + $0x580] sm:$0xff]  }
  0x89   :  { %8574 = vmatpush3.bf16.msra.mxu1 %v9510_v31  ;;  %v7629_v31 = vcombine.high %v33_v29, %v33_v29 }
  0x8a   :  { %8575 = vmatprep.subr.bf16.mxu1 %v9513_v34  ;;  %v34_v34 = vld [vmem:[%s12419_s0 + $0x58] sm:$0xff] }
  0x8b   :  { %8554 = vmatpush3.bf16.msra.mxu0 %v9512_v33  ;;  %v9573_v33 = vld [vmem:[%s12418_s1 + $0x678] sm:$0xff]  }
  0x8c   :  { %8555 = vmatprep.subr.bf16.mxu0 %v9515_v36  ;;  %v7631_v36 = vcombine.high %v34_v34, %v34_v34 }
  0x8d   :  { %8576 = vmatpush3.bf16.msra.mxu1 %v9514_v35  ;;  %v7630_v35 = vcombine.low %v34_v34, %v34_v34  ;;  %v9622_v34 = vld [vmem:[%s12418_s1 + $0x7a8] sm:$0xff]  }
  0x8e   :  { %8577 = vmatprep.subr.bf16.mxu1 %v9517_v38  ;;  %v9577_v38 = vld [vmem:[%s12418_s1 + $0x6f8] sm:$0xff]  }
  0x8f   :  { %8556 = vmatpush3.bf16.msra.mxu0 %v9516_v37  ;;  %v9576_v37 = vld [vmem:[%s12418_s1 + $0x638] sm:$0xff]  }
  0x90   :  { %8557 = vmatprep.subr.bf16.mxu0 %v9519_v40  ;;  %v9579_v40 = vld [vmem:[%s12418_s1 + $0x670] sm:$0xff]  }
  0x91   :  { %8578 = vmatpush3.bf16.msra.mxu1 %v9518_v39  ;;  %v9578_v39 = vld [vmem:[%s12418_s1 + $0x6b8] sm:$0xff]  }
  0x92   :  { %8579 = vmatprep.subr.bf16.mxu1 %v9521_v42  ;;  %v9581_v42 = vld [vmem:[%s12418_s1 + $0x6f0] sm:$0xff]  }
  0x93   :  { %8558 = vmatpush3.bf16.msra.mxu0 %v9520_v41  ;;  %v9580_v41 = vld [vmem:[%s12418_s1 + $0x630] sm:$0xff]  }
  0x94   :  { %8559 = vmatprep.subr.bf16.mxu0 %v9523_v44  ;;  %v9583_v44 = vld [vmem:[%s12418_s1 + $0x668] sm:$0xff]  }
  0x95   :  { %8580 = vmatpush3.bf16.msra.mxu1 %v9522_v43  ;;  %v9582_v43 = vld [vmem:[%s12418_s1 + $0x6b0] sm:$0xff]  }
  0x96   :  { %8581 = vmatprep.subr.bf16.mxu1 %v9525_v46  ;;  %v9585_v46 = vld [vmem:[%s12418_s1 + $0x6e8] sm:$0xff]  }
  0x97   :  { %8560 = vmatpush3.bf16.msra.mxu0 %v9524_v45  ;;  %v9584_v45 = vld [vmem:[%s12418_s1 + $0x628] sm:$0xff]  }
  0x98   :  { %8561 = vmatprep.subr.bf16.mxu0 %v9527_v48  ;;  %v9587_v48 = vld [vmem:[%s12418_s1 + $0x660] sm:$0xff]  }
  0x99   :  { %8582 = vmatpush3.bf16.msra.mxu1 %v9526_v47  ;;  %v9586_v47 = vld [vmem:[%s12418_s1 + $0x6a8] sm:$0xff]  }
  0x9a   :  { %8583 = vmatprep.subr.bf16.mxu1 %v9529_v50  ;;  %v9589_v50 = vld [vmem:[%s12418_s1 + $0x6e0] sm:$0xff]  }
  0x9b   :  { %8562 = vmatpush3.bf16.msra.mxu0 %v9528_v49  ;;  %v9588_v49 = vld [vmem:[%s12418_s1 + $0x620] sm:$0xff]  }
  0x9c   :  { %8563 = vmatprep.subr.bf16.mxu0 %v9531_v52  ;;  %v9591_v52 = vld [vmem:[%s12418_s1 + $0x658] sm:$0xff]  }
  0x9d   :  { %8584 = vmatpush3.bf16.msra.mxu1 %v9530_v51  ;;  %v9590_v51 = vld [vmem:[%s12418_s1 + $0x6a0] sm:$0xff]  }
  0x9e   :  { %8585 = vmatprep.subr.bf16.mxu1 %v9533_v54  ;;  %v9593_v54 = vld [vmem:[%s12418_s1 + $0x6d8] sm:$0xff]  }
  0x9f   :  { %8564 = vmatpush3.bf16.msra.mxu0 %v9532_v53  ;;  %v9592_v53 = vld [vmem:[%s12418_s1 + $0x618] sm:$0xff]  }
  0xa0   :  { %8593 = vmatprep.subr.bf16.mxu0 %v9537_v59  ;;  %v9598_v59 = vld [vmem:[%s12418_s1 + $0x690] sm:$0xff]  }
  0xa1   :  { %8586 = vmatpush3.bf16.msra.mxu1 %v9536_v58  ;;  %v9597_v58 = vld [vmem:[%s12418_s1 + $0x6d0] sm:$0xff]  }
  0xa2   :  { %6135 = vmatmul.mubr.bf16.vlgmr.msra.gmra.mxu0 %v7624_v56  ;;  %8615 = vmatprep.subr.bf16.mxu1 %v9541_v0  ;;  %v9595_v56 = vld [vmem:[%s12418_s1 + $0x650] sm:$0xff]   ;;  %v9603_v0 = vld [vmem:[%s12418_s1 + $0x640] sm:$0xff]  }
  0xa3   :  { %8594 = vmatpush3.bf16.msra.mxu0 %v9540_v63  ;;  %6214 = vmatprep.mubr.bf16.mxu0 %v7629_v31  ;;  %v9602_v63 = vld [vmem:[%s12418_s1 + $0x688] sm:$0xff]  }
  0xa4   :  { %6175 = vmatmul.mubr.bf16.vlgmr.msra.gmra.mxu1 %v7626_v61  ;;  %8595 = vmatprep.subr.bf16.mxu0 %v9543_v2  ;;  %v9600_v61 = vld [vmem:[%s12418_s1 + $0x608] sm:$0xff]   ;;  %v9605_v2 = vld [vmem:[%s12418_s1 + $0x6c0] sm:$0xff]  }
  0xa5   :  { %8616 = vmatpush3.bf16.msra.mxu1 %v9542_v1  ;;  %6254 = vmatprep.mubr.bf16.mxu1 %v7631_v36  ;;  %v9604_v1 = vld [vmem:[%s12418_s1 + $0x600] sm:$0xff]   ;;  %v9619_v31 = vld [vmem:[%s12418_s1 + $0x768] sm:$0xff]  }
  0xa6   :  { %8617 = vmatprep.subr.bf16.mxu1 %v9545_v4  ;;  %v9624_v36 = vld [vmem:[%s12418_s1 + $0x720] sm:$0xff]  }
  0xa7   :  { %8596 = vmatpush3.bf16.msra.mxu0 %v9544_v3  ;;  %v35_v3 = vld [vmem:[%s12419_s0 + $0x60] sm:$0xff] }
  0xa8   :  { %8597 = vmatprep.subr.bf16.mxu0 %v9547_v6  ;;  %v7633_v6 = vcombine.high %v35_v3, %v35_v3 }
  0xa9   :  { %8618 = vmatpush3.bf16.msra.mxu1 %v9546_v5  ;;  %v7632_v5 = vcombine.low %v35_v3, %v35_v3 }
  0xaa   :  { %8619 = vmatprep.subr.bf16.mxu1 %v9549_v8  ;;  %v9609_v8 = vld [vmem:[%s12418_s1 + $0x778] sm:$0xff]  }
  0xab   :  { %8598 = vmatpush3.bf16.msra.mxu0 %v9548_v7  ;;  %v9608_v7 = vld [vmem:[%s12418_s1 + $0x680] sm:$0xff]  }
  0xac   :  { %8599 = vmatprep.subr.bf16.mxu0 %v9551_v10 }
  0xad   :  { %8620 = vmatpush3.bf16.msra.mxu1 %v9550_v9  ;;  %v36_v9 = vld [vmem:[%s12419_s0 + $0x68] sm:$0xff] }
  0xae   :  { %8621 = vmatprep.subr.bf16.mxu1 %v9553_v12  ;;  %v7634_v12 = vcombine.low %v36_v9, %v36_v9 }
  0xaf   :  { %8600 = vmatpush3.bf16.msra.mxu0 %v9552_v11 }
  0xb0   :  { %8601 = vmatprep.subr.bf16.mxu0 %v9555_v14  ;;  %v9612_v14 = vld [vmem:[%s12418_s1 + $0x738] sm:$0xff]  }
  0xb1   :  { %8622 = vmatpush3.bf16.msra.mxu1 %v9554_v13  ;;  %v7635_v13 = vcombine.high %v36_v9, %v36_v9 }
  0xb2   :  { %8623 = vmatprep.subr.bf16.mxu1 %v9557_v16 }
  0xb3   :  { %8602 = vmatpush3.bf16.msra.mxu0 %v9556_v15  ;;  %v7607_v15 = vld [vmem:[%s12420_s2] ss:$0 sm:$0xff] }
  0xb4   :  { %8603 = vmatprep.subr.bf16.mxu0 %v9559_v18 }
  0xb5   :  { %8624 = vmatpush3.bf16.msra.mxu1 %v9558_v17  ;;  %v9613_v17 = vld [vmem:[%s12418_s1 + $0x7f8] sm:$0xff]  }
  0xb6   :  { %8625 = vmatprep.subr.bf16.mxu1 %v9561_v20 }
  0xb7   :  { %8604 = vmatpush3.bf16.msra.mxu0 %v9560_v19 }
  0xb8   :  { %8605 = vmatprep.subr.bf16.mxu0 %v9563_v22 }
  0xb9   :  { %8626 = vmatpush3.bf16.msra.mxu1 %v9562_v21  ;;  %v9614_v21 = vld [vmem:[%s12418_s1 + $0x7b8] sm:$0xff]  }
  0xba   :  { %8627 = vmatprep.subr.bf16.mxu1 %v9565_v24 }
  0xbb   :  { %8606 = vmatpush3.bf16.msra.mxu0 %v9564_v23  ;;  %v9615_v23 = vld [vmem:[%s12418_s1 + $0x770] sm:$0xff]  }
  0xbc   :  { %8607 = vmatprep.subr.bf16.mxu0 %v9567_v26 }
  0xbd   :  { %8628 = vmatpush3.bf16.msra.mxu1 %v9566_v25 }
  0xbe   :  { %8629 = vmatprep.subr.bf16.mxu1 %v9569_v28  ;;  %v9617_v28 = vld [vmem:[%s12418_s1 + $0x7f0] sm:$0xff]  }
  0xbf   :  { %8608 = vmatpush3.bf16.msra.mxu0 %v9568_v27  ;;  %v9616_v27 = vld [vmem:[%s12418_s1 + $0x730] sm:$0xff]  }
  0xc0   :  { %8637 = vmatprep.subr.bf16.mxu0 %v9573_v33  ;;  %v9621_v33 = vld [vmem:[%s12418_s1 + $0x7e8] sm:$0xff]  }
  0xc1   :  { %8630 = vmatpush3.bf16.msra.mxu1 %v9572_v32  ;;  %v9620_v32 = vld [vmem:[%s12418_s1 + $0x728] sm:$0xff]  }
  0xc2   :  { %6215 = vmatmul.mubr.bf16.vlgmr.msra.gmra.mxu0 %v7628_v30  ;;  %8659 = vmatprep.subr.bf16.mxu1 %v9577_v38  ;;  %v9618_v30 = vld [vmem:[%s12418_s1 + $0x7b0] sm:$0xff]   ;;  %v9626_v38 = vld [vmem:[%s12418_s1 + $0x7a0] sm:$0xff]  }
  0xc3   :  { %8638 = vmatpush3.bf16.msra.mxu0 %v9576_v37  ;;  %6294 = vmatprep.mubr.bf16.mxu0 %v7633_v6  ;;  %v9625_v37 = vld [vmem:[%s12418_s1 + $0x7e0] sm:$0xff]  }
  0xc4   :  { %6255 = vmatmul.mubr.bf16.vlgmr.msra.gmra.mxu1 %v7630_v35  ;;  %8639 = vmatprep.subr.bf16.mxu0 %v9579_v40  ;;  %v9623_v35 = vld [vmem:[%s12418_s1 + $0x760] sm:$0xff]   ;;  %v9628_v40 = vld [vmem:[%s12418_s1 + $0x718] sm:$0xff]  }
  0xc5   :  { %8660 = vmatpush3.bf16.msra.mxu1 %v9578_v39  ;;  %6334 = vmatprep.mubr.bf16.mxu1 %v7635_v13  ;;  %v9627_v39 = vld [vmem:[%s12418_s1 + $0x758] sm:$0xff]   ;;  %v9652_v13 = vld [vmem:[%s12418_s1 + $0x830] sm:$0xff]  }
  0xc6   :  { %8661 = vmatprep.subr.bf16.mxu1 %v9581_v42  ;;  %v9630_v42 = vld [vmem:[%s12418_s1 + $0x798] sm:$0xff]  }
  0xc7   :  { %8640 = vmatpush3.bf16.msra.mxu0 %v9580_v41  ;;  %v9629_v41 = vld [vmem:[%s12418_s1 + $0x7d8] sm:$0xff]  }
  0xc8   :  { %8641 = vmatprep.subr.bf16.mxu0 %v9583_v44  ;;  %v9632_v44 = vld [vmem:[%s12418_s1 + $0x710] sm:$0xff]  }
  0xc9   :  { %8662 = vmatpush3.bf16.msra.mxu1 %v9582_v43  ;;  %v9631_v43 = vld [vmem:[%s12418_s1 + $0x750] sm:$0xff]  }
  0xca   :  { %8663 = vmatprep.subr.bf16.mxu1 %v9585_v46  ;;  %v9634_v46 = vld [vmem:[%s12418_s1 + $0x790] sm:$0xff]  }
  0xcb   :  { %8642 = vmatpush3.bf16.msra.mxu0 %v9584_v45  ;;  %v9633_v45 = vld [vmem:[%s12418_s1 + $0x7d0] sm:$0xff]  }
  0xcc   :  { %8643 = vmatprep.subr.bf16.mxu0 %v9587_v48  ;;  %v9636_v48 = vld [vmem:[%s12418_s1 + $0x708] sm:$0xff]  }
  0xcd   :  { %8664 = vmatpush3.bf16.msra.mxu1 %v9586_v47  ;;  %v9635_v47 = vld [vmem:[%s12418_s1 + $0x748] sm:$0xff]  }
  0xce   :  { %8665 = vmatprep.subr.bf16.mxu1 %v9589_v50  ;;  %v9638_v50 = vld [vmem:[%s12418_s1 + $0x788] sm:$0xff]  }
  0xcf   :  { %8644 = vmatpush3.bf16.msra.mxu0 %v9588_v49  ;;  %v9637_v49 = vld [vmem:[%s12418_s1 + $0x7c8] sm:$0xff]  }
  0xd0   :  { %8645 = vmatprep.subr.bf16.mxu0 %v9591_v52  ;;  %v9640_v52 = vld [vmem:[%s12418_s1 + $0x700] sm:$0xff]  }
  0xd1   :  { %8666 = vmatpush3.bf16.msra.mxu1 %v9590_v51  ;;  %v9639_v51 = vld [vmem:[%s12418_s1 + $0x740] sm:$0xff]  }
  0xd2   :  { %8667 = vmatprep.subr.bf16.mxu1 %v9593_v54 }
  0xd3   :  { %8646 = vmatpush3.bf16.msra.mxu0 %v9592_v53  ;;  %v9641_v53 = vld [vmem:[%s12418_s1 + $0x7c0] sm:$0xff]  }
  0xd4   :  { %8647 = vmatprep.subr.bf16.mxu0 %v9595_v56 }
  0xd5   :  { %8668 = vmatpush3.bf16.msra.mxu1 %v9594_v55  ;;  %v37_v55 = vld [vmem:[%s12419_s0 + $0x70] sm:$0xff] }
  0xd6   :  { %8669 = vmatprep.subr.bf16.mxu1 %v9597_v58  ;;  %v7636_v56 = vcombine.low %v37_v55, %v37_v55  ;;  %v9644_v58 = vld [vmem:[%s12418_s1 + $0x780] sm:$0xff]  }
  0xd7   :  { %8648 = vmatpush3.bf16.msra.mxu0 %v9596_v57  ;;  %v7637_v57 = vcombine.high %v37_v55, %v37_v55 }
  0xd8   :  { %8649 = vmatprep.subr.bf16.mxu0 %v9599_v60  ;;  %v9645_v60 = vld [vmem:[%s12418_s1 + $0x878] sm:$0xff]  }
  0xd9   :  { %8670 = vmatpush3.bf16.msra.mxu1 %v9598_v59 }
  0xda   :  { %8671 = vmatprep.subr.bf16.mxu1 %v9601_v62 }
  0xdb   :  { %8650 = vmatpush3.bf16.msra.mxu0 %v9600_v61  ;;  %v38_v61 = vld [vmem:[%s12419_s0 + $0x78] sm:$0xff] }
  0xdc   :  { %8651 = vmatprep.subr.bf16.mxu0 %v9603_v0  ;;  %v7638_v0 = vcombine.low %v38_v61, %v38_v61 }
  0xdd   :  { %8672 = vmatpush3.bf16.msra.mxu1 %v9602_v63 }
  0xde   :  { %8673 = vmatprep.subr.bf16.mxu1 %v9605_v2  ;;  %v9648_v2 = vld [vmem:[%s12418_s1 + $0x838] sm:$0xff]  }
  0xdf   :  { %8652 = vmatpush3.bf16.msra.mxu0 %v9604_v1  ;;  %v7639_v1 = vcombine.high %v38_v61, %v38_v61 }
  0xe0   :  { %8681 = vmatprep.subr.bf16.mxu0 %v9609_v8 }
  0xe1   :  { %8674 = vmatpush3.bf16.msra.mxu1 %v9608_v7  ;;  %v9650_v7 = vld [vmem:[%s12418_s1 + $0x8b8] sm:$0xff]  }
  0xe2   :  { %v8389_v4 = vpop.f32.mrf.mxu0  ;;  %6295 = vmatmul.mubr.bf16.vlgmr.msra.gmra.mxu0 %v7632_v5  ;;  %8703 = vmatprep.subr.bf16.mxu1 %v9613_v17  ;;  %v9649_v5 = vld [vmem:[%s12418_s1 + $0x8f8] sm:$0xff]   ;;  %v9655_v17 = vld [vmem:[%s12418_s1 + $0x868] sm:$0xff]  }
  0xe3   :  { %8682 = vmatpush3.bf16.msra.mxu0 %v9612_v14  ;;  %6374 = vmatprep.mubr.bf16.mxu0 %v7637_v57  ;;  %v9653_v14 = vld [vmem:[%s12418_s1 + $0x8f0] sm:$0xff]  }
  0xe4   :  { %v8390_v10 = vpop.f32.mrf.mxu0  ;;  %v8411_v11 = vpop.f32.mrf.mxu1  ;;  %6335 = vmatmul.mubr.bf16.vlgmr.msra.gmra.mxu1 %v7634_v12  ;;  %8683 = vmatprep.subr.bf16.mxu0 %v9615_v23  ;;  %v9661_v23 = vld [vmem:[%s12418_s1 + $0x8e0] sm:$0xff]  }
  0xe5   :  { %v8391_v16 = vadd.f32 %v8390_v10, %v8389_v4  ;;  %8704 = vmatpush3.bf16.msra.mxu1 %v9614_v21  ;;  %6414 = vmatprep.mubr.bf16.mxu1 %v7639_v1  ;;  %v9651_v10 = vld [vmem:[%s12418_s1 + $0x870] sm:$0xff]   ;;  %v9659_v21 = vld [vmem:[%s12418_s1 + $0x860] sm:$0xff]  }
  0xe6   :  { %v8392_v18 = vpop.f32.mrf.mxu0  ;;  %v8412_v19 = vpop.f32.mrf.mxu1  ;;  %8705 = vmatprep.subr.bf16.mxu1 %v9617_v28  ;;  %v9666_v28 = vld [vmem:[%s12418_s1 + $0x898] sm:$0xff]   ;;  %v9689_v1 = vld [vmem:[%s12418_s1 + $0x9f0] sm:$0xff]  }
  0xe7   :  { %v5817_v20 = vadd.f32 %v8391_v16, %v7607_v15  ;;  %v8413_v22 = vadd.f32 %v8412_v19, %v8411_v11  ;;  %8684 = vmatpush3.bf16.msra.mxu0 %v9616_v27  ;;  %v9654_v16 = vld [vmem:[%s12418_s1 + $0x8b0] sm:$0xff]   ;;  %v9656_v18 = vld [vmem:[%s12418_s1 + $0x828] sm:$0xff]   ;;  %v9665_v27 = vld [vmem:[%s12418_s1 + $0x8d8] sm:$0xff]  }
  0xe8   :  { %v8393_v24 = vpop.f32.mrf.mxu0  ;;  %v8414_v25 = vpop.f32.mrf.mxu1  ;;  %8685 = vmatprep.subr.bf16.mxu0 %v9619_v31  ;;  %v9657_v19 = vld [vmem:[%s12418_s1 + $0x8e8] sm:$0xff]   ;;  %v9669_v31 = vld [vmem:[%s12418_s1 + $0x8d0] sm:$0xff]  }
  0xe9   :  { %v10884_v26 = vadd.f32 %v8413_v22, %v5817_v20  ;;  %8706 = vmatpush3.bf16.msra.mxu1 %v9618_v30  ;;  %v9658_v20 = vld [vmem:[%s12418_s1 + $0x8a8] sm:$0xff]   ;;  %v9660_v22 = vld [vmem:[%s12418_s1 + $0x820] sm:$0xff]   ;;  %v9663_v25 = vld [vmem:[%s12418_s1 + $0x858] sm:$0xff]  }
  0xea   :  { %v8415_v29 = vpop.f32.mrf.mxu1  ;;  %8707 = vmatprep.subr.bf16.mxu1 %v9621_v33  ;;  %v9662_v24 = vld [vmem:[%s12418_s1 + $0x8a0] sm:$0xff]   ;;  %v9668_v30 = vld [vmem:[%s12418_s1 + $0x810] sm:$0xff]   ;;  %v9671_v33 = vld [vmem:[%s12418_s1 + $0x848] sm:$0xff]  }
  0xeb   :  { %8686 = vmatpush3.bf16.msra.mxu0 %v9620_v32  ;;  %v9667_v29 = vld [vmem:[%s12418_s1 + $0x850] sm:$0xff]  }
  0xec   :  { %8687 = vmatprep.subr.bf16.mxu0 %v9623_v35  ;;  %v9670_v32 = vld [vmem:[%s12418_s1 + $0x890] sm:$0xff]   ;;  %v9673_v35 = vld [vmem:[%s12418_s1 + $0x8c8] sm:$0xff]  }
  0xed   :  { %8708 = vmatpush3.bf16.msra.mxu1 %v9622_v34  ;;  %v9672_v34 = vld [vmem:[%s12418_s1 + $0x808] sm:$0xff]  }
  0xee   :  { %8709 = vmatprep.subr.bf16.mxu1 %v9625_v37  ;;  %v9675_v37 = vld [vmem:[%s12418_s1 + $0x840] sm:$0xff]  }
  0xef   :  { %8688 = vmatpush3.bf16.msra.mxu0 %v9624_v36  ;;  %v9674_v36 = vld [vmem:[%s12418_s1 + $0x888] sm:$0xff]  }
  0xf0   :  { %8689 = vmatprep.subr.bf16.mxu0 %v9627_v39  ;;  %v9677_v39 = vld [vmem:[%s12418_s1 + $0x8c0] sm:$0xff]  }
  0xf1   :  { %8710 = vmatpush3.bf16.msra.mxu1 %v9626_v38  ;;  %v9676_v38 = vld [vmem:[%s12418_s1 + $0x800] sm:$0xff]  }
  0xf2   :  { %8711 = vmatprep.subr.bf16.mxu1 %v9629_v41 }
  0xf3   :  { %8690 = vmatpush3.bf16.msra.mxu0 %v9628_v40  ;;  %v39_v40 = vld [vmem:[%s12419_s0 + $0x80] sm:$0xff] }
  0xf4   :  { %8691 = vmatprep.subr.bf16.mxu0 %v9631_v43  ;;  %v7641_v43 = vcombine.high %v39_v40, %v39_v40 }
  0xf5   :  { %8712 = vmatpush3.bf16.msra.mxu1 %v9630_v42  ;;  %v7640_v42 = vcombine.low %v39_v40, %v39_v40 }
  0xf6   :  { %8713 = vmatprep.subr.bf16.mxu1 %v9633_v45  ;;  %v9681_v45 = vld [vmem:[%s12418_s1 + $0x978] sm:$0xff]  }
  0xf7   :  { %8692 = vmatpush3.bf16.msra.mxu0 %v9632_v44  ;;  %v9680_v44 = vld [vmem:[%s12418_s1 + $0x880] sm:$0xff]  }
  0xf8   :  { %8693 = vmatprep.subr.bf16.mxu0 %v9635_v47 }
  0xf9   :  { %8714 = vmatpush3.bf16.msra.mxu1 %v9634_v46 }
  0xfa   :  { %8715 = vmatprep.subr.bf16.mxu1 %v9637_v49 }
  0xfb   :  { %8694 = vmatpush3.bf16.msra.mxu0 %v9636_v48  ;;  %v40_v48 = vld [vmem:[%s12419_s0 + $0x88] sm:$0xff] }
  0xfc   :  { %8695 = vmatprep.subr.bf16.mxu0 %v9639_v51  ;;  %v7643_v51 = vcombine.high %v40_v48, %v40_v48 }
  0xfd   :  { %8716 = vmatpush3.bf16.msra.mxu1 %v9638_v50  ;;  %v7642_v50 = vcombine.low %v40_v48, %v40_v48 }
  0xfe   :  { %8717 = vmatprep.subr.bf16.mxu1 %v9641_v53 }
  0xff   :  { %8696 = vmatpush3.bf16.msra.mxu0 %v9640_v52  ;;  %v9684_v52 = vld [vmem:[%s12418_s1 + $0x938] sm:$0xff]  }
 0x100   :  { %8725 = vmatprep.subr.bf16.mxu0 %v9645_v60 }
 0x101   :  { %8718 = vmatpush3.bf16.msra.mxu1 %v9644_v58  ;;  %v9686_v58 = vld [vmem:[%s12418_s1 + $0x9b8] sm:$0xff]  }
 0x102   :  { %v8433_v54 = vpop.f32.mrf.mxu0  ;;  %6375 = vmatmul.mubr.bf16.vlgmr.msra.gmra.mxu0 %v7636_v56  ;;  %8747 = vmatprep.subr.bf16.mxu1 %v9649_v5  ;;  %v9685_v56 = vld [vmem:[%s12418_s1 + $0x9f8] sm:$0xff]   ;;  %v9693_v5 = vld [vmem:[%s12418_s1 + $0x9e8] sm:$0xff]  }
 0x103   :  { %8726 = vmatpush3.bf16.msra.mxu0 %v9648_v2  ;;  %6454 = vmatprep.mubr.bf16.mxu0 %v7641_v43  ;;  %v9690_v2 = vld [vmem:[%s12418_s1 + $0x9b0] sm:$0xff]   ;;  %v9722_v43 = vld [vmem:[%s12418_s1 + $0xab8] sm:$0xff]  }
 0x104   :  { %v8434_v59 = vpop.f32.mrf.mxu0  ;;  %v8455_v63 = vpop.f32.mrf.mxu1  ;;  %6415 = vmatmul.mubr.bf16.vlgmr.msra.gmra.mxu1 %v7638_v0  ;;  %8727 = vmatprep.subr.bf16.mxu0 %v9651_v10  ;;  %v9698_v10 = vld [vmem:[%s12418_s1 + $0x9a0] sm:$0xff]  }
 0x105   :  { %v8435_v62 = vadd.f32 %v8434_v59, %v8433_v54  ;;  %8748 = vmatpush3.bf16.msra.mxu1 %v9650_v7  ;;  %6494 = vmatprep.mubr.bf16.mxu1 %v7643_v51  ;;  %v9695_v7 = vld [vmem:[%s12418_s1 + $0x960] sm:$0xff]  }
 0x106   :  { %v8436_v3 = vpop.f32.mrf.mxu0  ;;  %v8456_v6 = vpop.f32.mrf.mxu1  ;;  %8749 = vmatprep.subr.bf16.mxu1 %v9653_v14  ;;  %v9702_v14 = vld [vmem:[%s12418_s1 + $0x998] sm:$0xff]  }
 0x107   :  { %v5897_v4 = vadd.f32 %v8435_v62, %v10884_v26  ;;  %v8457_v8 = vadd.f32 %v8456_v6, %v8455_v63  ;;  %8728 = vmatpush3.bf16.msra.mxu0 %v9652_v13  ;;  %v9664_v26 = vld [vmem:[%s12418_s1 + $0x818] sm:$0xff]   ;;  %v9687_v62 = vld [vmem:[%s12418_s1 + $0x970] sm:$0xff]   ;;  %v9691_v3 = vld [vmem:[%s12418_s1 + $0x968] sm:$0xff]  }
 0x108   :  { %v8437_v9 = vpop.f32.mrf.mxu0  ;;  %v8458_v11 = vpop.f32.mrf.mxu1  ;;  %8729 = vmatprep.subr.bf16.mxu0 %v9655_v17  ;;  %v9688_v63 = vld [vmem:[%s12418_s1 + $0x930] sm:$0xff]   ;;  %v9694_v6 = vld [vmem:[%s12418_s1 + $0x9a8] sm:$0xff]   ;;  %v9701_v13 = vld [vmem:[%s12418_s1 + $0x9d8] sm:$0xff]  }
 0x109   :  { %v10989_v12 = vadd.f32 %v8457_v8, %v5897_v4  ;;  %8750 = vmatpush3.bf16.msra.mxu1 %v9654_v16  ;;  %v9692_v4 = vld [vmem:[%s12418_s1 + $0x928] sm:$0xff]   ;;  %v9696_v8 = vld [vmem:[%s12418_s1 + $0x920] sm:$0xff]   ;;  %v9699_v11 = vld [vmem:[%s12418_s1 + $0x958] sm:$0xff]  }
 0x10a   :  { %v8459_v15 = vpop.f32.mrf.mxu1  ;;  %8751 = vmatprep.subr.bf16.mxu1 %v9657_v19  ;;  %v9697_v9 = vld [vmem:[%s12418_s1 + $0x9e0] sm:$0xff]   ;;  %v9704_v16 = vld [vmem:[%s12418_s1 + $0x910] sm:$0xff]   ;;  %v9707_v19 = vld [vmem:[%s12418_s1 + $0x948] sm:$0xff]  }
 0x10b   :  { %8730 = vmatpush3.bf16.msra.mxu0 %v9656_v18  ;;  %v9703_v15 = vld [vmem:[%s12418_s1 + $0x950] sm:$0xff]  }
 0x10c   :  { %8731 = vmatprep.subr.bf16.mxu0 %v9659_v21  ;;  %v9705_v17 = vld [vmem:[%s12418_s1 + $0x9d0] sm:$0xff]   ;;  %v9709_v21 = vld [vmem:[%s12418_s1 + $0x9c8] sm:$0xff]  }
 0x10d   :  { %8752 = vmatpush3.bf16.msra.mxu1 %v9658_v20  ;;  %v9706_v18 = vld [vmem:[%s12418_s1 + $0x990] sm:$0xff]   ;;  %v9708_v20 = vld [vmem:[%s12418_s1 + $0x908] sm:$0xff]  }
 0x10e   :  { %8753 = vmatprep.subr.bf16.mxu1 %v9661_v23  ;;  %v9711_v23 = vld [vmem:[%s12418_s1 + $0x940] sm:$0xff]  }
 0x10f   :  { %8732 = vmatpush3.bf16.msra.mxu0 %v9660_v22  ;;  %v9710_v22 = vld [vmem:[%s12418_s1 + $0x988] sm:$0xff]  }
 0x110   :  { %8733 = vmatprep.subr.bf16.mxu0 %v9663_v25  ;;  %v9713_v25 = vld [vmem:[%s12418_s1 + $0x9c0] sm:$0xff]  }
 0x111   :  { %8754 = vmatpush3.bf16.msra.mxu1 %v9662_v24  ;;  %v9712_v24 = vld [vmem:[%s12418_s1 + $0x900] sm:$0xff]  }
 0x112   :  { %8755 = vmatprep.subr.bf16.mxu1 %v9665_v27 }
 0x113   :  { %8734 = vmatpush3.bf16.msra.mxu0 %v9664_v26  ;;  %v41_v26 = vld [vmem:[%s12419_s0 + $0x90] sm:$0xff] }
 0x114   :  { %8735 = vmatprep.subr.bf16.mxu0 %v9667_v29  ;;  %v7645_v29 = vcombine.high %v41_v26, %v41_v26 }
 0x115   :  { %8756 = vmatpush3.bf16.msra.mxu1 %v9666_v28  ;;  %v7644_v28 = vcombine.low %v41_v26, %v41_v26 }
 0x116   :  { %8757 = vmatprep.subr.bf16.mxu1 %v9669_v31  ;;  %v9717_v31 = vld [vmem:[%s12418_s1 + $0xa78] sm:$0xff]  }
 0x117   :  { %8736 = vmatpush3.bf16.msra.mxu0 %v9668_v30  ;;  %v9716_v30 = vld [vmem:[%s12418_s1 + $0x980] sm:$0xff]  }
 0x118   :  { %8737 = vmatprep.subr.bf16.mxu0 %v9671_v33 }
 0x119   :  { %8758 = vmatpush3.bf16.msra.mxu1 %v9670_v32  ;;  %v42_v32 = vld [vmem:[%s12419_s0 + $0x98] sm:$0xff] }
 0x11a   :  { %8759 = vmatprep.subr.bf16.mxu1 %v9673_v35  ;;  %v7646_v35 = vcombine.low %v42_v32, %v42_v32 }
 0x11b   :  { %8738 = vmatpush3.bf16.msra.mxu0 %v9672_v34 }
 0x11c   :  { %8739 = vmatprep.subr.bf16.mxu0 %v9675_v37  ;;  %v9720_v37 = vld [vmem:[%s12418_s1 + $0xa38] sm:$0xff]  }
 0x11d   :  { %8760 = vmatpush3.bf16.msra.mxu1 %v9674_v36  ;;  %v7647_v36 = vcombine.high %v42_v32, %v42_v32  ;;  %v9759_v32 = vld [vmem:[%s12418_s1 + $0xb70] sm:$0xff]  }
 0x11e   :  { %8761 = vmatprep.subr.bf16.mxu1 %v9677_v39  ;;  %v9721_v39 = vld [vmem:[%s12418_s1 + $0xaf8] sm:$0xff]  }
 0x11f   :  { %8740 = vmatpush3.bf16.msra.mxu0 %v9676_v38 }
 0x120   :  { %8769 = vmatprep.subr.bf16.mxu0 %v9681_v45  ;;  %v9723_v45 = vld [vmem:[%s12418_s1 + $0xa70] sm:$0xff]  }
 0x121   :  { %8762 = vmatpush3.bf16.msra.mxu1 %v9680_v44 }
 0x122   :  { %v8477_v41 = vpop.f32.mrf.mxu0  ;;  %6455 = vmatmul.mubr.bf16.vlgmr.msra.gmra.mxu0 %v7640_v42  ;;  %8791 = vmatprep.subr.bf16.mxu1 %v9685_v56  ;;  %v9730_v56 = vld [vmem:[%s12418_s1 + $0xaa8] sm:$0xff]  }
 0x123   :  { %8770 = vmatpush3.bf16.msra.mxu0 %v9684_v52  ;;  %6534 = vmatprep.mubr.bf16.mxu0 %v7645_v29  ;;  %v9726_v52 = vld [vmem:[%s12418_s1 + $0xab0] sm:$0xff]   ;;  %v9758_v29 = vld [vmem:[%s12418_s1 + $0xbb8] sm:$0xff]  }
 0x124   :  { %v8478_v46 = vpop.f32.mrf.mxu0  ;;  %v8499_v47 = vpop.f32.mrf.mxu1  ;;  %6495 = vmatmul.mubr.bf16.vlgmr.msra.gmra.mxu1 %v7642_v50  ;;  %8771 = vmatprep.subr.bf16.mxu0 %v9687_v62  ;;  %v9725_v50 = vld [vmem:[%s12418_s1 + $0xaf0] sm:$0xff]   ;;  %v9736_v62 = vld [vmem:[%s12418_s1 + $0xa18] sm:$0xff]  }
 0x125   :  { %v8479_v49 = vadd.f32 %v8478_v46, %v8477_v41  ;;  %8792 = vmatpush3.bf16.msra.mxu1 %v9686_v58  ;;  %6574 = vmatprep.mubr.bf16.mxu1 %v7647_v36  ;;  %v9732_v58 = vld [vmem:[%s12418_s1 + $0xa20] sm:$0xff]   ;;  %v9761_v36 = vld [vmem:[%s12418_s1 + $0xbf0] sm:$0xff]  }
 0x126   :  { %v8480_v53 = vpop.f32.mrf.mxu0  ;;  %v8500_v54 = vpop.f32.mrf.mxu1  ;;  %8793 = vmatprep.subr.bf16.mxu1 %v9689_v1  ;;  %v9739_v1 = vld [vmem:[%s12418_s1 + $0xa50] sm:$0xff]  }
 0x127   :  { %v5977_v55 = vadd.f32 %v8479_v49, %v10989_v12  ;;  %v8501_v57 = vadd.f32 %v8500_v54, %v8499_v47  ;;  %8772 = vmatpush3.bf16.msra.mxu0 %v9688_v63  ;;  %v9700_v12 = vld [vmem:[%s12418_s1 + $0x918] sm:$0xff]   ;;  %v9724_v49 = vld [vmem:[%s12418_s1 + $0xa30] sm:$0xff]   ;;  %v9727_v53 = vld [vmem:[%s12418_s1 + $0xa68] sm:$0xff]  }
 0x128   :  { %v8481_v59 = vpop.f32.mrf.mxu0  ;;  %v8502_v60 = vpop.f32.mrf.mxu1  ;;  %8773 = vmatprep.subr.bf16.mxu0 %v9691_v3  ;;  %v9728_v54 = vld [vmem:[%s12418_s1 + $0xa28] sm:$0xff]   ;;  %v9737_v63 = vld [vmem:[%s12418_s1 + $0xad8] sm:$0xff]   ;;  %v9741_v3 = vld [vmem:[%s12418_s1 + $0xad0] sm:$0xff]  }
 0x129   :  { %v11091_v61 = vadd.f32 %v8501_v57, %v5977_v55  ;;  %8794 = vmatpush3.bf16.msra.mxu1 %v9690_v2  ;;  %v9729_v55 = vld [vmem:[%s12418_s1 + $0xae8] sm:$0xff]   ;;  %v9731_v57 = vld [vmem:[%s12418_s1 + $0xa60] sm:$0xff]   ;;  %v9740_v2 = vld [vmem:[%s12418_s1 + $0xa10] sm:$0xff]  }
 0x12a   :  { %v8503_v0 = vpop.f32.mrf.mxu1  ;;  %8795 = vmatprep.subr.bf16.mxu1 %v9693_v5  ;;  %v9733_v59 = vld [vmem:[%s12418_s1 + $0xae0] sm:$0xff]   ;;  %v9743_v5 = vld [vmem:[%s12418_s1 + $0xa48] sm:$0xff]  }
 0x12b   :  { %8774 = vmatpush3.bf16.msra.mxu0 %v9692_v4  ;;  %v9734_v60 = vld [vmem:[%s12418_s1 + $0xaa0] sm:$0xff]   ;;  %v9738_v0 = vld [vmem:[%s12418_s1 + $0xa98] sm:$0xff]   ;;  %v9742_v4 = vld [vmem:[%s12418_s1 + $0xa90] sm:$0xff]  }
 0x12c   :  { %8775 = vmatprep.subr.bf16.mxu0 %v9695_v7  ;;  %v9745_v7 = vld [vmem:[%s12418_s1 + $0xac8] sm:$0xff]  }
 0x12d   :  { %8796 = vmatpush3.bf16.msra.mxu1 %v9694_v6  ;;  %v9744_v6 = vld [vmem:[%s12418_s1 + $0xa08] sm:$0xff]  }
 0x12e   :  { %8797 = vmatprep.subr.bf16.mxu1 %v9697_v9  ;;  %v9747_v9 = vld [vmem:[%s12418_s1 + $0xa40] sm:$0xff]  }
 0x12f   :  { %8776 = vmatpush3.bf16.msra.mxu0 %v9696_v8  ;;  %v9746_v8 = vld [vmem:[%s12418_s1 + $0xa88] sm:$0xff]  }
 0x130   :  { %8777 = vmatprep.subr.bf16.mxu0 %v9699_v11  ;;  %v9749_v11 = vld [vmem:[%s12418_s1 + $0xac0] sm:$0xff]  }
 0x131   :  { %8798 = vmatpush3.bf16.msra.mxu1 %v9698_v10  ;;  %v9748_v10 = vld [vmem:[%s12418_s1 + $0xa00] sm:$0xff]  }
 0x132   :  { %8799 = vmatprep.subr.bf16.mxu1 %v9701_v13  ;;  %v43_v13 = vld [vmem:[%s12419_s0 + $0xa0] sm:$0xff] }
 0x133   :  { %8778 = vmatpush3.bf16.msra.mxu0 %v9700_v12 }
 0x134   :  { %8779 = vmatprep.subr.bf16.mxu0 %v9703_v15  ;;  %v7649_v15 = vcombine.high %v43_v13, %v43_v13 }
 0x135   :  { %8800 = vmatpush3.bf16.msra.mxu1 %v9702_v14  ;;  %v7648_v14 = vcombine.low %v43_v13, %v43_v13 }
 0x136   :  { %8801 = vmatprep.subr.bf16.mxu1 %v9705_v17 }
 0x137   :  { %8780 = vmatpush3.bf16.msra.mxu0 %v9704_v16  ;;  %v9752_v16 = vld [vmem:[%s12418_s1 + $0xa80] sm:$0xff]  }
 0x138   :  { %8781 = vmatprep.subr.bf16.mxu0 %v9707_v19  ;;  %v44_v19 = vld [vmem:[%s12419_s0 + $0xa8] sm:$0xff] }
 0x139   :  { %8802 = vmatpush3.bf16.msra.mxu1 %v9706_v18  ;;  %v9753_v18 = vld [vmem:[%s12418_s1 + $0xb78] sm:$0xff]  }
 0x13a   :  { %8803 = vmatprep.subr.bf16.mxu1 %v9709_v21 }
 0x13b   :  { %8782 = vmatpush3.bf16.msra.mxu0 %v9708_v20 }
 0x13c   :  { %8783 = vmatprep.subr.bf16.mxu0 %v9711_v23  ;;  %v7651_v23 = vcombine.high %v44_v19, %v44_v19 }
 0x13d   :  { %8804 = vmatpush3.bf16.msra.mxu1 %v9710_v22  ;;  %v7650_v22 = vcombine.low %v44_v19, %v44_v19 }
 0x13e   :  { %8805 = vmatprep.subr.bf16.mxu1 %v9713_v25 }
 0x13f   :  { %8784 = vmatpush3.bf16.msra.mxu0 %v9712_v24  ;;  %v9756_v24 = vld [vmem:[%s12418_s1 + $0xb38] sm:$0xff]  }
 0x140   :  { %8813 = vmatprep.subr.bf16.mxu0 %v9717_v31 }
 0x141   :  { %8806 = vmatpush3.bf16.msra.mxu1 %v9716_v30 }
 0x142   :  { %v8521_v27 = vpop.f32.mrf.mxu0  ;;  %6535 = vmatmul.mubr.bf16.vlgmr.msra.gmra.mxu0 %v7644_v28  ;;  %8835 = vmatprep.subr.bf16.mxu1 %v9721_v39  ;;  %v9763_v39 = vld [vmem:[%s12418_s1 + $0xb68] sm:$0xff]  }
 0x143   :  { %8814 = vmatpush3.bf16.msra.mxu0 %v9720_v37  ;;  %6614 = vmatprep.mubr.bf16.mxu0 %v7649_v15 }
 0x144   :  { %v8522_v33 = vpop.f32.mrf.mxu0  ;;  %v8543_v34 = vpop.f32.mrf.mxu1  ;;  %6575 = vmatmul.mubr.bf16.vlgmr.msra.gmra.mxu1 %v7646_v35  ;;  %8815 = vmatprep.subr.bf16.mxu0 %v9723_v45  ;;  %v9760_v35 = vld [vmem:[%s12418_s1 + $0xb30] sm:$0xff]   ;;  %v9769_v45 = vld [vmem:[%s12418_s1 + $0xbe0] sm:$0xff]  }
 0x145   :  { %v8523_v38 = vadd.f32 %v8522_v33, %v8521_v27  ;;  %8836 = vmatpush3.bf16.msra.mxu1 %v9722_v43  ;;  %v9757_v27 = vld [vmem:[%s12418_s1 + $0xbf8] sm:$0xff]   ;;  %6654 = vmatprep.mubr.bf16.mxu1 %v7651_v23  ;;  %v9767_v43 = vld [vmem:[%s12418_s1 + $0xb60] sm:$0xff]   ;;  %v9797_v23 = vld [vmem:[%s12418_s1 + $0xcf0] sm:$0xff]  }
 0x146   :  { %v8524_v40 = vpop.f32.mrf.mxu0  ;;  %v8544_v41 = vpop.f32.mrf.mxu1  ;;  %8837 = vmatprep.subr.bf16.mxu1 %v9725_v50  ;;  %v9774_v50 = vld [vmem:[%s12418_s1 + $0xb98] sm:$0xff]  }
 0x147   :  { %v6057_v42 = vadd.f32 %v8523_v38, %v11091_v61  ;;  %v8545_v44 = vadd.f32 %v8544_v41, %v8543_v34  ;;  %8816 = vmatpush3.bf16.msra.mxu0 %v9724_v49  ;;  %v9735_v61 = vld [vmem:[%s12418_s1 + $0xa58] sm:$0xff]   ;;  %v9762_v38 = vld [vmem:[%s12418_s1 + $0xbb0] sm:$0xff]   ;;  %v9764_v40 = vld [vmem:[%s12418_s1 + $0xb28] sm:$0xff]  }
 0x148   :  { %v8525_v46 = vpop.f32.mrf.mxu0  ;;  %v8546_v47 = vpop.f32.mrf.mxu1  ;;  %8817 = vmatprep.subr.bf16.mxu0 %v9727_v53  ;;  %v9765_v41 = vld [vmem:[%s12418_s1 + $0xbe8] sm:$0xff]   ;;  %v9773_v49 = vld [vmem:[%s12418_s1 + $0xbd8] sm:$0xff]   ;;  %v9777_v53 = vld [vmem:[%s12418_s1 + $0xbd0] sm:$0xff]  }
 0x149   :  { %v11199_v48 = vadd.f32 %v8545_v44, %v6057_v42  ;;  %8838 = vmatpush3.bf16.msra.mxu1 %v9726_v52  ;;  %v9766_v42 = vld [vmem:[%s12418_s1 + $0xba8] sm:$0xff]   ;;  %v9768_v44 = vld [vmem:[%s12418_s1 + $0xb20] sm:$0xff]   ;;  %v9771_v47 = vld [vmem:[%s12418_s1 + $0xb58] sm:$0xff]  }
 0x14a   :  { %v8547_v51 = vpop.f32.mrf.mxu1  ;;  %8839 = vmatprep.subr.bf16.mxu1 %v9729_v55  ;;  %v9770_v46 = vld [vmem:[%s12418_s1 + $0xba0] sm:$0xff]   ;;  %v9776_v52 = vld [vmem:[%s12418_s1 + $0xb10] sm:$0xff]   ;;  %v9779_v55 = vld [vmem:[%s12418_s1 + $0xb48] sm:$0xff]  }
 0x14b   :  { %8818 = vmatpush3.bf16.msra.mxu0 %v9728_v54  ;;  %v9775_v51 = vld [vmem:[%s12418_s1 + $0xb50] sm:$0xff]  }
 0x14c   :  { %8819 = vmatprep.subr.bf16.mxu0 %v9731_v57  ;;  %v9778_v54 = vld [vmem:[%s12418_s1 + $0xb90] sm:$0xff]   ;;  %v9781_v57 = vld [vmem:[%s12418_s1 + $0xbc8] sm:$0xff]  }
 0x14d   :  { %8840 = vmatpush3.bf16.msra.mxu1 %v9730_v56  ;;  %v9780_v56 = vld [vmem:[%s12418_s1 + $0xb08] sm:$0xff]  }
 0x14e   :  { %8841 = vmatprep.subr.bf16.mxu1 %v9733_v59  ;;  %v9783_v59 = vld [vmem:[%s12418_s1 + $0xb40] sm:$0xff]  }
 0x14f   :  { %8820 = vmatpush3.bf16.msra.mxu0 %v9732_v58  ;;  %v9782_v58 = vld [vmem:[%s12418_s1 + $0xb88] sm:$0xff]  }
 0x150   :  { %8821 = vmatprep.subr.bf16.mxu0 %v9735_v61  ;;  %v9785_v61 = vld [vmem:[%s12418_s1 + $0xbc0] sm:$0xff]  }
 0x151   :  { %8842 = vmatpush3.bf16.msra.mxu1 %v9734_v60  ;;  %v9784_v60 = vld [vmem:[%s12418_s1 + $0xb00] sm:$0xff]  }
 0x152   :  { %8843 = vmatprep.subr.bf16.mxu1 %v9737_v63 }
 0x153   :  { %8822 = vmatpush3.bf16.msra.mxu0 %v9736_v62  ;;  %v45_v62 = vld [vmem:[%s12419_s0 + $0xb0] sm:$0xff] }
 0x154   :  { %8823 = vmatprep.subr.bf16.mxu0 %v9739_v1  ;;  %v7653_v1 = vcombine.high %v45_v62, %v45_v62 }
 0x155   :  { %8844 = vmatpush3.bf16.msra.mxu1 %v9738_v0  ;;  %v7652_v0 = vcombine.low %v45_v62, %v45_v62 }
 0x156   :  { %8845 = vmatprep.subr.bf16.mxu1 %v9741_v3  ;;  %v9789_v3 = vld [vmem:[%s12418_s1 + $0xc78] sm:$0xff]  }
 0x157   :  { %8824 = vmatpush3.bf16.msra.mxu0 %v9740_v2  ;;  %v9788_v2 = vld [vmem:[%s12418_s1 + $0xb80] sm:$0xff]  }
 0x158   :  { %8825 = vmatprep.subr.bf16.mxu0 %v9743_v5 }
 0x159   :  { %8846 = vmatpush3.bf16.msra.mxu1 %v9742_v4 }
 0x15a   :  { %8847 = vmatprep.subr.bf16.mxu1 %v9745_v7 }
 0x15b   :  { %8826 = vmatpush3.bf16.msra.mxu0 %v9744_v6  ;;  %v46_v6 = vld [vmem:[%s12419_s0 + $0xb8] sm:$0xff] }
 0x15c   :  { %8827 = vmatprep.subr.bf16.mxu0 %v9747_v9  ;;  %v7655_v9 = vcombine.high %v46_v6, %v46_v6 }
 0x15d   :  { %8848 = vmatpush3.bf16.msra.mxu1 %v9746_v8  ;;  %v7654_v8 = vcombine.low %v46_v6, %v46_v6 }
 0x15e   :  { %8849 = vmatprep.subr.bf16.mxu1 %v9749_v11 }
 0x15f   :  { %8828 = vmatpush3.bf16.msra.mxu0 %v9748_v10  ;;  %v9792_v10 = vld [vmem:[%s12418_s1 + $0xc38] sm:$0xff]  }
 0x160   :  { %8857 = vmatprep.subr.bf16.mxu0 %v9753_v18 }
 0x161   :  { %8850 = vmatpush3.bf16.msra.mxu1 %v9752_v16  ;;  %v9794_v16 = vld [vmem:[%s12418_s1 + $0xcb8] sm:$0xff]  }
 0x162   :  { %v8565_v12 = vpop.f32.mrf.mxu0  ;;  %6615 = vmatmul.mubr.bf16.vlgmr.msra.gmra.mxu0 %v7648_v14  ;;  %8879 = vmatprep.subr.bf16.mxu1 %v9757_v27  ;;  %v9793_v14 = vld [vmem:[%s12418_s1 + $0xcf8] sm:$0xff]   ;;  %v9801_v27 = vld [vmem:[%s12418_s1 + $0xce8] sm:$0xff]  }
 0x163   :  { %8858 = vmatpush3.bf16.msra.mxu0 %v9756_v24  ;;  %6694 = vmatprep.mubr.bf16.mxu0 %v7653_v1  ;;  %v9798_v24 = vld [vmem:[%s12418_s1 + $0xcb0] sm:$0xff]   ;;  %v9830_v1 = vld [vmem:[%s12418_s1 + $0xdb8] sm:$0xff]  }
 0x164   :  { %v8566_v17 = vpop.f32.mrf.mxu0  ;;  %v8587_v21 = vpop.f32.mrf.mxu1  ;;  %6655 = vmatmul.mubr.bf16.vlgmr.msra.gmra.mxu1 %v7650_v22  ;;  %8859 = vmatprep.subr.bf16.mxu0 %v9759_v32  ;;  %v9806_v32 = vld [vmem:[%s12418_s1 + $0xca0] sm:$0xff]  }
 0x165   :  { %v8567_v20 = vadd.f32 %v8566_v17, %v8565_v12  ;;  %8880 = vmatpush3.bf16.msra.mxu1 %v9758_v29  ;;  %6734 = vmatprep.mubr.bf16.mxu1 %v7655_v9  ;;  %v9803_v29 = vld [vmem:[%s12418_s1 + $0xc60] sm:$0xff]  }
 0x166   :  { %v8568_v25 = vpop.f32.mrf.mxu0  ;;  %v8588_v28 = vpop.f32.mrf.mxu1  ;;  %8881 = vmatprep.subr.bf16.mxu1 %v9761_v36  ;;  %v9810_v36 = vld [vmem:[%s12418_s1 + $0xc98] sm:$0xff]  }
 0x167   :  { %v6137_v26 = vadd.f32 %v8567_v20, %v11199_v48  ;;  %v8589_v30 = vadd.f32 %v8588_v28, %v8587_v21  ;;  %8860 = vmatpush3.bf16.msra.mxu0 %v9760_v35  ;;  %v9772_v48 = vld [vmem:[%s12418_s1 + $0xb18] sm:$0xff]   ;;  %v9795_v20 = vld [vmem:[%s12418_s1 + $0xc70] sm:$0xff]   ;;  %v9799_v25 = vld [vmem:[%s12418_s1 + $0xc68] sm:$0xff]  }
 0x168   :  { %v8569_v31 = vpop.f32.mrf.mxu0  ;;  %v8590_v33 = vpop.f32.mrf.mxu1  ;;  %8861 = vmatprep.subr.bf16.mxu0 %v9763_v39  ;;  %v9796_v21 = vld [vmem:[%s12418_s1 + $0xc30] sm:$0xff]   ;;  %v9802_v28 = vld [vmem:[%s12418_s1 + $0xca8] sm:$0xff]   ;;  %v9809_v35 = vld [vmem:[%s12418_s1 + $0xcd8] sm:$0xff]  }
 0x169   :  { %v11304_v34 = vadd.f32 %v8589_v30, %v6137_v26  ;;  %8882 = vmatpush3.bf16.msra.mxu1 %v9762_v38  ;;  %v9800_v26 = vld [vmem:[%s12418_s1 + $0xc28] sm:$0xff]   ;;  %v9804_v30 = vld [vmem:[%s12418_s1 + $0xc20] sm:$0xff]   ;;  %v9807_v33 = vld [vmem:[%s12418_s1 + $0xc58] sm:$0xff]  }
 0x16a   :  { %v8591_v37 = vpop.f32.mrf.mxu1  ;;  %8883 = vmatprep.subr.bf16.mxu1 %v9765_v41  ;;  %v9805_v31 = vld [vmem:[%s12418_s1 + $0xce0] sm:$0xff]   ;;  %v9812_v38 = vld [vmem:[%s12418_s1 + $0xc10] sm:$0xff]   ;;  %v9815_v41 = vld [vmem:[%s12418_s1 + $0xc48] sm:$0xff]  }
 0x16b   :  { %8862 = vmatpush3.bf16.msra.mxu0 %v9764_v40  ;;  %v9811_v37 = vld [vmem:[%s12418_s1 + $0xc50] sm:$0xff]  }
 0x16c   :  { %8863 = vmatprep.subr.bf16.mxu0 %v9767_v43  ;;  %v9813_v39 = vld [vmem:[%s12418_s1 + $0xcd0] sm:$0xff]   ;;  %v9817_v43 = vld [vmem:[%s12418_s1 + $0xcc8] sm:$0xff]  }
 0x16d   :  { %8884 = vmatpush3.bf16.msra.mxu1 %v9766_v42  ;;  %v9814_v40 = vld [vmem:[%s12418_s1 + $0xc90] sm:$0xff]   ;;  %v9816_v42 = vld [vmem:[%s12418_s1 + $0xc08] sm:$0xff]  }
 0x16e   :  { %8885 = vmatprep.subr.bf16.mxu1 %v9769_v45  ;;  %v9819_v45 = vld [vmem:[%s12418_s1 + $0xc40] sm:$0xff]  }
 0x16f   :  { %8864 = vmatpush3.bf16.msra.mxu0 %v9768_v44  ;;  %v9818_v44 = vld [vmem:[%s12418_s1 + $0xc88] sm:$0xff]  }
 0x170   :  { %8865 = vmatprep.subr.bf16.mxu0 %v9771_v47  ;;  %v9821_v47 = vld [vmem:[%s12418_s1 + $0xcc0] sm:$0xff]  }
 0x171   :  { %8886 = vmatpush3.bf16.msra.mxu1 %v9770_v46  ;;  %v9820_v46 = vld [vmem:[%s12418_s1 + $0xc00] sm:$0xff]  }
 0x172   :  { %8887 = vmatprep.subr.bf16.mxu1 %v9773_v49 }
 0x173   :  { %8866 = vmatpush3.bf16.msra.mxu0 %v9772_v48  ;;  %v47_v48 = vld [vmem:[%s12419_s0 + $0xc0] sm:$0xff] }
 0x174   :  { %8867 = vmatprep.subr.bf16.mxu0 %v9775_v51  ;;  %v7657_v51 = vcombine.high %v47_v48, %v47_v48 }
 0x175   :  { %8888 = vmatpush3.bf16.msra.mxu1 %v9774_v50  ;;  %v7656_v50 = vcombine.low %v47_v48, %v47_v48 }
 0x176   :  { %8889 = vmatprep.subr.bf16.mxu1 %v9777_v53  ;;  %v9825_v53 = vld [vmem:[%s12418_s1 + $0xd78] sm:$0xff]  }
 0x177   :  { %8868 = vmatpush3.bf16.msra.mxu0 %v9776_v52  ;;  %v9824_v52 = vld [vmem:[%s12418_s1 + $0xc80] sm:$0xff]  }
 0x178   :  { %8869 = vmatprep.subr.bf16.mxu0 %v9779_v55 }
 0x179   :  { %8890 = vmatpush3.bf16.msra.mxu1 %v9778_v54  ;;  %v48_v54 = vld [vmem:[%s12419_s0 + $0xc8] sm:$0xff] }
 0x17a   :  { %8891 = vmatprep.subr.bf16.mxu1 %v9781_v57  ;;  %v7658_v57 = vcombine.low %v48_v54, %v48_v54 }
 0x17b   :  { %8870 = vmatpush3.bf16.msra.mxu0 %v9780_v56 }
 0x17c   :  { %8871 = vmatprep.subr.bf16.mxu0 %v9783_v59  ;;  %v9828_v59 = vld [vmem:[%s12418_s1 + $0xd38] sm:$0xff]  }
 0x17d   :  { %8892 = vmatpush3.bf16.msra.mxu1 %v9782_v58  ;;  %v7659_v58 = vcombine.high %v48_v54, %v48_v54 }
 0x17e   :  { %8893 = vmatprep.subr.bf16.mxu1 %v9785_v61  ;;  %v9829_v61 = vld [vmem:[%s12418_s1 + $0xdf8] sm:$0xff]  }
 0x17f   :  { %8872 = vmatpush3.bf16.msra.mxu0 %v9784_v60 }
 0x180   :  { %8901 = vmatprep.subr.bf16.mxu0 %v9789_v3  ;;  %v9831_v3 = vld [vmem:[%s12418_s1 + $0xd70] sm:$0xff]  }
 0x181   :  { %8894 = vmatpush3.bf16.msra.mxu1 %v9788_v2 }
 0x182   :  { %v8609_v63 = vpop.f32.mrf.mxu0  ;;  %6695 = vmatmul.mubr.bf16.vlgmr.msra.gmra.mxu0 %v7652_v0  ;;  %8923 = vmatprep.subr.bf16.mxu1 %v9793_v14  ;;  %v9838_v14 = vld [vmem:[%s12418_s1 + $0xda8] sm:$0xff]  }
 0x183   :  { %8902 = vmatpush3.bf16.msra.mxu0 %v9792_v10  ;;  %6774 = vmatprep.mubr.bf16.mxu0 %v7657_v51  ;;  %v9834_v10 = vld [vmem:[%s12418_s1 + $0xdb0] sm:$0xff]   ;;  %v9866_v51 = vld [vmem:[%s12418_s1 + $0xeb8] sm:$0xff]  }
 0x184   :  { %v8610_v4 = vpop.f32.mrf.mxu0  ;;  %v8631_v5 = vpop.f32.mrf.mxu1  ;;  %6735 = vmatmul.mubr.bf16.vlgmr.msra.gmra.mxu1 %v7654_v8  ;;  %8903 = vmatprep.subr.bf16.mxu0 %v9795_v20  ;;  %v9833_v8 = vld [vmem:[%s12418_s1 + $0xdf0] sm:$0xff]   ;;  %v9844_v20 = vld [vmem:[%s12418_s1 + $0xd18] sm:$0xff]  }
 0x185   :  { %v8611_v7 = vadd.f32 %v8610_v4, %v8609_v63  ;;  %8924 = vmatpush3.bf16.msra.mxu1 %v9794_v16  ;;  %6814 = vmatprep.mubr.bf16.mxu1 %v7659_v58  ;;  %v9840_v16 = vld [vmem:[%s12418_s1 + $0xd20] sm:$0xff]   ;;  %v9869_v58 = vld [vmem:[%s12418_s1 + $0xef0] sm:$0xff]  }
 0x186   :  { %v8612_v11 = vpop.f32.mrf.mxu0  ;;  %v8632_v12 = vpop.f32.mrf.mxu1  ;;  %8925 = vmatprep.subr.bf16.mxu1 %v9797_v23  ;;  %v9847_v23 = vld [vmem:[%s12418_s1 + $0xd50] sm:$0xff]  }
 0x187   :  { %v6217_v13 = vadd.f32 %v8611_v7, %v11304_v34  ;;  %v8633_v15 = vadd.f32 %v8632_v12, %v8631_v5  ;;  %8904 = vmatpush3.bf16.msra.mxu0 %v9796_v21  ;;  %v9808_v34 = vld [vmem:[%s12418_s1 + $0xc18] sm:$0xff]   ;;  %v9832_v7 = vld [vmem:[%s12418_s1 + $0xd30] sm:$0xff]   ;;  %v9835_v11 = vld [vmem:[%s12418_s1 + $0xd68] sm:$0xff]  }
 0x188   :  { %v8613_v17 = vpop.f32.mrf.mxu0  ;;  %v8634_v18 = vpop.f32.mrf.mxu1  ;;  %8905 = vmatprep.subr.bf16.mxu0 %v9799_v25  ;;  %v9836_v12 = vld [vmem:[%s12418_s1 + $0xd28] sm:$0xff]   ;;  %v9845_v21 = vld [vmem:[%s12418_s1 + $0xdd8] sm:$0xff]   ;;  %v9849_v25 = vld [vmem:[%s12418_s1 + $0xdd0] sm:$0xff]  }
 0x189   :  { %v11406_v19 = vadd.f32 %v8633_v15, %v6217_v13  ;;  %8926 = vmatpush3.bf16.msra.mxu1 %v9798_v24  ;;  %v9837_v13 = vld [vmem:[%s12418_s1 + $0xde8] sm:$0xff]   ;;  %v9839_v15 = vld [vmem:[%s12418_s1 + $0xd60] sm:$0xff]   ;;  %v9848_v24 = vld [vmem:[%s12418_s1 + $0xd10] sm:$0xff]  }
 0x18a   :  { %v8635_v22 = vpop.f32.mrf.mxu1  ;;  %8927 = vmatprep.subr.bf16.mxu1 %v9801_v27  ;;  %v9841_v17 = vld [vmem:[%s12418_s1 + $0xde0] sm:$0xff]   ;;  %v9851_v27 = vld [vmem:[%s12418_s1 + $0xd48] sm:$0xff]  }
 0x18b   :  { %8906 = vmatpush3.bf16.msra.mxu0 %v9800_v26  ;;  %v9842_v18 = vld [vmem:[%s12418_s1 + $0xda0] sm:$0xff]   ;;  %v9846_v22 = vld [vmem:[%s12418_s1 + $0xd98] sm:$0xff]   ;;  %v9850_v26 = vld [vmem:[%s12418_s1 + $0xd90] sm:$0xff]  }
 0x18c   :  { %8907 = vmatprep.subr.bf16.mxu0 %v9803_v29  ;;  %v9853_v29 = vld [vmem:[%s12418_s1 + $0xdc8] sm:$0xff]  }
 0x18d   :  { %8928 = vmatpush3.bf16.msra.mxu1 %v9802_v28  ;;  %v9852_v28 = vld [vmem:[%s12418_s1 + $0xd08] sm:$0xff]  }
 0x18e   :  { %8929 = vmatprep.subr.bf16.mxu1 %v9805_v31  ;;  %v9855_v31 = vld [vmem:[%s12418_s1 + $0xd40] sm:$0xff]  }
 0x18f   :  { %8908 = vmatpush3.bf16.msra.mxu0 %v9804_v30  ;;  %v9854_v30 = vld [vmem:[%s12418_s1 + $0xd88] sm:$0xff]  }
 0x190   :  { %8909 = vmatprep.subr.bf16.mxu0 %v9807_v33  ;;  %v9857_v33 = vld [vmem:[%s12418_s1 + $0xdc0] sm:$0xff]  }
 0x191   :  { %8930 = vmatpush3.bf16.msra.mxu1 %v9806_v32  ;;  %v9856_v32 = vld [vmem:[%s12418_s1 + $0xd00] sm:$0xff]  }
 0x192   :  { %8931 = vmatprep.subr.bf16.mxu1 %v9809_v35 }
 0x193   :  { %8910 = vmatpush3.bf16.msra.mxu0 %v9808_v34  ;;  %v49_v34 = vld [vmem:[%s12419_s0 + $0xd0] sm:$0xff] }
 0x194   :  { %8911 = vmatprep.subr.bf16.mxu0 %v9811_v37  ;;  %v7661_v37 = vcombine.high %v49_v34, %v49_v34 }
 0x195   :  { %8932 = vmatpush3.bf16.msra.mxu1 %v9810_v36  ;;  %v7660_v36 = vcombine.low %v49_v34, %v49_v34 }
 0x196   :  { %8933 = vmatprep.subr.bf16.mxu1 %v9813_v39  ;;  %v9861_v39 = vld [vmem:[%s12418_s1 + $0xe78] sm:$0xff]  }
 0x197   :  { %8912 = vmatpush3.bf16.msra.mxu0 %v9812_v38  ;;  %v9860_v38 = vld [vmem:[%s12418_s1 + $0xd80] sm:$0xff]  }
 0x198   :  { %8913 = vmatprep.subr.bf16.mxu0 %v9815_v41 }
 0x199   :  { %8934 = vmatpush3.bf16.msra.mxu1 %v9814_v40  ;;  %v50_v40 = vld [vmem:[%s12419_s0 + $0xd8] sm:$0xff] }
 0x19a   :  { %8935 = vmatprep.subr.bf16.mxu1 %v9817_v43  ;;  %v7662_v43 = vcombine.low %v50_v40, %v50_v40 }
 0x19b   :  { %8914 = vmatpush3.bf16.msra.mxu0 %v9816_v42 }
 0x19c   :  { %8915 = vmatprep.subr.bf16.mxu0 %v9819_v45  ;;  %v9864_v45 = vld [vmem:[%s12418_s1 + $0xe38] sm:$0xff]  }
 0x19d   :  { %8936 = vmatpush3.bf16.msra.mxu1 %v9818_v44  ;;  %v7663_v44 = vcombine.high %v50_v40, %v50_v40  ;;  %v9903_v40 = vld [vmem:[%s12418_s1 + $0xf70] sm:$0xff]  }
 0x19e   :  { %8937 = vmatprep.subr.bf16.mxu1 %v9821_v47  ;;  %v9865_v47 = vld [vmem:[%s12418_s1 + $0xef8] sm:$0xff]  }
 0x19f   :  { %8916 = vmatpush3.bf16.msra.mxu0 %v9820_v46 }
 0x1a0   :  { %8945 = vmatprep.subr.bf16.mxu0 %v9825_v53  ;;  %v9867_v53 = vld [vmem:[%s12418_s1 + $0xe70] sm:$0xff]  }
 0x1a1   :  { %8938 = vmatpush3.bf16.msra.mxu1 %v9824_v52 }
 0x1a2   :  { %v8653_v49 = vpop.f32.mrf.mxu0  ;;  %6775 = vmatmul.mubr.bf16.vlgmr.msra.gmra.mxu0 %v7656_v50  ;;  %8967 = vmatprep.subr.bf16.mxu1 %v9829_v61  ;;  %v9871_v61 = vld [vmem:[%s12418_s1 + $0xe68] sm:$0xff]  }
 0x1a3   :  { %8946 = vmatpush3.bf16.msra.mxu0 %v9828_v59  ;;  %6854 = vmatprep.mubr.bf16.mxu0 %v7661_v37  ;;  %v9902_v37 = vld [vmem:[%s12418_s1 + $0xfb8] sm:$0xff]  }
 0x1a4   :  { %v8654_v55 = vpop.f32.mrf.mxu0  ;;  %v8675_v56 = vpop.f32.mrf.mxu1  ;;  %6815 = vmatmul.mubr.bf16.vlgmr.msra.gmra.mxu1 %v7658_v57  ;;  %8947 = vmatprep.subr.bf16.mxu0 %v9831_v3  ;;  %v9868_v57 = vld [vmem:[%s12418_s1 + $0xe30] sm:$0xff]   ;;  %v9877_v3 = vld [vmem:[%s12418_s1 + $0xee0] sm:$0xff]  }
 0x1a5   :  { %v8655_v60 = vadd.f32 %v8654_v55, %v8653_v49  ;;  %8968 = vmatpush3.bf16.msra.mxu1 %v9830_v1  ;;  %6894 = vmatprep.mubr.bf16.mxu1 %v7663_v44  ;;  %v9875_v1 = vld [vmem:[%s12418_s1 + $0xe60] sm:$0xff]   ;;  %v9905_v44 = vld [vmem:[%s12418_s1 + $0xff0] sm:$0xff]  }
 0x1a6   :  { %v8656_v62 = vpop.f32.mrf.mxu0  ;;  %v8676_v63 = vpop.f32.mrf.mxu1  ;;  %8969 = vmatprep.subr.bf16.mxu1 %v9833_v8  ;;  %v9882_v8 = vld [vmem:[%s12418_s1 + $0xe98] sm:$0xff]  }
 0x1a7   :  { %v6297_v0 = vadd.f32 %v8655_v60, %v11406_v19  ;;  %v8677_v2 = vadd.f32 %v8676_v63, %v8675_v56  ;;  %8948 = vmatpush3.bf16.msra.mxu0 %v9832_v7  ;;  %v9843_v19 = vld [vmem:[%s12418_s1 + $0xd58] sm:$0xff]   ;;  %v9870_v60 = vld [vmem:[%s12418_s1 + $0xeb0] sm:$0xff]   ;;  %v9872_v62 = vld [vmem:[%s12418_s1 + $0xe28] sm:$0xff]  }
 0x1a8   :  { %v8657_v4 = vpop.f32.mrf.mxu0  ;;  %v8678_v5 = vpop.f32.mrf.mxu1  ;;  %8949 = vmatprep.subr.bf16.mxu0 %v9835_v11  ;;  %v9873_v63 = vld [vmem:[%s12418_s1 + $0xee8] sm:$0xff]   ;;  %v9881_v7 = vld [vmem:[%s12418_s1 + $0xed8] sm:$0xff]   ;;  %v9885_v11 = vld [vmem:[%s12418_s1 + $0xed0] sm:$0xff]  }
 0x1a9   :  { %v11514_v6 = vadd.f32 %v8677_v2, %v6297_v0  ;;  %8970 = vmatpush3.bf16.msra.mxu1 %v9834_v10  ;;  %v9874_v0 = vld [vmem:[%s12418_s1 + $0xea8] sm:$0xff]   ;;  %v9876_v2 = vld [vmem:[%s12418_s1 + $0xe20] sm:$0xff]   ;;  %v9879_v5 = vld [vmem:[%s12418_s1 + $0xe58] sm:$0xff]  }
 0x1aa   :  { %v8679_v9 = vpop.f32.mrf.mxu1  ;;  %8971 = vmatprep.subr.bf16.mxu1 %v9837_v13  ;;  %v9878_v4 = vld [vmem:[%s12418_s1 + $0xea0] sm:$0xff]   ;;  %v9884_v10 = vld [vmem:[%s12418_s1 + $0xe10] sm:$0xff]   ;;  %v9887_v13 = vld [vmem:[%s12418_s1 + $0xe48] sm:$0xff]  }
 0x1ab   :  { %8950 = vmatpush3.bf16.msra.mxu0 %v9836_v12  ;;  %v9883_v9 = vld [vmem:[%s12418_s1 + $0xe50] sm:$0xff]  }
 0x1ac   :  { %8951 = vmatprep.subr.bf16.mxu0 %v9839_v15  ;;  %v9886_v12 = vld [vmem:[%s12418_s1 + $0xe90] sm:$0xff]   ;;  %v9889_v15 = vld [vmem:[%s12418_s1 + $0xec8] sm:$0xff]  }
 0x1ad   :  { %8972 = vmatpush3.bf16.msra.mxu1 %v9838_v14  ;;  %v9888_v14 = vld [vmem:[%s12418_s1 + $0xe08] sm:$0xff]  }
 0x1ae   :  { %8973 = vmatprep.subr.bf16.mxu1 %v9841_v17  ;;  %v9891_v17 = vld [vmem:[%s12418_s1 + $0xe40] sm:$0xff]  }
 0x1af   :  { %8952 = vmatpush3.bf16.msra.mxu0 %v9840_v16  ;;  %v9890_v16 = vld [vmem:[%s12418_s1 + $0xe88] sm:$0xff]  }
 0x1b0   :  { %8953 = vmatprep.subr.bf16.mxu0 %v9843_v19  ;;  %v9893_v19 = vld [vmem:[%s12418_s1 + $0xec0] sm:$0xff]  }
 0x1b1   :  { %8974 = vmatpush3.bf16.msra.mxu1 %v9842_v18  ;;  %v9892_v18 = vld [vmem:[%s12418_s1 + $0xe00] sm:$0xff]  }
 0x1b2   :  { %8975 = vmatprep.subr.bf16.mxu1 %v9845_v21 }
 0x1b3   :  { %8954 = vmatpush3.bf16.msra.mxu0 %v9844_v20  ;;  %v51_v20 = vld [vmem:[%s12419_s0 + $0xe0] sm:$0xff] }
 0x1b4   :  { %8955 = vmatprep.subr.bf16.mxu0 %v9847_v23  ;;  %v7665_v23 = vcombine.high %v51_v20, %v51_v20 }
 0x1b5   :  { %8976 = vmatpush3.bf16.msra.mxu1 %v9846_v22  ;;  %v7664_v22 = vcombine.low %v51_v20, %v51_v20 }
 0x1b6   :  { %8977 = vmatprep.subr.bf16.mxu1 %v9849_v25  ;;  %v9897_v25 = vld [vmem:[%s12418_s1 + $0xf78] sm:$0xff]  }
 0x1b7   :  { %8956 = vmatpush3.bf16.msra.mxu0 %v9848_v24  ;;  %v9896_v24 = vld [vmem:[%s12418_s1 + $0xe80] sm:$0xff]  }
 0x1b8   :  { %8957 = vmatprep.subr.bf16.mxu0 %v9851_v27  ;;  %v52_v27 = vld [vmem:[%s12419_s0 + $0xe8] sm:$0xff] }
 0x1b9   :  { %8978 = vmatpush3.bf16.msra.mxu1 %v9850_v26 }
 0x1ba   :  { %8979 = vmatprep.subr.bf16.mxu1 %v9853_v29 }
 0x1bb   :  { %8958 = vmatpush3.bf16.msra.mxu0 %v9852_v28 }
 0x1bc   :  { %8959 = vmatprep.subr.bf16.mxu0 %v9855_v31  ;;  %v7667_v31 = vcombine.high %v52_v27, %v52_v27 }
 0x1bd   :  { %8980 = vmatpush3.bf16.msra.mxu1 %v9854_v30  ;;  %v7666_v30 = vcombine.low %v52_v27, %v52_v27 }
 0x1be   :  { %8981 = vmatprep.subr.bf16.mxu1 %v9857_v33 }
 0x1bf   :  { %8960 = vmatpush3.bf16.msra.mxu0 %v9856_v32  ;;  %v9900_v32 = vld [vmem:[%s12418_s1 + $0xf38] sm:$0xff]  }
 0x1c0   :  { %8989 = vmatprep.subr.bf16.mxu0 %v9861_v39 }
 0x1c1   :  { %8982 = vmatpush3.bf16.msra.mxu1 %v9860_v38 }
 0x1c2   :  { %v8697_v35 = vpop.f32.mrf.mxu0  ;;  %6855 = vmatmul.mubr.bf16.vlgmr.msra.gmra.mxu0 %v7660_v36  ;;  %9011 = vmatprep.subr.bf16.mxu1 %v9865_v47  ;;  %v9907_v47 = vld [vmem:[%s12418_s1 + $0xf68] sm:$0xff]  }
 0x1c3   :  { %8990 = vmatpush3.bf16.msra.mxu0 %v9864_v45  ;;  %6934 = vmatprep.mubr.bf16.mxu0 %v7665_v23  ;;  %v9938_v23 = vld [vmem:[%s12418_s1 + $0x10b8] sm:$0xff]  }
 0x1c4   :  { %v8698_v41 = vpop.f32.mrf.mxu0  ;;  %v8719_v42 = vpop.f32.mrf.mxu1  ;;  %6895 = vmatmul.mubr.bf16.vlgmr.msra.gmra.mxu1 %v7662_v43  ;;  %8991 = vmatprep.subr.bf16.mxu0 %v9867_v53  ;;  %v9904_v43 = vld [vmem:[%s12418_s1 + $0xf30] sm:$0xff]   ;;  %v9913_v53 = vld [vmem:[%s12418_s1 + $0xfe0] sm:$0xff]  }
 0x1c5   :  { %v8699_v46 = vadd.f32 %v8698_v41, %v8697_v35  ;;  %9012 = vmatpush3.bf16.msra.mxu1 %v9866_v51  ;;  %v9901_v35 = vld [vmem:[%s12418_s1 + $0xff8] sm:$0xff]   ;;  %6974 = vmatprep.mubr.bf16.mxu1 %v7667_v31  ;;  %v9911_v51 = vld [vmem:[%s12418_s1 + $0xf60] sm:$0xff]  }
 0x1c6   :  { %v8700_v48 = vpop.f32.mrf.mxu0  ;;  %v8720_v49 = vpop.f32.mrf.mxu1  ;;  %9013 = vmatprep.subr.bf16.mxu1 %v9869_v58  ;;  %v9918_v58 = vld [vmem:[%s12418_s1 + $0xf98] sm:$0xff]  }
 0x1c7   :  { %v6377_v50 = vadd.f32 %v8699_v46, %v11514_v6  ;;  %v8721_v52 = vadd.f32 %v8720_v49, %v8719_v42  ;;  %8992 = vmatpush3.bf16.msra.mxu0 %v9868_v57  ;;  %v9880_v6 = vld [vmem:[%s12418_s1 + $0xe18] sm:$0xff]   ;;  %v9906_v46 = vld [vmem:[%s12418_s1 + $0xfb0] sm:$0xff]   ;;  %v9908_v48 = vld [vmem:[%s12418_s1 + $0xf28] sm:$0xff]  }
 0x1c8   :  { %v8701_v54 = vpop.f32.mrf.mxu0  ;;  %v8722_v55 = vpop.f32.mrf.mxu1  ;;  %8993 = vmatprep.subr.bf16.mxu0 %v9871_v61  ;;  %v9909_v49 = vld [vmem:[%s12418_s1 + $0xfe8] sm:$0xff]   ;;  %v9917_v57 = vld [vmem:[%s12418_s1 + $0xfd8] sm:$0xff]   ;;  %v9921_v61 = vld [vmem:[%s12418_s1 + $0xfd0] sm:$0xff]  }
 0x1c9   :  { %v11619_v56 = vadd.f32 %v8721_v52, %v6377_v50  ;;  %9014 = vmatpush3.bf16.msra.mxu1 %v9870_v60  ;;  %v9910_v50 = vld [vmem:[%s12418_s1 + $0xfa8] sm:$0xff]   ;;  %v9912_v52 = vld [vmem:[%s12418_s1 + $0xf20] sm:$0xff]   ;;  %v9915_v55 = vld [vmem:[%s12418_s1 + $0xf58] sm:$0xff]  }
 0x1ca   :  { %v8723_v59 = vpop.f32.mrf.mxu1  ;;  %9015 = vmatprep.subr.bf16.mxu1 %v9873_v63  ;;  %v9914_v54 = vld [vmem:[%s12418_s1 + $0xfa0] sm:$0xff]   ;;  %v9920_v60 = vld [vmem:[%s12418_s1 + $0xf10] sm:$0xff]   ;;  %v9923_v63 = vld [vmem:[%s12418_s1 + $0xf48] sm:$0xff]  }
 0x1cb   :  { %8994 = vmatpush3.bf16.msra.mxu0 %v9872_v62  ;;  %v9919_v59 = vld [vmem:[%s12418_s1 + $0xf50] sm:$0xff]  }
 0x1cc   :  { %8995 = vmatprep.subr.bf16.mxu0 %v9875_v1  ;;  %v9922_v62 = vld [vmem:[%s12418_s1 + $0xf90] sm:$0xff]   ;;  %v9925_v1 = vld [vmem:[%s12418_s1 + $0xfc8] sm:$0xff]  }
 0x1cd   :  { %9016 = vmatpush3.bf16.msra.mxu1 %v9874_v0  ;;  %v9924_v0 = vld [vmem:[%s12418_s1 + $0xf08] sm:$0xff]  }
 0x1ce   :  { %9017 = vmatprep.subr.bf16.mxu1 %v9877_v3  ;;  %v9927_v3 = vld [vmem:[%s12418_s1 + $0xf40] sm:$0xff]  }
 0x1cf   :  { %8996 = vmatpush3.bf16.msra.mxu0 %v9876_v2  ;;  %v9926_v2 = vld [vmem:[%s12418_s1 + $0xf88] sm:$0xff]  }
 0x1d0   :  { %8997 = vmatprep.subr.bf16.mxu0 %v9879_v5  ;;  %v9929_v5 = vld [vmem:[%s12418_s1 + $0xfc0] sm:$0xff]  }
 0x1d1   :  { %9018 = vmatpush3.bf16.msra.mxu1 %v9878_v4  ;;  %v9928_v4 = vld [vmem:[%s12418_s1 + $0xf00] sm:$0xff]  }
 0x1d2   :  { %9019 = vmatprep.subr.bf16.mxu1 %v9881_v7 }
 0x1d3   :  { %8998 = vmatpush3.bf16.msra.mxu0 %v9880_v6  ;;  %v53_v6 = vld [vmem:[%s12419_s0 + $0xf0] sm:$0xff] }
 0x1d4   :  { %8999 = vmatprep.subr.bf16.mxu0 %v9883_v9  ;;  %v7669_v9 = vcombine.high %v53_v6, %v53_v6 }
 0x1d5   :  { %9020 = vmatpush3.bf16.msra.mxu1 %v9882_v8  ;;  %v7668_v8 = vcombine.low %v53_v6, %v53_v6 }
 0x1d6   :  { %9021 = vmatprep.subr.bf16.mxu1 %v9885_v11  ;;  %v9933_v11 = vld [vmem:[%s12418_s1 + $0x1078] sm:$0xff]  }
 0x1d7   :  { %9000 = vmatpush3.bf16.msra.mxu0 %v9884_v10  ;;  %v9932_v10 = vld [vmem:[%s12418_s1 + $0xf80] sm:$0xff]  }
 0x1d8   :  { %9001 = vmatprep.subr.bf16.mxu0 %v9887_v13 }
 0x1d9   :  { %9022 = vmatpush3.bf16.msra.mxu1 %v9886_v12  ;;  %v54_v12 = vld [vmem:[%s12419_s0 + $0xf8] sm:$0xff] }
 0x1da   :  { %9023 = vmatprep.subr.bf16.mxu1 %v9889_v15  ;;  %v7670_v15 = vcombine.low %v54_v12, %v54_v12 }
 0x1db   :  { %9002 = vmatpush3.bf16.msra.mxu0 %v9888_v14 }
 0x1dc   :  { %9003 = vmatprep.subr.bf16.mxu0 %v9891_v17  ;;  %v9936_v17 = vld [vmem:[%s12418_s1 + $0x1038] sm:$0xff]  }
 0x1dd   :  { %9024 = vmatpush3.bf16.msra.mxu1 %v9890_v16  ;;  %v7671_v16 = vcombine.high %v54_v12, %v54_v12 }
 0x1de   :  { %9025 = vmatprep.subr.bf16.mxu1 %v9893_v19  ;;  %v9937_v19 = vld [vmem:[%s12418_s1 + $0x10f8] sm:$0xff]  }
 0x1df   :  { %9004 = vmatpush3.bf16.msra.mxu0 %v9892_v18 }
 0x1e0   :  { %9033 = vmatprep.subr.bf16.mxu0 %v9897_v25  ;;  %v9939_v25 = vld [vmem:[%s12418_s1 + $0x1070] sm:$0xff]  }
 0x1e1   :  { %9026 = vmatpush3.bf16.msra.mxu1 %v9896_v24 }
 0x1e2   :  { %v8741_v21 = vpop.f32.mrf.mxu0  ;;  %6935 = vmatmul.mubr.bf16.vlgmr.msra.gmra.mxu0 %v7664_v22  ;;  %9055 = vmatprep.subr.bf16.mxu1 %v9901_v35  ;;  %v9945_v35 = vld [vmem:[%s12418_s1 + $0x10e8] sm:$0xff]  }
 0x1e3   :  { %9034 = vmatpush3.bf16.msra.mxu0 %v9900_v32  ;;  %7014 = vmatprep.mubr.bf16.mxu0 %v7669_v9  ;;  %v9942_v32 = vld [vmem:[%s12418_s1 + $0x10b0] sm:$0xff]   ;;  %v9974_v9 = vld [vmem:[%s12418_s1 + $0x11b8] sm:$0xff]  }
 0x1e4   :  { %v8742_v26 = vpop.f32.mrf.mxu0  ;;  %v8763_v29 = vpop.f32.mrf.mxu1  ;;  %6975 = vmatmul.mubr.bf16.vlgmr.msra.gmra.mxu1 %v7666_v30  ;;  %9035 = vmatprep.subr.bf16.mxu0 %v9903_v40  ;;  %v9941_v30 = vld [vmem:[%s12418_s1 + $0x10f0] sm:$0xff]   ;;  %v9950_v40 = vld [vmem:[%s12418_s1 + $0x10a0] sm:$0xff]  }
 0x1e5   :  { %v8743_v28 = vadd.f32 %v8742_v26, %v8741_v21  ;;  %9056 = vmatpush3.bf16.msra.mxu1 %v9902_v37  ;;  %7054 = vmatprep.mubr.bf16.mxu1 %v7671_v16  ;;  %v9947_v37 = vld [vmem:[%s12418_s1 + $0x1060] sm:$0xff]   ;;  %v9977_v16 = vld [vmem:[%s12418_s1 + $0x11f0] sm:$0xff]  }
 0x1e6   :  { %v8744_v33 = vpop.f32.mrf.mxu0  ;;  %v8764_v36 = vpop.f32.mrf.mxu1  ;;  %9057 = vmatprep.subr.bf16.mxu1 %v9905_v44  ;;  %v9954_v44 = vld [vmem:[%s12418_s1 + $0x1098] sm:$0xff]  }
 0x1e7   :  { %v6457_v34 = vadd.f32 %v8743_v28, %v11619_v56  ;;  %v8765_v38 = vadd.f32 %v8764_v36, %v8763_v29  ;;  %9036 = vmatpush3.bf16.msra.mxu0 %v9904_v43  ;;  %v9916_v56 = vld [vmem:[%s12418_s1 + $0xf18] sm:$0xff]   ;;  %v9940_v29 = vld [vmem:[%s12418_s1 + $0x1030] sm:$0xff]   ;;  %v9943_v33 = vld [vmem:[%s12418_s1 + $0x1068] sm:$0xff]  }
 0x1e8   :  { %v8745_v39 = vpop.f32.mrf.mxu0  ;;  %v8766_v41 = vpop.f32.mrf.mxu1  ;;  %9037 = vmatprep.subr.bf16.mxu0 %v9907_v47  ;;  %v9946_v36 = vld [vmem:[%s12418_s1 + $0x10a8] sm:$0xff]   ;;  %v9953_v43 = vld [vmem:[%s12418_s1 + $0x10d8] sm:$0xff]   ;;  %v9957_v47 = vld [vmem:[%s12418_s1 + $0x10d0] sm:$0xff]  }
 0x1e9   :  { %v11724_v42 = vadd.f32 %v8765_v38, %v6457_v34  ;;  %9058 = vmatpush3.bf16.msra.mxu1 %v9906_v46  ;;  %v9944_v34 = vld [vmem:[%s12418_s1 + $0x1028] sm:$0xff]   ;;  %v9948_v38 = vld [vmem:[%s12418_s1 + $0x1020] sm:$0xff]   ;;  %v9951_v41 = vld [vmem:[%s12418_s1 + $0x1058] sm:$0xff]  }
 0x1ea   :  { %v8767_v45 = vpop.f32.mrf.mxu1  ;;  %9059 = vmatprep.subr.bf16.mxu1 %v9909_v49  ;;  %v9949_v39 = vld [vmem:[%s12418_s1 + $0x10e0] sm:$0xff]   ;;  %v9956_v46 = vld [vmem:[%s12418_s1 + $0x1010] sm:$0xff]   ;;  %v9959_v49 = vld [vmem:[%s12418_s1 + $0x1048] sm:$0xff]  }
 0x1eb   :  { %9038 = vmatpush3.bf16.msra.mxu0 %v9908_v48  ;;  %v9955_v45 = vld [vmem:[%s12418_s1 + $0x1050] sm:$0xff]  }
 0x1ec   :  { %9039 = vmatprep.subr.bf16.mxu0 %v9911_v51  ;;  %v9958_v48 = vld [vmem:[%s12418_s1 + $0x1090] sm:$0xff]   ;;  %v9961_v51 = vld [vmem:[%s12418_s1 + $0x10c8] sm:$0xff]  }
 0x1ed   :  { %9060 = vmatpush3.bf16.msra.mxu1 %v9910_v50  ;;  %v9960_v50 = vld [vmem:[%s12418_s1 + $0x1008] sm:$0xff]  }
 0x1ee   :  { %9061 = vmatprep.subr.bf16.mxu1 %v9913_v53  ;;  %v9963_v53 = vld [vmem:[%s12418_s1 + $0x1040] sm:$0xff]  }
 0x1ef   :  { %9040 = vmatpush3.bf16.msra.mxu0 %v9912_v52  ;;  %v9962_v52 = vld [vmem:[%s12418_s1 + $0x1088] sm:$0xff]  }
 0x1f0   :  { %9041 = vmatprep.subr.bf16.mxu0 %v9915_v55  ;;  %v9965_v55 = vld [vmem:[%s12418_s1 + $0x10c0] sm:$0xff]  }
 0x1f1   :  { %9062 = vmatpush3.bf16.msra.mxu1 %v9914_v54  ;;  %v9964_v54 = vld [vmem:[%s12418_s1 + $0x1000] sm:$0xff]  }
 0x1f2   :  { %9063 = vmatprep.subr.bf16.mxu1 %v9917_v57 }
 0x1f3   :  { %9042 = vmatpush3.bf16.msra.mxu0 %v9916_v56  ;;  %v55_v56 = vld [vmem:[%s12419_s0 + $0x100] sm:$0xff] }
 0x1f4   :  { %9043 = vmatprep.subr.bf16.mxu0 %v9919_v59  ;;  %v7673_v59 = vcombine.high %v55_v56, %v55_v56 }
 0x1f5   :  { %9064 = vmatpush3.bf16.msra.mxu1 %v9918_v58  ;;  %v7672_v58 = vcombine.low %v55_v56, %v55_v56 }
 0x1f6   :  { %9065 = vmatprep.subr.bf16.mxu1 %v9921_v61  ;;  %v9969_v61 = vld [vmem:[%s12418_s1 + $0x1178] sm:$0xff]  }
 0x1f7   :  { %9044 = vmatpush3.bf16.msra.mxu0 %v9920_v60  ;;  %v9968_v60 = vld [vmem:[%s12418_s1 + $0x1080] sm:$0xff]  }
 0x1f8   :  { %9045 = vmatprep.subr.bf16.mxu0 %v9923_v63 }
 0x1f9   :  { %9066 = vmatpush3.bf16.msra.mxu1 %v9922_v62  ;;  %v56_v62 = vld [vmem:[%s12419_s0 + $0x108] sm:$0xff] }
 0x1fa   :  { %9067 = vmatprep.subr.bf16.mxu1 %v9925_v1  ;;  %v7674_v1 = vcombine.low %v56_v62, %v56_v62 }
 0x1fb   :  { %9046 = vmatpush3.bf16.msra.mxu0 %v9924_v0 }
 0x1fc   :  { %9047 = vmatprep.subr.bf16.mxu0 %v9927_v3  ;;  %v9972_v3 = vld [vmem:[%s12418_s1 + $0x1138] sm:$0xff]  }
 0x1fd   :  { %9068 = vmatpush3.bf16.msra.mxu1 %v9926_v2  ;;  %v7675_v2 = vcombine.high %v56_v62, %v56_v62  ;;  %v10011_v62 = vld [vmem:[%s12418_s1 + $0x1270] sm:$0xff]  }
 0x1fe   :  { %9069 = vmatprep.subr.bf16.mxu1 %v9929_v5  ;;  %v9973_v5 = vld [vmem:[%s12418_s1 + $0x11f8] sm:$0xff]  }
 0x1ff   :  { %9048 = vmatpush3.bf16.msra.mxu0 %v9928_v4 }
 0x200   :  { %9077 = vmatprep.subr.bf16.mxu0 %v9933_v11  ;;  %v9975_v11 = vld [vmem:[%s12418_s1 + $0x1170] sm:$0xff]  }
 0x201   :  { %9070 = vmatpush3.bf16.msra.mxu1 %v9932_v10 }
 0x202   :  { %v8785_v7 = vpop.f32.mrf.mxu0  ;;  %7015 = vmatmul.mubr.bf16.vlgmr.msra.gmra.mxu0 %v7668_v8  ;;  %9099 = vmatprep.subr.bf16.mxu1 %v9937_v19  ;;  %v9979_v19 = vld [vmem:[%s12418_s1 + $0x1168] sm:$0xff]  }
 0x203   :  { %9078 = vmatpush3.bf16.msra.mxu0 %v9936_v17  ;;  %7094 = vmatprep.mubr.bf16.mxu0 %v7673_v59  ;;  %v10010_v59 = vld [vmem:[%s12418_s1 + $0x12b8] sm:$0xff]  }
 0x204   :  { %v8786_v13 = vpop.f32.mrf.mxu0  ;;  %v8807_v14 = vpop.f32.mrf.mxu1  ;;  %7055 = vmatmul.mubr.bf16.vlgmr.msra.gmra.mxu1 %v7670_v15  ;;  %9079 = vmatprep.subr.bf16.mxu0 %v9939_v25  ;;  %v9976_v15 = vld [vmem:[%s12418_s1 + $0x1130] sm:$0xff]   ;;  %v9985_v25 = vld [vmem:[%s12418_s1 + $0x11e0] sm:$0xff]  }
 0x205   :  { %v8787_v18 = vadd.f32 %v8786_v13, %v8785_v7  ;;  %9100 = vmatpush3.bf16.msra.mxu1 %v9938_v23  ;;  %7134 = vmatprep.mubr.bf16.mxu1 %v7675_v2  ;;  %v9983_v23 = vld [vmem:[%s12418_s1 + $0x1160] sm:$0xff]   ;;  %v10013_v2 = vld [vmem:[%s12418_s1 + $0x12f0] sm:$0xff]  }
 0x206   :  { %v8788_v20 = vpop.f32.mrf.mxu0  ;;  %v8808_v21 = vpop.f32.mrf.mxu1  ;;  %9101 = vmatprep.subr.bf16.mxu1 %v9941_v30  ;;  %v9990_v30 = vld [vmem:[%s12418_s1 + $0x1198] sm:$0xff]  }
 0x207   :  { %v6537_v22 = vadd.f32 %v8787_v18, %v11724_v42  ;;  %v8809_v24 = vadd.f32 %v8808_v21, %v8807_v14  ;;  %9080 = vmatpush3.bf16.msra.mxu0 %v9940_v29  ;;  %v9952_v42 = vld [vmem:[%s12418_s1 + $0x1018] sm:$0xff]   ;;  %v9978_v18 = vld [vmem:[%s12418_s1 + $0x11b0] sm:$0xff]   ;;  %v9980_v20 = vld [vmem:[%s12418_s1 + $0x1128] sm:$0xff]  }
 0x208   :  { %v8789_v26 = vpop.f32.mrf.mxu0  ;;  %v8810_v27 = vpop.f32.mrf.mxu1  ;;  %9081 = vmatprep.subr.bf16.mxu0 %v9943_v33  ;;  %v9981_v21 = vld [vmem:[%s12418_s1 + $0x11e8] sm:$0xff]   ;;  %v9989_v29 = vld [vmem:[%s12418_s1 + $0x11d8] sm:$0xff]   ;;  %v9993_v33 = vld [vmem:[%s12418_s1 + $0x11d0] sm:$0xff]  }
 0x209   :  { %v11829_v28 = vadd.f32 %v8809_v24, %v6537_v22  ;;  %9102 = vmatpush3.bf16.msra.mxu1 %v9942_v32  ;;  %v9982_v22 = vld [vmem:[%s12418_s1 + $0x11a8] sm:$0xff]   ;;  %v9984_v24 = vld [vmem:[%s12418_s1 + $0x1120] sm:$0xff]   ;;  %v9987_v27 = vld [vmem:[%s12418_s1 + $0x1158] sm:$0xff]  }
 0x20a   :  { %v8811_v31 = vpop.f32.mrf.mxu1  ;;  %9103 = vmatprep.subr.bf16.mxu1 %v9945_v35  ;;  %v9986_v26 = vld [vmem:[%s12418_s1 + $0x11a0] sm:$0xff]   ;;  %v9992_v32 = vld [vmem:[%s12418_s1 + $0x1110] sm:$0xff]   ;;  %v9995_v35 = vld [vmem:[%s12418_s1 + $0x1148] sm:$0xff]  }
 0x20b   :  { %9082 = vmatpush3.bf16.msra.mxu0 %v9944_v34  ;;  %v9991_v31 = vld [vmem:[%s12418_s1 + $0x1150] sm:$0xff]  }
 0x20c   :  { %9083 = vmatprep.subr.bf16.mxu0 %v9947_v37  ;;  %v9994_v34 = vld [vmem:[%s12418_s1 + $0x1190] sm:$0xff]   ;;  %v9997_v37 = vld [vmem:[%s12418_s1 + $0x11c8] sm:$0xff]  }
 0x20d   :  { %9104 = vmatpush3.bf16.msra.mxu1 %v9946_v36  ;;  %v9996_v36 = vld [vmem:[%s12418_s1 + $0x1108] sm:$0xff]  }
 0x20e   :  { %9105 = vmatprep.subr.bf16.mxu1 %v9949_v39  ;;  %v9999_v39 = vld [vmem:[%s12418_s1 + $0x1140] sm:$0xff]  }
 0x20f   :  { %9084 = vmatpush3.bf16.msra.mxu0 %v9948_v38  ;;  %v9998_v38 = vld [vmem:[%s12418_s1 + $0x1188] sm:$0xff]  }
 0x210   :  { %9085 = vmatprep.subr.bf16.mxu0 %v9951_v41  ;;  %v10001_v41 = vld [vmem:[%s12418_s1 + $0x11c0] sm:$0xff]  }
 0x211   :  { %9106 = vmatpush3.bf16.msra.mxu1 %v9950_v40  ;;  %v10000_v40 = vld [vmem:[%s12418_s1 + $0x1100] sm:$0xff]  }
 0x212   :  { %9107 = vmatprep.subr.bf16.mxu1 %v9953_v43 }
 0x213   :  { %9086 = vmatpush3.bf16.msra.mxu0 %v9952_v42  ;;  %v57_v42 = vld [vmem:[%s12419_s0 + $0x110] sm:$0xff] }
 0x214   :  { %9087 = vmatprep.subr.bf16.mxu0 %v9955_v45  ;;  %v7677_v45 = vcombine.high %v57_v42, %v57_v42 }
 0x215   :  { %9108 = vmatpush3.bf16.msra.mxu1 %v9954_v44  ;;  %v7676_v44 = vcombine.low %v57_v42, %v57_v42 }
 0x216   :  { %9109 = vmatprep.subr.bf16.mxu1 %v9957_v47  ;;  %v10005_v47 = vld [vmem:[%s12418_s1 + $0x1278] sm:$0xff]  }
 0x217   :  { %9088 = vmatpush3.bf16.msra.mxu0 %v9956_v46  ;;  %v10004_v46 = vld [vmem:[%s12418_s1 + $0x1180] sm:$0xff]  }
 0x218   :  { %9089 = vmatprep.subr.bf16.mxu0 %v9959_v49  ;;  %v58_v49 = vld [vmem:[%s12419_s0 + $0x118] sm:$0xff] }
 0x219   :  { %9110 = vmatpush3.bf16.msra.mxu1 %v9958_v48 }
 0x21a   :  { %9111 = vmatprep.subr.bf16.mxu1 %v9961_v51 }
 0x21b   :  { %9090 = vmatpush3.bf16.msra.mxu0 %v9960_v50 }
 0x21c   :  { %9091 = vmatprep.subr.bf16.mxu0 %v9963_v53  ;;  %v7679_v53 = vcombine.high %v58_v49, %v58_v49 }
 0x21d   :  { %9112 = vmatpush3.bf16.msra.mxu1 %v9962_v52  ;;  %v7678_v52 = vcombine.low %v58_v49, %v58_v49 }
 0x21e   :  { %9113 = vmatprep.subr.bf16.mxu1 %v9965_v55 }
 0x21f   :  { %9092 = vmatpush3.bf16.msra.mxu0 %v9964_v54  ;;  %v10008_v54 = vld [vmem:[%s12418_s1 + $0x1238] sm:$0xff]  }
 0x220   :  { %9121 = vmatprep.subr.bf16.mxu0 %v9969_v61 }
 0x221   :  { %9114 = vmatpush3.bf16.msra.mxu1 %v9968_v60 }
 0x222   :  { %v8829_v57 = vpop.f32.mrf.mxu0  ;;  %7095 = vmatmul.mubr.bf16.vlgmr.msra.gmra.mxu0 %v7672_v58  ;;  %9143 = vmatprep.subr.bf16.mxu1 %v9973_v5  ;;  %v10015_v5 = vld [vmem:[%s12418_s1 + $0x1268] sm:$0xff]  }
 0x223   :  { %9122 = vmatpush3.bf16.msra.mxu0 %v9972_v3  ;;  %7174 = vmatprep.mubr.bf16.mxu0 %v7677_v45  ;;  %v10046_v45 = vld [vmem:[%s12418_s1 + $0x13b8] sm:$0xff]  }
 0x224   :  { %v8830_v63 = vpop.f32.mrf.mxu0  ;;  %v8851_v0 = vpop.f32.mrf.mxu1  ;;  %7135 = vmatmul.mubr.bf16.vlgmr.msra.gmra.mxu1 %v7674_v1  ;;  %9123 = vmatprep.subr.bf16.mxu0 %v9975_v11  ;;  %v10012_v1 = vld [vmem:[%s12418_s1 + $0x1230] sm:$0xff]   ;;  %v10021_v11 = vld [vmem:[%s12418_s1 + $0x12e0] sm:$0xff]  }
 0x225   :  { %v8831_v4 = vadd.f32 %v8830_v63, %v8829_v57  ;;  %9144 = vmatpush3.bf16.msra.mxu1 %v9974_v9  ;;  %v10009_v57 = vld [vmem:[%s12418_s1 + $0x12f8] sm:$0xff]   ;;  %7214 = vmatprep.mubr.bf16.mxu1 %v7679_v53  ;;  %v10019_v9 = vld [vmem:[%s12418_s1 + $0x1260] sm:$0xff]  }
 0x226   :  { %v8832_v6 = vpop.f32.mrf.mxu0  ;;  %v8852_v7 = vpop.f32.mrf.mxu1  ;;  %9145 = vmatprep.subr.bf16.mxu1 %v9977_v16  ;;  %v10026_v16 = vld [vmem:[%s12418_s1 + $0x1298] sm:$0xff]  }
 0x227   :  { %v6617_v8 = vadd.f32 %v8831_v4, %v11829_v28  ;;  %v8853_v10 = vadd.f32 %v8852_v7, %v8851_v0  ;;  %9124 = vmatpush3.bf16.msra.mxu0 %v9976_v15  ;;  %v9988_v28 = vld [vmem:[%s12418_s1 + $0x1118] sm:$0xff]   ;;  %v10014_v4 = vld [vmem:[%s12418_s1 + $0x12b0] sm:$0xff]   ;;  %v10016_v6 = vld [vmem:[%s12418_s1 + $0x1228] sm:$0xff]  }
 0x228   :  { %v8833_v12 = vpop.f32.mrf.mxu0  ;;  %v8854_v13 = vpop.f32.mrf.mxu1  ;;  %9125 = vmatprep.subr.bf16.mxu0 %v9979_v19  ;;  %v10017_v7 = vld [vmem:[%s12418_s1 + $0x12e8] sm:$0xff]   ;;  %v10025_v15 = vld [vmem:[%s12418_s1 + $0x12d8] sm:$0xff]   ;;  %v10029_v19 = vld [vmem:[%s12418_s1 + $0x12d0] sm:$0xff]  }
 0x229   :  { %v11934_v14 = vadd.f32 %v8853_v10, %v6617_v8  ;;  %9146 = vmatpush3.bf16.msra.mxu1 %v9978_v18  ;;  %v10018_v8 = vld [vmem:[%s12418_s1 + $0x12a8] sm:$0xff]   ;;  %v10020_v10 = vld [vmem:[%s12418_s1 + $0x1220] sm:$0xff]   ;;  %v10023_v13 = vld [vmem:[%s12418_s1 + $0x1258] sm:$0xff]  }
 0x22a   :  { %v8855_v17 = vpop.f32.mrf.mxu1  ;;  %9147 = vmatprep.subr.bf16.mxu1 %v9981_v21  ;;  %v10022_v12 = vld [vmem:[%s12418_s1 + $0x12a0] sm:$0xff]   ;;  %v10028_v18 = vld [vmem:[%s12418_s1 + $0x1210] sm:$0xff]   ;;  %v10031_v21 = vld [vmem:[%s12418_s1 + $0x1248] sm:$0xff]  }
 0x22b   :  { %9126 = vmatpush3.bf16.msra.mxu0 %v9980_v20  ;;  %v10027_v17 = vld [vmem:[%s12418_s1 + $0x1250] sm:$0xff]  }
 0x22c   :  { %9127 = vmatprep.subr.bf16.mxu0 %v9983_v23  ;;  %v10030_v20 = vld [vmem:[%s12418_s1 + $0x1290] sm:$0xff]   ;;  %v10033_v23 = vld [vmem:[%s12418_s1 + $0x12c8] sm:$0xff]  }
 0x22d   :  { %9148 = vmatpush3.bf16.msra.mxu1 %v9982_v22  ;;  %v10032_v22 = vld [vmem:[%s12418_s1 + $0x1208] sm:$0xff]  }
 0x22e   :  { %9149 = vmatprep.subr.bf16.mxu1 %v9985_v25  ;;  %v10035_v25 = vld [vmem:[%s12418_s1 + $0x1240] sm:$0xff]  }
 0x22f   :  { %9128 = vmatpush3.bf16.msra.mxu0 %v9984_v24  ;;  %v10034_v24 = vld [vmem:[%s12418_s1 + $0x1288] sm:$0xff]  }
 0x230   :  { %9129 = vmatprep.subr.bf16.mxu0 %v9987_v27  ;;  %v10037_v27 = vld [vmem:[%s12418_s1 + $0x12c0] sm:$0xff]  }
 0x231   :  { %9150 = vmatpush3.bf16.msra.mxu1 %v9986_v26  ;;  %v10036_v26 = vld [vmem:[%s12418_s1 + $0x1200] sm:$0xff]  }
 0x232   :  { %9151 = vmatprep.subr.bf16.mxu1 %v9989_v29 }
 0x233   :  { %9130 = vmatpush3.bf16.msra.mxu0 %v9988_v28  ;;  %v59_v28 = vld [vmem:[%s12419_s0 + $0x120] sm:$0xff] }
 0x234   :  { %9131 = vmatprep.subr.bf16.mxu0 %v9991_v31  ;;  %v7681_v31 = vcombine.high %v59_v28, %v59_v28 }
 0x235   :  { %9152 = vmatpush3.bf16.msra.mxu1 %v9990_v30  ;;  %v7680_v30 = vcombine.low %v59_v28, %v59_v28 }
 0x236   :  { %9153 = vmatprep.subr.bf16.mxu1 %v9993_v33  ;;  %v10041_v33 = vld [vmem:[%s12418_s1 + $0x1378] sm:$0xff]  }
 0x237   :  { %9132 = vmatpush3.bf16.msra.mxu0 %v9992_v32  ;;  %v10040_v32 = vld [vmem:[%s12418_s1 + $0x1280] sm:$0xff]  }
 0x238   :  { %9133 = vmatprep.subr.bf16.mxu0 %v9995_v35 }
 0x239   :  { %9154 = vmatpush3.bf16.msra.mxu1 %v9994_v34  ;;  %v60_v34 = vld [vmem:[%s12419_s0 + $0x128] sm:$0xff] }
 0x23a   :  { %9155 = vmatprep.subr.bf16.mxu1 %v9997_v37  ;;  %v7682_v37 = vcombine.low %v60_v34, %v60_v34 }
 0x23b   :  { %9134 = vmatpush3.bf16.msra.mxu0 %v9996_v36 }
 0x23c   :  { %9135 = vmatprep.subr.bf16.mxu0 %v9999_v39  ;;  %v10044_v39 = vld [vmem:[%s12418_s1 + $0x1338] sm:$0xff]  }
 0x23d   :  { %9156 = vmatpush3.bf16.msra.mxu1 %v9998_v38  ;;  %v7683_v38 = vcombine.high %v60_v34, %v60_v34 }
 0x23e   :  { %9157 = vmatprep.subr.bf16.mxu1 %v10001_v41  ;;  %v10045_v41 = vld [vmem:[%s12418_s1 + $0x13f8] sm:$0xff]  }
 0x23f   :  { %9136 = vmatpush3.bf16.msra.mxu0 %v10000_v40 }
 0x240   :  { %9165 = vmatprep.subr.bf16.mxu0 %v10005_v47  ;;  %v10047_v47 = vld [vmem:[%s12418_s1 + $0x1370] sm:$0xff]  }
 0x241   :  { %9158 = vmatpush3.bf16.msra.mxu1 %v10004_v46 }
 0x242   :  { %v8873_v43 = vpop.f32.mrf.mxu0  ;;  %7175 = vmatmul.mubr.bf16.vlgmr.msra.gmra.mxu0 %v7676_v44  ;;  %9187 = vmatprep.subr.bf16.mxu1 %v10009_v57  ;;  %v10053_v57 = vld [vmem:[%s12418_s1 + $0x13e8] sm:$0xff]  }
 0x243   :  { %9166 = vmatpush3.bf16.msra.mxu0 %v10008_v54  ;;  %7254 = vmatprep.mubr.bf16.mxu0 %v7681_v31  ;;  %v10050_v54 = vld [vmem:[%s12418_s1 + $0x13b0] sm:$0xff]   ;;  %v10082_v31 = vld [vmem:[%s12418_s1 + $0x14b8] sm:$0xff]  }
 0x244   :  { %v8874_v48 = vpop.f32.mrf.mxu0  ;;  %v8895_v51 = vpop.f32.mrf.mxu1  ;;  %7215 = vmatmul.mubr.bf16.vlgmr.msra.gmra.mxu1 %v7678_v52  ;;  %9167 = vmatprep.subr.bf16.mxu0 %v10011_v62  ;;  %v10049_v52 = vld [vmem:[%s12418_s1 + $0x13f0] sm:$0xff]   ;;  %v10058_v62 = vld [vmem:[%s12418_s1 + $0x13a0] sm:$0xff]  }
 0x245   :  { %v8875_v50 = vadd.f32 %v8874_v48, %v8873_v43  ;;  %9188 = vmatpush3.bf16.msra.mxu1 %v10010_v59  ;;  %7294 = vmatprep.mubr.bf16.mxu1 %v7683_v38  ;;  %v10055_v59 = vld [vmem:[%s12418_s1 + $0x1360] sm:$0xff]   ;;  %v10085_v38 = vld [vmem:[%s12418_s1 + $0x14f0] sm:$0xff]  }
 0x246   :  { %v8876_v55 = vpop.f32.mrf.mxu0  ;;  %v8896_v58 = vpop.f32.mrf.mxu1  ;;  %9189 = vmatprep.subr.bf16.mxu1 %v10013_v2  ;;  %v10062_v2 = vld [vmem:[%s12418_s1 + $0x1398] sm:$0xff]  }
 0x247   :  { %v6697_v56 = vadd.f32 %v8875_v50, %v11934_v14  ;;  %v8897_v60 = vadd.f32 %v8896_v58, %v8895_v51  ;;  %9168 = vmatpush3.bf16.msra.mxu0 %v10012_v1  ;;  %v10024_v14 = vld [vmem:[%s12418_s1 + $0x1218] sm:$0xff]   ;;  %v10048_v51 = vld [vmem:[%s12418_s1 + $0x1330] sm:$0xff]   ;;  %v10051_v55 = vld [vmem:[%s12418_s1 + $0x1368] sm:$0xff]  }
 0x248   :  { %v8877_v61 = vpop.f32.mrf.mxu0  ;;  %v8898_v63 = vpop.f32.mrf.mxu1  ;;  %9169 = vmatprep.subr.bf16.mxu0 %v10015_v5  ;;  %v10054_v58 = vld [vmem:[%s12418_s1 + $0x13a8] sm:$0xff]   ;;  %v10061_v1 = vld [vmem:[%s12418_s1 + $0x13d8] sm:$0xff]   ;;  %v10065_v5 = vld [vmem:[%s12418_s1 + $0x13d0] sm:$0xff]  }
 0x249   :  { %v12039_v0 = vadd.f32 %v8897_v60, %v6697_v56  ;;  %9190 = vmatpush3.bf16.msra.mxu1 %v10014_v4  ;;  %v10052_v56 = vld [vmem:[%s12418_s1 + $0x1328] sm:$0xff]   ;;  %v10056_v60 = vld [vmem:[%s12418_s1 + $0x1320] sm:$0xff]   ;;  %v10059_v63 = vld [vmem:[%s12418_s1 + $0x1358] sm:$0xff]  }
 0x24a   :  { %v8899_v3 = vpop.f32.mrf.mxu1  ;;  %9191 = vmatprep.subr.bf16.mxu1 %v10017_v7  ;;  %v10057_v61 = vld [vmem:[%s12418_s1 + $0x13e0] sm:$0xff]   ;;  %v10064_v4 = vld [vmem:[%s12418_s1 + $0x1310] sm:$0xff]   ;;  %v10067_v7 = vld [vmem:[%s12418_s1 + $0x1348] sm:$0xff]  }
 0x24b   :  { %9170 = vmatpush3.bf16.msra.mxu0 %v10016_v6  ;;  %v10063_v3 = vld [vmem:[%s12418_s1 + $0x1350] sm:$0xff]  }
 0x24c   :  { %9171 = vmatprep.subr.bf16.mxu0 %v10019_v9  ;;  %v10066_v6 = vld [vmem:[%s12418_s1 + $0x1390] sm:$0xff]   ;;  %v10069_v9 = vld [vmem:[%s12418_s1 + $0x13c8] sm:$0xff]  }
 0x24d   :  { %9192 = vmatpush3.bf16.msra.mxu1 %v10018_v8  ;;  %v10068_v8 = vld [vmem:[%s12418_s1 + $0x1308] sm:$0xff]  }
 0x24e   :  { %9193 = vmatprep.subr.bf16.mxu1 %v10021_v11  ;;  %v10071_v11 = vld [vmem:[%s12418_s1 + $0x1340] sm:$0xff]  }
 0x24f   :  { %9172 = vmatpush3.bf16.msra.mxu0 %v10020_v10  ;;  %v10070_v10 = vld [vmem:[%s12418_s1 + $0x1388] sm:$0xff]  }
 0x250   :  { %9173 = vmatprep.subr.bf16.mxu0 %v10023_v13  ;;  %v10073_v13 = vld [vmem:[%s12418_s1 + $0x13c0] sm:$0xff]  }
 0x251   :  { %9194 = vmatpush3.bf16.msra.mxu1 %v10022_v12  ;;  %v10072_v12 = vld [vmem:[%s12418_s1 + $0x1300] sm:$0xff]  }
 0x252   :  { %9195 = vmatprep.subr.bf16.mxu1 %v10025_v15 }
 0x253   :  { %9174 = vmatpush3.bf16.msra.mxu0 %v10024_v14  ;;  %v61_v14 = vld [vmem:[%s12419_s0 + $0x130] sm:$0xff] }
 0x254   :  { %9175 = vmatprep.subr.bf16.mxu0 %v10027_v17  ;;  %v7685_v17 = vcombine.high %v61_v14, %v61_v14 }
 0x255   :  { %9196 = vmatpush3.bf16.msra.mxu1 %v10026_v16  ;;  %v7684_v16 = vcombine.low %v61_v14, %v61_v14 }
 0x256   :  { %9197 = vmatprep.subr.bf16.mxu1 %v10029_v19  ;;  %v10077_v19 = vld [vmem:[%s12418_s1 + $0x1478] sm:$0xff]  }
 0x257   :  { %9176 = vmatpush3.bf16.msra.mxu0 %v10028_v18  ;;  %v10076_v18 = vld [vmem:[%s12418_s1 + $0x1380] sm:$0xff]  }
 0x258   :  { %9177 = vmatprep.subr.bf16.mxu0 %v10031_v21 }
 0x259   :  { %9198 = vmatpush3.bf16.msra.mxu1 %v10030_v20  ;;  %v62_v20 = vld [vmem:[%s12419_s0 + $0x138] sm:$0xff] }
 0x25a   :  { %9199 = vmatprep.subr.bf16.mxu1 %v10033_v23  ;;  %v7686_v23 = vcombine.low %v62_v20, %v62_v20 }
 0x25b   :  { %9178 = vmatpush3.bf16.msra.mxu0 %v10032_v22 }
 0x25c   :  { %9179 = vmatprep.subr.bf16.mxu0 %v10035_v25  ;;  %v10080_v25 = vld [vmem:[%s12418_s1 + $0x1438] sm:$0xff]  }
 0x25d   :  { %9200 = vmatpush3.bf16.msra.mxu1 %v10034_v24  ;;  %v7687_v24 = vcombine.high %v62_v20, %v62_v20 }
 0x25e   :  { %9201 = vmatprep.subr.bf16.mxu1 %v10037_v27  ;;  %v10081_v27 = vld [vmem:[%s12418_s1 + $0x14f8] sm:$0xff]  }
 0x25f   :  { %9180 = vmatpush3.bf16.msra.mxu0 %v10036_v26 }
 0x260   :  { %9209 = vmatprep.subr.bf16.mxu0 %v10041_v33  ;;  %v10083_v33 = vld [vmem:[%s12418_s1 + $0x1470] sm:$0xff]  }
 0x261   :  { %9202 = vmatpush3.bf16.msra.mxu1 %v10040_v32 }
 0x262   :  { %v8917_v29 = vpop.f32.mrf.mxu0  ;;  %7255 = vmatmul.mubr.bf16.vlgmr.msra.gmra.mxu0 %v7680_v30  ;;  %9231 = vmatprep.subr.bf16.mxu1 %v10045_v41  ;;  %v10087_v41 = vld [vmem:[%s12418_s1 + $0x1468] sm:$0xff]  }
 0x263   :  { %9210 = vmatpush3.bf16.msra.mxu0 %v10044_v39  ;;  %7334 = vmatprep.mubr.bf16.mxu0 %v7685_v17 }
 0x264   :  { %v8918_v35 = vpop.f32.mrf.mxu0  ;;  %v8939_v36 = vpop.f32.mrf.mxu1  ;;  %7295 = vmatmul.mubr.bf16.vlgmr.msra.gmra.mxu1 %v7682_v37  ;;  %9211 = vmatprep.subr.bf16.mxu0 %v10047_v47  ;;  %v10084_v37 = vld [vmem:[%s12418_s1 + $0x1430] sm:$0xff]   ;;  %v10093_v47 = vld [vmem:[%s12418_s1 + $0x14e0] sm:$0xff]  }
 0x265   :  { %v8919_v40 = vadd.f32 %v8918_v35, %v8917_v29  ;;  %9232 = vmatpush3.bf16.msra.mxu1 %v10046_v45  ;;  %7374 = vmatprep.mubr.bf16.mxu1 %v7687_v24  ;;  %v10091_v45 = vld [vmem:[%s12418_s1 + $0x1460] sm:$0xff]   ;;  %v10119_v24 = vld [vmem:[%s12419_s0 + $0x150] ss:$0 sps:$4 sm:$0xff]  }
 0x266   :  { %v8920_v42 = vpop.f32.mrf.mxu0  ;;  %v8940_v43 = vpop.f32.mrf.mxu1  ;;  %9233 = vmatprep.subr.bf16.mxu1 %v10049_v52  ;;  %v10098_v52 = vld [vmem:[%s12418_s1 + $0x1498] sm:$0xff]  }
 0x267   :  { %v6777_v44 = vadd.f32 %v8919_v40, %v12039_v0  ;;  %v8941_v46 = vadd.f32 %v8940_v43, %v8939_v36  ;;  %9212 = vmatpush3.bf16.msra.mxu0 %v10048_v51  ;;  %v10060_v0 = vld [vmem:[%s12418_s1 + $0x1318] sm:$0xff]   ;;  %v10086_v40 = vld [vmem:[%s12418_s1 + $0x14b0] sm:$0xff]   ;;  %v10088_v42 = vld [vmem:[%s12418_s1 + $0x1428] sm:$0xff]  }
 0x268   :  { %v8921_v48 = vpop.f32.mrf.mxu0  ;;  %v8942_v49 = vpop.f32.mrf.mxu1  ;;  %9213 = vmatprep.subr.bf16.mxu0 %v10051_v55  ;;  %v10089_v43 = vld [vmem:[%s12418_s1 + $0x14e8] sm:$0xff]   ;;  %v10097_v51 = vld [vmem:[%s12418_s1 + $0x14d8] sm:$0xff]   ;;  %v10101_v55 = vld [vmem:[%s12418_s1 + $0x14d0] sm:$0xff]  }
 0x269   :  { %v12144_v50 = vadd.f32 %v8941_v46, %v6777_v44  ;;  %9234 = vmatpush3.bf16.msra.mxu1 %v10050_v54  ;;  %v10090_v44 = vld [vmem:[%s12418_s1 + $0x14a8] sm:$0xff]   ;;  %v10092_v46 = vld [vmem:[%s12418_s1 + $0x1420] sm:$0xff]   ;;  %v10095_v49 = vld [vmem:[%s12418_s1 + $0x1458] sm:$0xff]  }
 0x26a   :  { %v8943_v53 = vpop.f32.mrf.mxu1  ;;  %9235 = vmatprep.subr.bf16.mxu1 %v10053_v57  ;;  %v10094_v48 = vld [vmem:[%s12418_s1 + $0x14a0] sm:$0xff]   ;;  %v10100_v54 = vld [vmem:[%s12418_s1 + $0x1410] sm:$0xff]   ;;  %v10103_v57 = vld [vmem:[%s12418_s1 + $0x1448] sm:$0xff]  }
 0x26b   :  { %9214 = vmatpush3.bf16.msra.mxu0 %v10052_v56  ;;  %v10099_v53 = vld [vmem:[%s12418_s1 + $0x1450] sm:$0xff]  }
 0x26c   :  { %9215 = vmatprep.subr.bf16.mxu0 %v10055_v59  ;;  %v10102_v56 = vld [vmem:[%s12418_s1 + $0x1490] sm:$0xff]   ;;  %v10105_v59 = vld [vmem:[%s12418_s1 + $0x14c8] sm:$0xff]  }
 0x26d   :  { %9236 = vmatpush3.bf16.msra.mxu1 %v10054_v58  ;;  %v10104_v58 = vld [vmem:[%s12418_s1 + $0x1408] sm:$0xff]  }
 0x26e   :  { %9237 = vmatprep.subr.bf16.mxu1 %v10057_v61  ;;  %v10107_v61 = vld [vmem:[%s12418_s1 + $0x1440] sm:$0xff]  }
 0x26f   :  { %9216 = vmatpush3.bf16.msra.mxu0 %v10056_v60  ;;  %v10106_v60 = vld [vmem:[%s12418_s1 + $0x1488] sm:$0xff]  }
 0x270   :  { %9217 = vmatprep.subr.bf16.mxu0 %v10059_v63  ;;  %v10109_v63 = vld [vmem:[%s12418_s1 + $0x14c0] sm:$0xff]  }
 0x271   :  { %9238 = vmatpush3.bf16.msra.mxu1 %v10058_v62  ;;  %v10108_v62 = vld [vmem:[%s12418_s1 + $0x1400] sm:$0xff]  }
 0x272   :  { %9239 = vmatprep.subr.bf16.mxu1 %v10061_v1 }
 0x273   :  { %9218 = vmatpush3.bf16.msra.mxu0 %v10060_v0  ;;  %v63_v0 = vld [vmem:[%s12419_s0 + $0x140] sm:$0xff] }
 0x274   :  { %9219 = vmatprep.subr.bf16.mxu0 %v10063_v3  ;;  %v7689_v3 = vcombine.high %v63_v0, %v63_v0 }
 0x275   :  { %9240 = vmatpush3.bf16.msra.mxu1 %v10062_v2  ;;  %v7688_v2 = vcombine.low %v63_v0, %v63_v0 }
 0x276   :  { %9241 = vmatprep.subr.bf16.mxu1 %v10065_v5  ;;  %v10120_v5 = vmov 0.0  }
 0x277   :  { %9220 = vmatpush3.bf16.msra.mxu0 %v10064_v4  ;;  %v10112_v4 = vld [vmem:[%s12418_s1 + $0x1480] sm:$0xff]  }
 0x278   :  { %9221 = vmatprep.subr.bf16.mxu0 %v10067_v7 }
 0x279   :  { %9242 = vmatpush3.bf16.msra.mxu1 %v10066_v6  ;;  %v64_v6 = vld [vmem:[%s12419_s0 + $0x148] sm:$0xff] }
 0x27a   :  { %9243 = vmatprep.subr.bf16.mxu1 %v10069_v9  ;;  %v7691_v9 = vcombine.high %v64_v6, %v64_v6 }
 0x27b   :  { %9222 = vmatpush3.bf16.msra.mxu0 %v10068_v8  ;;  %v7690_v8 = vcombine.low %v64_v6, %v64_v6 }
 0x27c   :  { %9223 = vmatprep.subr.bf16.mxu0 %v10071_v11 }
 0x27d   :  { %9244 = vmatpush3.bf16.msra.mxu1 %v10070_v10  ;;  %v10115_v10 = vld [vmem:[%s12418_s1 + $0x1518] sm:$0xff]  }
 0x27e   :  { %9245 = vmatprep.subr.bf16.mxu1 %v10073_v13 }
 0x27f   :  { %9224 = vmatpush3.bf16.msra.mxu0 %v10072_v12 }
 0x280   :  { %9253 = vmatprep.subr.bf16.mxu0 %v10077_v19 }
 0x281   :  { %9246 = vmatpush3.bf16.msra.mxu1 %v10076_v18 }
 0x282   :  { %v8961_v15 = vpop.f32.mrf.mxu0  ;;  %7335 = vmatmul.mubr.bf16.vlgmr.msra.gmra.mxu0 %v7684_v16  ;;  %9275 = vmatprep.subr.bf16.mxu1 %v10081_v27  ;;  %v10116_v16 = vld [vmem:[%s12418_s1 + $0x1510] sm:$0xff]  }
 0x283   :  { %9254 = vmatpush3.bf16.msra.mxu0 %v10080_v25  ;;  %7414 = vmatprep.mubr.bf16.mxu0 %v7689_v3 }
 0x284   :  { %v8962_v21 = vpop.f32.mrf.mxu0  ;;  %v8983_v22 = vpop.f32.mrf.mxu1  ;;  %7375 = vmatmul.mubr.bf16.vlgmr.msra.gmra.mxu1 %v7686_v23  ;;  %9255 = vmatprep.subr.bf16.mxu0 %v10083_v33  ;;  %v10118_v23 = vld [vmem:[%s12418_s1 + $0x1500] sm:$0xff]  }
 0x285   :  { %v8963_v26 = vadd.f32 %v8962_v21, %v8961_v15  ;;  %9276 = vmatpush3.bf16.msra.mxu1 %v10082_v31  ;;  %7454 = vmatprep.mubr.bf16.mxu1 %v7691_v9  ;;  %v10117_v21 = vld [vmem:[%s12418_s1 + $0x1508] sm:$0xff]  }
 0x286   :  { %v8964_v28 = vpop.f32.mrf.mxu0  ;;  %v8984_v29 = vpop.f32.mrf.mxu1  ;;  %9277 = vmatprep.subr.bf16.mxu1 %v10085_v38  ;;  %v7514_v38 = vld [vmem:[%s12421_s3 + $0x58] sm:$0xff] }
 0x287   :  { %v6857_v30 = vadd.f32 %v8963_v26, %v12144_v50  ;;  %v8985_v32 = vadd.f32 %v8984_v29, %v8983_v22  ;;  %9256 = vmatpush3.bf16.msra.mxu0 %v10084_v37  ;;  %v10096_v50 = vld [vmem:[%s12418_s1 + $0x1418] sm:$0xff]   ;;  %v7515_v37 = vld [vmem:[%s12421_s3 + $0x60] sm:$0xf] }
 0x288   :  { %v8965_v34 = vpop.f32.mrf.mxu0  ;;  %v8986_v35 = vpop.f32.mrf.mxu1  ;;  %9257 = vmatprep.subr.bf16.mxu0 %v10087_v41 }
 0x289   :  { %v12249_v36 = vadd.f32 %v8985_v32, %v6857_v30  ;;  %9278 = vmatpush3.bf16.msra.mxu1 %v10086_v40  ;;  %v7513_v40 = vld [vmem:[%s12421_s3 + $0x50] sm:$0xff] }
 0x28a   :  { %v8987_v39 = vpop.f32.mrf.mxu1  ;;  %9279 = vmatprep.subr.bf16.mxu1 %v10089_v43 }
 0x28b   :  { %9258 = vmatpush3.bf16.msra.mxu0 %v10088_v42 }
 0x28c   :  { %9259 = vmatprep.subr.bf16.mxu0 %v10091_v45 }
 0x28d   :  { %9280 = vmatpush3.bf16.msra.mxu1 %v10090_v44  ;;  %v7512_v44 = vld [vmem:[%s12421_s3 + $0x48] sm:$0xff] }
 0x28e   :  { %9281 = vmatprep.subr.bf16.mxu1 %v10093_v47 }
 0x28f   :  { %9260 = vmatpush3.bf16.msra.mxu0 %v10092_v46 }
 0x290   :  { %9261 = vmatprep.subr.bf16.mxu0 %v10095_v49  ;;  %v7511_v49 = vld [vmem:[%s12421_s3 + $0x40] sm:$0xff] }
 0x291   :  { %9282 = vmatpush3.bf16.msra.mxu1 %v10094_v48 }
 0x292   :  { %9283 = vmatprep.subr.bf16.mxu1 %v10097_v51 }
 0x293   :  { %9262 = vmatpush3.bf16.msra.mxu0 %v10096_v50 }
 0x294   :  { %9263 = vmatprep.subr.bf16.mxu0 %v10099_v53  ;;  %v7510_v53 = vld [vmem:[%s12421_s3 + $0x38] sm:$0xff] }
 0x295   :  { %9284 = vmatpush3.bf16.msra.mxu1 %v10098_v52 }
 0x296   :  { %9285 = vmatprep.subr.bf16.mxu1 %v10101_v55  ;;  %v7509_v55 = vld [vmem:[%s12421_s3 + $0x30] sm:$0xff] }
 0x297   :  { %9264 = vmatpush3.bf16.msra.mxu0 %v10100_v54 }
 0x298   :  { %9265 = vmatprep.subr.bf16.mxu0 %v10103_v57  ;;  %v7507_v57 = vld [vmem:[%s12421_s3 + $0x20] sm:$0xff] }
 0x299   :  { %9286 = vmatpush3.bf16.msra.mxu1 %v10102_v56  ;;  %v7508_v56 = vld [vmem:[%s12421_s3 + $0x28] sm:$0xff] }
 0x29a   :  { %9287 = vmatprep.subr.bf16.mxu1 %v10105_v59  ;;  %v7505_v59 = vld [vmem:[%s12421_s3 + $0x10] sm:$0xff] }
 0x29b   :  { %9266 = vmatpush3.bf16.msra.mxu0 %v10104_v58  ;;  %v7506_v58 = vld [vmem:[%s12421_s3 + $0x18] sm:$0xff] }
 0x29c   :  { %9267 = vmatprep.subr.bf16.mxu0 %v10107_v61  ;;  %v7503_v61 = vld [vmem:[%s12421_s3] sm:$0xff] }
 0x29d   :  { %9288 = vmatpush3.bf16.msra.mxu1 %v10106_v60  ;;  %v7504_v60 = vld [vmem:[%s12421_s3 + $0x8] sm:$0xff] }
 0x29e   :  { %9289 = vmatprep.subr.bf16.mxu1 %v10109_v63 }
 0x29f   :  { %9268 = vmatpush3.bf16.msra.mxu0 %v10108_v62  ;;  %v10_v62 = vstv %s12422_s4 }
 0x2a0   :  { %9316 = vmatprep.subr.bf16.mxu0 %v10120_v5  ;;  %11 = vst [vmem:[#allocation2] sm:$0x1] %v10_v62 }
 0x2a1   :  { %9290 = vmatpush3.bf16.msra.mxu1 %v10112_v4 }
 0x2a2   :  { %v9005_v1 = vpop.f32.mrf.mxu0  ;;  %7415 = vmatmul.mubr.bf16.vlgmr.msra.gmra.mxu0 %v7688_v2  ;;  %9328 = vmatprep.subr.mxu1 %v10120_v5 }
 0x2a3   :  { %9317 = vmatpush3.bf16.msra.mxu0 %v10115_v10  ;;  %9324 = vmatprep.mubr.msk.bf16.mxu0 %vm10121_vm0, %v10120_v5 }
 0x2a4   :  { %v9006_v7 = vpop.f32.mrf.mxu0  ;;  %v9027_v12 = vpop.f32.mrf.mxu1  ;;  %7455 = vmatmul.mubr.bf16.vlgmr.msra.gmra.mxu1 %v7690_v8  ;;  %9318 = vmatprep.subr.bf16.mxu0 %v10120_v5 }
 0x2a5   :  { %v9007_v11 = vadd.f32 %v9006_v7, %v9005_v1  ;;  %9354 = vmatprep.mubr.msk.f32.mxu1 %vm10121_vm0, %v10120_v5  ;;  %9329 = vmatpush3.msk.msra.mxu1 %vm7527_vm2, %v7515_v37 }
 0x2a6   :  { %v9008_v13 = vpop.f32.mrf.mxu0  ;;  %v9028_v15 = vpop.f32.mrf.mxu1  ;;  %9330 = vmatprep.subr.mxu1 %v10120_v5 }
 0x2a7   :  { %v6937_v14 = vadd.f32 %v9007_v11, %v12249_v36  ;;  %v9029_v17 = vadd.f32 %v9028_v15, %v9027_v12  ;;  %9319 = vmatpush3.bf16.msra.mxu0 %v10116_v16  ;;  %9331 = vmatpush3.msra.mxu1 %v7514_v38 }
 0x2a8   :  { %v9009_v18 = vpop.f32.mrf.mxu0  ;;  %v9030_v19 = vpop.f32.mrf.mxu1  ;;  %9320 = vmatprep.subr.bf16.mxu0 %v10120_v5  ;;  %9332 = vmatprep.subr.mxu1 %v10120_v5 }
 0x2a9   :  { %v6977_v20 = vadd.f32 %v9029_v17, %v6937_v14  ;;  %9333 = vmatpush3.msra.mxu1 %v7513_v40 }
 0x2aa   :  { %v9031_v22 = vpop.f32.mrf.mxu1  ;;  %9334 = vmatprep.subr.mxu1 %v10120_v5 }
 0x2ab   :  { %9321 = vmatpush3.bf16.msra.mxu0 %v10117_v21  ;;  %9335 = vmatpush3.msra.mxu1 %v7512_v44 }
 0x2ac   :  { %9322 = vmatprep.subr.bf16.mxu0 %v10120_v5  ;;  %9336 = vmatprep.subr.mxu1 %v10120_v5 }
 0x2ad   :  { %9337 = vmatpush3.msra.mxu1 %v7511_v49 }
 0x2ae   :  { %9338 = vmatprep.subr.mxu1 %v10120_v5 }
 0x2af   :  { %9323 = vmatpush3.bf16.msra.mxu0 %v10118_v23  ;;  %9339 = vmatpush3.msra.mxu1 %v7510_v53  ;;  %v8370_v53 = vld [vmem:[#allocation2] ss:$0 sm:$0xff] }
 0x2b0   :  { %9340 = vmatprep.subr.mxu1 %v10120_v5 }
 0x2b1   :  { %9341 = vmatpush3.msra.mxu1 %v7509_v55 }
 0x2b2   :  { %9325 = vmatmul.mubr.msk.bf16.vlgmr.msra.gmra.mxu0 %vm5778_vm1, %v10119_v24  ;;  %9342 = vmatprep.subr.mxu1 %v10120_v5 }
 0x2b3   :  { %9343 = vmatpush3.msra.mxu1 %v7508_v56 }
 0x2b4   :  { %9344 = vmatprep.subr.mxu1 %v10120_v5 }
 0x2b5   :  { %9345 = vmatpush3.msra.mxu1 %v7507_v57 }
 0x2b6   :  { %9346 = vmatprep.subr.mxu1 %v10120_v5 }
 0x2b7   :  { %9347 = vmatpush3.msra.mxu1 %v7506_v58 }
 0x2b8   :  { %9348 = vmatprep.subr.mxu1 %v10120_v5 }
 0x2b9   :  { %9349 = vmatpush3.msra.mxu1 %v7505_v59 }
 0x2ba   :  { %9350 = vmatprep.subr.mxu1 %v10120_v5 }
 0x2bb   :  { %9351 = vmatpush3.msra.mxu1 %v7504_v60 }
 0x2bc   :  { %9352 = vmatprep.subr.mxu1 %v10120_v5 }
 0x2bd   :  { %9353 = vmatpush3.msra.mxu1 %v7503_v61 }
 0x2c2   :  { %v9049_v25 = vpop.f32.mrf.mxu0 }
 0x2c4   :  { %v9050_v26 = vpop.f32.mrf.mxu0  ;;  %v9071_v27 = vpop.f32.mrf.mxu1 }
 0x2c5   :  { %v9051_v28 = vadd.f32 %v9050_v26, %v9049_v25 }
 0x2c6   :  { %v9052_v29 = vpop.f32.mrf.mxu0  ;;  %v9072_v30 = vpop.f32.mrf.mxu1 }
 0x2c7   :  { %v7017_v31 = vadd.f32 %v9051_v28, %v6977_v20  ;;  %v9073_v32 = vadd.f32 %v9072_v30, %v9071_v27 }
 0x2c8   :  { %v9053_v33 = vpop.f32.mrf.mxu0  ;;  %v9074_v34 = vpop.f32.mrf.mxu1 }
 0x2c9   :  { %v7057_v35 = vadd.f32 %v9073_v32, %v7017_v31 }
 0x2ca   :  { %v9075_v36 = vpop.f32.mrf.mxu1 }
 0x2e2   :  { %v9093_v39 = vpop.f32.mrf.mxu0 }
 0x2e4   :  { %v9094_v41 = vpop.f32.mrf.mxu0  ;;  %v9115_v42 = vpop.f32.mrf.mxu1 }
 0x2e5   :  { %v9095_v43 = vadd.f32 %v9094_v41, %v9093_v39 }
 0x2e6   :  { %v9096_v45 = vpop.f32.mrf.mxu0  ;;  %v9116_v46 = vpop.f32.mrf.mxu1 }
 0x2e7   :  { %v7097_v47 = vadd.f32 %v9095_v43, %v7057_v35  ;;  %v9117_v48 = vadd.f32 %v9116_v46, %v9115_v42 }
 0x2e8   :  { %v9097_v50 = vpop.f32.mrf.mxu0  ;;  %v9118_v51 = vpop.f32.mrf.mxu1 }
 0x2e9   :  { %v7137_v52 = vadd.f32 %v9117_v48, %v7097_v47 }
 0x2ea   :  { %v9119_v54 = vpop.f32.mrf.mxu1 }
 0x302   :  { %v9137_v63 = vpop.f32.mrf.mxu0 }
 0x304   :  { %v9138_v0 = vpop.f32.mrf.mxu0  ;;  %v9159_v2 = vpop.f32.mrf.mxu1 }
 0x305   :  { %v9139_v1 = vadd.f32 %v9138_v0, %v9137_v63 }
 0x306   :  { %v9140_v3 = vpop.f32.mrf.mxu0  ;;  %v9160_v6 = vpop.f32.mrf.mxu1 }
 0x307   :  { %v7177_v4 = vadd.f32 %v9139_v1, %v7137_v52  ;;  %v9161_v7 = vadd.f32 %v9160_v6, %v9159_v2 }
 0x308   :  { %v9141_v8 = vpop.f32.mrf.mxu0  ;;  %v9162_v5 = vpop.f32.mrf.mxu1 }
 0x309   :  { %v7217_v9 = vadd.f32 %v9161_v7, %v7177_v4 }
 0x30a   :  { %v9163_v10 = vpop.f32.mrf.mxu1 }
 0x322   :  { %v9181_v11 = vpop.f32.mrf.mxu0 }
 0x324   :  { %v9182_v12 = vpop.f32.mrf.mxu0  ;;  %v9203_v13 = vpop.f32.mrf.mxu1 }
 0x325   :  { %v9183_v14 = vadd.f32 %v9182_v12, %v9181_v11 }
 0x326   :  { %v9184_v15 = vpop.f32.mrf.mxu0  ;;  %v9204_v16 = vpop.f32.mrf.mxu1 }
 0x327   :  { %v7257_v17 = vadd.f32 %v9183_v14, %v7217_v9  ;;  %v9205_v18 = vadd.f32 %v9204_v16, %v9203_v13 }
 0x328   :  { %v9185_v19 = vpop.f32.mrf.mxu0  ;;  %v9206_v20 = vpop.f32.mrf.mxu1 }
 0x329   :  { %v7297_v21 = vadd.f32 %v9205_v18, %v7257_v17 }
 0x32a   :  { %v9207_v22 = vpop.f32.mrf.mxu1 }
 0x342   :  { %v9225_v23 = vpop.f32.mrf.mxu0 }
 0x344   :  { %v9226_v24 = vpop.f32.mrf.mxu0  ;;  %v9247_v25 = vpop.f32.mrf.mxu1 }
 0x345   :  { %v9227_v32 = vadd.f32 %v9226_v24, %v9225_v23 }
 0x346   :  { %v9228_v26 = vpop.f32.mrf.mxu0  ;;  %v9248_v27 = vpop.f32.mrf.mxu1 }
 0x347   :  { %v7337_v37 = vadd.f32 %v9227_v32, %v7297_v21  ;;  %v9249_v38 = vadd.f32 %v9248_v27, %v9247_v25 }
 0x348   :  { %v9229_v28 = vpop.f32.mrf.mxu0  ;;  %v9250_v29 = vpop.f32.mrf.mxu1 }
 0x349   :  { %v7377_v43 = vadd.f32 %v9249_v38, %v7337_v37 }
 0x34a   :  { %v9251_v30 = vpop.f32.mrf.mxu1 }
 0x362   :  { %v9269_v31 = vpop.f32.mrf.mxu0 }
 0x364   :  { %v9270_v33 = vpop.f32.mrf.mxu0  ;;  %v9291_v34 = vpop.f32.mrf.mxu1 }
 0x365   :  { %v9271_v41 = vadd.f32 %v9270_v33, %v9269_v31 }
 0x366   :  { %v9272_v35 = vpop.f32.mrf.mxu0  ;;  %v9292_v36 = vpop.f32.mrf.mxu1 }
 0x367   :  { %v7417_v44 = vadd.f32 %v9271_v41, %v7377_v43  ;;  %v9293_v45 = vadd.f32 %v9292_v36, %v9291_v34 }
 0x368   :  { %v9273_v39 = vpop.f32.mrf.mxu0  ;;  %v9294_v40 = vpop.f32.mrf.mxu1 }
 0x369   :  { %v7457_v46 = vadd.f32 %v9293_v45, %v7417_v44 }
 0x36a   :  { %v9295_v42 = vpop.f32.mrf.mxu1 }
 0x372   :  { %v7496_v47 = vpop.f32.mrf.mxu0 }
 0x373   :  { %v7497_v48 = vadd.f32 %v7496_v47, %v7457_v46 }
 0x374   :  { %v9326_v49 = vpop.f32.mrf.mxu0 }
 0x375   :  { %v7502_v50 = vmax.f32 %v7497_v48, 0.0 }
 0x376   :  { %v7499_v51 = vpop.f32.mrf.mxu0 }
 0x377   :  { %9355 = vmatmul.mubr.msk.f32.vlgmr.msra.gmra.mxu1 %vm7523_vm3, %v7502_v50 }
 0x378   :  { %v9327_v52 = vpop.f32.mrf.mxu0 }
 0x437   :  { %v7597_v54 = vpop.f32.mrf.mxu1 }
 0x438   :  { %v7598_v55 = vadd.f32 %v8370_v53, %v7597_v54 }
 0x439   :  { %v9356_v56 = vpop.f32.mrf.mxu1 }
 0x43a   :  { %7602 = vst.msk [vmem:[%s12423_s5] sm:$0xff] %vm7601_vm4, %v7598_v55 }

</bundles_post_ra>
